<compile_context>
chip_gen: v6e
topology: v6e:2x2x1
jax: 0.10.0
libtpu: 0.0.40
codegen_flags: <defaults>
</compile_context>

<pallas_src>
import functools

import jax
import jax.numpy as jnp
from jax.experimental import pallas as pl
from jax.experimental.pallas import tpu as pltpu


# ----------------------------------------------------------------------------
# Pallas kernels
# ----------------------------------------------------------------------------
def _matmul_bias_act_kernel(x_ref, w_ref, b_ref, o_ref, *, apply_relu):
    """One M-tile of (M,K)@(K,N) + bias (+ReLU). bf16 operands, f32 accumulate."""
    acc = jnp.dot(x_ref[...], w_ref[...], preferred_element_type=jnp.float32)
    acc = acc + b_ref[...]
    if apply_relu:
        acc = jnp.maximum(acc, 0.0)
    o_ref[...] = acc.astype(o_ref.dtype)


def _pick_tm(m):
    for t in (512, 256, 128):
        if m % t == 0:
            return t
    return m  # small M: single full block (M is always a multiple of 8 or tiny)


def matmul_bias_act(x, w, b_row, *, apply_relu, out_dtype):
    m, k = x.shape
    k2, n = w.shape
    assert k == k2, (k, k2)
    assert n % 128 == 0, n  # lane-dense output (unmasked stores)
    tm = _pick_tm(m)
    grid_m = m // tm
    kernel = functools.partial(_matmul_bias_act_kernel, apply_relu=apply_relu)
    return pl.pallas_call(
        kernel,
        out_shape=jax.ShapeDtypeStruct((m, n), out_dtype),
        grid=(grid_m,),
        in_specs=[
            pl.BlockSpec((tm, k), lambda i: (i, 0)),
            pl.BlockSpec((k, n), lambda i: (0, 0)),   # weight resident across M tiles
            pl.BlockSpec((1, n), lambda i: (0, 0)),
        ],
        out_specs=pl.BlockSpec((tm, n), lambda i: (i, 0)),
        compiler_params=pltpu.CompilerParams(
            dimension_semantics=("parallel",),
            vmem_limit_bytes=64 * 1024 * 1024,
        ),
    )(x, w, b_row)


def _fc_stack_kernel(x_ref, w1_ref, b1_ref, w2_ref, b2_ref, w3_ref, b3_ref, o_ref):
    """Fused Linear+ReLU -> Linear+ReLU -> Linear (bf16 matmuls, f32 epilogues)."""
    h = jnp.dot(x_ref[...], w1_ref[...], preferred_element_type=jnp.float32)
    h = jnp.maximum(h + b1_ref[...], 0.0)
    # TODO(synk): Dropout(p=0.5) implemented as eval-mode identity (deterministic forward).
    h = jnp.dot(h.astype(jnp.bfloat16), w2_ref[...], preferred_element_type=jnp.float32)
    h = jnp.maximum(h + b2_ref[...], 0.0)
    h = jnp.dot(h.astype(jnp.bfloat16), w3_ref[...], preferred_element_type=jnp.float32)
    o_ref[...] = (h + b3_ref[...]).astype(o_ref.dtype)


def fc_stack(x, w1, b1, w2, b2, w3, b3):
    m = x.shape[0]
    n_out = w3.shape[1]
    full = lambda s: pl.BlockSpec(s, lambda i: (0, 0))
    return pl.pallas_call(
        _fc_stack_kernel,
        out_shape=jax.ShapeDtypeStruct((m, n_out), jnp.float32),
        grid=(1,),
        in_specs=[full(x.shape), full(w1.shape), full(b1.shape),
                  full(w2.shape), full(b2.shape), full(w3.shape), full(b3.shape)],
        out_specs=full((m, n_out)),
    )(x, w1, b1, w2, b2, w3, b3)


def _maxpool_kernel(x_ref, o_ref, *, c, wo):
    """2x2/2 max pool on a (N*Ho, 2*W*C) view: single read, lane-aligned slices."""
    x = x_ref[...]
    half = x.shape[-1] // 2                         # = W*C, a multiple of 128
    hmax = jnp.maximum(x[:, :half], x[:, half:])    # reduce the two pooled rows
    parts = []
    for k in range(wo):                             # reduce the two pooled cols
        a = hmax[:, (2 * k) * c:(2 * k + 1) * c]
        b = hmax[:, (2 * k + 1) * c:(2 * k + 2) * c]
        parts.append(jnp.maximum(a, b))
    o_ref[...] = parts[0] if wo == 1 else jnp.concatenate(parts, axis=-1)


def maxpool_2x2(x_nhwc):
    """MaxPool2d(kernel_size=2, stride=2), channels-last, single-input kernel."""
    n, h, w, c = x_nhwc.shape
    assert h % 2 == 0 and w % 2 == 0, (h, w)
    assert c % 128 == 0, c
    ho, wo = h // 2, w // 2
    rows = n * ho
    x2 = x_nhwc.reshape(rows, 2 * w * c)            # free row-major reshape
    out = pl.pallas_call(
        functools.partial(_maxpool_kernel, c=c, wo=wo),
        out_shape=jax.ShapeDtypeStruct((rows, wo * c), x_nhwc.dtype),
        grid=(1,),
        in_specs=[pl.BlockSpec((rows, 2 * w * c), lambda i: (0, 0))],
        out_specs=pl.BlockSpec((rows, wo * c), lambda i: (0, 0)),
    )(x2)
    return out.reshape(n, ho, wo, c)


# ----------------------------------------------------------------------------
# Convolution = im2col (glue) + Pallas fused matmul/bias/ReLU
# ----------------------------------------------------------------------------
def _im2col(x_nhwc, kh, kw, stride, pad):
    # TODO(synk): patch extraction remains XLA slicing glue; fully fusing it into
    # the conv kernel would need manual-DMA index maps (pl.ANY + make_async_copy).
    x = jnp.pad(x_nhwc, ((0, 0), (pad, pad), (pad, pad), (0, 0)))
    n, h, w, c = x.shape
    out_h = (h - kh) // stride + 1
    out_w = (w - kw) // stride + 1
    cols = []
    for i in range(kh):
        for j in range(kw):
            cols.append(x[:, i:i + stride * out_h:stride, j:j + stride * out_w:stride, :])
    patches = jnp.stack(cols, axis=-2)              # (n, out_h, out_w, kh*kw, c)
    return patches.reshape(n * out_h * out_w, kh * kw * c), (n, out_h, out_w)


def conv2d(x_nhwc, w_mat, b_row, *, ksize, stride, pad, relu=True):
    patches, (n, ho, wo) = _im2col(x_nhwc, ksize, ksize, stride, pad)
    k_pad, out_c = w_mat.shape
    if patches.shape[1] < k_pad:                    # lane-pad K (e.g. conv1 363->384)
        patches = jnp.pad(patches, ((0, 0), (0, k_pad - patches.shape[1])))
    out = matmul_bias_act(patches, w_mat, b_row, apply_relu=relu, out_dtype=jnp.bfloat16)
    return out.reshape(n, ho, wo, out_c)


# ----------------------------------------------------------------------------
# Parameter init (PyTorch-layout) and one-time prep (fold / pad / transpose / cast)
# ----------------------------------------------------------------------------
def init_params(key, num_classes=10):
    ks = jax.random.split(key, 16)
    scale = 0.05

    def conv_p(k1, k2, out_c, in_c, ksz):
        return (scale * jax.random.normal(k1, (out_c, in_c, ksz, ksz), jnp.float32),
                scale * jax.random.normal(k2, (out_c,), jnp.float32))

    def fc_p(k1, k2, in_f, out_f):
        return (scale * jax.random.normal(k1, (in_f, out_f), jnp.float32),
                scale * jax.random.normal(k2, (out_f,), jnp.float32))

    return {
        "conv1": conv_p(ks[0], ks[1], 96, 3, 11),
        "conv2": conv_p(ks[2], ks[3], 256, 96, 5),
        "conv3a": conv_p(ks[4], ks[5], 384, 256, 3),
        "conv3b": conv_p(ks[6], ks[7], 384, 384, 3),
        "conv3c": conv_p(ks[8], ks[9], 256, 384, 3),
        "fc1": fc_p(ks[10], ks[11], 256, 512),
        "fc2": fc_p(ks[12], ks[13], 512, 512),
        "fc3": fc_p(ks[14], ks[15], 512, num_classes),
        # cifar10/100 normalization constants from the module
        "mean": jnp.array([0.5, 0.5, 0.5], jnp.float32),
        "std": jnp.array([0.2, 0.2, 0.2], jnp.float32),
    }


def prepare_params(raw):
    """One-time weight prep: fold 1/std into conv1, transpose to (K, N) matmul
    layout, zero-pad lane dims to multiples of 128, cast weights to bf16."""

    def conv_mat(w_oihw, b, *, in_pad=None, k_pad=None, out_pad=None, inv_std=None):
        o, i, kh, kw = w_oihw.shape
        w = w_oihw
        if inv_std is not None:
            w = w * inv_std.reshape(1, i, 1, 1)
        if in_pad is not None and in_pad > i:
            w = jnp.pad(w, ((0, 0), (0, in_pad - i), (0, 0), (0, 0)))
            i = in_pad
        # (O, I, kh, kw) -> (kh, kw, I, O) -> (kh*kw*I, O)  (matches im2col layout)
        wm = jnp.transpose(w, (2, 3, 1, 0)).reshape(kh * kw * i, o)
        if k_pad is not None and k_pad > wm.shape[0]:
            wm = jnp.pad(wm, ((0, k_pad - wm.shape[0]), (0, 0)))
        if out_pad is not None and out_pad > o:
            wm = jnp.pad(wm, ((0, 0), (0, out_pad - o)))
            b = jnp.pad(b, (0, out_pad - o))
        return wm.astype(jnp.bfloat16), b.reshape(1, -1).astype(jnp.float32)

    def fc_mat(w, b, *, out_pad=None):
        if out_pad is not None and out_pad > w.shape[1]:
            w = jnp.pad(w, ((0, 0), (0, out_pad - w.shape[1])))
            b = jnp.pad(b, (0, out_pad - b.shape[0]))
        return w.astype(jnp.bfloat16), b.reshape(1, -1).astype(jnp.float32)

    inv_std = 1.0 / raw["std"]
    p = {}
    # conv1: fold 1/std, pad K 363->384 and out 96->128 (padded lanes are zero)
    p["conv1_w"], p["conv1_b"] = conv_mat(*raw["conv1"], inv_std=inv_std,
                                          k_pad=384, out_pad=128)
    # conv2: pad input channels 96->128 with zeros to match conv1's padded output
    p["conv2_w"], p["conv2_b"] = conv_mat(*raw["conv2"], in_pad=128)
    p["conv3a_w"], p["conv3a_b"] = conv_mat(*raw["conv3a"])
    p["conv3b_w"], p["conv3b_b"] = conv_mat(*raw["conv3b"])
    p["conv3c_w"], p["conv3c_b"] = conv_mat(*raw["conv3c"])
    p["fc1_w"], p["fc1_b"] = fc_mat(*raw["fc1"])
    p["fc2_w"], p["fc2_b"] = fc_mat(*raw["fc2"])
    p["fc3_w"], p["fc3_b"] = fc_mat(*raw["fc3"], out_pad=128)   # logits lane-padded
    p["mean"] = raw["mean"].astype(jnp.float32)
    return p


# ----------------------------------------------------------------------------
# Forward pass
# ----------------------------------------------------------------------------
def alexnet_forward(p, x_nchw, *, num_classes):
    # NCHW -> NHWC.  Mean subtraction is a single XLA elementwise op fused into
    # the transpose (must precede zero spatial padding to stay exact); the
    # 1/std scale is already folded into conv1's weights.
    x = jnp.transpose(x_nchw, (0, 2, 3, 1)).astype(jnp.float32)
    x = (x - p["mean"]).astype(jnp.bfloat16)

    # conv1: Conv(3->96 [pad 128], k=11, s=4, p=5) + ReLU + MaxPool(2,2)
    x = conv2d(x, p["conv1_w"], p["conv1_b"], ksize=11, stride=4, pad=5, relu=True)
    x = maxpool_2x2(x)

    # conv2: Conv(96->256, k=5, p=2) + ReLU + MaxPool(2,2)
    x = conv2d(x, p["conv2_w"], p["conv2_b"], ksize=5, stride=1, pad=2, relu=True)
    x = maxpool_2x2(x)

    # conv3: three 3x3 convs + ReLU each, then MaxPool(2,2)
    x = conv2d(x, p["conv3a_w"], p["conv3a_b"], ksize=3, stride=1, pad=1, relu=True)
    x = conv2d(x, p["conv3b_w"], p["conv3b_b"], ksize=3, stride=1, pad=1, relu=True)
    x = conv2d(x, p["conv3c_w"], p["conv3c_b"], ksize=3, stride=1, pad=1, relu=True)
    x = maxpool_2x2(x)

    # flatten: spatial is 1x1 here, so NHWC flatten == PyTorch NCHW .view()
    n = x.shape[0]
    x = x.reshape(n, -1)

    # fused FC stack: Linear+ReLU, (Dropout=id), Linear+ReLU, (Dropout=id), Linear
    logits = fc_stack(x, p["fc1_w"], p["fc1_b"], p["fc2_w"], p["fc2_b"],
                      p["fc3_w"], p["fc3_b"])
    return logits[:, :num_classes]


if __name__ == "__main__":
    key = jax.random.PRNGKey(0)
    pkey, xkey = jax.random.split(key)
    raw_params = init_params(pkey, num_classes=10)
    params = prepare_params(raw_params)

    # CIFAR-sized input, small batch: NCHW (2, 3, 32, 32)
    x = jax.random.uniform(xkey, (2, 3, 32, 32), jnp.float32)

    fwd = jax.jit(functools.partial(alexnet_forward, num_classes=10))
    out = fwd(params, x)
    out = jax.block_until_ready(out)
    assert out.shape == (2, 10), out.shape
    print("KERNEL_OK")
</pallas_src>

<mosaic_0001>
module attributes {stable_mosaic.version = 11 : i64} {
  func.func @_maxpool_kernel(%arg0: i32, %arg1: memref<8x2048xbf16, #tpu.memory_space<vmem>>, %arg2: memref<8x512xbf16, #tpu.memory_space<vmem>>) attributes {dimension_semantics = [#tpu.dimension_semantics<arbitrary>], iteration_bounds = array<i64: 1>, scalar_prefetch = 0 : i64, scratch_operands = 0 : i64, tpu.core_type = #tpu.core_type<tc>, window_params = [{pipeline_mode = #tpu.pipeline_mode<synchronous>, transform_indices = @transform_0, window_bounds = array<i64: 8, 2048>}, {pipeline_mode = #tpu.pipeline_mode<synchronous>, transform_indices = @transform_1, window_bounds = array<i64: 8, 512>}]} {
    %c0 = arith.constant 0 : index
    %c0_0 = arith.constant 0 : index
    %0 = vector.load %arg1[%c0, %c0_0] : memref<8x2048xbf16, #tpu.memory_space<vmem>>, vector<8x2048xbf16>
    %1 = vector.extract_strided_slice %0 {offsets = [0, 0], sizes = [8, 1024], strides = [1, 1]} : vector<8x2048xbf16> to vector<8x1024xbf16>
    %2 = vector.extract_strided_slice %0 {offsets = [0, 1024], sizes = [8, 1024], strides = [1, 1]} : vector<8x2048xbf16> to vector<8x1024xbf16>
    %3 = arith.maximumf %1, %2 : vector<8x1024xbf16>
    %4 = vector.extract_strided_slice %3 {offsets = [0, 0], sizes = [8, 128], strides = [1, 1]} : vector<8x1024xbf16> to vector<8x128xbf16>
    %5 = vector.extract_strided_slice %3 {offsets = [0, 128], sizes = [8, 128], strides = [1, 1]} : vector<8x1024xbf16> to vector<8x128xbf16>
    %6 = arith.maximumf %4, %5 : vector<8x128xbf16>
    %7 = vector.extract_strided_slice %3 {offsets = [0, 256], sizes = [8, 128], strides = [1, 1]} : vector<8x1024xbf16> to vector<8x128xbf16>
    %8 = vector.extract_strided_slice %3 {offsets = [0, 384], sizes = [8, 128], strides = [1, 1]} : vector<8x1024xbf16> to vector<8x128xbf16>
    %9 = arith.maximumf %7, %8 : vector<8x128xbf16>
    %10 = vector.extract_strided_slice %3 {offsets = [0, 512], sizes = [8, 128], strides = [1, 1]} : vector<8x1024xbf16> to vector<8x128xbf16>
    %11 = vector.extract_strided_slice %3 {offsets = [0, 640], sizes = [8, 128], strides = [1, 1]} : vector<8x1024xbf16> to vector<8x128xbf16>
    %12 = arith.maximumf %10, %11 : vector<8x128xbf16>
    %13 = vector.extract_strided_slice %3 {offsets = [0, 768], sizes = [8, 128], strides = [1, 1]} : vector<8x1024xbf16> to vector<8x128xbf16>
    %14 = vector.extract_strided_slice %3 {offsets = [0, 896], sizes = [8, 128], strides = [1, 1]} : vector<8x1024xbf16> to vector<8x128xbf16>
    %15 = arith.maximumf %13, %14 : vector<8x128xbf16>
    %16 = tpu.concatenate %6, %9, %12, %15 in 1 : vector<8x128xbf16>, vector<8x128xbf16>, vector<8x128xbf16>, vector<8x128xbf16> -> vector<8x512xbf16>
    %c0_1 = arith.constant 0 : index
    %c0_2 = arith.constant 0 : index
    %17 = vector.load %arg2[%c0_1, %c0_2] : memref<8x512xbf16, #tpu.memory_space<vmem>>, vector<8x512xbf16>
    tpu.vector_store %arg2[%c0_1, %c0_2], %16 {strides = array<i32>} : memref<8x512xbf16, #tpu.memory_space<vmem>>, vector<8x512xbf16>,
    return
  }
  func.func @transform_0(%arg0: i32) -> (i32, i32) {
    %c0_i32 = arith.constant 0 : i32
    %c0_i32_0 = arith.constant 0 : i32
    %c0_i32_1 = arith.constant 0 : i32
    return %c0_i32, %c0_i32_0 : i32, i32
  }
  func.func @transform_1(%arg0: i32) -> (i32, i32) {
    %c0_i32 = arith.constant 0 : i32
    %c0_i32_0 = arith.constant 0 : i32
    %c0_i32_1 = arith.constant 0 : i32
    return %c0_i32, %c0_i32_0 : i32, i32
  }
}

module attributes {stable_mosaic.version = 11 : i64} {
  func.func @_matmul_bias_act_kernel(%arg0: i32, %arg1: memref<128x384xbf16, #tpu.memory_space<vmem>>, %arg2: memref<384x128xbf16, #tpu.memory_space<vmem>>, %arg3: memref<1x128xf32, #tpu.memory_space<vmem>>, %arg4: memref<128x128xbf16, #tpu.memory_space<vmem>>) attributes {dimension_semantics = [#tpu.dimension_semantics<parallel>], iteration_bounds = array<i64: 1>, scalar_prefetch = 0 : i64, scratch_operands = 0 : i64, tpu.core_type = #tpu.core_type<tc>, window_params = [{transform_indices = @transform_0, window_bounds = array<i64: 128, 384>}, {pipeline_mode = #tpu.pipeline_mode<synchronous>, transform_indices = @transform_1, window_bounds = array<i64: 384, 128>}, {pipeline_mode = #tpu.pipeline_mode<synchronous>, transform_indices = @transform_2, window_bounds = array<i64: 1, 128>}, {transform_indices = @transform_3, window_bounds = array<i64: 128, 128>}]} {
    %c0 = arith.constant 0 : index
    %c0_0 = arith.constant 0 : index
    %0 = vector.load %arg1[%c0, %c0_0] : memref<128x384xbf16, #tpu.memory_space<vmem>>, vector<128x384xbf16>
    %c0_1 = arith.constant 0 : index
    %c0_2 = arith.constant 0 : index
    %1 = vector.load %arg2[%c0_1, %c0_2] : memref<384x128xbf16, #tpu.memory_space<vmem>>, vector<384x128xbf16>
    %cst = arith.constant dense<0.000000e+00> : vector<128x128xf32>
    %2 = tpu.matmul %0, %1, %cst {dimension_numbers = #tpu.dot_dimension_numbers<[1], [0], [0], [1], [0, 0, 1, 1], [], []>} : vector<128x384xbf16>, vector<384x128xbf16>, vector<128x128xf32> -> vector<128x128xf32>
    %c0_3 = arith.constant 0 : index
    %c0_4 = arith.constant 0 : index
    %3 = vector.load %arg3[%c0_3, %c0_4] : memref<1x128xf32, #tpu.memory_space<vmem>>, vector<1x128xf32>
    %4 = vector.broadcast %3 : vector<1x128xf32> to vector<128x128xf32>
    %5 = arith.addf %2, %4 : vector<128x128xf32>
    %cst_5 = arith.constant 0.000000e+00 : f32
    %6 = vector.broadcast %cst_5 : f32 to vector<128x128xf32>
    %7 = arith.maximumf %5, %6 : vector<128x128xf32>
    %8 = arith.truncf %7 : vector<128x128xf32> to vector<128x128xbf16>
    %c0_6 = arith.constant 0 : index
    %c0_7 = arith.constant 0 : index
    %9 = vector.load %arg4[%c0_6, %c0_7] : memref<128x128xbf16, #tpu.memory_space<vmem>>, vector<128x128xbf16>
    tpu.vector_store %arg4[%c0_6, %c0_7], %8 {strides = array<i32>} : memref<128x128xbf16, #tpu.memory_space<vmem>>, vector<128x128xbf16>,
    return
  }
  func.func @transform_0(%arg0: i32) -> (i32, i32) {
    %c0_i32 = arith.constant 0 : i32
    %c0_i32_0 = arith.constant 0 : i32
    return %arg0, %c0_i32 : i32, i32
  }
  func.func @transform_1(%arg0: i32) -> (i32, i32) {
    %c0_i32 = arith.constant 0 : i32
    %c0_i32_0 = arith.constant 0 : i32
    %c0_i32_1 = arith.constant 0 : i32
    return %c0_i32, %c0_i32_0 : i32, i32
  }
  func.func @transform_2(%arg0: i32) -> (i32, i32) {
    %c0_i32 = arith.constant 0 : i32
    %c0_i32_0 = arith.constant 0 : i32
    %c0_i32_1 = arith.constant 0 : i32
    return %c0_i32, %c0_i32_0 : i32, i32
  }
  func.func @transform_3(%arg0: i32) -> (i32, i32) {
    %c0_i32 = arith.constant 0 : i32
    %c0_i32_0 = arith.constant 0 : i32
    return %arg0, %c0_i32 : i32, i32
  }
}

module attributes {stable_mosaic.version = 11 : i64} {
  func.func @_matmul_bias_act_kernel(%arg0: i32, %arg1: memref<32x3200xbf16, #tpu.memory_space<vmem>>, %arg2: memref<3200x256xbf16, #tpu.memory_space<vmem>>, %arg3: memref<1x256xf32, #tpu.memory_space<vmem>>, %arg4: memref<32x256xbf16, #tpu.memory_space<vmem>>) attributes {dimension_semantics = [#tpu.dimension_semantics<parallel>], iteration_bounds = array<i64: 1>, scalar_prefetch = 0 : i64, scratch_operands = 0 : i64, tpu.core_type = #tpu.core_type<tc>, window_params = [{transform_indices = @transform_0, window_bounds = array<i64: 32, 3200>}, {pipeline_mode = #tpu.pipeline_mode<synchronous>, transform_indices = @transform_1, window_bounds = array<i64: 3200, 256>}, {pipeline_mode = #tpu.pipeline_mode<synchronous>, transform_indices = @transform_2, window_bounds = array<i64: 1, 256>}, {transform_indices = @transform_3, window_bounds = array<i64: 32, 256>}]} {
    %c0 = arith.constant 0 : index
    %c0_0 = arith.constant 0 : index
    %0 = vector.load %arg1[%c0, %c0_0] : memref<32x3200xbf16, #tpu.memory_space<vmem>>, vector<32x3200xbf16>
    %c0_1 = arith.constant 0 : index
    %c0_2 = arith.constant 0 : index
    %1 = vector.load %arg2[%c0_1, %c0_2] : memref<3200x256xbf16, #tpu.memory_space<vmem>>, vector<3200x256xbf16>
    %cst = arith.constant dense<0.000000e+00> : vector<32x256xf32>
    %2 = tpu.matmul %0, %1, %cst {dimension_numbers = #tpu.dot_dimension_numbers<[1], [0], [0], [1], [0, 0, 1, 1], [], []>} : vector<32x3200xbf16>, vector<3200x256xbf16>, vector<32x256xf32> -> vector<32x256xf32>
    %c0_3 = arith.constant 0 : index
    %c0_4 = arith.constant 0 : index
    %3 = vector.load %arg3[%c0_3, %c0_4] : memref<1x256xf32, #tpu.memory_space<vmem>>, vector<1x256xf32>
    %4 = vector.broadcast %3 : vector<1x256xf32> to vector<32x256xf32>
    %5 = arith.addf %2, %4 : vector<32x256xf32>
    %cst_5 = arith.constant 0.000000e+00 : f32
    %6 = vector.broadcast %cst_5 : f32 to vector<32x256xf32>
    %7 = arith.maximumf %5, %6 : vector<32x256xf32>
    %8 = arith.truncf %7 : vector<32x256xf32> to vector<32x256xbf16>
    %c0_6 = arith.constant 0 : index
    %c0_7 = arith.constant 0 : index
    %9 = vector.load %arg4[%c0_6, %c0_7] : memref<32x256xbf16, #tpu.memory_space<vmem>>, vector<32x256xbf16>
    tpu.vector_store %arg4[%c0_6, %c0_7], %8 {strides = array<i32>} : memref<32x256xbf16, #tpu.memory_space<vmem>>, vector<32x256xbf16>,
    return
  }
  func.func @transform_0(%arg0: i32) -> (i32, i32) {
    %c0_i32 = arith.constant 0 : i32
    %c0_i32_0 = arith.constant 0 : i32
    return %arg0, %c0_i32 : i32, i32
  }
  func.func @transform_1(%arg0: i32) -> (i32, i32) {
    %c0_i32 = arith.constant 0 : i32
    %c0_i32_0 = arith.constant 0 : i32
    %c0_i32_1 = arith.constant 0 : i32
    return %c0_i32, %c0_i32_0 : i32, i32
  }
  func.func @transform_2(%arg0: i32) -> (i32, i32) {
    %c0_i32 = arith.constant 0 : i32
    %c0_i32_0 = arith.constant 0 : i32
    %c0_i32_1 = arith.constant 0 : i32
    return %c0_i32, %c0_i32_0 : i32, i32
  }
  func.func @transform_3(%arg0: i32) -> (i32, i32) {
    %c0_i32 = arith.constant 0 : i32
    %c0_i32_0 = arith.constant 0 : i32
    return %arg0, %c0_i32 : i32, i32
  }
}

module attributes {stable_mosaic.version = 11 : i64} {
  func.func @_maxpool_kernel(%arg0: i32, %arg1: memref<4x2048xbf16, #tpu.memory_space<vmem>>, %arg2: memref<4x512xbf16, #tpu.memory_space<vmem>>) attributes {dimension_semantics = [#tpu.dimension_semantics<arbitrary>], iteration_bounds = array<i64: 1>, scalar_prefetch = 0 : i64, scratch_operands = 0 : i64, tpu.core_type = #tpu.core_type<tc>, window_params = [{pipeline_mode = #tpu.pipeline_mode<synchronous>, transform_indices = @transform_0, window_bounds = array<i64: 4, 2048>}, {pipeline_mode = #tpu.pipeline_mode<synchronous>, transform_indices = @transform_1, window_bounds = array<i64: 4, 512>}]} {
    %c0 = arith.constant 0 : index
    %c0_0 = arith.constant 0 : index
    %0 = vector.load %arg1[%c0, %c0_0] : memref<4x2048xbf16, #tpu.memory_space<vmem>>, vector<4x2048xbf16>
    %1 = vector.extract_strided_slice %0 {offsets = [0, 0], sizes = [4, 1024], strides = [1, 1]} : vector<4x2048xbf16> to vector<4x1024xbf16>
    %2 = vector.extract_strided_slice %0 {offsets = [0, 1024], sizes = [4, 1024], strides = [1, 1]} : vector<4x2048xbf16> to vector<4x1024xbf16>
    %3 = arith.maximumf %1, %2 : vector<4x1024xbf16>
    %4 = vector.extract_strided_slice %3 {offsets = [0, 0], sizes = [4, 256], strides = [1, 1]} : vector<4x1024xbf16> to vector<4x256xbf16>
    %5 = vector.extract_strided_slice %3 {offsets = [0, 256], sizes = [4, 256], strides = [1, 1]} : vector<4x1024xbf16> to vector<4x256xbf16>
    %6 = arith.maximumf %4, %5 : vector<4x256xbf16>
    %7 = vector.extract_strided_slice %3 {offsets = [0, 512], sizes = [4, 256], strides = [1, 1]} : vector<4x1024xbf16> to vector<4x256xbf16>
    %8 = vector.extract_strided_slice %3 {offsets = [0, 768], sizes = [4, 256], strides = [1, 1]} : vector<4x1024xbf16> to vector<4x256xbf16>
    %9 = arith.maximumf %7, %8 : vector<4x256xbf16>
    %10 = tpu.concatenate %6, %9 in 1 : vector<4x256xbf16>, vector<4x256xbf16> -> vector<4x512xbf16>
    %c0_1 = arith.constant 0 : index
    %c0_2 = arith.constant 0 : index
    %11 = vector.load %arg2[%c0_1, %c0_2] : memref<4x512xbf16, #tpu.memory_space<vmem>>, vector<4x512xbf16>
    tpu.vector_store %arg2[%c0_1, %c0_2], %10 {strides = array<i32>} : memref<4x512xbf16, #tpu.memory_space<vmem>>, vector<4x512xbf16>,
    return
  }
  func.func @transform_0(%arg0: i32) -> (i32, i32) {
    %c0_i32 = arith.constant 0 : i32
    %c0_i32_0 = arith.constant 0 : i32
    %c0_i32_1 = arith.constant 0 : i32
    return %c0_i32, %c0_i32_0 : i32, i32
  }
  func.func @transform_1(%arg0: i32) -> (i32, i32) {
    %c0_i32 = arith.constant 0 : i32
    %c0_i32_0 = arith.constant 0 : i32
    %c0_i32_1 = arith.constant 0 : i32
    return %c0_i32, %c0_i32_0 : i32, i32
  }
}

module attributes {stable_mosaic.version = 11 : i64} {
  func.func @_matmul_bias_act_kernel(%arg0: i32, %arg1: memref<8x2304xbf16, #tpu.memory_space<vmem>>, %arg2: memref<2304x384xbf16, #tpu.memory_space<vmem>>, %arg3: memref<1x384xf32, #tpu.memory_space<vmem>>, %arg4: memref<8x384xbf16, #tpu.memory_space<vmem>>) attributes {dimension_semantics = [#tpu.dimension_semantics<parallel>], iteration_bounds = array<i64: 1>, scalar_prefetch = 0 : i64, scratch_operands = 0 : i64, tpu.core_type = #tpu.core_type<tc>, window_params = [{transform_indices = @transform_0, window_bounds = array<i64: 8, 2304>}, {pipeline_mode = #tpu.pipeline_mode<synchronous>, transform_indices = @transform_1, window_bounds = array<i64: 2304, 384>}, {pipeline_mode = #tpu.pipeline_mode<synchronous>, transform_indices = @transform_2, window_bounds = array<i64: 1, 384>}, {transform_indices = @transform_3, window_bounds = array<i64: 8, 384>}]} {
    %c0 = arith.constant 0 : index
    %c0_0 = arith.constant 0 : index
    %0 = vector.load %arg1[%c0, %c0_0] : memref<8x2304xbf16, #tpu.memory_space<vmem>>, vector<8x2304xbf16>
    %c0_1 = arith.constant 0 : index
    %c0_2 = arith.constant 0 : index
    %1 = vector.load %arg2[%c0_1, %c0_2] : memref<2304x384xbf16, #tpu.memory_space<vmem>>, vector<2304x384xbf16>
    %cst = arith.constant dense<0.000000e+00> : vector<8x384xf32>
    %2 = tpu.matmul %0, %1, %cst {dimension_numbers = #tpu.dot_dimension_numbers<[1], [0], [0], [1], [0, 0, 1, 1], [], []>} : vector<8x2304xbf16>, vector<2304x384xbf16>, vector<8x384xf32> -> vector<8x384xf32>
    %c0_3 = arith.constant 0 : index
    %c0_4 = arith.constant 0 : index
    %3 = vector.load %arg3[%c0_3, %c0_4] : memref<1x384xf32, #tpu.memory_space<vmem>>, vector<1x384xf32>
    %4 = vector.broadcast %3 : vector<1x384xf32> to vector<8x384xf32>
    %5 = arith.addf %2, %4 : vector<8x384xf32>
    %cst_5 = arith.constant 0.000000e+00 : f32
    %6 = vector.broadcast %cst_5 : f32 to vector<8x384xf32>
    %7 = arith.maximumf %5, %6 : vector<8x384xf32>
    %8 = arith.truncf %7 : vector<8x384xf32> to vector<8x384xbf16>
    %c0_6 = arith.constant 0 : index
    %c0_7 = arith.constant 0 : index
    %9 = vector.load %arg4[%c0_6, %c0_7] : memref<8x384xbf16, #tpu.memory_space<vmem>>, vector<8x384xbf16>
    tpu.vector_store %arg4[%c0_6, %c0_7], %8 {strides = array<i32>} : memref<8x384xbf16, #tpu.memory_space<vmem>>, vector<8x384xbf16>,
    return
  }
  func.func @transform_0(%arg0: i32) -> (i32, i32) {
    %c0_i32 = arith.constant 0 : i32
    %c0_i32_0 = arith.constant 0 : i32
    return %arg0, %c0_i32 : i32, i32
  }
  func.func @transform_1(%arg0: i32) -> (i32, i32) {
    %c0_i32 = arith.constant 0 : i32
    %c0_i32_0 = arith.constant 0 : i32
    %c0_i32_1 = arith.constant 0 : i32
    return %c0_i32, %c0_i32_0 : i32, i32
  }
  func.func @transform_2(%arg0: i32) -> (i32, i32) {
    %c0_i32 = arith.constant 0 : i32
    %c0_i32_0 = arith.constant 0 : i32
    %c0_i32_1 = arith.constant 0 : i32
    return %c0_i32, %c0_i32_0 : i32, i32
  }
  func.func @transform_3(%arg0: i32) -> (i32, i32) {
    %c0_i32 = arith.constant 0 : i32
    %c0_i32_0 = arith.constant 0 : i32
    return %arg0, %c0_i32 : i32, i32
  }
}

module attributes {stable_mosaic.version = 11 : i64} {
  func.func @_matmul_bias_act_kernel(%arg0: i32, %arg1: memref<8x3456xbf16, #tpu.memory_space<vmem>>, %arg2: memref<3456x384xbf16, #tpu.memory_space<vmem>>, %arg3: memref<1x384xf32, #tpu.memory_space<vmem>>, %arg4: memref<8x384xbf16, #tpu.memory_space<vmem>>) attributes {dimension_semantics = [#tpu.dimension_semantics<parallel>], iteration_bounds = array<i64: 1>, scalar_prefetch = 0 : i64, scratch_operands = 0 : i64, tpu.core_type = #tpu.core_type<tc>, window_params = [{transform_indices = @transform_0, window_bounds = array<i64: 8, 3456>}, {pipeline_mode = #tpu.pipeline_mode<synchronous>, transform_indices = @transform_1, window_bounds = array<i64: 3456, 384>}, {pipeline_mode = #tpu.pipeline_mode<synchronous>, transform_indices = @transform_2, window_bounds = array<i64: 1, 384>}, {transform_indices = @transform_3, window_bounds = array<i64: 8, 384>}]} {
    %c0 = arith.constant 0 : index
    %c0_0 = arith.constant 0 : index
    %0 = vector.load %arg1[%c0, %c0_0] : memref<8x3456xbf16, #tpu.memory_space<vmem>>, vector<8x3456xbf16>
    %c0_1 = arith.constant 0 : index
    %c0_2 = arith.constant 0 : index
    %1 = vector.load %arg2[%c0_1, %c0_2] : memref<3456x384xbf16, #tpu.memory_space<vmem>>, vector<3456x384xbf16>
    %cst = arith.constant dense<0.000000e+00> : vector<8x384xf32>
    %2 = tpu.matmul %0, %1, %cst {dimension_numbers = #tpu.dot_dimension_numbers<[1], [0], [0], [1], [0, 0, 1, 1], [], []>} : vector<8x3456xbf16>, vector<3456x384xbf16>, vector<8x384xf32> -> vector<8x384xf32>
    %c0_3 = arith.constant 0 : index
    %c0_4 = arith.constant 0 : index
    %3 = vector.load %arg3[%c0_3, %c0_4] : memref<1x384xf32, #tpu.memory_space<vmem>>, vector<1x384xf32>
    %4 = vector.broadcast %3 : vector<1x384xf32> to vector<8x384xf32>
    %5 = arith.addf %2, %4 : vector<8x384xf32>
    %cst_5 = arith.constant 0.000000e+00 : f32
    %6 = vector.broadcast %cst_5 : f32 to vector<8x384xf32>
    %7 = arith.maximumf %5, %6 : vector<8x384xf32>
    %8 = arith.truncf %7 : vector<8x384xf32> to vector<8x384xbf16>
    %c0_6 = arith.constant 0 : index
    %c0_7 = arith.constant 0 : index
    %9 = vector.load %arg4[%c0_6, %c0_7] : memref<8x384xbf16, #tpu.memory_space<vmem>>, vector<8x384xbf16>
    tpu.vector_store %arg4[%c0_6, %c0_7], %8 {strides = array<i32>} : memref<8x384xbf16, #tpu.memory_space<vmem>>, vector<8x384xbf16>,
    return
  }
  func.func @transform_0(%arg0: i32) -> (i32, i32) {
    %c0_i32 = arith.constant 0 : i32
    %c0_i32_0 = arith.constant 0 : i32
    return %arg0, %c0_i32 : i32, i32
  }
  func.func @transform_1(%arg0: i32) -> (i32, i32) {
    %c0_i32 = arith.constant 0 : i32
    %c0_i32_0 = arith.constant 0 : i32
    %c0_i32_1 = arith.constant 0 : i32
    return %c0_i32, %c0_i32_0 : i32, i32
  }
  func.func @transform_2(%arg0: i32) -> (i32, i32) {
    %c0_i32 = arith.constant 0 : i32
    %c0_i32_0 = arith.constant 0 : i32
    %c0_i32_1 = arith.constant 0 : i32
    return %c0_i32, %c0_i32_0 : i32, i32
  }
  func.func @transform_3(%arg0: i32) -> (i32, i32) {
    %c0_i32 = arith.constant 0 : i32
    %c0_i32_0 = arith.constant 0 : i32
    return %arg0, %c0_i32 : i32, i32
  }
}

module attributes {stable_mosaic.version = 11 : i64} {
  func.func @_matmul_bias_act_kernel(%arg0: i32, %arg1: memref<8x3456xbf16, #tpu.memory_space<vmem>>, %arg2: memref<3456x256xbf16, #tpu.memory_space<vmem>>, %arg3: memref<1x256xf32, #tpu.memory_space<vmem>>, %arg4: memref<8x256xbf16, #tpu.memory_space<vmem>>) attributes {dimension_semantics = [#tpu.dimension_semantics<parallel>], iteration_bounds = array<i64: 1>, scalar_prefetch = 0 : i64, scratch_operands = 0 : i64, tpu.core_type = #tpu.core_type<tc>, window_params = [{transform_indices = @transform_0, window_bounds = array<i64: 8, 3456>}, {pipeline_mode = #tpu.pipeline_mode<synchronous>, transform_indices = @transform_1, window_bounds = array<i64: 3456, 256>}, {pipeline_mode = #tpu.pipeline_mode<synchronous>, transform_indices = @transform_2, window_bounds = array<i64: 1, 256>}, {transform_indices = @transform_3, window_bounds = array<i64: 8, 256>}]} {
    %c0 = arith.constant 0 : index
    %c0_0 = arith.constant 0 : index
    %0 = vector.load %arg1[%c0, %c0_0] : memref<8x3456xbf16, #tpu.memory_space<vmem>>, vector<8x3456xbf16>
    %c0_1 = arith.constant 0 : index
    %c0_2 = arith.constant 0 : index
    %1 = vector.load %arg2[%c0_1, %c0_2] : memref<3456x256xbf16, #tpu.memory_space<vmem>>, vector<3456x256xbf16>
    %cst = arith.constant dense<0.000000e+00> : vector<8x256xf32>
    %2 = tpu.matmul %0, %1, %cst {dimension_numbers = #tpu.dot_dimension_numbers<[1], [0], [0], [1], [0, 0, 1, 1], [], []>} : vector<8x3456xbf16>, vector<3456x256xbf16>, vector<8x256xf32> -> vector<8x256xf32>
    %c0_3 = arith.constant 0 : index
    %c0_4 = arith.constant 0 : index
    %3 = vector.load %arg3[%c0_3, %c0_4] : memref<1x256xf32, #tpu.memory_space<vmem>>, vector<1x256xf32>
    %4 = vector.broadcast %3 : vector<1x256xf32> to vector<8x256xf32>
    %5 = arith.addf %2, %4 : vector<8x256xf32>
    %cst_5 = arith.constant 0.000000e+00 : f32
    %6 = vector.broadcast %cst_5 : f32 to vector<8x256xf32>
    %7 = arith.maximumf %5, %6 : vector<8x256xf32>
    %8 = arith.truncf %7 : vector<8x256xf32> to vector<8x256xbf16>
    %c0_6 = arith.constant 0 : index
    %c0_7 = arith.constant 0 : index
    %9 = vector.load %arg4[%c0_6, %c0_7] : memref<8x256xbf16, #tpu.memory_space<vmem>>, vector<8x256xbf16>
    tpu.vector_store %arg4[%c0_6, %c0_7], %8 {strides = array<i32>} : memref<8x256xbf16, #tpu.memory_space<vmem>>, vector<8x256xbf16>,
    return
  }
  func.func @transform_0(%arg0: i32) -> (i32, i32) {
    %c0_i32 = arith.constant 0 : i32
    %c0_i32_0 = arith.constant 0 : i32
    return %arg0, %c0_i32 : i32, i32
  }
  func.func @transform_1(%arg0: i32) -> (i32, i32) {
    %c0_i32 = arith.constant 0 : i32
    %c0_i32_0 = arith.constant 0 : i32
    %c0_i32_1 = arith.constant 0 : i32
    return %c0_i32, %c0_i32_0 : i32, i32
  }
  func.func @transform_2(%arg0: i32) -> (i32, i32) {
    %c0_i32 = arith.constant 0 : i32
    %c0_i32_0 = arith.constant 0 : i32
    %c0_i32_1 = arith.constant 0 : i32
    return %c0_i32, %c0_i32_0 : i32, i32
  }
  func.func @transform_3(%arg0: i32) -> (i32, i32) {
    %c0_i32 = arith.constant 0 : i32
    %c0_i32_0 = arith.constant 0 : i32
    return %arg0, %c0_i32 : i32, i32
  }
}

module attributes {stable_mosaic.version = 11 : i64} {
  func.func @_maxpool_kernel(%arg0: i32, %arg1: memref<2x1024xbf16, #tpu.memory_space<vmem>>, %arg2: memref<2x256xbf16, #tpu.memory_space<vmem>>) attributes {dimension_semantics = [#tpu.dimension_semantics<arbitrary>], iteration_bounds = array<i64: 1>, scalar_prefetch = 0 : i64, scratch_operands = 0 : i64, tpu.core_type = #tpu.core_type<tc>, window_params = [{pipeline_mode = #tpu.pipeline_mode<synchronous>, transform_indices = @transform_0, window_bounds = array<i64: 2, 1024>}, {pipeline_mode = #tpu.pipeline_mode<synchronous>, transform_indices = @transform_1, window_bounds = array<i64: 2, 256>}]} {
    %c0 = arith.constant 0 : index
    %c0_0 = arith.constant 0 : index
    %0 = vector.load %arg1[%c0, %c0_0] : memref<2x1024xbf16, #tpu.memory_space<vmem>>, vector<2x1024xbf16>
    %1 = vector.extract_strided_slice %0 {offsets = [0, 0], sizes = [2, 512], strides = [1, 1]} : vector<2x1024xbf16> to vector<2x512xbf16>
    %2 = vector.extract_strided_slice %0 {offsets = [0, 512], sizes = [2, 512], strides = [1, 1]} : vector<2x1024xbf16> to vector<2x512xbf16>
    %3 = arith.maximumf %1, %2 : vector<2x512xbf16>
    %4 = vector.extract_strided_slice %3 {offsets = [0, 0], sizes = [2, 256], strides = [1, 1]} : vector<2x512xbf16> to vector<2x256xbf16>
    %5 = vector.extract_strided_slice %3 {offsets = [0, 256], sizes = [2, 256], strides = [1, 1]} : vector<2x512xbf16> to vector<2x256xbf16>
    %6 = arith.maximumf %4, %5 : vector<2x256xbf16>
    %c0_1 = arith.constant 0 : index
    %c0_2 = arith.constant 0 : index
    %7 = vector.load %arg2[%c0_1, %c0_2] : memref<2x256xbf16, #tpu.memory_space<vmem>>, vector<2x256xbf16>
    tpu.vector_store %arg2[%c0_1, %c0_2], %6 {strides = array<i32>} : memref<2x256xbf16, #tpu.memory_space<vmem>>, vector<2x256xbf16>,
    return
  }
  func.func @transform_0(%arg0: i32) -> (i32, i32) {
    %c0_i32 = arith.constant 0 : i32
    %c0_i32_0 = arith.constant 0 : i32
    %c0_i32_1 = arith.constant 0 : i32
    return %c0_i32, %c0_i32_0 : i32, i32
  }
  func.func @transform_1(%arg0: i32) -> (i32, i32) {
    %c0_i32 = arith.constant 0 : i32
    %c0_i32_0 = arith.constant 0 : i32
    %c0_i32_1 = arith.constant 0 : i32
    return %c0_i32, %c0_i32_0 : i32, i32
  }
}

module attributes {stable_mosaic.version = 11 : i64} {
  func.func @_fc_stack_kernel(%arg0: i32, %arg1: memref<2x256xbf16, #tpu.memory_space<vmem>>, %arg2: memref<256x512xbf16, #tpu.memory_space<vmem>>, %arg3: memref<1x512xf32, #tpu.memory_space<vmem>>, %arg4: memref<512x512xbf16, #tpu.memory_space<vmem>>, %arg5: memref<1x512xf32, #tpu.memory_space<vmem>>, %arg6: memref<512x128xbf16, #tpu.memory_space<vmem>>, %arg7: memref<1x128xf32, #tpu.memory_space<vmem>>, %arg8: memref<2x128xf32, #tpu.memory_space<vmem>>) attributes {dimension_semantics = [#tpu.dimension_semantics<arbitrary>], iteration_bounds = array<i64: 1>, scalar_prefetch = 0 : i64, scratch_operands = 0 : i64, tpu.core_type = #tpu.core_type<tc>, window_params = [{pipeline_mode = #tpu.pipeline_mode<synchronous>, transform_indices = @transform_0, window_bounds = array<i64: 2, 256>}, {pipeline_mode = #tpu.pipeline_mode<synchronous>, transform_indices = @transform_1, window_bounds = array<i64: 256, 512>}, {pipeline_mode = #tpu.pipeline_mode<synchronous>, transform_indices = @transform_2, window_bounds = array<i64: 1, 512>}, {pipeline_mode = #tpu.pipeline_mode<synchronous>, transform_indices = @transform_3, window_bounds = array<i64: 512, 512>}, {pipeline_mode = #tpu.pipeline_mode<synchronous>, transform_indices = @transform_4, window_bounds = array<i64: 1, 512>}, {pipeline_mode = #tpu.pipeline_mode<synchronous>, transform_indices = @transform_5, window_bounds = array<i64: 512, 128>}, {pipeline_mode = #tpu.pipeline_mode<synchronous>, transform_indices = @transform_6, window_bounds = array<i64: 1, 128>}, {pipeline_mode = #tpu.pipeline_mode<synchronous>, transform_indices = @transform_7, window_bounds = array<i64: 2, 128>}]} {
    %c0 = arith.constant 0 : index
    %c0_0 = arith.constant 0 : index
    %0 = vector.load %arg1[%c0, %c0_0] : memref<2x256xbf16, #tpu.memory_space<vmem>>, vector<2x256xbf16>
    %c0_1 = arith.constant 0 : index
    %c0_2 = arith.constant 0 : index
    %1 = vector.load %arg2[%c0_1, %c0_2] : memref<256x512xbf16, #tpu.memory_space<vmem>>, vector<256x512xbf16>
    %cst = arith.constant dense<0.000000e+00> : vector<2x512xf32>
    %2 = tpu.matmul %0, %1, %cst {dimension_numbers = #tpu.dot_dimension_numbers<[1], [0], [0], [1], [0, 0, 1, 1], [], []>} : vector<2x256xbf16>, vector<256x512xbf16>, vector<2x512xf32> -> vector<2x512xf32>
    %c0_3 = arith.constant 0 : index
    %c0_4 = arith.constant 0 : index
    %3 = vector.load %arg3[%c0_3, %c0_4] : memref<1x512xf32, #tpu.memory_space<vmem>>, vector<1x512xf32>
    %4 = vector.broadcast %3 : vector<1x512xf32> to vector<2x512xf32>
    %5 = arith.addf %2, %4 : vector<2x512xf32>
    %cst_5 = arith.constant 0.000000e+00 : f32
    %6 = vector.broadcast %cst_5 : f32 to vector<2x512xf32>
    %7 = arith.maximumf %5, %6 : vector<2x512xf32>
    %8 = arith.truncf %7 : vector<2x512xf32> to vector<2x512xbf16>
    %c0_6 = arith.constant 0 : index
    %c0_7 = arith.constant 0 : index
    %9 = vector.load %arg4[%c0_6, %c0_7] : memref<512x512xbf16, #tpu.memory_space<vmem>>, vector<512x512xbf16>
    %cst_8 = arith.constant dense<0.000000e+00> : vector<2x512xf32>
    %10 = tpu.matmul %8, %9, %cst_8 {dimension_numbers = #tpu.dot_dimension_numbers<[1], [0], [0], [1], [0, 0, 1, 1], [], []>} : vector<2x512xbf16>, vector<512x512xbf16>, vector<2x512xf32> -> vector<2x512xf32>
    %c0_9 = arith.constant 0 : index
    %c0_10 = arith.constant 0 : index
    %11 = vector.load %arg5[%c0_9, %c0_10] : memref<1x512xf32, #tpu.memory_space<vmem>>, vector<1x512xf32>
    %12 = vector.broadcast %11 : vector<1x512xf32> to vector<2x512xf32>
    %13 = arith.addf %10, %12 : vector<2x512xf32>
    %cst_11 = arith.constant 0.000000e+00 : f32
    %14 = vector.broadcast %cst_11 : f32 to vector<2x512xf32>
    %15 = arith.maximumf %13, %14 : vector<2x512xf32>
    %16 = arith.truncf %15 : vector<2x512xf32> to vector<2x512xbf16>
    %c0_12 = arith.constant 0 : index
    %c0_13 = arith.constant 0 : index
    %17 = vector.load %arg6[%c0_12, %c0_13] : memref<512x128xbf16, #tpu.memory_space<vmem>>, vector<512x128xbf16>
    %cst_14 = arith.constant dense<0.000000e+00> : vector<2x128xf32>
    %18 = tpu.matmul %16, %17, %cst_14 {dimension_numbers = #tpu.dot_dimension_numbers<[1], [0], [0], [1], [0, 0, 1, 1], [], []>} : vector<2x512xbf16>, vector<512x128xbf16>, vector<2x128xf32> -> vector<2x128xf32>
    %c0_15 = arith.constant 0 : index
    %c0_16 = arith.constant 0 : index
    %19 = vector.load %arg7[%c0_15, %c0_16] : memref<1x128xf32, #tpu.memory_space<vmem>>, vector<1x128xf32>
    %20 = vector.broadcast %19 : vector<1x128xf32> to vector<2x128xf32>
    %21 = arith.addf %18, %20 : vector<2x128xf32>
    %c0_17 = arith.constant 0 : index
    %c0_18 = arith.constant 0 : index
    %22 = vector.load %arg8[%c0_17, %c0_18] : memref<2x128xf32, #tpu.memory_space<vmem>>, vector<2x128xf32>
    tpu.vector_store %arg8[%c0_17, %c0_18], %21 {strides = array<i32>} : memref<2x128xf32, #tpu.memory_space<vmem>>, vector<2x128xf32>,
    return
  }
  func.func @transform_0(%arg0: i32) -> (i32, i32) {
    %c0_i32 = arith.constant 0 : i32
    %c0_i32_0 = arith.constant 0 : i32
    %c0_i32_1 = arith.constant 0 : i32
    return %c0_i32, %c0_i32_0 : i32, i32
  }
  func.func @transform_1(%arg0: i32) -> (i32, i32) {
    %c0_i32 = arith.constant 0 : i32
    %c0_i32_0 = arith.constant 0 : i32
    %c0_i32_1 = arith.constant 0 : i32
    return %c0_i32, %c0_i32_0 : i32, i32
  }
  func.func @transform_2(%arg0: i32) -> (i32, i32) {
    %c0_i32 = arith.constant 0 : i32
    %c0_i32_0 = arith.constant 0 : i32
    %c0_i32_1 = arith.constant 0 : i32
    return %c0_i32, %c0_i32_0 : i32, i32
  }
  func.func @transform_3(%arg0: i32) -> (i32, i32) {
    %c0_i32 = arith.constant 0 : i32
    %c0_i32_0 = arith.constant 0 : i32
    %c0_i32_1 = arith.constant 0 : i32
    return %c0_i32, %c0_i32_0 : i32, i32
  }
  func.func @transform_4(%arg0: i32) -> (i32, i32) {
    %c0_i32 = arith.constant 0 : i32
    %c0_i32_0 = arith.constant 0 : i32
    %c0_i32_1 = arith.constant 0 : i32
    return %c0_i32, %c0_i32_0 : i32, i32
  }
  func.func @transform_5(%arg0: i32) -> (i32, i32) {
    %c0_i32 = arith.constant 0 : i32
    %c0_i32_0 = arith.constant 0 : i32
    %c0_i32_1 = arith.constant 0 : i32
    return %c0_i32, %c0_i32_0 : i32, i32
  }
  func.func @transform_6(%arg0: i32) -> (i32, i32) {
    %c0_i32 = arith.constant 0 : i32
    %c0_i32_0 = arith.constant 0 : i32
    %c0_i32_1 = arith.constant 0 : i32
    return %c0_i32, %c0_i32_0 : i32, i32
  }
  func.func @transform_7(%arg0: i32) -> (i32, i32) {
    %c0_i32 = arith.constant 0 : i32
    %c0_i32_0 = arith.constant 0 : i32
    %c0_i32_1 = arith.constant 0 : i32
    return %c0_i32, %c0_i32_0 : i32, i32
  }
}

</mosaic_0001>

<bundles_post_ra>
// kernel: alexnet_forward.10
= control target key start
LH: loop header
LB: loop body
LE: loop exit
PB: predicated region body
PF: predicated region fallthrough
CT: control target
= control target key end

     0   :  { %s96_s0 = inlined_call_operand.vmem [shape: bf16[8,2048], index: 0, kind: input, shape index: {}]   ;;  %s97_s1 = inlined_call_operand.vmem [shape: bf16[8,512], index: 1, kind: output, shape index: {}]  }
   0x1   :  { %v8_v0 = vld [vmem:[%s96_s0] sm:$0xff]  ;;  %v9_v1 = vld [vmem:[%s96_s0 + $0x8] sm:$0xff]  ;;  %v10_v5 = vld [vmem:[%s96_s0 + $0x10] sm:$0xff] }
   0x2   :  { %v12_v2 = vld [vmem:[%s96_s0 + $0x20] sm:$0xff]  ;;  %v13_v3 = vld [vmem:[%s96_s0 + $0x28] sm:$0xff]  ;;  %v11_v6 = vld [vmem:[%s96_s0 + $0x18] sm:$0xff] }
   0x3   :  { %v16_v4 = vmax.bf16 %v12_v2, %v8_v0  ;;  %v17_v7 = vmax.bf16 %v13_v3, %v9_v1  ;;  %v14_v8 = vld [vmem:[%s96_s0 + $0x30] sm:$0xff]  ;;  %v15_v9 = vld [vmem:[%s96_s0 + $0x38] sm:$0xff] }
   0x4   :  { %v18_v11 = vmax.bf16 %v14_v8, %v10_v5  ;;  %v19_v12 = vmax.bf16 %v15_v9, %v11_v6 }
   0x5   :  { %v21_v10 = vrot.slane %v16_v4, 4  ;;  %v25_v13 = vrot.slane %v17_v7, 4 }
   0x6   :  { %v29_v15 = vrot.slane %v18_v11, 4  ;;  %v33_v16 = vrot.slane %v19_v12, 4 }
   0x7   :  { %v23_v14 = vmax.bf16 %v21_v10, %v16_v4  ;;  %v27_v17 = vmax.bf16 %v25_v13, %v17_v7 }
   0x8   :  { %v31_v18 = vmax.bf16 %v29_v15, %v18_v11  ;;  %v35_v19 = vmax.bf16 %v33_v16, %v19_v12 }
   0x9   :  { %v54_v20 = vcombine.low %v23_v14, %v27_v17 }
   0xa   :  { %v55_v21 = vcombine.low %v31_v18, %v35_v19 }
   0xb   :  { %48 = vst [vmem:[%s97_s1] sm:$0xff] %v54_v20 }
   0xc   :  { %49 = vst [vmem:[%s97_s1 + $0x8] sm:$0xff] %v55_v21 }

// kernel: alexnet_forward.9
= control target key start
LH: loop header
LB: loop body
LE: loop exit
PB: predicated region body
PF: predicated region fallthrough
CT: control target
= control target key end

     0   :  { %s1173_s1 = inlined_call_operand.vmem [shape: bf16[384,128], index: 1, kind: input, shape index: {}]   ;;  %s1174_s0 = inlined_call_operand.vmem [shape: bf16[128,384], index: 0, kind: input, shape index: {}]   ;;  %s1175_s2 = inlined_call_operand.vmem [shape: f32[1,128], index: 2, kind: input, shape index: {}]   ;;  %s1176_s3 = inlined_call_operand.vmem [shape: bf16[128,128], index: 3, kind: output, shape index: {}]  }
   0x1   :  { %v908_v0 = vld [vmem:[%s1173_s1 + $0x78] sm:$0xff]   ;;  %v910_v2 = vld [vmem:[%s1173_s1 + $0x70] sm:$0xff]   ;;  %v913_v5 = vld [vmem:[%s1173_s1 + $0x68] sm:$0xff]  }
   0x2   :  { %v909_v1 = vld [vmem:[%s1173_s1 + $0x38] sm:$0xff]   ;;  %796 = vmatprep.subr.bf16.mxu0 %v908_v0  ;;  %v912_v4 = vld [vmem:[%s1173_s1 + $0x30] sm:$0xff]   ;;  %v915_v7 = vld [vmem:[%s1173_s1 + $0x28] sm:$0xff]  }
   0x3   :  { %797 = vmatpush3.bf16.msra.mxu0 %v909_v1  ;;  %v911_v3 = vld [vmem:[%s1173_s1 + $0xb8] sm:$0xff]   ;;  %v914_v6 = vld [vmem:[%s1173_s1 + $0xb0] sm:$0xff]   ;;  %v916_v8 = vld [vmem:[%s1173_s1 + $0x60] sm:$0xff]  }
   0x4   :  { %798 = vmatprep.subr.bf16.mxu0 %v910_v2  ;;  %876 = vmatprep.subr.bf16.mxu1 %v911_v3  ;;  %v917_v9 = vld [vmem:[%s1173_s1 + $0xa8] sm:$0xff]   ;;  %v918_v10 = vld [vmem:[%s1173_s1 + $0x20] sm:$0xff]   ;;  %v919_v11 = vld [vmem:[%s1173_s1 + $0x58] sm:$0xff]  }
   0x5   :  { %877 = vmatpush3.bf16.msra.mxu1 %v911_v3  ;;  %v920_v12 = vld [vmem:[%s1173_s1 + $0xa0] sm:$0xff]   ;;  %v921_v13 = vld [vmem:[%s1173_s1 + $0x18] sm:$0xff]   ;;  %v922_v15 = vld [vmem:[%s1173_s1 + $0x50] sm:$0xff]  }
   0x6   :  { %878 = vmatprep.subr.bf16.mxu1 %v914_v6  ;;  %v923_v14 = vld [vmem:[%s1173_s1 + $0x98] sm:$0xff]   ;;  %v924_v16 = vld [vmem:[%s1173_s1 + $0x10] sm:$0xff]   ;;  %v925_v18 = vld [vmem:[%s1173_s1 + $0x48] sm:$0xff]  }
   0x7   :  { %799 = vmatpush3.bf16.msra.mxu0 %v912_v4  ;;  %v926_v17 = vld [vmem:[%s1173_s1 + $0x90] sm:$0xff]   ;;  %v927_v19 = vld [vmem:[%s1173_s1 + $0x8] sm:$0xff]   ;;  %v928_v20 = vld [vmem:[%s1173_s1 + $0x40] sm:$0xff]  }
   0x8   :  { %800 = vmatprep.subr.bf16.mxu0 %v913_v5  ;;  %v929_v21 = vld [vmem:[%s1173_s1 + $0x88] sm:$0xff]   ;;  %v933_v22 = vld [vmem:[%s1174_s0 + $0x4] ss:$12 sps:$4 sm:$0xff]   ;;  %v940_v31 = vld [vmem:[%s1174_s0 + $0x34] ss:$12 sps:$4 sm:$0xff]  }
   0x9   :  { %879 = vmatpush3.bf16.msra.mxu1 %v914_v6  ;;  %v930_v23 = vld [vmem:[%s1173_s1] sm:$0xff]   ;;  %406 = vmatprep.mubr.bf16.mxu0 %v933_v22  ;;  %v935_v24 = vld [vmem:[%s1174_s0 + $0x8] ss:$12 sps:$4 sm:$0xff]   ;;  %v944_v32 = vld [vmem:[%s1174_s0 + $0x50] ss:$12 sps:$4 sm:$0xff]  }
   0xa   :  { %880 = vmatprep.subr.bf16.mxu1 %v917_v9  ;;  %v934_v25 = vld [vmem:[%s1173_s1 + $0x80] sm:$0xff]   ;;  %892 = vmatprep.mubr.bf16.mxu1 %v935_v24  ;;  %v937_v27 = vld [vmem:[%s1174_s0 + $0x1c] ss:$12 sps:$4 sm:$0xff]   ;;  %v945_v35 = vld [vmem:[%s1174_s0 + $0x4c] ss:$12 sps:$4 sm:$0xff]  }
   0xb   :  { %801 = vmatpush3.bf16.msra.mxu0 %v915_v7  ;;  %v931_v26 = vld [vmem:[%s1174_s0] ss:$12 sps:$4 sm:$0xff]   ;;  %v943_v29 = vld [vmem:[%s1174_s0 + $0x38] ss:$12 sps:$4 sm:$0xff]   ;;  %v951_v33 = vld [vmem:[%s1174_s0 + $0x68] ss:$12 sps:$4 sm:$0xff]  }
   0xc   :  { %802 = vmatprep.subr.bf16.mxu0 %v916_v8  ;;  %v936_v28 = vld [vmem:[%s1174_s0 + $0x20] ss:$12 sps:$4 sm:$0xff]   ;;  %v939_v30 = vld [vmem:[%s1174_s0 + $0x18] ss:$12 sps:$4 sm:$0xff]   ;;  %v942_v34 = vld [vmem:[%s1174_s0 + $0x30] ss:$12 sps:$4 sm:$0xff]  }
   0xd   :  { %881 = vmatpush3.bf16.msra.mxu1 %v917_v9  ;;  %v952_v36 = vld [vmem:[%s1174_s0 + $0x80] ss:$12 sps:$4 sm:$0xff]   ;;  %v959_v37 = vld [vmem:[%s1174_s0 + $0x98] ss:$12 sps:$4 sm:$0xff]   ;;  %v947_v38 = vld [vmem:[%s1174_s0 + $0x48] ss:$12 sps:$4 sm:$0xff]  }
   0xe   :  { %882 = vmatprep.subr.bf16.mxu1 %v920_v12  ;;  %v948_v39 = vld [vmem:[%s1174_s0 + $0x64] ss:$12 sps:$4 sm:$0xff]   ;;  %v950_v41 = vld [vmem:[%s1174_s0 + $0x60] ss:$12 sps:$4 sm:$0xff]   ;;  %v953_v42 = vld [vmem:[%s1174_s0 + $0x7c] ss:$12 sps:$4 sm:$0xff]  }
   0xf   :  { %803 = vmatpush3.bf16.msra.mxu0 %v918_v10  ;;  %v960_v40 = vld [vmem:[%s1174_s0 + $0xb0] ss:$12 sps:$4 sm:$0xff]   ;;  %v955_v43 = vld [vmem:[%s1174_s0 + $0x78] ss:$12 sps:$4 sm:$0xff]   ;;  %v956_v44 = vld [vmem:[%s1174_s0 + $0x94] ss:$12 sps:$4 sm:$0xff]  }
  0x10   :  { %804 = vmatprep.subr.bf16.mxu0 %v919_v11  ;;  %v958_v45 = vld [vmem:[%s1174_s0 + $0x90] ss:$12 sps:$4 sm:$0xff]   ;;  %v961_v46 = vld [vmem:[%s1174_s0 + $0xac] ss:$12 sps:$4 sm:$0xff]   ;;  %v963_v47 = vld [vmem:[%s1174_s0 + $0xa8] ss:$12 sps:$4 sm:$0xff]  }
  0x11   :  { %883 = vmatpush3.bf16.msra.mxu1 %v920_v12  ;;  %v1131_v50 = vld [vmem:[%s1175_s2] ss:$0 sm:$0xff] }
  0x12   :  { %884 = vmatprep.subr.bf16.mxu1 %v923_v14 }
  0x13   :  { %805 = vmatpush3.bf16.msra.mxu0 %v921_v13 }
  0x14   :  { %806 = vmatprep.subr.bf16.mxu0 %v922_v15 }
  0x15   :  { %885 = vmatpush3.bf16.msra.mxu1 %v923_v14 }
  0x16   :  { %886 = vmatprep.subr.bf16.mxu1 %v926_v17 }
  0x17   :  { %807 = vmatpush3.bf16.msra.mxu0 %v924_v16 }
  0x18   :  { %808 = vmatprep.subr.bf16.mxu0 %v925_v18 }
  0x19   :  { %887 = vmatpush3.bf16.msra.mxu1 %v926_v17 }
  0x1a   :  { %888 = vmatprep.subr.bf16.mxu1 %v929_v21 }
  0x1b   :  { %809 = vmatpush3.bf16.msra.mxu0 %v927_v19 }
  0x1c   :  { %810 = vmatprep.subr.bf16.mxu0 %v928_v20 }
  0x1d   :  { %889 = vmatpush3.bf16.msra.mxu1 %v929_v21 }
  0x1e   :  { %890 = vmatprep.subr.bf16.mxu1 %v934_v25 }
  0x1f   :  { %811 = vmatpush3.bf16.msra.mxu0 %v930_v23 }
  0x21   :  { %891 = vmatpush3.bf16.msra.mxu1 %v934_v25 }
  0x22   :  { %407 = vmatmul.mubr.bf16.vlgmr.msra.gmra.mxu0 %v931_v26 }
  0x23   :  { %414 = vmatprep.mubr.bf16.mxu0 %v937_v27 }
  0x24   :  { %893 = vmatmul.mubr.bf16.vlgmr.msra.gmra.mxu1 %v936_v28 }
  0x25   :  { %896 = vmatprep.mubr.bf16.mxu1 %v943_v29 }
  0x2a   :  { %415 = vmatmul.mubr.bf16.gmra.mxu0 %v939_v30 }
  0x2b   :  { %422 = vmatprep.mubr.bf16.mxu0 %v940_v31 }
  0x2c   :  { %897 = vmatmul.mubr.bf16.gmra.mxu1 %v944_v32 }
  0x2d   :  { %900 = vmatprep.mubr.bf16.mxu1 %v951_v33 }
  0x32   :  { %423 = vmatmul.mubr.bf16.gmra.mxu0 %v942_v34 }
  0x33   :  { %430 = vmatprep.mubr.bf16.mxu0 %v945_v35 }
  0x34   :  { %901 = vmatmul.mubr.bf16.gmra.mxu1 %v952_v36 }
  0x35   :  { %904 = vmatprep.mubr.bf16.mxu1 %v959_v37 }
  0x3a   :  { %431 = vmatmul.mubr.bf16.gmra.mxu0 %v947_v38 }
  0x3b   :  { %438 = vmatprep.mubr.bf16.mxu0 %v948_v39 }
  0x3c   :  { %905 = vmatmul.mubr.bf16.gmra.mxu1 %v960_v40 }
  0x42   :  { %439 = vmatmul.mubr.bf16.gmra.mxu0 %v950_v41 }
  0x43   :  { %446 = vmatprep.mubr.bf16.mxu0 %v953_v42 }
  0x4a   :  { %447 = vmatmul.mubr.bf16.gmra.mxu0 %v955_v43 }
  0x4b   :  { %454 = vmatprep.mubr.bf16.mxu0 %v956_v44 }
  0x52   :  { %455 = vmatmul.mubr.bf16.gmra.mxu0 %v958_v45 }
  0x53   :  { %462 = vmatprep.mubr.bf16.mxu0 %v961_v46 }
  0x5a   :  { %463 = vmatmul.mubr.bf16.gmra.mxu0 %v963_v47 }
  0xe2   :  { %v812_v48 = vpop.f32.mrf.mxu0 }
  0xe4   :  { %v813_v49 = vpop.f32.mrf.mxu0  ;;  %v894_v52 = vpop.f32.mrf.mxu1 }
  0xe5   :  { %v814_v51 = vadd.f32 %v813_v49, %v812_v48 }
  0xe6   :  { %v815_v53 = vpop.f32.mrf.mxu0  ;;  %v505_v55 = vpop.f32.mrf.mxu1 }
  0xe7   :  { %v409_v54 = vadd.f32 %v814_v51, %v1131_v50 }
  0xe8   :  { %v816_v56 = vpop.f32.mrf.mxu0  ;;  %v895_v58 = vpop.f32.mrf.mxu1 }
  0xe9   :  { %v817_v57 = vadd.f32 %v816_v56, %v815_v53  ;;  %v506_v60 = vadd.f32 %v505_v55, %v409_v54 }
  0xea   :  { %v818_v59 = vpop.f32.mrf.mxu0  ;;  %v508_v62 = vpop.f32.mrf.mxu1 }
  0xeb   :  { %v412_v61 = vadd.f32 %v817_v57, %v1131_v50  ;;  %v568_v4 = vmax.f32 %v506_v60, 0.0 }
  0xec   :  { %v819_v63 = vpop.f32.mrf.mxu0  ;;  %v898_v3 = vpop.f32.mrf.mxu1 }
  0xed   :  { %v820_v0 = vadd.f32 %v819_v63, %v818_v59  ;;  %v509_v1 = vadd.f32 %v508_v62, %v412_v61 }
  0xee   :  { %v821_v2 = vpop.f32.mrf.mxu0  ;;  %v521_v11 = vpop.f32.mrf.mxu1 }
  0xef   :  { %v417_v5 = vadd.f32 %v820_v0, %v1131_v50  ;;  %v569_v6 = vmax.f32 %v509_v1, 0.0 }
  0xf0   :  { %v822_v7 = vpop.f32.mrf.mxu0  ;;  %v899_v18 = vpop.f32.mrf.mxu1 }
  0xf1   :  { %v752_v8 = vpack.c.bf16 %v569_v6, %v568_v4  ;;  %v823_v9 = vadd.f32 %v822_v7, %v821_v2  ;;  %v514_v12 = vadd.f32 %v894_v52, %v417_v5 }
  0xf2   :  { %v824_v10 = vpop.f32.mrf.mxu0  ;;  %v524_v26 = vpop.f32.mrf.mxu1 }
  0xf3   :  { %753 = vst [vmem:[%s1176_s3] sm:$0xff] %v752_v8   ;;  %v420_v13 = vadd.f32 %v823_v9, %v1131_v50  ;;  %v570_v19 = vmax.f32 %v514_v12, 0.0 }
  0xf4   :  { %v825_v14 = vpop.f32.mrf.mxu0  ;;  %v902_v33 = vpop.f32.mrf.mxu1 }
  0xf5   :  { %v517_v15 = vadd.f32 %v895_v58, %v420_v13  ;;  %v826_v16 = vadd.f32 %v825_v14, %v824_v10 }
  0xf6   :  { %v827_v17 = vpop.f32.mrf.mxu0  ;;  %v537_v41 = vpop.f32.mrf.mxu1 }
  0xf7   :  { %v571_v20 = vmax.f32 %v517_v15, 0.0  ;;  %v425_v21 = vadd.f32 %v826_v16, %v1131_v50 }
  0xf8   :  { %v828_v22 = vpop.f32.mrf.mxu0  ;;  %v903_v48 = vpop.f32.mrf.mxu1 }
  0xf9   :  { %v757_v23 = vpack.c.bf16 %v571_v20, %v570_v19  ;;  %v829_v24 = vadd.f32 %v828_v22, %v827_v17  ;;  %v522_v27 = vadd.f32 %v521_v11, %v425_v21 }
  0xfa   :  { %v830_v25 = vpop.f32.mrf.mxu0  ;;  %v540_v57 = vpop.f32.mrf.mxu1 }
  0xfb   :  { %789 = vst [vmem:[%s1176_s3 + $0x8] sm:$0xff] %v757_v23   ;;  %v428_v28 = vadd.f32 %v829_v24, %v1131_v50  ;;  %v572_v34 = vmax.f32 %v522_v27, 0.0 }
  0xfc   :  { %v831_v29 = vpop.f32.mrf.mxu0  ;;  %v906_v0 = vpop.f32.mrf.mxu1 }
  0xfd   :  { %v832_v30 = vadd.f32 %v831_v29, %v830_v25  ;;  %v525_v31 = vadd.f32 %v524_v26, %v428_v28 }
  0xfe   :  { %v833_v32 = vpop.f32.mrf.mxu0  ;;  %v553_v8 = vpop.f32.mrf.mxu1 }
  0xff   :  { %v433_v35 = vadd.f32 %v832_v30, %v1131_v50  ;;  %v573_v36 = vmax.f32 %v525_v31, 0.0 }
 0x100   :  { %v834_v37 = vpop.f32.mrf.mxu0  ;;  %v907_v15 = vpop.f32.mrf.mxu1 }
 0x101   :  { %v762_v38 = vpack.c.bf16 %v573_v36, %v572_v34  ;;  %v835_v39 = vadd.f32 %v834_v37, %v833_v32  ;;  %v530_v42 = vadd.f32 %v898_v3, %v433_v35 }
 0x102   :  { %v836_v40 = vpop.f32.mrf.mxu0  ;;  %v556_v23 = vpop.f32.mrf.mxu1 }
 0x103   :  { %790 = vst [vmem:[%s1176_s3 + $0x10] sm:$0xff] %v762_v38   ;;  %v436_v43 = vadd.f32 %v835_v39, %v1131_v50  ;;  %v574_v49 = vmax.f32 %v530_v42, 0.0 }
 0x104   :  { %v837_v44 = vpop.f32.mrf.mxu0 }
 0x105   :  { %v533_v45 = vadd.f32 %v899_v18, %v436_v43  ;;  %v838_v46 = vadd.f32 %v837_v44, %v836_v40 }
 0x106   :  { %v839_v47 = vpop.f32.mrf.mxu0 }
 0x107   :  { %v575_v51 = vmax.f32 %v533_v45, 0.0  ;;  %v441_v52 = vadd.f32 %v838_v46, %v1131_v50 }
 0x108   :  { %v840_v53 = vpop.f32.mrf.mxu0 }
 0x109   :  { %v767_v54 = vpack.c.bf16 %v575_v51, %v574_v49  ;;  %v841_v55 = vadd.f32 %v840_v53, %v839_v47  ;;  %v538_v58 = vadd.f32 %v537_v41, %v441_v52 }
 0x10a   :  { %v842_v56 = vpop.f32.mrf.mxu0 }
 0x10b   :  { %791 = vst [vmem:[%s1176_s3 + $0x18] sm:$0xff] %v767_v54   ;;  %v444_v59 = vadd.f32 %v841_v55, %v1131_v50  ;;  %v576_v1 = vmax.f32 %v538_v58, 0.0 }
 0x10c   :  { %v843_v60 = vpop.f32.mrf.mxu0 }
 0x10d   :  { %v844_v61 = vadd.f32 %v843_v60, %v842_v56  ;;  %v541_v62 = vadd.f32 %v540_v57, %v444_v59 }
 0x10e   :  { %v845_v63 = vpop.f32.mrf.mxu0 }
 0x10f   :  { %v449_v2 = vadd.f32 %v844_v61, %v1131_v50  ;;  %v577_v3 = vmax.f32 %v541_v62, 0.0 }
 0x110   :  { %v846_v4 = vpop.f32.mrf.mxu0 }
 0x111   :  { %v772_v5 = vpack.c.bf16 %v577_v3, %v576_v1  ;;  %v847_v6 = vadd.f32 %v846_v4, %v845_v63  ;;  %v546_v9 = vadd.f32 %v902_v33, %v449_v2 }
 0x112   :  { %v848_v7 = vpop.f32.mrf.mxu0 }
 0x113   :  { %792 = vst [vmem:[%s1176_s3 + $0x20] sm:$0xff] %v772_v5   ;;  %v452_v10 = vadd.f32 %v847_v6, %v1131_v50  ;;  %v578_v16 = vmax.f32 %v546_v9, 0.0 }
 0x114   :  { %v849_v11 = vpop.f32.mrf.mxu0 }
 0x115   :  { %v549_v12 = vadd.f32 %v903_v48, %v452_v10  ;;  %v850_v13 = vadd.f32 %v849_v11, %v848_v7 }
 0x116   :  { %v851_v14 = vpop.f32.mrf.mxu0 }
 0x117   :  { %v579_v17 = vmax.f32 %v549_v12, 0.0  ;;  %v457_v18 = vadd.f32 %v850_v13, %v1131_v50 }
 0x118   :  { %v852_v19 = vpop.f32.mrf.mxu0 }
 0x119   :  { %v777_v20 = vpack.c.bf16 %v579_v17, %v578_v16  ;;  %v853_v21 = vadd.f32 %v852_v19, %v851_v14  ;;  %v554_v24 = vadd.f32 %v553_v8, %v457_v18 }
 0x11a   :  { %v854_v22 = vpop.f32.mrf.mxu0 }
 0x11b   :  { %793 = vst [vmem:[%s1176_s3 + $0x28] sm:$0xff] %v777_v20   ;;  %v460_v25 = vadd.f32 %v853_v21, %v1131_v50  ;;  %v580_v30 = vmax.f32 %v554_v24, 0.0 }
 0x11c   :  { %v855_v26 = vpop.f32.mrf.mxu0 }
 0x11d   :  { %v856_v27 = vadd.f32 %v855_v26, %v854_v22  ;;  %v557_v28 = vadd.f32 %v556_v23, %v460_v25 }
 0x11e   :  { %v857_v29 = vpop.f32.mrf.mxu0 }
 0x11f   :  { %v465_v31 = vadd.f32 %v856_v27, %v1131_v50  ;;  %v581_v32 = vmax.f32 %v557_v28, 0.0 }
 0x120   :  { %v858_v33 = vpop.f32.mrf.mxu0 }
 0x121   :  { %v782_v34 = vpack.c.bf16 %v581_v32, %v580_v30  ;;  %v859_v35 = vadd.f32 %v858_v33, %v857_v29  ;;  %v562_v36 = vadd.f32 %v906_v0, %v465_v31 }
 0x123   :  { %794 = vst [vmem:[%s1176_s3 + $0x30] sm:$0xff] %v782_v34   ;;  %v468_v37 = vadd.f32 %v859_v35, %v1131_v50  ;;  %v582_v39 = vmax.f32 %v562_v36, 0.0 }
 0x125   :  { %v565_v38 = vadd.f32 %v907_v15, %v468_v37 }
 0x127   :  { %v583_v40 = vmax.f32 %v565_v38, 0.0 }
 0x129   :  { %v787_v41 = vpack.c.bf16 %v583_v40, %v582_v39 }
 0x12b   :  { %795 = vst [vmem:[%s1176_s3 + $0x38] sm:$0xff] %v787_v41  }

// kernel: alexnet_forward.12
= control target key start
LH: loop header
LB: loop body
LE: loop exit
PB: predicated region body
PF: predicated region fallthrough
CT: control target
= control target key end

     0   :  { %v26_v0 = vlaneseq  ;;  %v64_v4 = vmov 1983009808   ;;  %s90_s0 = inlined_call_operand.vmem [shape: bf16[4,2048], index: 0, kind: input, shape index: {}]   ;;  %s91_s1 = inlined_call_operand.vmem [shape: bf16[4,512], index: 1, kind: output, shape index: {}]  }
   0x1   :  { %v8_v1 = vld [vmem:[%s90_s0] sm:$0xff]  ;;  %v9_v2 = vld [vmem:[%s90_s0 + $0x8] sm:$0xff]  ;;  %v10_v3 = vld [vmem:[%s90_s0 + $0x10] sm:$0xff]  ;;  %v24_v5 = vunpack.c.l.s4 %v64_v4 }
   0x2   :  { %v11_v6 = vld [vmem:[%s90_s0 + $0x18] sm:$0xff]  ;;  %v12_v7 = vmax.bf16 %v10_v3, %v8_v1  ;;  %v27_v8 = vshrl.u32 %v26_v0, 7 }
   0x3   :  { %v13_v9 = vmax.bf16 %v11_v6, %v9_v2  ;;  %v25_v10 = vunpack.c.0.s8 %v24_v5 }
   0x4   :  { %v15_v11 = vrot.slane %v12_v7, 4 }
   0x5   :  { %v19_v12 = vrot.slane %v13_v9, 4  ;;  %v28_v13 = vsub.s32 %v25_v10, %v27_v8 }
   0x6   :  { %v17_v14 = vmax.bf16 %v15_v11, %v12_v7 }
   0x7   :  { %v21_v15 = vmax.bf16 %v19_v12, %v13_v9 }
   0x8   :  { %v29_v16 = vrot.slane %v17_v14, %v28_v13 }
   0x9   :  { %v38_v17 = vrot.slane %v21_v15, %v28_v13 }
   0xa   :  { %v30_v18 = vcombine.high %v29_v16, %v29_v16 }
   0xb   :  { %v39_v19 = vcombine.high %v38_v17, %v38_v17 }
   0xc   :  { %v40_v20 = vcombine.low %v29_v16, %v30_v18 }
   0xd   :  { %v41_v21 = vcombine.low %v38_v17, %v39_v19 }
   0xe   :  { %v48_v22 = vrot.slane %v40_v20, %v28_v13 }
   0xf   :  { %v55_v23 = vrot.slane %v41_v21, %v28_v13 }
  0x11   :  { %v56_v24 = vcombine.low %v48_v22, %v55_v23 }
  0x13   :  { %58 = vst [vmem:[%s91_s1] sm:$0xff] %v56_v24 }

// kernel: alexnet_forward.11
= control target key start
LH: loop header
LB: loop body
LE: loop exit
PB: predicated region body
PF: predicated region fallthrough
CT: control target
= control target key end

     0   :  { %s6196_s1 = inlined_call_operand.vmem [shape: bf16[3200,256], index: 1, kind: input, shape index: {}]   ;;  %s6197_s0 = inlined_call_operand.vmem [shape: bf16[32,3200], index: 0, kind: input, shape index: {}]   ;;  %s6198_s2 = inlined_call_operand.vmem [shape: f32[1,256], index: 2, kind: input, shape index: {}]   ;;  %s6199_s3 = inlined_call_operand.vmem [shape: bf16[32,256], index: 3, kind: output, shape index: {}]  }
   0x1   :  { %v3935_v0 = vld [vmem:[%s6196_s1 + $0x74] ss:$8 sps:$4 sm:$0xff]   ;;  %v3939_v2 = vld [vmem:[%s6196_s1 + $0x70] ss:$8 sps:$4 sm:$0xff]   ;;  %v3941_v4 = vld [vmem:[%s6196_s1 + $0x64] ss:$8 sps:$4 sm:$0xff]  }
   0x2   :  { %v3937_v1 = vld [vmem:[%s6196_s1 + $0x174] ss:$8 sps:$4 sm:$0xff]   ;;  %2731 = vmatprep.subr.bf16.mxu0 %v3935_v0  ;;  %v3940_v3 = vld [vmem:[%s6196_s1 + $0x170] ss:$8 sps:$4 sm:$0xff]   ;;  %v3943_v5 = vld [vmem:[%s6196_s1 + $0x164] ss:$8 sps:$4 sm:$0xff]  }
   0x3   :  { %2784 = vmatprep.subr.bf16.mxu1 %v3937_v1  ;;  %2732 = vmatpush1.bf16.msra.mxu0 %v3939_v2  ;;  %v3945_v6 = vld [vmem:[%s6196_s1 + $0x60] ss:$8 sps:$4 sm:$0xff]   ;;  %v3947_v8 = vld [vmem:[%s6196_s1 + $0x54] ss:$8 sps:$4 sm:$0xff]   ;;  %v3951_v10 = vld [vmem:[%s6196_s1 + $0x50] ss:$8 sps:$4 sm:$0xff]  }
   0x4   :  { %2785 = vmatpush1.bf16.msra.mxu1 %v3940_v3  ;;  %2733 = vmatprep.subr.bf16.mxu0 %v3941_v4  ;;  %v3946_v7 = vld [vmem:[%s6196_s1 + $0x160] ss:$8 sps:$4 sm:$0xff]   ;;  %v3949_v9 = vld [vmem:[%s6196_s1 + $0x154] ss:$8 sps:$4 sm:$0xff]   ;;  %v3952_v11 = vld [vmem:[%s6196_s1 + $0x150] ss:$8 sps:$4 sm:$0xff]  }
   0x5   :  { %2786 = vmatprep.subr.bf16.mxu1 %v3943_v5  ;;  %v3953_v12 = vld [vmem:[%s6196_s1 + $0x44] ss:$8 sps:$4 sm:$0xff]   ;;  %v3957_v14 = vld [vmem:[%s6196_s1 + $0x40] ss:$8 sps:$4 sm:$0xff]   ;;  %v3959_v16 = vld [vmem:[%s6196_s1 + $0x34] ss:$8 sps:$4 sm:$0xff]  }
   0x6   :  { %v3955_v13 = vld [vmem:[%s6196_s1 + $0x144] ss:$8 sps:$4 sm:$0xff]   ;;  %v3958_v15 = vld [vmem:[%s6196_s1 + $0x140] ss:$8 sps:$4 sm:$0xff]   ;;  %v3961_v17 = vld [vmem:[%s6196_s1 + $0x134] ss:$8 sps:$4 sm:$0xff]  }
   0x7   :  { %2734 = vmatpush1.bf16.msra.mxu0 %v3945_v6  ;;  %v3963_v18 = vld [vmem:[%s6196_s1 + $0x30] ss:$8 sps:$4 sm:$0xff]   ;;  %v3965_v20 = vld [vmem:[%s6196_s1 + $0x24] ss:$8 sps:$4 sm:$0xff]   ;;  %v3969_v22 = vld [vmem:[%s6196_s1 + $0x20] ss:$8 sps:$4 sm:$0xff]  }
   0x8   :  { %2787 = vmatpush1.bf16.msra.mxu1 %v3946_v7  ;;  %2735 = vmatprep.subr.bf16.mxu0 %v3947_v8  ;;  %v3964_v19 = vld [vmem:[%s6196_s1 + $0x130] ss:$8 sps:$4 sm:$0xff]   ;;  %v3967_v21 = vld [vmem:[%s6196_s1 + $0x124] ss:$8 sps:$4 sm:$0xff]   ;;  %v3970_v23 = vld [vmem:[%s6196_s1 + $0x120] ss:$8 sps:$4 sm:$0xff]  }
   0x9   :  { %2788 = vmatprep.subr.bf16.mxu1 %v3949_v9  ;;  %v3971_v24 = vld [vmem:[%s6196_s1 + $0x14] ss:$8 sps:$4 sm:$0xff]   ;;  %v3975_v26 = vld [vmem:[%s6196_s1 + $0x10] ss:$8 sps:$4 sm:$0xff]   ;;  %v3977_v28 = vld [vmem:[%s6196_s1 + $0x4] ss:$8 sps:$4 sm:$0xff]  }
   0xa   :  { %v3973_v25 = vld [vmem:[%s6196_s1 + $0x114] ss:$8 sps:$4 sm:$0xff]   ;;  %v3976_v27 = vld [vmem:[%s6196_s1 + $0x110] ss:$8 sps:$4 sm:$0xff]   ;;  %v3979_v29 = vld [vmem:[%s6196_s1 + $0x104] ss:$8 sps:$4 sm:$0xff]  }
   0xb   :  { %2736 = vmatpush1.bf16.msra.mxu0 %v3951_v10  ;;  %v3981_v30 = vld [vmem:[%s6196_s1] ss:$8 sps:$4 sm:$0xff]   ;;  %v3983_v32 = vld [vmem:[%s6196_s1 + $0xf4] ss:$8 sps:$4 sm:$0xff]   ;;  %v3987_v34 = vld [vmem:[%s6196_s1 + $0xf0] ss:$8 sps:$4 sm:$0xff]  }
   0xc   :  { %2789 = vmatpush1.bf16.msra.mxu1 %v3952_v11  ;;  %2737 = vmatprep.subr.bf16.mxu0 %v3953_v12  ;;  %v3982_v31 = vld [vmem:[%s6196_s1 + $0x100] ss:$8 sps:$4 sm:$0xff]   ;;  %v3985_v33 = vld [vmem:[%s6196_s1 + $0x1f4] ss:$8 sps:$4 sm:$0xff]   ;;  %v3988_v35 = vld [vmem:[%s6196_s1 + $0x1f0] ss:$8 sps:$4 sm:$0xff]  }
   0xd   :  { %2790 = vmatprep.subr.bf16.mxu1 %v3955_v13  ;;  %v3989_v36 = vld [vmem:[%s6196_s1 + $0xe4] ss:$8 sps:$4 sm:$0xff]   ;;  %v3993_v38 = vld [vmem:[%s6196_s1 + $0xe0] ss:$8 sps:$4 sm:$0xff]   ;;  %v3995_v40 = vld [vmem:[%s6196_s1 + $0xd4] ss:$8 sps:$4 sm:$0xff]  }
   0xe   :  { %v3991_v37 = vld [vmem:[%s6196_s1 + $0x1e4] ss:$8 sps:$4 sm:$0xff]   ;;  %v3994_v39 = vld [vmem:[%s6196_s1 + $0x1e0] ss:$8 sps:$4 sm:$0xff]   ;;  %v3997_v41 = vld [vmem:[%s6196_s1 + $0x1d4] ss:$8 sps:$4 sm:$0xff]  }
   0xf   :  { %2738 = vmatpush1.bf16.msra.mxu0 %v3957_v14  ;;  %v3999_v42 = vld [vmem:[%s6196_s1 + $0xd0] ss:$8 sps:$4 sm:$0xff]   ;;  %v4001_v44 = vld [vmem:[%s6196_s1 + $0xc4] ss:$8 sps:$4 sm:$0xff]   ;;  %v4005_v46 = vld [vmem:[%s6196_s1 + $0xc0] ss:$8 sps:$4 sm:$0xff]  }
  0x10   :  { %2791 = vmatpush1.bf16.msra.mxu1 %v3958_v15  ;;  %2739 = vmatprep.subr.bf16.mxu0 %v3959_v16  ;;  %v4000_v43 = vld [vmem:[%s6196_s1 + $0x1d0] ss:$8 sps:$4 sm:$0xff]   ;;  %v4003_v45 = vld [vmem:[%s6196_s1 + $0x1c4] ss:$8 sps:$4 sm:$0xff]   ;;  %v4006_v47 = vld [vmem:[%s6196_s1 + $0x1c0] ss:$8 sps:$4 sm:$0xff]  }
  0x11   :  { %2792 = vmatprep.subr.bf16.mxu1 %v3961_v17  ;;  %v4007_v48 = vld [vmem:[%s6196_s1 + $0xb4] ss:$8 sps:$4 sm:$0xff]   ;;  %v4033_v49 = vld [vmem:[%s6197_s0 + $0x4] ss:$100 sps:$4 sm:$0xff]   ;;  %v4036_v51 = vld [vmem:[%s6197_s0 + $0xc] ss:$100 sps:$4 sm:$0xff]  }
  0x12   :  { %v4009_v50 = vld [vmem:[%s6196_s1 + $0x1b4] ss:$8 sps:$4 sm:$0xff]   ;;  %2763 = vmatprep.mubr.bf16.mxu0 %v4033_v49  ;;  %v4011_v52 = vld [vmem:[%s6196_s1 + $0xb0] ss:$8 sps:$4 sm:$0xff]   ;;  %2816 = vmatprep.mubr.bf16.mxu1 %v4036_v51  ;;  %v4013_v54 = vld [vmem:[%s6196_s1 + $0xa4] ss:$8 sps:$4 sm:$0xff]  }
  0x13   :  { %2740 = vmatpush1.bf16.msra.mxu0 %v3963_v18  ;;  %v4012_v53 = vld [vmem:[%s6196_s1 + $0x1b0] ss:$8 sps:$4 sm:$0xff]   ;;  %v4015_v55 = vld [vmem:[%s6196_s1 + $0x1a4] ss:$8 sps:$4 sm:$0xff]   ;;  %v4017_v56 = vld [vmem:[%s6196_s1 + $0xa0] ss:$8 sps:$4 sm:$0xff]  }
  0x14   :  { %2793 = vmatpush1.bf16.msra.mxu1 %v3964_v19  ;;  %2741 = vmatprep.subr.bf16.mxu0 %v3965_v20  ;;  %v4018_v57 = vld [vmem:[%s6196_s1 + $0x1a0] ss:$8 sps:$4 sm:$0xff]   ;;  %v4019_v58 = vld [vmem:[%s6196_s1 + $0x94] ss:$8 sps:$4 sm:$0xff]   ;;  %v4023_v60 = vld [vmem:[%s6196_s1 + $0x90] ss:$8 sps:$4 sm:$0xff]  }
  0x15   :  { %2794 = vmatprep.subr.bf16.mxu1 %v3967_v21  ;;  %v4021_v59 = vld [vmem:[%s6196_s1 + $0x194] ss:$8 sps:$4 sm:$0xff]   ;;  %v4024_v61 = vld [vmem:[%s6196_s1 + $0x190] ss:$8 sps:$4 sm:$0xff]   ;;  %v4025_v62 = vld [vmem:[%s6196_s1 + $0x84] ss:$8 sps:$4 sm:$0xff]  }
  0x16   :  { %v4027_v63 = vld [vmem:[%s6196_s1 + $0x184] ss:$8 sps:$4 sm:$0xff]   ;;  %v4029_v0 = vld [vmem:[%s6196_s1 + $0x80] ss:$8 sps:$4 sm:$0xff]   ;;  %v4039_v2 = vld [vmem:[%s6196_s1 + $0x274] ss:$8 sps:$4 sm:$0xff]  }
  0x17   :  { %2742 = vmatpush1.bf16.msra.mxu0 %v3969_v22  ;;  %v4030_v1 = vld [vmem:[%s6196_s1 + $0x180] ss:$8 sps:$4 sm:$0xff]   ;;  %v4042_v3 = vld [vmem:[%s6196_s1 + $0x374] ss:$8 sps:$4 sm:$0xff]   ;;  %v4037_v6 = vld [vmem:[%s6196_s1 + $0x270] ss:$8 sps:$4 sm:$0xff]  }
  0x18   :  { %2795 = vmatpush1.bf16.msra.mxu1 %v3970_v23  ;;  %2743 = vmatprep.subr.bf16.mxu0 %v3971_v24  ;;  %v4031_v4 = vld [vmem:[%s6197_s0] ss:$100 sps:$4 sm:$0xff]   ;;  %v4034_v5 = vld [vmem:[%s6197_s0 + $0x8] ss:$100 sps:$4 sm:$0xff]   ;;  %v4040_v7 = vld [vmem:[%s6196_s1 + $0x370] ss:$8 sps:$4 sm:$0xff]  }
  0x19   :  { %2796 = vmatprep.subr.bf16.mxu1 %v3973_v25  ;;  %v4045_v8 = vld [vmem:[%s6196_s1 + $0x264] ss:$8 sps:$4 sm:$0xff]   ;;  %v4043_v10 = vld [vmem:[%s6196_s1 + $0x260] ss:$8 sps:$4 sm:$0xff]   ;;  %v4051_v12 = vld [vmem:[%s6196_s1 + $0x254] ss:$8 sps:$4 sm:$0xff]  }
  0x1a   :  { %v4048_v9 = vld [vmem:[%s6196_s1 + $0x364] ss:$8 sps:$4 sm:$0xff]   ;;  %v4046_v11 = vld [vmem:[%s6196_s1 + $0x360] ss:$8 sps:$4 sm:$0xff]   ;;  %v4054_v13 = vld [vmem:[%s6196_s1 + $0x354] ss:$8 sps:$4 sm:$0xff]  }
  0x1b   :  { %2744 = vmatpush1.bf16.msra.mxu0 %v3975_v26  ;;  %v4049_v14 = vld [vmem:[%s6196_s1 + $0x250] ss:$8 sps:$4 sm:$0xff]   ;;  %v4057_v16 = vld [vmem:[%s6196_s1 + $0x244] ss:$8 sps:$4 sm:$0xff]   ;;  %v4055_v18 = vld [vmem:[%s6196_s1 + $0x240] ss:$8 sps:$4 sm:$0xff]  }
  0x1c   :  { %2797 = vmatpush1.bf16.msra.mxu1 %v3976_v27  ;;  %2745 = vmatprep.subr.bf16.mxu0 %v3977_v28  ;;  %v4052_v15 = vld [vmem:[%s6196_s1 + $0x350] ss:$8 sps:$4 sm:$0xff]   ;;  %v4060_v17 = vld [vmem:[%s6196_s1 + $0x344] ss:$8 sps:$4 sm:$0xff]   ;;  %v4058_v19 = vld [vmem:[%s6196_s1 + $0x340] ss:$8 sps:$4 sm:$0xff]  }
  0x1d   :  { %2798 = vmatprep.subr.bf16.mxu1 %v3979_v29  ;;  %v4063_v20 = vld [vmem:[%s6196_s1 + $0x234] ss:$8 sps:$4 sm:$0xff]   ;;  %v4109_v22 = vld [vmem:[%s6197_s0 + $0xcc] ss:$100 sps:$4 sm:$0xff]   ;;  %v4067_v28 = vld [vmem:[%s6196_s1 + $0x220] ss:$8 sps:$4 sm:$0xff]  }
  0x1e   :  { %v4066_v21 = vld [vmem:[%s6196_s1 + $0x334] ss:$8 sps:$4 sm:$0xff]   ;;  %v4061_v23 = vld [vmem:[%s6196_s1 + $0x230] ss:$8 sps:$4 sm:$0xff]   ;;  %v4069_v25 = vld [vmem:[%s6196_s1 + $0x224] ss:$8 sps:$4 sm:$0xff]  }
  0x1f   :  { %2746 = vmatpush1.bf16.msra.mxu0 %v3981_v30  ;;  %v4064_v24 = vld [vmem:[%s6196_s1 + $0x330] ss:$8 sps:$4 sm:$0xff]   ;;  %v4072_v26 = vld [vmem:[%s6196_s1 + $0x324] ss:$8 sps:$4 sm:$0xff]   ;;  %v4070_v30 = vld [vmem:[%s6196_s1 + $0x320] ss:$8 sps:$4 sm:$0xff]  }
  0x20   :  { %2799 = vmatpush1.bf16.msra.mxu1 %v3982_v31  ;;  %2747 = vmatprep.subr.bf16.mxu0 %v3983_v32  ;;  %v4117_v27 = vld [vmem:[%s6197_s0 + $0xc8] ss:$100 sps:$4 sm:$0xff]   ;;  %v4118_v29 = vld [vmem:[%s6197_s0 + $0xd4] ss:$100 sps:$4 sm:$0xff]  }
  0x21   :  { %2800 = vmatprep.subr.bf16.mxu1 %v3985_v33  ;;  %v4120_v31 = vld [vmem:[%s6197_s0 + $0xd0] ss:$100 sps:$4 sm:$0xff]   ;;  %v4094_v49 = vld [vmem:[%s6196_s1 + $0x3e0] ss:$8 sps:$4 sm:$0xff]  }
  0x22   :  { %v4075_v32 = vld [vmem:[%s6196_s1 + $0x214] ss:$8 sps:$4 sm:$0xff]  }
  0x23   :  { %2748 = vmatpush2.bf16.msra.mxu0 %v3987_v34  ;;  %v4078_v33 = vld [vmem:[%s6196_s1 + $0x314] ss:$8 sps:$4 sm:$0xff]   ;;  %v4073_v34 = vld [vmem:[%s6196_s1 + $0x210] ss:$8 sps:$4 sm:$0xff]  }
  0x24   :  { %2801 = vmatpush2.bf16.msra.mxu1 %v3988_v35  ;;  %2749 = vmatprep.subr.bf16.mxu0 %v3989_v36  ;;  %v4076_v35 = vld [vmem:[%s6196_s1 + $0x310] ss:$8 sps:$4 sm:$0xff]   ;;  %v4081_v36 = vld [vmem:[%s6196_s1 + $0x204] ss:$8 sps:$4 sm:$0xff]   ;;  %v4102_v51 = vld [vmem:[%s6196_s1 + $0x3d4] ss:$8 sps:$4 sm:$0xff]  }
  0x25   :  { %2802 = vmatprep.subr.bf16.mxu1 %v3991_v37  ;;  %v4084_v37 = vld [vmem:[%s6196_s1 + $0x304] ss:$8 sps:$4 sm:$0xff]  }
  0x27   :  { %2750 = vmatpush2.bf16.msra.mxu0 %v3993_v38  ;;  %v4079_v38 = vld [vmem:[%s6196_s1 + $0x200] ss:$8 sps:$4 sm:$0xff]  }
  0x28   :  { %2803 = vmatpush2.bf16.msra.mxu1 %v3994_v39  ;;  %2751 = vmatprep.subr.bf16.mxu0 %v3995_v40  ;;  %v4082_v39 = vld [vmem:[%s6196_s1 + $0x300] ss:$8 sps:$4 sm:$0xff]   ;;  %v4087_v40 = vld [vmem:[%s6196_s1 + $0x2f4] ss:$8 sps:$4 sm:$0xff]  }
  0x29   :  { %2804 = vmatprep.subr.bf16.mxu1 %v3997_v41  ;;  %v4141_v41 = vld [vmem:[%s6197_s0 + $0x14] ss:$100 sps:$4 sm:$0xff]  }
  0x2b   :  { %2752 = vmatpush2.bf16.msra.mxu0 %v3999_v42  ;;  %v4090_v42 = vld [vmem:[%s6196_s1 + $0x3f4] ss:$8 sps:$4 sm:$0xff]  }
  0x2c   :  { %2805 = vmatpush2.bf16.msra.mxu1 %v4000_v43  ;;  %2753 = vmatprep.subr.bf16.mxu0 %v4001_v44  ;;  %v4144_v43 = vld [vmem:[%s6197_s0 + $0x1c] ss:$100 sps:$4 sm:$0xff]   ;;  %v4085_v44 = vld [vmem:[%s6196_s1 + $0x2f0] ss:$8 sps:$4 sm:$0xff]  }
  0x2d   :  { %2806 = vmatprep.subr.bf16.mxu1 %v4003_v45  ;;  %v4088_v45 = vld [vmem:[%s6196_s1 + $0x3f0] ss:$8 sps:$4 sm:$0xff]  }
  0x2f   :  { %2754 = vmatpush2.bf16.msra.mxu0 %v4005_v46  ;;  %v4093_v46 = vld [vmem:[%s6196_s1 + $0x2e4] ss:$8 sps:$4 sm:$0xff]  }
  0x30   :  { %2807 = vmatpush2.bf16.msra.mxu1 %v4006_v47  ;;  %2755 = vmatprep.subr.bf16.mxu0 %v4007_v48  ;;  %v4096_v47 = vld [vmem:[%s6196_s1 + $0x3e4] ss:$8 sps:$4 sm:$0xff]   ;;  %v4091_v48 = vld [vmem:[%s6196_s1 + $0x2e0] ss:$8 sps:$4 sm:$0xff]  }
  0x31   :  { %2808 = vmatprep.subr.bf16.mxu1 %v4009_v50  ;;  %v4099_v50 = vld [vmem:[%s6196_s1 + $0x2d4] ss:$8 sps:$4 sm:$0xff]  }
  0x33   :  { %2756 = vmatpush2.bf16.msra.mxu0 %v4011_v52  ;;  %v4097_v52 = vld [vmem:[%s6196_s1 + $0x2d0] ss:$8 sps:$4 sm:$0xff]  }
  0x34   :  { %2809 = vmatpush2.bf16.msra.mxu1 %v4012_v53  ;;  %2757 = vmatprep.subr.bf16.mxu0 %v4013_v54  ;;  %v4100_v53 = vld [vmem:[%s6196_s1 + $0x3d0] ss:$8 sps:$4 sm:$0xff]   ;;  %v4105_v54 = vld [vmem:[%s6196_s1 + $0x2c4] ss:$8 sps:$4 sm:$0xff]  }
  0x35   :  { %2810 = vmatprep.subr.bf16.mxu1 %v4015_v55  ;;  %v4108_v55 = vld [vmem:[%s6196_s1 + $0x3c4] ss:$8 sps:$4 sm:$0xff]  }
  0x37   :  { %2758 = vmatpush2.bf16.msra.mxu0 %v4017_v56  ;;  %v4103_v56 = vld [vmem:[%s6196_s1 + $0x2c0] ss:$8 sps:$4 sm:$0xff]  }
  0x38   :  { %2811 = vmatpush2.bf16.msra.mxu1 %v4018_v57  ;;  %2759 = vmatprep.subr.bf16.mxu0 %v4019_v58  ;;  %v4106_v57 = vld [vmem:[%s6196_s1 + $0x3c0] ss:$8 sps:$4 sm:$0xff]   ;;  %v4113_v58 = vld [vmem:[%s6196_s1 + $0x2b4] ss:$8 sps:$4 sm:$0xff]  }
  0x39   :  { %2812 = vmatprep.subr.bf16.mxu1 %v4021_v59  ;;  %v4116_v59 = vld [vmem:[%s6196_s1 + $0x3b4] ss:$8 sps:$4 sm:$0xff]  }
  0x3b   :  { %2760 = vmatpush2.bf16.msra.mxu0 %v4023_v60  ;;  %v4111_v60 = vld [vmem:[%s6196_s1 + $0x2b0] ss:$8 sps:$4 sm:$0xff]  }
  0x3c   :  { %2813 = vmatpush2.bf16.msra.mxu1 %v4024_v61  ;;  %2761 = vmatprep.subr.bf16.mxu0 %v4025_v62  ;;  %v4114_v61 = vld [vmem:[%s6196_s1 + $0x3b0] ss:$8 sps:$4 sm:$0xff]   ;;  %v4123_v62 = vld [vmem:[%s6196_s1 + $0x2a4] ss:$8 sps:$4 sm:$0xff]  }
  0x3d   :  { %2814 = vmatprep.subr.bf16.mxu1 %v4027_v63  ;;  %v4126_v63 = vld [vmem:[%s6196_s1 + $0x3a4] ss:$8 sps:$4 sm:$0xff]  }
  0x3f   :  { %2762 = vmatpush2.bf16.msra.mxu0 %v4029_v0  ;;  %v4121_v0 = vld [vmem:[%s6196_s1 + $0x2a0] ss:$8 sps:$4 sm:$0xff]  }
  0x40   :  { %2815 = vmatpush2.bf16.msra.mxu1 %v4030_v1  ;;  %2837 = vmatprep.subr.bf16.mxu0 %v4039_v2  ;;  %v4124_v1 = vld [vmem:[%s6196_s1 + $0x3a0] ss:$8 sps:$4 sm:$0xff]   ;;  %v4129_v2 = vld [vmem:[%s6196_s1 + $0x294] ss:$8 sps:$4 sm:$0xff]  }
  0x41   :  { %2890 = vmatprep.subr.bf16.mxu1 %v4042_v3  ;;  %v4132_v3 = vld [vmem:[%s6196_s1 + $0x394] ss:$8 sps:$4 sm:$0xff]  }
  0x42   :  { %2764 = vmatmul.mubr.bf16.vlgmr.msra.gmra.mxu0 %v4031_v4  ;;  %v4127_v4 = vld [vmem:[%s6196_s1 + $0x290] ss:$8 sps:$4 sm:$0xff]  }
  0x43   :  { %2817 = vmatmul.mubr.bf16.vlgmr.msra.gmra.mxu1 %v4034_v5  ;;  %2838 = vmatpush1.bf16.msra.mxu0 %v4037_v6  ;;  %v4130_v5 = vld [vmem:[%s6196_s1 + $0x390] ss:$8 sps:$4 sm:$0xff]   ;;  %v4135_v6 = vld [vmem:[%s6196_s1 + $0x284] ss:$8 sps:$4 sm:$0xff]  }
  0x44   :  { %2891 = vmatpush1.bf16.msra.mxu1 %v4040_v7  ;;  %2839 = vmatprep.subr.bf16.mxu0 %v4045_v8  ;;  %v4138_v7 = vld [vmem:[%s6196_s1 + $0x384] ss:$8 sps:$4 sm:$0xff]   ;;  %v4133_v8 = vld [vmem:[%s6196_s1 + $0x280] ss:$8 sps:$4 sm:$0xff]  }
  0x45   :  { %2892 = vmatprep.subr.bf16.mxu1 %v4048_v9  ;;  %2773 = vmatprep.mubr.bf16.mxu0 %v4109_v22  ;;  %v4136_v9 = vld [vmem:[%s6196_s1 + $0x380] ss:$8 sps:$4 sm:$0xff]   ;;  %v4162_v22 = vld [vmem:[%s6196_s1 + $0x454] ss:$8 sps:$4 sm:$0xff]  }
  0x46   :  { %2826 = vmatprep.mubr.bf16.mxu1 %v4118_v29  ;;  %v4174_v29 = vld [vmem:[%s6196_s1 + $0x544] ss:$8 sps:$4 sm:$0xff]  }
  0x47   :  { %2840 = vmatpush1.bf16.msra.mxu0 %v4043_v10  ;;  %v4147_v10 = vld [vmem:[%s6196_s1 + $0x474] ss:$8 sps:$4 sm:$0xff]  }
  0x48   :  { %2893 = vmatpush1.bf16.msra.mxu1 %v4046_v11  ;;  %2841 = vmatprep.subr.bf16.mxu0 %v4051_v12  ;;  %v4150_v11 = vld [vmem:[%s6196_s1 + $0x574] ss:$8 sps:$4 sm:$0xff]  }
  0x49   :  { %2894 = vmatprep.subr.bf16.mxu1 %v4054_v13  ;;  %v4139_v12 = vld [vmem:[%s6197_s0 + $0x10] ss:$100 sps:$4 sm:$0xff]   ;;  %v4142_v13 = vld [vmem:[%s6197_s0 + $0x18] ss:$100 sps:$4 sm:$0xff]  }
  0x4a   :  { %2774 = vmatmul.mubr.bf16.gmra.mxu0 %v4117_v27  ;;  %v4168_v27 = vld [vmem:[%s6197_s0 + $0xe0] ss:$100 sps:$4 sm:$0xff]  }
  0x4b   :  { %2842 = vmatpush1.bf16.msra.mxu0 %v4049_v14  ;;  %2827 = vmatmul.mubr.bf16.gmra.mxu1 %v4120_v31  ;;  %v4145_v14 = vld [vmem:[%s6196_s1 + $0x470] ss:$8 sps:$4 sm:$0xff]   ;;  %v4172_v31 = vld [vmem:[%s6196_s1 + $0x540] ss:$8 sps:$4 sm:$0xff]  }
  0x4c   :  { %2895 = vmatpush1.bf16.msra.mxu1 %v4052_v15  ;;  %2843 = vmatprep.subr.bf16.mxu0 %v4057_v16  ;;  %v4148_v15 = vld [vmem:[%s6196_s1 + $0x570] ss:$8 sps:$4 sm:$0xff]   ;;  %v4153_v16 = vld [vmem:[%s6196_s1 + $0x464] ss:$8 sps:$4 sm:$0xff]  }
  0x4d   :  { %2896 = vmatprep.subr.bf16.mxu1 %v4060_v17  ;;  %2869 = vmatprep.mubr.bf16.mxu0 %v4141_v41  ;;  %v4156_v17 = vld [vmem:[%s6196_s1 + $0x564] ss:$8 sps:$4 sm:$0xff]   ;;  %v4184_v41 = vld [vmem:[%s6196_s1 + $0x520] ss:$8 sps:$4 sm:$0xff]  }
  0x4e   :  { %2922 = vmatprep.mubr.bf16.mxu1 %v4144_v43  ;;  %v4192_v43 = vld [vmem:[%s6196_s1 + $0x514] ss:$8 sps:$4 sm:$0xff]  }
  0x4f   :  { %2844 = vmatpush1.bf16.msra.mxu0 %v4055_v18  ;;  %v4157_v18 = vld [vmem:[%s6197_s0 + $0xdc] ss:$100 sps:$4 sm:$0xff]  }
  0x50   :  { %2897 = vmatpush1.bf16.msra.mxu1 %v4058_v19  ;;  %2845 = vmatprep.subr.bf16.mxu0 %v4063_v20  ;;  %v4166_v19 = vld [vmem:[%s6197_s0 + $0xe4] ss:$100 sps:$4 sm:$0xff]  }
  0x51   :  { %2898 = vmatprep.subr.bf16.mxu1 %v4066_v21  ;;  %v4151_v20 = vld [vmem:[%s6196_s1 + $0x460] ss:$8 sps:$4 sm:$0xff]  }
  0x52   :  { %v4154_v21 = vld [vmem:[%s6196_s1 + $0x560] ss:$8 sps:$4 sm:$0xff]  }
  0x53   :  { %2846 = vmatpush1.bf16.msra.mxu0 %v4061_v23  ;;  %v4165_v23 = vld [vmem:[%s6196_s1 + $0x554] ss:$8 sps:$4 sm:$0xff]  }
  0x54   :  { %2899 = vmatpush1.bf16.msra.mxu1 %v4064_v24  ;;  %2847 = vmatprep.subr.bf16.mxu0 %v4069_v25  ;;  %v4159_v24 = vld [vmem:[%s6197_s0 + $0xd8] ss:$100 sps:$4 sm:$0xff]  }
  0x55   :  { %2900 = vmatprep.subr.bf16.mxu1 %v4072_v26  ;;  %v4160_v25 = vld [vmem:[%s6196_s1 + $0x450] ss:$8 sps:$4 sm:$0xff]  }
  0x56   :  { %v4163_v26 = vld [vmem:[%s6196_s1 + $0x550] ss:$8 sps:$4 sm:$0xff]  }
  0x57   :  { %2848 = vmatpush1.bf16.msra.mxu0 %v4067_v28  ;;  %v4171_v28 = vld [vmem:[%s6196_s1 + $0x444] ss:$8 sps:$4 sm:$0xff]  }
  0x58   :  { %2901 = vmatpush1.bf16.msra.mxu1 %v4070_v30  ;;  %2849 = vmatprep.subr.bf16.mxu0 %v4075_v32  ;;  %v4169_v30 = vld [vmem:[%s6196_s1 + $0x440] ss:$8 sps:$4 sm:$0xff]   ;;  %v4177_v32 = vld [vmem:[%s6196_s1 + $0x434] ss:$8 sps:$4 sm:$0xff]  }
  0x59   :  { %2902 = vmatprep.subr.bf16.mxu1 %v4078_v33  ;;  %v4249_v33 = vld [vmem:[%s6197_s0 + $0x24] ss:$100 sps:$4 sm:$0xff]  }
  0x5b   :  { %2850 = vmatpush1.bf16.msra.mxu0 %v4073_v34  ;;  %v4180_v34 = vld [vmem:[%s6196_s1 + $0x534] ss:$8 sps:$4 sm:$0xff]  }
  0x5c   :  { %2903 = vmatpush1.bf16.msra.mxu1 %v4076_v35  ;;  %2851 = vmatprep.subr.bf16.mxu0 %v4081_v36  ;;  %v4252_v35 = vld [vmem:[%s6197_s0 + $0x2c] ss:$100 sps:$4 sm:$0xff]  }
  0x5d   :  { %2904 = vmatprep.subr.bf16.mxu1 %v4084_v37  ;;  %v4175_v36 = vld [vmem:[%s6196_s1 + $0x430] ss:$8 sps:$4 sm:$0xff]  }
  0x5e   :  { %v4178_v37 = vld [vmem:[%s6196_s1 + $0x530] ss:$8 sps:$4 sm:$0xff]  }
  0x5f   :  { %2852 = vmatpush1.bf16.msra.mxu0 %v4079_v38  ;;  %v4183_v38 = vld [vmem:[%s6196_s1 + $0x424] ss:$8 sps:$4 sm:$0xff]  }
  0x60   :  { %2905 = vmatpush1.bf16.msra.mxu1 %v4082_v39  ;;  %2853 = vmatprep.subr.bf16.mxu0 %v4087_v40  ;;  %v4186_v39 = vld [vmem:[%s6196_s1 + $0x524] ss:$8 sps:$4 sm:$0xff]   ;;  %v4181_v40 = vld [vmem:[%s6196_s1 + $0x420] ss:$8 sps:$4 sm:$0xff]  }
  0x61   :  { %2906 = vmatprep.subr.bf16.mxu1 %v4090_v42  ;;  %v4189_v42 = vld [vmem:[%s6196_s1 + $0x414] ss:$8 sps:$4 sm:$0xff]  }
  0x63   :  { %2854 = vmatpush2.bf16.msra.mxu0 %v4085_v44  ;;  %v4187_v44 = vld [vmem:[%s6196_s1 + $0x410] ss:$8 sps:$4 sm:$0xff]  }
  0x64   :  { %2907 = vmatpush2.bf16.msra.mxu1 %v4088_v45  ;;  %2855 = vmatprep.subr.bf16.mxu0 %v4093_v46  ;;  %v4190_v45 = vld [vmem:[%s6196_s1 + $0x510] ss:$8 sps:$4 sm:$0xff]   ;;  %v4195_v46 = vld [vmem:[%s6196_s1 + $0x404] ss:$8 sps:$4 sm:$0xff]  }
  0x65   :  { %2908 = vmatprep.subr.bf16.mxu1 %v4096_v47  ;;  %v4198_v47 = vld [vmem:[%s6196_s1 + $0x504] ss:$8 sps:$4 sm:$0xff]  }
  0x67   :  { %2856 = vmatpush2.bf16.msra.mxu0 %v4091_v48  ;;  %v4193_v48 = vld [vmem:[%s6196_s1 + $0x400] ss:$8 sps:$4 sm:$0xff]  }
  0x68   :  { %2909 = vmatpush2.bf16.msra.mxu1 %v4094_v49  ;;  %2857 = vmatprep.subr.bf16.mxu0 %v4099_v50  ;;  %v4196_v49 = vld [vmem:[%s6196_s1 + $0x500] ss:$8 sps:$4 sm:$0xff]   ;;  %v4201_v50 = vld [vmem:[%s6196_s1 + $0x4f4] ss:$8 sps:$4 sm:$0xff]  }
  0x69   :  { %2910 = vmatprep.subr.bf16.mxu1 %v4102_v51  ;;  %v4204_v51 = vld [vmem:[%s6196_s1 + $0x5f4] ss:$8 sps:$4 sm:$0xff]  }
  0x6b   :  { %2858 = vmatpush2.bf16.msra.mxu0 %v4097_v52  ;;  %v4199_v52 = vld [vmem:[%s6196_s1 + $0x4f0] ss:$8 sps:$4 sm:$0xff]  }
  0x6c   :  { %2911 = vmatpush2.bf16.msra.mxu1 %v4100_v53  ;;  %2859 = vmatprep.subr.bf16.mxu0 %v4105_v54  ;;  %v4202_v53 = vld [vmem:[%s6196_s1 + $0x5f0] ss:$8 sps:$4 sm:$0xff]   ;;  %v4207_v54 = vld [vmem:[%s6196_s1 + $0x4e4] ss:$8 sps:$4 sm:$0xff]  }
  0x6d   :  { %2912 = vmatprep.subr.bf16.mxu1 %v4108_v55  ;;  %v4210_v55 = vld [vmem:[%s6196_s1 + $0x5e4] ss:$8 sps:$4 sm:$0xff]  }
  0x6f   :  { %2860 = vmatpush2.bf16.msra.mxu0 %v4103_v56  ;;  %v4205_v56 = vld [vmem:[%s6196_s1 + $0x4e0] ss:$8 sps:$4 sm:$0xff]  }
  0x70   :  { %2913 = vmatpush2.bf16.msra.mxu1 %v4106_v57  ;;  %2861 = vmatprep.subr.bf16.mxu0 %v4113_v58  ;;  %v4208_v57 = vld [vmem:[%s6196_s1 + $0x5e0] ss:$8 sps:$4 sm:$0xff]   ;;  %v4213_v58 = vld [vmem:[%s6196_s1 + $0x4d4] ss:$8 sps:$4 sm:$0xff]  }
  0x71   :  { %2914 = vmatprep.subr.bf16.mxu1 %v4116_v59  ;;  %v4216_v59 = vld [vmem:[%s6196_s1 + $0x5d4] ss:$8 sps:$4 sm:$0xff]  }
  0x73   :  { %2862 = vmatpush2.bf16.msra.mxu0 %v4111_v60  ;;  %v4211_v60 = vld [vmem:[%s6196_s1 + $0x4d0] ss:$8 sps:$4 sm:$0xff]  }
  0x74   :  { %2915 = vmatpush2.bf16.msra.mxu1 %v4114_v61  ;;  %2863 = vmatprep.subr.bf16.mxu0 %v4123_v62  ;;  %v4214_v61 = vld [vmem:[%s6196_s1 + $0x5d0] ss:$8 sps:$4 sm:$0xff]   ;;  %v4219_v62 = vld [vmem:[%s6196_s1 + $0x4c4] ss:$8 sps:$4 sm:$0xff]  }
  0x75   :  { %2916 = vmatprep.subr.bf16.mxu1 %v4126_v63  ;;  %v4222_v63 = vld [vmem:[%s6196_s1 + $0x5c4] ss:$8 sps:$4 sm:$0xff]  }
  0x77   :  { %2864 = vmatpush2.bf16.msra.mxu0 %v4121_v0  ;;  %v4217_v0 = vld [vmem:[%s6196_s1 + $0x4c0] ss:$8 sps:$4 sm:$0xff]  }
  0x78   :  { %2917 = vmatpush2.bf16.msra.mxu1 %v4124_v1  ;;  %2865 = vmatprep.subr.bf16.mxu0 %v4129_v2  ;;  %v4220_v1 = vld [vmem:[%s6196_s1 + $0x5c0] ss:$8 sps:$4 sm:$0xff]   ;;  %v4225_v2 = vld [vmem:[%s6196_s1 + $0x4b4] ss:$8 sps:$4 sm:$0xff]  }
  0x79   :  { %2918 = vmatprep.subr.bf16.mxu1 %v4132_v3  ;;  %v4228_v3 = vld [vmem:[%s6196_s1 + $0x5b4] ss:$8 sps:$4 sm:$0xff]  }
  0x7b   :  { %2866 = vmatpush2.bf16.msra.mxu0 %v4127_v4  ;;  %v4223_v4 = vld [vmem:[%s6196_s1 + $0x4b0] ss:$8 sps:$4 sm:$0xff]  }
  0x7c   :  { %2919 = vmatpush2.bf16.msra.mxu1 %v4130_v5  ;;  %2867 = vmatprep.subr.bf16.mxu0 %v4135_v6  ;;  %v4226_v5 = vld [vmem:[%s6196_s1 + $0x5b0] ss:$8 sps:$4 sm:$0xff]   ;;  %v4231_v6 = vld [vmem:[%s6196_s1 + $0x4a4] ss:$8 sps:$4 sm:$0xff]  }
  0x7d   :  { %2920 = vmatprep.subr.bf16.mxu1 %v4138_v7  ;;  %v4234_v7 = vld [vmem:[%s6196_s1 + $0x5a4] ss:$8 sps:$4 sm:$0xff]  }
  0x7f   :  { %2868 = vmatpush2.bf16.msra.mxu0 %v4133_v8  ;;  %v4229_v8 = vld [vmem:[%s6196_s1 + $0x4a0] ss:$8 sps:$4 sm:$0xff]  }
  0x80   :  { %2921 = vmatpush2.bf16.msra.mxu1 %v4136_v9  ;;  %2943 = vmatprep.subr.bf16.mxu0 %v4147_v10  ;;  %v4232_v9 = vld [vmem:[%s6196_s1 + $0x5a0] ss:$8 sps:$4 sm:$0xff]   ;;  %v4237_v10 = vld [vmem:[%s6196_s1 + $0x494] ss:$8 sps:$4 sm:$0xff]  }
  0x81   :  { %2996 = vmatprep.subr.bf16.mxu1 %v4150_v11  ;;  %v4240_v11 = vld [vmem:[%s6196_s1 + $0x594] ss:$8 sps:$4 sm:$0xff]  }
  0x82   :  { %2870 = vmatmul.mubr.bf16.vlgmr.msra.gmra.mxu0 %v4139_v12  ;;  %v4235_v12 = vld [vmem:[%s6196_s1 + $0x490] ss:$8 sps:$4 sm:$0xff]  }
  0x83   :  { %2923 = vmatmul.mubr.bf16.vlgmr.msra.gmra.mxu1 %v4142_v13  ;;  %2944 = vmatpush1.bf16.msra.mxu0 %v4145_v14  ;;  %v4238_v13 = vld [vmem:[%s6196_s1 + $0x590] ss:$8 sps:$4 sm:$0xff]   ;;  %v4243_v14 = vld [vmem:[%s6196_s1 + $0x484] ss:$8 sps:$4 sm:$0xff]  }
  0x84   :  { %2997 = vmatpush1.bf16.msra.mxu1 %v4148_v15  ;;  %2945 = vmatprep.subr.bf16.mxu0 %v4153_v16  ;;  %v4246_v15 = vld [vmem:[%s6196_s1 + $0x584] ss:$8 sps:$4 sm:$0xff]   ;;  %v4241_v16 = vld [vmem:[%s6196_s1 + $0x480] ss:$8 sps:$4 sm:$0xff]  }
  0x85   :  { %2998 = vmatprep.subr.bf16.mxu1 %v4156_v17  ;;  %2879 = vmatprep.mubr.bf16.mxu0 %v4157_v18  ;;  %v4244_v17 = vld [vmem:[%s6196_s1 + $0x580] ss:$8 sps:$4 sm:$0xff]   ;;  %v4255_v18 = vld [vmem:[%s6196_s1 + $0x674] ss:$8 sps:$4 sm:$0xff]  }
  0x86   :  { %2932 = vmatprep.mubr.bf16.mxu1 %v4166_v19  ;;  %v4258_v19 = vld [vmem:[%s6196_s1 + $0x774] ss:$8 sps:$4 sm:$0xff]  }
  0x87   :  { %2946 = vmatpush1.bf16.msra.mxu0 %v4151_v20  ;;  %v4247_v20 = vld [vmem:[%s6197_s0 + $0x20] ss:$100 sps:$4 sm:$0xff]  }
  0x88   :  { %2999 = vmatpush1.bf16.msra.mxu1 %v4154_v21  ;;  %2947 = vmatprep.subr.bf16.mxu0 %v4162_v22  ;;  %v4250_v21 = vld [vmem:[%s6197_s0 + $0x28] ss:$100 sps:$4 sm:$0xff]   ;;  %v4253_v22 = vld [vmem:[%s6196_s1 + $0x670] ss:$8 sps:$4 sm:$0xff]  }
  0x89   :  { %3000 = vmatprep.subr.bf16.mxu1 %v4165_v23  ;;  %v4256_v23 = vld [vmem:[%s6196_s1 + $0x770] ss:$8 sps:$4 sm:$0xff]  }
  0x8a   :  { %2880 = vmatmul.mubr.bf16.gmra.mxu0 %v4159_v24  ;;  %v4261_v24 = vld [vmem:[%s6196_s1 + $0x664] ss:$8 sps:$4 sm:$0xff]  }
  0x8b   :  { %2933 = vmatmul.mubr.bf16.gmra.mxu1 %v4168_v27  ;;  %2948 = vmatpush1.bf16.msra.mxu0 %v4160_v25  ;;  %v4264_v25 = vld [vmem:[%s6196_s1 + $0x764] ss:$8 sps:$4 sm:$0xff]   ;;  %v4274_v27 = vld [vmem:[%s6197_s0 + $0xf4] ss:$100 sps:$4 sm:$0xff]  }
  0x8c   :  { %3001 = vmatpush1.bf16.msra.mxu1 %v4163_v26  ;;  %2949 = vmatprep.subr.bf16.mxu0 %v4171_v28  ;;  %v4265_v26 = vld [vmem:[%s6197_s0 + $0xec] ss:$100 sps:$4 sm:$0xff]   ;;  %v4259_v28 = vld [vmem:[%s6196_s1 + $0x660] ss:$8 sps:$4 sm:$0xff]  }
  0x8d   :  { %3002 = vmatprep.subr.bf16.mxu1 %v4174_v29  ;;  %2975 = vmatprep.mubr.bf16.mxu0 %v4249_v33  ;;  %v4262_v29 = vld [vmem:[%s6196_s1 + $0x760] ss:$8 sps:$4 sm:$0xff]   ;;  %v4268_v33 = vld [vmem:[%s6196_s1 + $0x650] ss:$8 sps:$4 sm:$0xff]  }
  0x8e   :  { %3028 = vmatprep.mubr.bf16.mxu1 %v4252_v35  ;;  %v4271_v35 = vld [vmem:[%s6196_s1 + $0x750] ss:$8 sps:$4 sm:$0xff]  }
  0x8f   :  { %2950 = vmatpush1.bf16.msra.mxu0 %v4169_v30  ;;  %v4270_v30 = vld [vmem:[%s6196_s1 + $0x654] ss:$8 sps:$4 sm:$0xff]  }
  0x90   :  { %3003 = vmatpush1.bf16.msra.mxu1 %v4172_v31  ;;  %2951 = vmatprep.subr.bf16.mxu0 %v4177_v32  ;;  %v4273_v31 = vld [vmem:[%s6196_s1 + $0x754] ss:$8 sps:$4 sm:$0xff]   ;;  %v4267_v32 = vld [vmem:[%s6197_s0 + $0xe8] ss:$100 sps:$4 sm:$0xff]  }
  0x91   :  { %3004 = vmatprep.subr.bf16.mxu1 %v4180_v34  ;;  %v4276_v34 = vld [vmem:[%s6197_s0 + $0xf0] ss:$100 sps:$4 sm:$0xff]  }
  0x93   :  { %2952 = vmatpush1.bf16.msra.mxu0 %v4175_v36  ;;  %v4279_v36 = vld [vmem:[%s6196_s1 + $0x644] ss:$8 sps:$4 sm:$0xff]  }
  0x94   :  { %3005 = vmatpush1.bf16.msra.mxu1 %v4178_v37  ;;  %2953 = vmatprep.subr.bf16.mxu0 %v4183_v38  ;;  %v4282_v37 = vld [vmem:[%s6196_s1 + $0x744] ss:$8 sps:$4 sm:$0xff]   ;;  %v4357_v38 = vld [vmem:[%s6197_s0 + $0x34] ss:$100 sps:$4 sm:$0xff]  }
  0x95   :  { %3006 = vmatprep.subr.bf16.mxu1 %v4186_v39  ;;  %v4360_v39 = vld [vmem:[%s6197_s0 + $0x3c] ss:$100 sps:$4 sm:$0xff]  }
  0x97   :  { %2954 = vmatpush1.bf16.msra.mxu0 %v4181_v40  ;;  %v4277_v40 = vld [vmem:[%s6196_s1 + $0x640] ss:$8 sps:$4 sm:$0xff]  }
  0x98   :  { %3007 = vmatpush1.bf16.msra.mxu1 %v4184_v41  ;;  %2955 = vmatprep.subr.bf16.mxu0 %v4189_v42  ;;  %v4280_v41 = vld [vmem:[%s6196_s1 + $0x740] ss:$8 sps:$4 sm:$0xff]   ;;  %v4285_v42 = vld [vmem:[%s6196_s1 + $0x634] ss:$8 sps:$4 sm:$0xff]  }
  0x99   :  { %3008 = vmatprep.subr.bf16.mxu1 %v4192_v43  ;;  %v4288_v43 = vld [vmem:[%s6196_s1 + $0x734] ss:$8 sps:$4 sm:$0xff]  }
  0x9b   :  { %2956 = vmatpush1.bf16.msra.mxu0 %v4187_v44  ;;  %v4283_v44 = vld [vmem:[%s6196_s1 + $0x630] ss:$8 sps:$4 sm:$0xff]  }
  0x9c   :  { %3009 = vmatpush1.bf16.msra.mxu1 %v4190_v45  ;;  %2957 = vmatprep.subr.bf16.mxu0 %v4195_v46  ;;  %v4286_v45 = vld [vmem:[%s6196_s1 + $0x730] ss:$8 sps:$4 sm:$0xff]   ;;  %v4291_v46 = vld [vmem:[%s6196_s1 + $0x624] ss:$8 sps:$4 sm:$0xff]  }
  0x9d   :  { %3010 = vmatprep.subr.bf16.mxu1 %v4198_v47  ;;  %v4294_v47 = vld [vmem:[%s6196_s1 + $0x724] ss:$8 sps:$4 sm:$0xff]  }
  0x9f   :  { %2958 = vmatpush1.bf16.msra.mxu0 %v4193_v48  ;;  %v4289_v48 = vld [vmem:[%s6196_s1 + $0x620] ss:$8 sps:$4 sm:$0xff]  }
  0xa0   :  { %3011 = vmatpush1.bf16.msra.mxu1 %v4196_v49  ;;  %2959 = vmatprep.subr.bf16.mxu0 %v4201_v50  ;;  %v4292_v49 = vld [vmem:[%s6196_s1 + $0x720] ss:$8 sps:$4 sm:$0xff]   ;;  %v4297_v50 = vld [vmem:[%s6196_s1 + $0x614] ss:$8 sps:$4 sm:$0xff]  }
  0xa1   :  { %3012 = vmatprep.subr.bf16.mxu1 %v4204_v51  ;;  %v4300_v51 = vld [vmem:[%s6196_s1 + $0x714] ss:$8 sps:$4 sm:$0xff]  }
  0xa3   :  { %2960 = vmatpush2.bf16.msra.mxu0 %v4199_v52  ;;  %v4295_v52 = vld [vmem:[%s6196_s1 + $0x610] ss:$8 sps:$4 sm:$0xff]  }
  0xa4   :  { %3013 = vmatpush2.bf16.msra.mxu1 %v4202_v53  ;;  %2961 = vmatprep.subr.bf16.mxu0 %v4207_v54  ;;  %v4298_v53 = vld [vmem:[%s6196_s1 + $0x710] ss:$8 sps:$4 sm:$0xff]   ;;  %v4303_v54 = vld [vmem:[%s6196_s1 + $0x604] ss:$8 sps:$4 sm:$0xff]  }
  0xa5   :  { %3014 = vmatprep.subr.bf16.mxu1 %v4210_v55  ;;  %v4306_v55 = vld [vmem:[%s6196_s1 + $0x704] ss:$8 sps:$4 sm:$0xff]  }
  0xa7   :  { %2962 = vmatpush2.bf16.msra.mxu0 %v4205_v56  ;;  %v4301_v56 = vld [vmem:[%s6196_s1 + $0x600] ss:$8 sps:$4 sm:$0xff]  }
  0xa8   :  { %3015 = vmatpush2.bf16.msra.mxu1 %v4208_v57  ;;  %2963 = vmatprep.subr.bf16.mxu0 %v4213_v58  ;;  %v4304_v57 = vld [vmem:[%s6196_s1 + $0x700] ss:$8 sps:$4 sm:$0xff]   ;;  %v4309_v58 = vld [vmem:[%s6196_s1 + $0x6f4] ss:$8 sps:$4 sm:$0xff]  }
  0xa9   :  { %3016 = vmatprep.subr.bf16.mxu1 %v4216_v59  ;;  %v4312_v59 = vld [vmem:[%s6196_s1 + $0x7f4] ss:$8 sps:$4 sm:$0xff]  }
  0xab   :  { %2964 = vmatpush2.bf16.msra.mxu0 %v4211_v60  ;;  %v4307_v60 = vld [vmem:[%s6196_s1 + $0x6f0] ss:$8 sps:$4 sm:$0xff]  }
  0xac   :  { %3017 = vmatpush2.bf16.msra.mxu1 %v4214_v61  ;;  %2965 = vmatprep.subr.bf16.mxu0 %v4219_v62  ;;  %v4310_v61 = vld [vmem:[%s6196_s1 + $0x7f0] ss:$8 sps:$4 sm:$0xff]   ;;  %v4315_v62 = vld [vmem:[%s6196_s1 + $0x6e4] ss:$8 sps:$4 sm:$0xff]  }
  0xad   :  { %3018 = vmatprep.subr.bf16.mxu1 %v4222_v63  ;;  %v4318_v63 = vld [vmem:[%s6196_s1 + $0x7e4] ss:$8 sps:$4 sm:$0xff]  }
  0xaf   :  { %2966 = vmatpush2.bf16.msra.mxu0 %v4217_v0  ;;  %v4313_v0 = vld [vmem:[%s6196_s1 + $0x6e0] ss:$8 sps:$4 sm:$0xff]  }
  0xb0   :  { %3019 = vmatpush2.bf16.msra.mxu1 %v4220_v1  ;;  %2967 = vmatprep.subr.bf16.mxu0 %v4225_v2  ;;  %v4316_v1 = vld [vmem:[%s6196_s1 + $0x7e0] ss:$8 sps:$4 sm:$0xff]   ;;  %v4321_v2 = vld [vmem:[%s6196_s1 + $0x6d4] ss:$8 sps:$4 sm:$0xff]  }
  0xb1   :  { %3020 = vmatprep.subr.bf16.mxu1 %v4228_v3  ;;  %v4324_v3 = vld [vmem:[%s6196_s1 + $0x7d4] ss:$8 sps:$4 sm:$0xff]  }
  0xb3   :  { %2968 = vmatpush2.bf16.msra.mxu0 %v4223_v4  ;;  %v4319_v4 = vld [vmem:[%s6196_s1 + $0x6d0] ss:$8 sps:$4 sm:$0xff]  }
  0xb4   :  { %3021 = vmatpush2.bf16.msra.mxu1 %v4226_v5  ;;  %2969 = vmatprep.subr.bf16.mxu0 %v4231_v6  ;;  %v4322_v5 = vld [vmem:[%s6196_s1 + $0x7d0] ss:$8 sps:$4 sm:$0xff]   ;;  %v4327_v6 = vld [vmem:[%s6196_s1 + $0x6c4] ss:$8 sps:$4 sm:$0xff]  }
  0xb5   :  { %3022 = vmatprep.subr.bf16.mxu1 %v4234_v7  ;;  %v4330_v7 = vld [vmem:[%s6196_s1 + $0x7c4] ss:$8 sps:$4 sm:$0xff]  }
  0xb7   :  { %2970 = vmatpush2.bf16.msra.mxu0 %v4229_v8  ;;  %v4325_v8 = vld [vmem:[%s6196_s1 + $0x6c0] ss:$8 sps:$4 sm:$0xff]  }
  0xb8   :  { %3023 = vmatpush2.bf16.msra.mxu1 %v4232_v9  ;;  %2971 = vmatprep.subr.bf16.mxu0 %v4237_v10  ;;  %v4328_v9 = vld [vmem:[%s6196_s1 + $0x7c0] ss:$8 sps:$4 sm:$0xff]   ;;  %v4333_v10 = vld [vmem:[%s6196_s1 + $0x6b4] ss:$8 sps:$4 sm:$0xff]  }
  0xb9   :  { %3024 = vmatprep.subr.bf16.mxu1 %v4240_v11  ;;  %v4336_v11 = vld [vmem:[%s6196_s1 + $0x7b4] ss:$8 sps:$4 sm:$0xff]  }
  0xbb   :  { %2972 = vmatpush2.bf16.msra.mxu0 %v4235_v12  ;;  %v4331_v12 = vld [vmem:[%s6196_s1 + $0x6b0] ss:$8 sps:$4 sm:$0xff]  }
  0xbc   :  { %3025 = vmatpush2.bf16.msra.mxu1 %v4238_v13  ;;  %2973 = vmatprep.subr.bf16.mxu0 %v4243_v14  ;;  %v4334_v13 = vld [vmem:[%s6196_s1 + $0x7b0] ss:$8 sps:$4 sm:$0xff]   ;;  %v4339_v14 = vld [vmem:[%s6196_s1 + $0x6a4] ss:$8 sps:$4 sm:$0xff]  }
  0xbd   :  { %3026 = vmatprep.subr.bf16.mxu1 %v4246_v15  ;;  %v4342_v15 = vld [vmem:[%s6196_s1 + $0x7a4] ss:$8 sps:$4 sm:$0xff]  }
  0xbf   :  { %2974 = vmatpush2.bf16.msra.mxu0 %v4241_v16  ;;  %v4337_v16 = vld [vmem:[%s6196_s1 + $0x6a0] ss:$8 sps:$4 sm:$0xff]  }
  0xc0   :  { %3027 = vmatpush2.bf16.msra.mxu1 %v4244_v17  ;;  %3049 = vmatprep.subr.bf16.mxu0 %v4255_v18  ;;  %v4340_v17 = vld [vmem:[%s6196_s1 + $0x7a0] ss:$8 sps:$4 sm:$0xff]   ;;  %v469_v18 = vlaneseq }
  0xc1   :  { %3102 = vmatprep.subr.bf16.mxu1 %v4258_v19  ;;  %v4345_v19 = vld [vmem:[%s6196_s1 + $0x694] ss:$8 sps:$4 sm:$0xff]  }
  0xc2   :  { %2976 = vmatmul.mubr.bf16.vlgmr.msra.gmra.mxu0 %v4247_v20  ;;  %v4348_v20 = vld [vmem:[%s6196_s1 + $0x794] ss:$8 sps:$4 sm:$0xff]  }
  0xc3   :  { %3029 = vmatmul.mubr.bf16.vlgmr.msra.gmra.mxu1 %v4250_v21  ;;  %3050 = vmatpush1.bf16.msra.mxu0 %v4253_v22  ;;  %v4343_v21 = vld [vmem:[%s6196_s1 + $0x690] ss:$8 sps:$4 sm:$0xff]  }
  0xc4   :  { %3103 = vmatpush1.bf16.msra.mxu1 %v4256_v23  ;;  %3051 = vmatprep.subr.bf16.mxu0 %v4261_v24  ;;  %v4346_v22 = vld [vmem:[%s6196_s1 + $0x790] ss:$8 sps:$4 sm:$0xff]   ;;  %v470_v23 = vshrl.u32 %v469_v18, 7  ;;  %v4351_v24 = vld [vmem:[%s6196_s1 + $0x684] ss:$8 sps:$4 sm:$0xff]  }
  0xc5   :  { %3104 = vmatprep.subr.bf16.mxu1 %v4264_v25  ;;  %2985 = vmatprep.mubr.bf16.mxu0 %v4265_v26  ;;  %v4354_v25 = vld [vmem:[%s6196_s1 + $0x784] ss:$8 sps:$4 sm:$0xff]   ;;  %v4349_v26 = vld [vmem:[%s6196_s1 + $0x680] ss:$8 sps:$4 sm:$0xff]  }
  0xc6   :  { %3038 = vmatprep.mubr.bf16.mxu1 %v4274_v27  ;;  %v4352_v27 = vld [vmem:[%s6196_s1 + $0x780] ss:$8 sps:$4 sm:$0xff]  }
  0xc7   :  { %3052 = vmatpush1.bf16.msra.mxu0 %v4259_v28  ;;  %v467_v28 = vld [vmem:[%s6198_s2] sm:$0x3] }
  0xc8   :  { %3105 = vmatpush1.bf16.msra.mxu1 %v4262_v29  ;;  %3053 = vmatprep.subr.bf16.mxu0 %v4270_v30  ;;  %v471_v29 = vsub.s32 0, %v470_v23  ;;  %v4363_v30 = vld [vmem:[%s6196_s1 + $0x874] ss:$8 sps:$4 sm:$0xff]  }
  0xc9   :  { %3106 = vmatprep.subr.bf16.mxu1 %v4273_v31  ;;  %v4366_v31 = vld [vmem:[%s6196_s1 + $0x974] ss:$8 sps:$4 sm:$0xff]  }
  0xca   :  { %2986 = vmatmul.mubr.bf16.gmra.mxu0 %v4267_v32  ;;  %v4355_v32 = vld [vmem:[%s6197_s0 + $0x30] ss:$100 sps:$4 sm:$0xff]  }
  0xcb   :  { %3039 = vmatmul.mubr.bf16.gmra.mxu1 %v4276_v34  ;;  %3054 = vmatpush1.bf16.msra.mxu0 %v4268_v33  ;;  %v4358_v33 = vld [vmem:[%s6197_s0 + $0x38] ss:$100 sps:$4 sm:$0xff]   ;;  %v475_v34 = vsub.s32 1, %v470_v23 }
  0xcc   :  { %3107 = vmatpush1.bf16.msra.mxu1 %v4271_v35  ;;  %3055 = vmatprep.subr.bf16.mxu0 %v4279_v36  ;;  %v4361_v35 = vld [vmem:[%s6196_s1 + $0x870] ss:$8 sps:$4 sm:$0xff]   ;;  %v5494_v36 = vrot.slane %v467_v28, %v471_v29  ;;  %v4411_v29 = vld [vmem:[%s6196_s1 + $0x804] ss:$8 sps:$4 sm:$0xff]  }
  0xcd   :  { %3108 = vmatprep.subr.bf16.mxu1 %v4282_v37  ;;  %3081 = vmatprep.mubr.bf16.mxu0 %v4357_v38  ;;  %v4364_v37 = vld [vmem:[%s6196_s1 + $0x970] ss:$8 sps:$4 sm:$0xff]   ;;  %v4369_v38 = vld [vmem:[%s6196_s1 + $0x864] ss:$8 sps:$4 sm:$0xff]  }
  0xce   :  { %3134 = vmatprep.mubr.bf16.mxu1 %v4360_v39  ;;  %v4372_v39 = vld [vmem:[%s6196_s1 + $0x964] ss:$8 sps:$4 sm:$0xff]   ;;  %v4403_v23 = vld [vmem:[%s6196_s1 + $0x810] ss:$8 sps:$4 sm:$0xff]  }
  0xcf   :  { %3056 = vmatpush1.bf16.msra.mxu0 %v4277_v40  ;;  %v5505_v40 = vrot.slane %v467_v28, %v475_v34 }
  0xd0   :  { %3109 = vmatpush1.bf16.msra.mxu1 %v4280_v41  ;;  %3057 = vmatprep.subr.bf16.mxu0 %v4285_v42  ;;  %v4373_v41 = vld [vmem:[%s6197_s0 + $0xfc] ss:$100 sps:$4 sm:$0xff]   ;;  %v4382_v42 = vld [vmem:[%s6197_s0 + $0x104] ss:$100 sps:$4 sm:$0xff]  }
  0xd1   :  { %3110 = vmatprep.subr.bf16.mxu1 %v4288_v43 }
  0xd3   :  { %3058 = vmatpush1.bf16.msra.mxu0 %v4283_v44 }
  0xd4   :  { %3111 = vmatpush1.bf16.msra.mxu1 %v4286_v45  ;;  %3059 = vmatprep.subr.bf16.mxu0 %v4291_v46  ;;  %v4367_v45 = vld [vmem:[%s6196_s1 + $0x860] ss:$8 sps:$4 sm:$0xff]  }
  0xd5   :  { %3112 = vmatprep.subr.bf16.mxu1 %v4294_v47  ;;  %v4370_v47 = vld [vmem:[%s6196_s1 + $0x960] ss:$8 sps:$4 sm:$0xff]  }
  0xd7   :  { %3060 = vmatpush1.bf16.msra.mxu0 %v4289_v48 }
  0xd8   :  { %3113 = vmatpush1.bf16.msra.mxu1 %v4292_v49  ;;  %3061 = vmatprep.subr.bf16.mxu0 %v4297_v50  ;;  %v4378_v50 = vld [vmem:[%s6196_s1 + $0x854] ss:$8 sps:$4 sm:$0xff]  }
  0xd9   :  { %3114 = vmatprep.subr.bf16.mxu1 %v4300_v51  ;;  %v4381_v51 = vld [vmem:[%s6196_s1 + $0x954] ss:$8 sps:$4 sm:$0xff]  }
  0xdb   :  { %3062 = vmatpush1.bf16.msra.mxu0 %v4295_v52 }
  0xdc   :  { %3115 = vmatpush1.bf16.msra.mxu1 %v4298_v53  ;;  %3063 = vmatprep.subr.bf16.mxu0 %v4303_v54  ;;  %v4375_v54 = vld [vmem:[%s6197_s0 + $0xf8] ss:$100 sps:$4 sm:$0xff]  }
  0xdd   :  { %3116 = vmatprep.subr.bf16.mxu1 %v4306_v55  ;;  %v4376_v55 = vld [vmem:[%s6196_s1 + $0x850] ss:$8 sps:$4 sm:$0xff]  }
  0xdf   :  { %3064 = vmatpush1.bf16.msra.mxu0 %v4301_v56 }
  0xe0   :  { %3117 = vmatpush1.bf16.msra.mxu1 %v4304_v57  ;;  %3065 = vmatprep.subr.bf16.mxu0 %v4309_v58  ;;  %v4384_v58 = vld [vmem:[%s6197_s0 + $0x100] ss:$100 sps:$4 sm:$0xff]  }
  0xe1   :  { %3118 = vmatprep.subr.bf16.mxu1 %v4312_v59 }
  0xe3   :  { %3066 = vmatpush2.bf16.msra.mxu0 %v4307_v60 }
  0xe4   :  { %3119 = vmatpush2.bf16.msra.mxu1 %v4310_v61  ;;  %3067 = vmatprep.subr.bf16.mxu0 %v4315_v62  ;;  %v4379_v61 = vld [vmem:[%s6196_s1 + $0x950] ss:$8 sps:$4 sm:$0xff]  }
  0xe5   :  { %3120 = vmatprep.subr.bf16.mxu1 %v4318_v63  ;;  %v4387_v63 = vld [vmem:[%s6196_s1 + $0x844] ss:$8 sps:$4 sm:$0xff]  }
  0xe7   :  { %3068 = vmatpush2.bf16.msra.mxu0 %v4313_v0  ;;  %v4390_v0 = vld [vmem:[%s6196_s1 + $0x944] ss:$8 sps:$4 sm:$0xff]  }
  0xe8   :  { %3121 = vmatpush2.bf16.msra.mxu1 %v4316_v1  ;;  %3069 = vmatprep.subr.bf16.mxu0 %v4321_v2 }
  0xe9   :  { %3122 = vmatprep.subr.bf16.mxu1 %v4324_v3  ;;  %v4465_v3 = vld [vmem:[%s6197_s0 + $0x44] ss:$100 sps:$4 sm:$0xff]  }
  0xeb   :  { %3070 = vmatpush2.bf16.msra.mxu0 %v4319_v4  ;;  %v4468_v4 = vld [vmem:[%s6197_s0 + $0x4c] ss:$100 sps:$4 sm:$0xff]  }
  0xec   :  { %3123 = vmatpush2.bf16.msra.mxu1 %v4322_v5  ;;  %3071 = vmatprep.subr.bf16.mxu0 %v4327_v6  ;;  %v4385_v6 = vld [vmem:[%s6196_s1 + $0x840] ss:$8 sps:$4 sm:$0xff]  }
  0xed   :  { %3124 = vmatprep.subr.bf16.mxu1 %v4330_v7 }
  0xef   :  { %3072 = vmatpush2.bf16.msra.mxu0 %v4325_v8  ;;  %v4388_v8 = vld [vmem:[%s6196_s1 + $0x940] ss:$8 sps:$4 sm:$0xff]  }
  0xf0   :  { %3125 = vmatpush2.bf16.msra.mxu1 %v4328_v9  ;;  %3073 = vmatprep.subr.bf16.mxu0 %v4333_v10  ;;  %v4393_v9 = vld [vmem:[%s6196_s1 + $0x834] ss:$8 sps:$4 sm:$0xff]  }
  0xf1   :  { %3126 = vmatprep.subr.bf16.mxu1 %v4336_v11  ;;  %v4396_v10 = vld [vmem:[%s6196_s1 + $0x934] ss:$8 sps:$4 sm:$0xff]   ;;  %v4391_v11 = vld [vmem:[%s6196_s1 + $0x830] ss:$8 sps:$4 sm:$0xff]  }
  0xf3   :  { %3074 = vmatpush2.bf16.msra.mxu0 %v4331_v12  ;;  %v4394_v12 = vld [vmem:[%s6196_s1 + $0x930] ss:$8 sps:$4 sm:$0xff]  }
  0xf4   :  { %3127 = vmatpush2.bf16.msra.mxu1 %v4334_v13  ;;  %3075 = vmatprep.subr.bf16.mxu0 %v4339_v14  ;;  %v4399_v13 = vld [vmem:[%s6196_s1 + $0x824] ss:$8 sps:$4 sm:$0xff]  }
  0xf5   :  { %3128 = vmatprep.subr.bf16.mxu1 %v4342_v15  ;;  %v4402_v14 = vld [vmem:[%s6196_s1 + $0x924] ss:$8 sps:$4 sm:$0xff]   ;;  %v4397_v15 = vld [vmem:[%s6196_s1 + $0x820] ss:$8 sps:$4 sm:$0xff]  }
  0xf7   :  { %3076 = vmatpush2.bf16.msra.mxu0 %v4337_v16 }
  0xf8   :  { %3129 = vmatpush2.bf16.msra.mxu1 %v4340_v17  ;;  %3077 = vmatprep.subr.bf16.mxu0 %v4345_v19  ;;  %v4400_v17 = vld [vmem:[%s6196_s1 + $0x920] ss:$8 sps:$4 sm:$0xff]   ;;  %v4405_v19 = vld [vmem:[%s6196_s1 + $0x814] ss:$8 sps:$4 sm:$0xff]  }
  0xf9   :  { %3130 = vmatprep.subr.bf16.mxu1 %v4348_v20  ;;  %v4408_v20 = vld [vmem:[%s6196_s1 + $0x914] ss:$8 sps:$4 sm:$0xff]  }
  0xfb   :  { %3078 = vmatpush2.bf16.msra.mxu0 %v4343_v21 }
  0xfc   :  { %3131 = vmatpush2.bf16.msra.mxu1 %v4346_v22  ;;  %3079 = vmatprep.subr.bf16.mxu0 %v4351_v24 }
  0xfd   :  { %3132 = vmatprep.subr.bf16.mxu1 %v4354_v25 }
  0xff   :  { %3080 = vmatpush2.bf16.msra.mxu0 %v4349_v26  ;;  %v4406_v26 = vld [vmem:[%s6196_s1 + $0x910] ss:$8 sps:$4 sm:$0xff]  }
 0x100   :  { %3133 = vmatpush2.bf16.msra.mxu1 %v4352_v27  ;;  %3155 = vmatprep.subr.bf16.mxu0 %v4363_v30  ;;  %v4414_v30 = vld [vmem:[%s6196_s1 + $0x904] ss:$8 sps:$4 sm:$0xff]  }
 0x101   :  { %3208 = vmatprep.subr.bf16.mxu1 %v4366_v31 }
 0x102   :  { %v2765_v43 = vpop.f32.mrf.mxu0  ;;  %3082 = vmatmul.mubr.bf16.vlgmr.msra.gmra.mxu0 %v4355_v32 }
 0x103   :  { %v2818_v44 = vpop.f32.mrf.mxu1  ;;  %3135 = vmatmul.mubr.bf16.vlgmr.msra.gmra.mxu1 %v4358_v33  ;;  %v2766_v46 = vadd.f32 %v2765_v43, %v5494_v36  ;;  %3156 = vmatpush1.bf16.msra.mxu0 %v4361_v35  ;;  %v4409_v35 = vld [vmem:[%s6196_s1 + $0x800] ss:$8 sps:$4 sm:$0xff]   ;;  %v4415_v43 = vld [vmem:[%s6196_s1 + $0x8f0] ss:$8 sps:$4 sm:$0xff]  }
 0x104   :  { %3209 = vmatpush1.bf16.msra.mxu1 %v4364_v37  ;;  %v2767_v48 = vpop.f32.mrf.mxu0  ;;  %3157 = vmatprep.subr.bf16.mxu0 %v4369_v38  ;;  %v4412_v37 = vld [vmem:[%s6196_s1 + $0x900] ss:$8 sps:$4 sm:$0xff]  }
 0x105   :  { %v2820_v49 = vpop.f32.mrf.mxu1  ;;  %3210 = vmatprep.subr.bf16.mxu1 %v4372_v39  ;;  %v5526_v52 = vadd.f32 %v2818_v44, %v2766_v46  ;;  %v2768_v53 = vadd.f32 %v2767_v48, %v5505_v40  ;;  %3091 = vmatprep.mubr.bf16.mxu0 %v4373_v41  ;;  %v4417_v39 = vld [vmem:[%s6196_s1 + $0x8f4] ss:$8 sps:$4 sm:$0xff]   ;;  %v4418_v44 = vld [vmem:[%s6196_s1 + $0x9f0] ss:$8 sps:$4 sm:$0xff]   ;;  %v4426_v46 = vld [vmem:[%s6196_s1 + $0x9e4] ss:$8 sps:$4 sm:$0xff]  }
 0x106   :  { %3144 = vmatprep.mubr.bf16.mxu1 %v4382_v42  ;;  %v2769_v56 = vpop.f32.mrf.mxu0  ;;  %v4424_v48 = vld [vmem:[%s6196_s1 + $0x9e0] ss:$8 sps:$4 sm:$0xff]  }
 0x107   :  { %v2822_v57 = vpop.f32.mrf.mxu1  ;;  %v5538_v59 = vadd.f32 %v2820_v49, %v2768_v53  ;;  %v2770_v60 = vadd.f32 %v2769_v56, %v5494_v36  ;;  %3158 = vmatpush1.bf16.msra.mxu0 %v4367_v45  ;;  %v4423_v45 = vld [vmem:[%s6196_s1 + $0x8e4] ss:$8 sps:$4 sm:$0xff]   ;;  %v4429_v49 = vld [vmem:[%s6196_s1 + $0x8d4] ss:$8 sps:$4 sm:$0xff]   ;;  %v4430_v53 = vld [vmem:[%s6196_s1 + $0x9d0] ss:$8 sps:$4 sm:$0xff]  }
 0x108   :  { %3211 = vmatpush1.bf16.msra.mxu1 %v4370_v47  ;;  %v2771_v62 = vpop.f32.mrf.mxu0  ;;  %3159 = vmatprep.subr.bf16.mxu0 %v4378_v50  ;;  %v4421_v47 = vld [vmem:[%s6196_s1 + $0x8e0] ss:$8 sps:$4 sm:$0xff]   ;;  %v4432_v50 = vld [vmem:[%s6196_s1 + $0x9d4] ss:$8 sps:$4 sm:$0xff]  }
 0x109   :  { %3212 = vmatprep.subr.bf16.mxu1 %v4381_v51  ;;  %v5550_v1 = vadd.f32 %v2822_v57, %v2770_v60  ;;  %v2772_v2 = vadd.f32 %v2771_v62, %v5505_v40  ;;  %v2824_v5 = vpop.f32.mrf.mxu1  ;;  %v4427_v51 = vld [vmem:[%s6196_s1 + $0x8d0] ss:$8 sps:$4 sm:$0xff]   ;;  %v4433_v56 = vld [vmem:[%s6196_s1 + $0x8c0] ss:$8 sps:$4 sm:$0xff]   ;;  %v4444_v60 = vld [vmem:[%s6196_s1 + $0x9b4] ss:$8 sps:$4 sm:$0xff]  }
 0x10a   :  { %3092 = vmatmul.mubr.bf16.gmra.mxu0 %v4375_v54  ;;  %v2775_v16 = vpop.f32.mrf.mxu0  ;;  %v4435_v54 = vld [vmem:[%s6196_s1 + $0x8c4] ss:$8 sps:$4 sm:$0xff]   ;;  %v4436_v57 = vld [vmem:[%s6196_s1 + $0x9c0] ss:$8 sps:$4 sm:$0xff]   ;;  %v4442_v62 = vld [vmem:[%s6196_s1 + $0x9b0] ss:$8 sps:$4 sm:$0xff]  }
 0x10b   :  { %3145 = vmatmul.mubr.bf16.gmra.mxu1 %v4384_v58  ;;  %v5562_v7 = vadd.f32 %v2824_v5, %v2772_v2  ;;  %3160 = vmatpush1.bf16.msra.mxu0 %v4376_v55  ;;  %v2776_v18 = vadd.f32 %v2775_v16, %v5494_v36  ;;  %v2828_v24 = vpop.f32.mrf.mxu1  ;;  %v4438_v55 = vld [vmem:[%s6196_s1 + $0x9c4] ss:$8 sps:$4 sm:$0xff]   ;;  %v4441_v58 = vld [vmem:[%s6196_s1 + $0x8b4] ss:$8 sps:$4 sm:$0xff]   ;;  %v4445_v2 = vld [vmem:[%s6196_s1 + $0x8a0] ss:$8 sps:$4 sm:$0xff]  }
 0x10c   :  { %3213 = vmatpush1.bf16.msra.mxu1 %v4379_v61  ;;  %3161 = vmatprep.subr.bf16.mxu0 %v4387_v63  ;;  %v2777_v21 = vpop.f32.mrf.mxu0  ;;  %v4439_v61 = vld [vmem:[%s6196_s1 + $0x8b0] ss:$8 sps:$4 sm:$0xff]   ;;  %v4447_v63 = vld [vmem:[%s6196_s1 + $0x8a4] ss:$8 sps:$4 sm:$0xff]   ;;  %v4456_v5 = vld [vmem:[%s6196_s1 + $0x994] ss:$8 sps:$4 sm:$0xff]  }
 0x10d   :  { %3214 = vmatprep.subr.bf16.mxu1 %v4390_v0  ;;  %3187 = vmatprep.mubr.bf16.mxu0 %v4465_v3  ;;  %v2778_v22 = vadd.f32 %v2777_v21, %v5505_v40  ;;  %v5605_v27 = vadd.f32 %v2828_v24, %v2776_v18  ;;  %v2830_v31 = vpop.f32.mrf.mxu1  ;;  %v4450_v0 = vld [vmem:[%s6196_s1 + $0x9a4] ss:$8 sps:$4 sm:$0xff]   ;;  %v4448_v3 = vld [vmem:[%s6196_s1 + $0x9a0] ss:$8 sps:$4 sm:$0xff]   ;;  %v4472_v18 = vld [vmem:[%s6196_s1 + $0xb70] ss:$8 sps:$4 sm:$0xff]  }
 0x10e   :  { %3240 = vmatprep.mubr.bf16.mxu1 %v4468_v4  ;;  %v2779_v25 = vpop.f32.mrf.mxu0  ;;  %v4453_v4 = vld [vmem:[%s6196_s1 + $0x894] ss:$8 sps:$4 sm:$0xff]   ;;  %v4466_v16 = vld [vmem:[%s6197_s0 + $0x48] ss:$100 sps:$4 sm:$0xff]  }
 0x10f   :  { %3162 = vmatpush1.bf16.msra.mxu0 %v4385_v6  ;;  %v2780_v28 = vadd.f32 %v2779_v25, %v5494_v36  ;;  %v5614_v33 = vadd.f32 %v2830_v31, %v2778_v22  ;;  %v2832_v36 = vpop.f32.mrf.mxu1  ;;  %v4451_v6 = vld [vmem:[%s6196_s1 + $0x890] ss:$8 sps:$4 sm:$0xff]   ;;  %v4489_v31 = vld [vmem:[%s6196_s1 + $0xb54] ss:$8 sps:$4 sm:$0xff]  }
 0x110   :  { %3215 = vmatpush1.bf16.msra.mxu1 %v4388_v8  ;;  %3163 = vmatprep.subr.bf16.mxu0 %v4393_v9  ;;  %v2781_v32 = vpop.f32.mrf.mxu0  ;;  %v4454_v8 = vld [vmem:[%s6196_s1 + $0x990] ss:$8 sps:$4 sm:$0xff]   ;;  %v4459_v9 = vld [vmem:[%s6196_s1 + $0x884] ss:$8 sps:$4 sm:$0xff]  }
 0x111   :  { %3216 = vmatprep.subr.bf16.mxu1 %v4396_v10  ;;  %v2782_v34 = vadd.f32 %v2781_v32, %v5505_v40  ;;  %v5623_v38 = vadd.f32 %v2832_v36, %v2780_v28  ;;  %v4420_v40 = vld [vmem:[%s6196_s1 + $0x9f4] ss:$8 sps:$4 sm:$0xff]   ;;  %v2834_v41 = vpop.f32.mrf.mxu1  ;;  %v4462_v10 = vld [vmem:[%s6196_s1 + $0x984] ss:$8 sps:$4 sm:$0xff]   ;;  %v4478_v28 = vld [vmem:[%s6196_s1 + $0xb60] ss:$8 sps:$4 sm:$0xff]  }
 0x112   :  { %v4481_v21 = vld [vmem:[%s6197_s0 + $0x10c] ss:$100 sps:$4 sm:$0xff]   ;;  %v4490_v22 = vld [vmem:[%s6197_s0 + $0x114] ss:$100 sps:$4 sm:$0xff]  }
 0x113   :  { %3164 = vmatpush1.bf16.msra.mxu0 %v4391_v11  ;;  %v5631_v42 = vadd.f32 %v2834_v41, %v2782_v34  ;;  %v4457_v11 = vld [vmem:[%s6196_s1 + $0x880] ss:$8 sps:$4 sm:$0xff]   ;;  %v4492_v36 = vld [vmem:[%s6197_s0 + $0x110] ss:$100 sps:$4 sm:$0xff]  }
 0x114   :  { %3217 = vmatpush1.bf16.msra.mxu1 %v4394_v12  ;;  %3165 = vmatprep.subr.bf16.mxu0 %v4399_v13  ;;  %v4460_v12 = vld [vmem:[%s6196_s1 + $0x980] ss:$8 sps:$4 sm:$0xff]   ;;  %v4471_v13 = vld [vmem:[%s6196_s1 + $0xa74] ss:$8 sps:$4 sm:$0xff]  }
 0x115   :  { %3218 = vmatprep.subr.bf16.mxu1 %v4402_v14  ;;  %v4474_v14 = vld [vmem:[%s6196_s1 + $0xb74] ss:$8 sps:$4 sm:$0xff]  }
 0x117   :  { %3166 = vmatpush1.bf16.msra.mxu0 %v4397_v15  ;;  %v4463_v15 = vld [vmem:[%s6197_s0 + $0x40] ss:$100 sps:$4 sm:$0xff]  }
 0x118   :  { %3219 = vmatpush1.bf16.msra.mxu1 %v4400_v17  ;;  %3167 = vmatprep.subr.bf16.mxu0 %v4405_v19  ;;  %v4469_v17 = vld [vmem:[%s6196_s1 + $0xa70] ss:$8 sps:$4 sm:$0xff]   ;;  %v4477_v19 = vld [vmem:[%s6196_s1 + $0xa64] ss:$8 sps:$4 sm:$0xff]  }
 0x119   :  { %3220 = vmatprep.subr.bf16.mxu1 %v4408_v20  ;;  %v4480_v20 = vld [vmem:[%s6196_s1 + $0xb64] ss:$8 sps:$4 sm:$0xff]  }
 0x11b   :  { %3168 = vmatpush1.bf16.msra.mxu0 %v4403_v23 }
 0x11c   :  { %3221 = vmatpush1.bf16.msra.mxu1 %v4406_v26  ;;  %3169 = vmatprep.subr.bf16.mxu0 %v4411_v29  ;;  %v4475_v26 = vld [vmem:[%s6196_s1 + $0xa60] ss:$8 sps:$4 sm:$0xff]  }
 0x11d   :  { %3222 = vmatprep.subr.bf16.mxu1 %v4414_v30 }
 0x11f   :  { %3170 = vmatpush1.bf16.msra.mxu0 %v4409_v35  ;;  %v4483_v35 = vld [vmem:[%s6197_s0 + $0x108] ss:$100 sps:$4 sm:$0xff]  }
 0x120   :  { %3223 = vmatpush1.bf16.msra.mxu1 %v4412_v37  ;;  %3171 = vmatprep.subr.bf16.mxu0 %v4417_v39  ;;  %v4484_v39 = vld [vmem:[%s6196_s1 + $0xa50] ss:$8 sps:$4 sm:$0xff]  }
 0x121   :  { %3224 = vmatprep.subr.bf16.mxu1 %v4420_v40  ;;  %v4487_v40 = vld [vmem:[%s6196_s1 + $0xb50] ss:$8 sps:$4 sm:$0xff]  }
 0x123   :  { %3172 = vmatpush2.bf16.msra.mxu0 %v4415_v43  ;;  %v4495_v43 = vld [vmem:[%s6196_s1 + $0xa44] ss:$8 sps:$4 sm:$0xff]  }
 0x124   :  { %3225 = vmatpush2.bf16.msra.mxu1 %v4418_v44  ;;  %3173 = vmatprep.subr.bf16.mxu0 %v4423_v45  ;;  %v4573_v45 = vld [vmem:[%s6197_s0 + $0x54] ss:$100 sps:$4 sm:$0xff]  }
 0x125   :  { %3226 = vmatprep.subr.bf16.mxu1 %v4426_v46  ;;  %v4576_v46 = vld [vmem:[%s6197_s0 + $0x5c] ss:$100 sps:$4 sm:$0xff]  }
 0x127   :  { %3174 = vmatpush2.bf16.msra.mxu0 %v4421_v47  ;;  %v4493_v47 = vld [vmem:[%s6196_s1 + $0xa40] ss:$8 sps:$4 sm:$0xff]  }
 0x128   :  { %3227 = vmatpush2.bf16.msra.mxu1 %v4424_v48  ;;  %3175 = vmatprep.subr.bf16.mxu0 %v4429_v49  ;;  %v4496_v48 = vld [vmem:[%s6196_s1 + $0xb40] ss:$8 sps:$4 sm:$0xff]   ;;  %v4501_v49 = vld [vmem:[%s6196_s1 + $0xa34] ss:$8 sps:$4 sm:$0xff]  }
 0x129   :  { %3228 = vmatprep.subr.bf16.mxu1 %v4432_v50  ;;  %v4504_v50 = vld [vmem:[%s6196_s1 + $0xb34] ss:$8 sps:$4 sm:$0xff]  }
 0x12b   :  { %3176 = vmatpush2.bf16.msra.mxu0 %v4427_v51  ;;  %v4499_v51 = vld [vmem:[%s6196_s1 + $0xa30] ss:$8 sps:$4 sm:$0xff]  }
 0x12c   :  { %3229 = vmatpush2.bf16.msra.mxu1 %v4430_v53  ;;  %3177 = vmatprep.subr.bf16.mxu0 %v4435_v54  ;;  %v4502_v53 = vld [vmem:[%s6196_s1 + $0xb30] ss:$8 sps:$4 sm:$0xff]   ;;  %v4507_v54 = vld [vmem:[%s6196_s1 + $0xa24] ss:$8 sps:$4 sm:$0xff]  }
 0x12d   :  { %3230 = vmatprep.subr.bf16.mxu1 %v4438_v55  ;;  %v4510_v55 = vld [vmem:[%s6196_s1 + $0xb24] ss:$8 sps:$4 sm:$0xff]  }
 0x12f   :  { %3178 = vmatpush2.bf16.msra.mxu0 %v4433_v56  ;;  %v4505_v56 = vld [vmem:[%s6196_s1 + $0xa20] ss:$8 sps:$4 sm:$0xff]  }
 0x130   :  { %3231 = vmatpush2.bf16.msra.mxu1 %v4436_v57  ;;  %3179 = vmatprep.subr.bf16.mxu0 %v4441_v58  ;;  %v4508_v57 = vld [vmem:[%s6196_s1 + $0xb20] ss:$8 sps:$4 sm:$0xff]   ;;  %v4513_v58 = vld [vmem:[%s6196_s1 + $0xa14] ss:$8 sps:$4 sm:$0xff]  }
 0x131   :  { %3232 = vmatprep.subr.bf16.mxu1 %v4444_v60  ;;  %v4516_v60 = vld [vmem:[%s6196_s1 + $0xb14] ss:$8 sps:$4 sm:$0xff]  }
 0x133   :  { %3180 = vmatpush2.bf16.msra.mxu0 %v4439_v61  ;;  %v4511_v61 = vld [vmem:[%s6196_s1 + $0xa10] ss:$8 sps:$4 sm:$0xff]  }
 0x134   :  { %3233 = vmatpush2.bf16.msra.mxu1 %v4442_v62  ;;  %3181 = vmatprep.subr.bf16.mxu0 %v4447_v63  ;;  %v4514_v62 = vld [vmem:[%s6196_s1 + $0xb10] ss:$8 sps:$4 sm:$0xff]   ;;  %v4519_v63 = vld [vmem:[%s6196_s1 + $0xa04] ss:$8 sps:$4 sm:$0xff]  }
 0x135   :  { %3234 = vmatprep.subr.bf16.mxu1 %v4450_v0  ;;  %v4522_v0 = vld [vmem:[%s6196_s1 + $0xb04] ss:$8 sps:$4 sm:$0xff]  }
 0x137   :  { %3182 = vmatpush2.bf16.msra.mxu0 %v4445_v2  ;;  %v4517_v2 = vld [vmem:[%s6196_s1 + $0xa00] ss:$8 sps:$4 sm:$0xff]  }
 0x138   :  { %3235 = vmatpush2.bf16.msra.mxu1 %v4448_v3  ;;  %3183 = vmatprep.subr.bf16.mxu0 %v4453_v4  ;;  %v4520_v3 = vld [vmem:[%s6196_s1 + $0xb00] ss:$8 sps:$4 sm:$0xff]   ;;  %v4525_v4 = vld [vmem:[%s6196_s1 + $0xaf4] ss:$8 sps:$4 sm:$0xff]  }
 0x139   :  { %3236 = vmatprep.subr.bf16.mxu1 %v4456_v5  ;;  %v4528_v5 = vld [vmem:[%s6196_s1 + $0xbf4] ss:$8 sps:$4 sm:$0xff]  }
 0x13b   :  { %3184 = vmatpush2.bf16.msra.mxu0 %v4451_v6  ;;  %v4523_v6 = vld [vmem:[%s6196_s1 + $0xaf0] ss:$8 sps:$4 sm:$0xff]  }
 0x13c   :  { %3237 = vmatpush2.bf16.msra.mxu1 %v4454_v8  ;;  %3185 = vmatprep.subr.bf16.mxu0 %v4459_v9  ;;  %v4526_v8 = vld [vmem:[%s6196_s1 + $0xbf0] ss:$8 sps:$4 sm:$0xff]   ;;  %v4531_v9 = vld [vmem:[%s6196_s1 + $0xae4] ss:$8 sps:$4 sm:$0xff]  }
 0x13d   :  { %3238 = vmatprep.subr.bf16.mxu1 %v4462_v10  ;;  %v4534_v10 = vld [vmem:[%s6196_s1 + $0xbe4] ss:$8 sps:$4 sm:$0xff]  }
 0x13f   :  { %3186 = vmatpush2.bf16.msra.mxu0 %v4457_v11  ;;  %v4529_v11 = vld [vmem:[%s6196_s1 + $0xae0] ss:$8 sps:$4 sm:$0xff]  }
 0x140   :  { %3239 = vmatpush2.bf16.msra.mxu1 %v4460_v12  ;;  %3261 = vmatprep.subr.bf16.mxu0 %v4471_v13  ;;  %v4532_v12 = vld [vmem:[%s6196_s1 + $0xbe0] ss:$8 sps:$4 sm:$0xff]   ;;  %v4537_v13 = vld [vmem:[%s6196_s1 + $0xad4] ss:$8 sps:$4 sm:$0xff]  }
 0x141   :  { %3314 = vmatprep.subr.bf16.mxu1 %v4474_v14  ;;  %v4540_v14 = vld [vmem:[%s6196_s1 + $0xbd4] ss:$8 sps:$4 sm:$0xff]  }
 0x142   :  { %v2871_v23 = vpop.f32.mrf.mxu0  ;;  %3188 = vmatmul.mubr.bf16.vlgmr.msra.gmra.mxu0 %v4463_v15  ;;  %v4535_v15 = vld [vmem:[%s6196_s1 + $0xad0] ss:$8 sps:$4 sm:$0xff]  }
 0x143   :  { %v2924_v24 = vpop.f32.mrf.mxu1  ;;  %3241 = vmatmul.mubr.bf16.vlgmr.msra.gmra.mxu1 %v4466_v16  ;;  %v2872_v25 = vadd.f32 %v2871_v23, %v5526_v52  ;;  %3262 = vmatpush1.bf16.msra.mxu0 %v4469_v17  ;;  %v4486_v52 = vld [vmem:[%s6196_s1 + $0xa54] ss:$8 sps:$4 sm:$0xff]   ;;  %v4538_v16 = vld [vmem:[%s6196_s1 + $0xbd0] ss:$8 sps:$4 sm:$0xff]   ;;  %v4543_v17 = vld [vmem:[%s6196_s1 + $0xac4] ss:$8 sps:$4 sm:$0xff]  }
 0x144   :  { %3315 = vmatpush1.bf16.msra.mxu1 %v4472_v18  ;;  %v5760_v29 = vpop.f32.mrf.mxu0  ;;  %3263 = vmatprep.subr.bf16.mxu0 %v4477_v19  ;;  %v4546_v18 = vld [vmem:[%s6196_s1 + $0xbc4] ss:$8 sps:$4 sm:$0xff]   ;;  %v4541_v19 = vld [vmem:[%s6196_s1 + $0xac0] ss:$8 sps:$4 sm:$0xff]   ;;  %v4547_v23 = vld [vmem:[%s6196_s1 + $0xab0] ss:$8 sps:$4 sm:$0xff]  }
 0x145   :  { %v5762_v30 = vpop.f32.mrf.mxu1  ;;  %3316 = vmatprep.subr.bf16.mxu1 %v4480_v20  ;;  %v5770_v32 = vadd.f32 %v2924_v24, %v2872_v25  ;;  %3197 = vmatprep.mubr.bf16.mxu0 %v4481_v21  ;;  %v4544_v20 = vld [vmem:[%s6196_s1 + $0xbc0] ss:$8 sps:$4 sm:$0xff]   ;;  %v4549_v21 = vld [vmem:[%s6196_s1 + $0xab4] ss:$8 sps:$4 sm:$0xff]   ;;  %v4550_v24 = vld [vmem:[%s6196_s1 + $0xbb0] ss:$8 sps:$4 sm:$0xff]  }
 0x146   :  { %3250 = vmatprep.mubr.bf16.mxu1 %v4490_v22  ;;  %v2875_v34 = vpop.f32.mrf.mxu0  ;;  %v4552_v22 = vld [vmem:[%s6196_s1 + $0xbb4] ss:$8 sps:$4 sm:$0xff]   ;;  %v4555_v25 = vld [vmem:[%s6196_s1 + $0xaa4] ss:$8 sps:$4 sm:$0xff]  }
 0x147   :  { %v2876_v37 = vadd.f32 %v2875_v34, %v5550_v1  ;;  %3264 = vmatpush1.bf16.msra.mxu0 %v4475_v26  ;;  %v2928_v41 = vpop.f32.mrf.mxu1  ;;  %v4498_v1 = vld [vmem:[%s6196_s1 + $0xb44] ss:$8 sps:$4 sm:$0xff]   ;;  %v4564_v34 = vld [vmem:[%s6196_s1 + $0xb94] ss:$8 sps:$4 sm:$0xff]  }
 0x148   :  { %3317 = vmatpush1.bf16.msra.mxu1 %v4478_v28  ;;  %3265 = vmatprep.subr.bf16.mxu0 %v4486_v52  ;;  %v4558_v26 = vld [vmem:[%s6196_s1 + $0xba4] ss:$8 sps:$4 sm:$0xff]   ;;  %v4553_v28 = vld [vmem:[%s6196_s1 + $0xaa0] ss:$8 sps:$4 sm:$0xff]  }
 0x149   :  { %3318 = vmatprep.subr.bf16.mxu1 %v4489_v31  ;;  %v5791_v44 = vadd.f32 %v2928_v41, %v2876_v37  ;;  %v4556_v52 = vld [vmem:[%s6196_s1 + $0xba0] ss:$8 sps:$4 sm:$0xff]   ;;  %v4561_v31 = vld [vmem:[%s6196_s1 + $0xa94] ss:$8 sps:$4 sm:$0xff]   ;;  %v4567_v37 = vld [vmem:[%s6196_s1 + $0xa84] ss:$8 sps:$4 sm:$0xff]  }
 0x14a   :  { %3198 = vmatmul.mubr.bf16.gmra.mxu0 %v4483_v35  ;;  %v4559_v35 = vld [vmem:[%s6196_s1 + $0xa90] ss:$8 sps:$4 sm:$0xff]   ;;  %v4568_v41 = vld [vmem:[%s6196_s1 + $0xb80] ss:$8 sps:$4 sm:$0xff]  }
 0x14b   :  { %3251 = vmatmul.mubr.bf16.gmra.mxu1 %v4492_v36  ;;  %3266 = vmatpush1.bf16.msra.mxu0 %v4484_v39  ;;  %v4562_v36 = vld [vmem:[%s6196_s1 + $0xb90] ss:$8 sps:$4 sm:$0xff]   ;;  %v4570_v39 = vld [vmem:[%s6196_s1 + $0xb84] ss:$8 sps:$4 sm:$0xff]  }
 0x14c   :  { %3319 = vmatpush1.bf16.msra.mxu1 %v4487_v40  ;;  %3267 = vmatprep.subr.bf16.mxu0 %v4495_v43  ;;  %v4565_v40 = vld [vmem:[%s6196_s1 + $0xa80] ss:$8 sps:$4 sm:$0xff]   ;;  %v4579_v43 = vld [vmem:[%s6196_s1 + $0xc74] ss:$8 sps:$4 sm:$0xff]  }
 0x14d   :  { %3320 = vmatprep.subr.bf16.mxu1 %v4498_v1  ;;  %3293 = vmatprep.mubr.bf16.mxu0 %v4573_v45  ;;  %v4571_v1 = vld [vmem:[%s6197_s0 + $0x50] ss:$100 sps:$4 sm:$0xff]   ;;  %v4574_v45 = vld [vmem:[%s6197_s0 + $0x58] ss:$100 sps:$4 sm:$0xff]  }
 0x14e   :  { %3346 = vmatprep.mubr.bf16.mxu1 %v4576_v46  ;;  %v4577_v46 = vld [vmem:[%s6196_s1 + $0xc70] ss:$8 sps:$4 sm:$0xff]  }
 0x14f   :  { %3268 = vmatpush1.bf16.msra.mxu0 %v4493_v47  ;;  %v4582_v47 = vld [vmem:[%s6196_s1 + $0xc64] ss:$8 sps:$4 sm:$0xff]  }
 0x150   :  { %3321 = vmatpush1.bf16.msra.mxu1 %v4496_v48  ;;  %3269 = vmatprep.subr.bf16.mxu0 %v4501_v49  ;;  %v4583_v48 = vld [vmem:[%s6197_s0 + $0x11c] ss:$100 sps:$4 sm:$0xff]   ;;  %v4589_v49 = vld [vmem:[%s6197_s0 + $0x124] ss:$100 sps:$4 sm:$0xff]  }
 0x151   :  { %3322 = vmatprep.subr.bf16.mxu1 %v4504_v50  ;;  %v4580_v50 = vld [vmem:[%s6196_s1 + $0xc60] ss:$8 sps:$4 sm:$0xff]  }
 0x153   :  { %3270 = vmatpush1.bf16.msra.mxu0 %v4499_v51  ;;  %v4588_v51 = vld [vmem:[%s6196_s1 + $0xc54] ss:$8 sps:$4 sm:$0xff]  }
 0x154   :  { %3323 = vmatpush1.bf16.msra.mxu1 %v4502_v53  ;;  %3271 = vmatprep.subr.bf16.mxu0 %v4507_v54  ;;  %v4585_v53 = vld [vmem:[%s6197_s0 + $0x118] ss:$100 sps:$4 sm:$0xff]   ;;  %v4591_v54 = vld [vmem:[%s6197_s0 + $0x120] ss:$100 sps:$4 sm:$0xff]  }
 0x155   :  { %3324 = vmatprep.subr.bf16.mxu1 %v4510_v55  ;;  %v4586_v55 = vld [vmem:[%s6196_s1 + $0xc50] ss:$8 sps:$4 sm:$0xff]  }
 0x157   :  { %3272 = vmatpush1.bf16.msra.mxu0 %v4505_v56  ;;  %v4594_v56 = vld [vmem:[%s6196_s1 + $0xc44] ss:$8 sps:$4 sm:$0xff]  }
 0x158   :  { %3325 = vmatpush1.bf16.msra.mxu1 %v4508_v57  ;;  %3273 = vmatprep.subr.bf16.mxu0 %v4513_v58  ;;  %v4592_v57 = vld [vmem:[%s6196_s1 + $0xc40] ss:$8 sps:$4 sm:$0xff]   ;;  %v4597_v58 = vld [vmem:[%s6196_s1 + $0xc34] ss:$8 sps:$4 sm:$0xff]  }
 0x159   :  { %3326 = vmatprep.subr.bf16.mxu1 %v4516_v60  ;;  %v4609_v60 = vmov 0  }
 0x15b   :  { %3274 = vmatpush1.bf16.msra.mxu0 %v4511_v61  ;;  %v4595_v61 = vld [vmem:[%s6196_s1 + $0xc30] ss:$8 sps:$4 sm:$0xff]  }
 0x15c   :  { %3327 = vmatpush1.bf16.msra.mxu1 %v4514_v62  ;;  %3275 = vmatprep.subr.bf16.mxu0 %v4519_v63  ;;  %v4600_v62 = vld [vmem:[%s6196_s1 + $0xc24] ss:$8 sps:$4 sm:$0xff]   ;;  %v4598_v63 = vld [vmem:[%s6196_s1 + $0xc20] ss:$8 sps:$4 sm:$0xff]  }
 0x15d   :  { %3328 = vmatprep.subr.bf16.mxu1 %v4522_v0  ;;  %v4603_v0 = vld [vmem:[%s6196_s1 + $0xc14] ss:$8 sps:$4 sm:$0xff]  }
 0x15f   :  { %3276 = vmatpush1.bf16.msra.mxu0 %v4517_v2  ;;  %v4601_v2 = vld [vmem:[%s6196_s1 + $0xc10] ss:$8 sps:$4 sm:$0xff]  }
 0x160   :  { %3329 = vmatpush1.bf16.msra.mxu1 %v4520_v3  ;;  %3277 = vmatprep.subr.bf16.mxu0 %v4525_v4  ;;  %v4606_v3 = vld [vmem:[%s6196_s1 + $0xc04] ss:$8 sps:$4 sm:$0xff]   ;;  %v4604_v4 = vld [vmem:[%s6196_s1 + $0xc00] ss:$8 sps:$4 sm:$0xff]  }
 0x161   :  { %3330 = vmatprep.subr.bf16.mxu1 %v4528_v5  ;;  %v4607_v5 = vld [vmem:[%s6197_s0 + $0x60] ss:$100 sps:$4 sm:$0xff]  }
 0x163   :  { %3278 = vmatpush2.bf16.msra.mxu0 %v4523_v6  ;;  %v4608_v6 = vld [vmem:[%s6197_s0 + $0x128] ss:$100 sps:$4 sm:$0xff]  }
 0x164   :  { %3331 = vmatpush2.bf16.msra.mxu1 %v4526_v8  ;;  %3279 = vmatprep.subr.bf16.mxu0 %v4531_v9  ;;  %v6021_v8 = vpop.f32.mrf.mxu0 }
 0x165   :  { %3332 = vmatprep.subr.bf16.mxu1 %v4534_v10 }
 0x166   :  { %v2881_v9 = vpop.f32.mrf.mxu0 }
 0x167   :  { %3280 = vmatpush2.bf16.msra.mxu0 %v4529_v11  ;;  %v6023_v11 = vpop.f32.mrf.mxu1 }
 0x168   :  { %3333 = vmatpush2.bf16.msra.mxu1 %v4532_v12  ;;  %3281 = vmatprep.subr.bf16.mxu0 %v4537_v13  ;;  %v2883_v10 = vpop.f32.mrf.mxu0 }
 0x169   :  { %3334 = vmatprep.subr.bf16.mxu1 %v4540_v14  ;;  %v2934_v12 = vpop.f32.mrf.mxu1 }
 0x16a   :  { %v2885_v13 = vpop.f32.mrf.mxu0 }
 0x16b   :  { %3282 = vmatpush2.bf16.msra.mxu0 %v4535_v15  ;;  %v2936_v14 = vpop.f32.mrf.mxu1 }
 0x16c   :  { %3335 = vmatpush2.bf16.msra.mxu1 %v4538_v16  ;;  %3283 = vmatprep.subr.bf16.mxu0 %v4543_v17  ;;  %v6025_v15 = vpop.f32.mrf.mxu0 }
 0x16d   :  { %3336 = vmatprep.subr.bf16.mxu1 %v4546_v18  ;;  %v6027_v17 = vpop.f32.mrf.mxu1 }
 0x16f   :  { %3284 = vmatpush2.bf16.msra.mxu0 %v4541_v19  ;;  %v6031_v19 = vpop.f32.mrf.mxu1 }
 0x170   :  { %3337 = vmatpush2.bf16.msra.mxu1 %v4544_v20  ;;  %3285 = vmatprep.subr.bf16.mxu0 %v4549_v21 }
 0x171   :  { %3338 = vmatprep.subr.bf16.mxu1 %v4552_v22 }
 0x173   :  { %3286 = vmatpush2.bf16.msra.mxu0 %v4547_v23 }
 0x174   :  { %3339 = vmatpush2.bf16.msra.mxu1 %v4550_v24  ;;  %3287 = vmatprep.subr.bf16.mxu0 %v4555_v25 }
 0x175   :  { %3340 = vmatprep.subr.bf16.mxu1 %v4558_v26 }
 0x177   :  { %3288 = vmatpush2.bf16.msra.mxu0 %v4553_v28 }
 0x178   :  { %3341 = vmatpush2.bf16.msra.mxu1 %v4556_v52  ;;  %3289 = vmatprep.subr.bf16.mxu0 %v4561_v31 }
 0x179   :  { %3342 = vmatprep.subr.bf16.mxu1 %v4564_v34 }
 0x17b   :  { %3290 = vmatpush2.bf16.msra.mxu0 %v4559_v35 }
 0x17c   :  { %3343 = vmatpush2.bf16.msra.mxu1 %v4562_v36  ;;  %3291 = vmatprep.subr.bf16.mxu0 %v4567_v37 }
 0x17d   :  { %3344 = vmatprep.subr.bf16.mxu1 %v4570_v39 }
 0x17f   :  { %3292 = vmatpush2.bf16.msra.mxu0 %v4565_v40 }
 0x180   :  { %3345 = vmatpush2.bf16.msra.mxu1 %v4568_v41  ;;  %3367 = vmatprep.subr.bf16.mxu0 %v4579_v43 }
 0x181   :  { %3918 = vmatprep.subr.bf16.mxu1 %v4579_v43 }
 0x182   :  { %3294 = vmatmul.mubr.bf16.vlgmr.msra.gmra.mxu0 %v4571_v1  ;;  %v2977_v16 = vpop.f32.mrf.mxu0 }
 0x183   :  { %3347 = vmatmul.mubr.bf16.vlgmr.msra.gmra.mxu1 %v4574_v45  ;;  %3368 = vmatpush1.bf16.msra.mxu0 %v4577_v46  ;;  %v6033_v20 = vpop.f32.mrf.mxu1 }
 0x184   :  { %3926 = vmatpush1.bf16.msra.mxu1 %v4577_v46  ;;  %3369 = vmatprep.subr.bf16.mxu0 %v4582_v47  ;;  %v6029_v18 = vpop.f32.mrf.mxu0 }
 0x185   :  { %3919 = vmatprep.subr.bf16.mxu1 %v4582_v47  ;;  %3303 = vmatprep.mubr.bf16.mxu0 %v4583_v48  ;;  %v6037_v22 = vpop.f32.mrf.mxu1 }
 0x186   :  { %3356 = vmatprep.mubr.bf16.mxu1 %v4589_v49  ;;  %v6035_v21 = vpop.f32.mrf.mxu0 }
 0x187   :  { %3370 = vmatpush1.bf16.msra.mxu0 %v4580_v50  ;;  %v6041_v24 = vpop.f32.mrf.mxu1 }
 0x188   :  { %3927 = vmatpush1.bf16.msra.mxu1 %v4580_v50  ;;  %3371 = vmatprep.subr.bf16.mxu0 %v4588_v51  ;;  %v6039_v23 = vpop.f32.mrf.mxu0 }
 0x189   :  { %3920 = vmatprep.subr.bf16.mxu1 %v4588_v51  ;;  %v6043_v26 = vpop.f32.mrf.mxu1 }
 0x18a   :  { %3304 = vmatmul.mubr.bf16.gmra.mxu0 %v4585_v53  ;;  %v2987_v25 = vpop.f32.mrf.mxu0 }
 0x18b   :  { %3357 = vmatmul.mubr.bf16.gmra.mxu1 %v4591_v54  ;;  %3372 = vmatpush1.bf16.msra.mxu0 %v4586_v55  ;;  %v3040_v52 = vpop.f32.mrf.mxu1 }
 0x18c   :  { %3928 = vmatpush1.bf16.msra.mxu1 %v4586_v55  ;;  %3373 = vmatprep.subr.bf16.mxu0 %v4594_v56  ;;  %v2989_v28 = vpop.f32.mrf.mxu0 }
 0x18d   :  { %3921 = vmatprep.subr.bf16.mxu1 %v4594_v56  ;;  %3399 = vmatprep.mubr.bf16.mxu0 %v4609_v60  ;;  %v6045_v34 = vpop.f32.mrf.mxu1 }
 0x18e   :  { %3409 = vmatprep.mubr.bf16.mxu1 %v4609_v60  ;;  %v2991_v31 = vpop.f32.mrf.mxu0 }
 0x18f   :  { %3374 = vmatpush1.bf16.msra.mxu0 %v4592_v57  ;;  %v6049_v36 = vpop.f32.mrf.mxu1 }
 0x190   :  { %3929 = vmatpush1.bf16.msra.mxu1 %v4592_v57  ;;  %3375 = vmatprep.subr.bf16.mxu0 %v4597_v58  ;;  %v6047_v35 = vpop.f32.mrf.mxu0 }
 0x191   :  { %3922 = vmatprep.subr.bf16.mxu1 %v4597_v58  ;;  %v6051_v39 = vpop.f32.mrf.mxu1 }
 0x193   :  { %3376 = vmatpush1.bf16.msra.mxu0 %v4595_v61 }
 0x194   :  { %3930 = vmatpush1.bf16.msra.mxu1 %v4595_v61  ;;  %3377 = vmatprep.subr.bf16.mxu0 %v4600_v62 }
 0x195   :  { %3923 = vmatprep.subr.bf16.mxu1 %v4600_v62 }
 0x197   :  { %3378 = vmatpush1.bf16.msra.mxu0 %v4598_v63 }
 0x198   :  { %3931 = vmatpush1.bf16.msra.mxu1 %v4598_v63  ;;  %3379 = vmatprep.subr.bf16.mxu0 %v4603_v0 }
 0x199   :  { %3924 = vmatprep.subr.bf16.mxu1 %v4603_v0 }
 0x19b   :  { %3380 = vmatpush1.bf16.msra.mxu0 %v4601_v2 }
 0x19c   :  { %3932 = vmatpush1.bf16.msra.mxu1 %v4601_v2  ;;  %3381 = vmatprep.subr.bf16.mxu0 %v4606_v3 }
 0x19d   :  { %3925 = vmatprep.subr.bf16.mxu1 %v4606_v3 }
 0x19f   :  { %3382 = vmatpush1.bf16.msra.mxu0 %v4604_v4 }
 0x1a0   :  { %3933 = vmatpush1.bf16.msra.mxu1 %v4604_v4 }
 0x1a2   :  { %3400 = vmatmul.mubr.bf16.vlgmr.msra.gmra.mxu0 %v4607_v5 }
 0x1a3   :  { %3410 = vmatmul.mubr.bf16.vlgmr.msra.gmra.mxu1 %v4608_v6 }
 0x1c2   :  { %v3083_v37 = vpop.f32.mrf.mxu0 }
 0x1c3   :  { %v6055_v41 = vpop.f32.mrf.mxu1 }
 0x1c4   :  { %v6053_v40 = vpop.f32.mrf.mxu0 }
 0x1c5   :  { %v6059_v1 = vpop.f32.mrf.mxu1 }
 0x1c6   :  { %v6057_v43 = vpop.f32.mrf.mxu0 }
 0x1c7   :  { %v6063_v46 = vpop.f32.mrf.mxu1 }
 0x1c8   :  { %v6061_v45 = vpop.f32.mrf.mxu0 }
 0x1c9   :  { %v6065_v48 = vpop.f32.mrf.mxu1 }
 0x1ca   :  { %v3093_v47 = vpop.f32.mrf.mxu0  ;;  %6200 = vst [vmem:[#allocation2_spill] sm:$0xff] %v6065_v48 }
 0x1cb   :  { %v6067_v50 = vpop.f32.mrf.mxu1 }
 0x1cc   :  { %v3095_v49 = vpop.f32.mrf.mxu0 }
 0x1cd   :  { %v6071_v53 = vpop.f32.mrf.mxu1 }
 0x1ce   :  { %v6069_v51 = vpop.f32.mrf.mxu0 }
 0x1cf   :  { %v6075_v55 = vpop.f32.mrf.mxu1 }
 0x1d0   :  { %v6073_v54 = vpop.f32.mrf.mxu0  ;;  %6201 = vst [vmem:[#allocation3_spill] sm:$0xff] %v6075_v55 }
 0x1d1   :  { %v6079_v57 = vpop.f32.mrf.mxu1 }
 0x1d2   :  { %6202 = vst [vmem:[#allocation4_spill] sm:$0xff] %v6079_v57 }
 0x202   :  { %v6077_v56 = vpop.f32.mrf.mxu0 }
 0x203   :  { %v6081_v58 = vpop.f32.mrf.mxu1 }
 0x204   :  { %6203 = vst [vmem:[#allocation5_spill] sm:$0xff] %v6081_v58  ;;  %v6083_v60 = vpop.f32.mrf.mxu0 }
 0x205   :  { %v6085_v61 = vpop.f32.mrf.mxu1 }
 0x206   :  { %6204 = vst [vmem:[#allocation6_spill] sm:$0xff] %v6085_v61  ;;  %v6087_v62 = vpop.f32.mrf.mxu0 }
 0x207   :  { %6205 = vst [vmem:[#allocation7_spill] sm:$0xff] %v6087_v62  ;;  %v6089_v63 = vpop.f32.mrf.mxu1 }
 0x208   :  { %6206 = vst [vmem:[#allocation8_spill] sm:$0xff] %v6089_v63  ;;  %v6091_v0 = vpop.f32.mrf.mxu0  ;;  %v2882_v63 = vadd.f32 %v2881_v9, %v5605_v27  ;;  %v2878_v9 = vadd.f32 %v6021_v8, %v5562_v7  ;;  %v2982_v7 = vadd.f32 %v6035_v21, %v5791_v44 }
 0x209   :  { %6207 = vst [vmem:[#allocation9_spill] sm:$0xff] %v6091_v0  ;;  %v6093_v2 = vpop.f32.mrf.mxu1 }
 0x20a   :  { %6208 = vst [vmem:[#allocation10_spill] sm:$0xff] %v6093_v2  ;;  %v3199_v3 = vpop.f32.mrf.mxu0  ;;  %v2874_v2 = vadd.f32 %v5760_v29, %v5538_v59  ;;  %v2888_v59 = vadd.f32 %v6025_v15, %v5631_v42  ;;  %v3035_v44 = vadd.f32 %v6041_v24, %v2982_v7 }
 0x20b   :  { %v6095_v4 = vpop.f32.mrf.mxu1 }
 0x20c   :  { %6209 = vst [vmem:[#allocation11_spill] sm:$0xff] %v6095_v4  ;;  %v3201_v5 = vpop.f32.mrf.mxu0  ;;  %v2884_v4 = vadd.f32 %v2883_v10, %v5614_v33 }
 0x20d   :  { %v6097_v6 = vpop.f32.mrf.mxu1 }
 0x20e   :  { %6210 = vst [vmem:[#allocation12_spill] sm:$0xff] %v6097_v6  ;;  %v6099_v57 = vpop.f32.mrf.mxu0 }
 0x20f   :  { %6211 = vst [vmem:[#allocation13_spill] sm:$0xff] %v6099_v57  ;;  %v6101_v48 = vpop.f32.mrf.mxu1  ;;  %v2935_v57 = vadd.f32 %v2934_v12, %v2882_v63  ;;  %v6219_v63 = vld [vmem:[#allocation2_spill] sm:$0xff] }
 0x210   :  { %6212 = vst [vmem:[#allocation14_spill] sm:$0xff] %v6101_v48  ;;  %v6103_v58 = vpop.f32.mrf.mxu0  ;;  %v2886_v48 = vadd.f32 %v2885_v13, %v5623_v38 }
 0x211   :  { %6213 = vst [vmem:[#allocation15_spill] sm:$0xff] %v6103_v58  ;;  %v6105_v61 = vpop.f32.mrf.mxu1  ;;  %v2937_v58 = vadd.f32 %v2936_v14, %v2884_v4  ;;  %v2988_v27 = vadd.f32 %v2987_v25, %v2935_v57  ;;  %v2941_v14 = vadd.f32 %v6031_v19, %v2888_v59 }
 0x212   :  { %6214 = vst [vmem:[#allocation16_spill] sm:$0xff] %v6105_v61  ;;  %v2927_v61 = vadd.f32 %v5762_v30, %v2874_v2  ;;  %v2939_v38 = vadd.f32 %v6027_v17, %v2886_v48  ;;  %v6220_v2 = vld [vmem:[#allocation4_spill] sm:$0xff] }
 0x213   :  { %v2990_v10 = vadd.f32 %v2989_v28, %v2937_v58  ;;  %v3041_v13 = vadd.f32 %v3040_v52, %v2988_v27  ;;  %v6216_v58 = vld [vmem:[#allocation3_spill] sm:$0xff] }
 0x214   :  { %v2980_v29 = vadd.f32 %v6029_v18, %v2927_v61  ;;  %v2992_v42 = vadd.f32 %v2991_v31, %v2939_v38  ;;  %v6217_v61 = vld [vmem:[#allocation5_spill] sm:$0xff] }
 0x215   :  { %v3094_v18 = vadd.f32 %v3093_v47, %v3041_v13  ;;  %v6226_v13 = vld [vmem:[#allocation9_spill] sm:$0xff] }
 0x216   :  { %v3033_v15 = vadd.f32 %v6037_v22, %v2980_v29  ;;  %v3045_v21 = vadd.f32 %v6049_v36, %v2992_v42  ;;  %v6224_v29 = vld [vmem:[#allocation12_spill] sm:$0xff] }
 0x218   :  { %v3098_v47 = vadd.f32 %v6069_v51, %v3045_v21  ;;  %v6230_v21 = vld [vmem:[#allocation10_spill] sm:$0xff] }
 0x21a   :  { %v3151_v51 = vadd.f32 %v6216_v58, %v3098_v47 }
 0x242   :  { %v6107_v62 = vpop.f32.mrf.mxu0 }
 0x243   :  { %6215 = vst [vmem:[#allocation17_spill] sm:$0xff] %v6107_v62  ;;  %v6110_v0 = vpop.f32.mrf.mxu1  ;;  %v2978_v62 = vadd.f32 %v2977_v16, %v5770_v32  ;;  %v2931_v32 = vadd.f32 %v6023_v11, %v2878_v9  ;;  %v3043_v16 = vadd.f32 %v6045_v34, %v2990_v10  ;;  %v3086_v11 = vadd.f32 %v6053_v40, %v3033_v15 }
 0x244   :  { %v6115_v6 = vpop.f32.mrf.mxu0  ;;  %v3147_v34 = vadd.f32 %v6067_v50, %v3094_v18  ;;  %v6229_v18 = vld [vmem:[#allocation14_spill] sm:$0xff] }
 0x245   :  { %v6118_v55 = vpop.f32.mrf.mxu1  ;;  %v3031_v30 = vadd.f32 %v6033_v20, %v2978_v62  ;;  %v2984_v25 = vadd.f32 %v6039_v23, %v2931_v32  ;;  %v2994_v20 = vadd.f32 %v6047_v35, %v2941_v14  ;;  %v3096_v19 = vadd.f32 %v3095_v49, %v3043_v16  ;;  %v6218_v62 = vld [vmem:[#allocation11_spill] sm:$0xff]  ;;  %v6228_v16 = vld [vmem:[#allocation8_spill] sm:$0xff] }
 0x246   :  { %v6126_v33 = vpop.f32.mrf.mxu0  ;;  %v3088_v35 = vadd.f32 %v6057_v43, %v3035_v44  ;;  %v3139_v40 = vadd.f32 %v6059_v1, %v3086_v11  ;;  %v3200_v48 = vadd.f32 %v3199_v3, %v3147_v34  ;;  %v6227_v14 = vld [vmem:[#allocation15_spill] sm:$0xff]  ;;  %v6231_v34 = vld [vmem:[#allocation16_spill] sm:$0xff] }
 0x247   :  { %v6130_v12 = vpop.f32.mrf.mxu1  ;;  %v3084_v17 = vadd.f32 %v3083_v37, %v3031_v30  ;;  %v3037_v37 = vadd.f32 %v6043_v26, %v2984_v25  ;;  %v3047_v23 = vadd.f32 %v6051_v39, %v2994_v20  ;;  %v3149_v24 = vadd.f32 %v6071_v53, %v3096_v19 }
 0x248   :  { %v6137_v8 = vpop.f32.mrf.mxu0  ;;  %v3192_v26 = vadd.f32 %v6083_v60, %v3139_v40  ;;  %v3141_v43 = vadd.f32 %v6063_v46, %v3088_v35  ;;  %v3253_v53 = vadd.f32 %v6218_v62, %v3200_v48  ;;  %v6223_v60 = vld [vmem:[#allocation6_spill] sm:$0xff] }
 0x249   :  { %v6143_v28 = vpop.f32.mrf.mxu1  ;;  %v3137_v22 = vadd.f32 %v6055_v41, %v3084_v17  ;;  %v3090_v49 = vadd.f32 %v6061_v45, %v3037_v37  ;;  %v3100_v41 = vadd.f32 %v6073_v54, %v3047_v23  ;;  %v3202_v39 = vadd.f32 %v3201_v5, %v3149_v24  ;;  %v6221_v45 = vld [vmem:[#allocation7_spill] sm:$0xff]  ;;  %v6222_v54 = vld [vmem:[#allocation13_spill] sm:$0xff] }
 0x24a   :  { %v3305_v52 = vpop.f32.mrf.mxu0  ;;  %v3194_v4 = vadd.f32 %v6221_v45, %v3141_v43  ;;  %v3204_v27 = vadd.f32 %v6222_v54, %v3151_v51  ;;  %v3245_v5 = vadd.f32 %v6223_v60, %v3192_v26  ;;  %v6225_v10 = vld [vmem:[#allocation17_spill] sm:$0xff] }
 0x24b   :  { %v3358_v31 = vpop.f32.mrf.mxu1  ;;  %v3190_v36 = vadd.f32 %v6077_v56, %v3137_v22  ;;  %v3143_v56 = vadd.f32 %v6219_v63, %v3090_v49  ;;  %v3153_v3 = vadd.f32 %v6220_v2, %v3100_v41  ;;  %v3255_v46 = vadd.f32 %v6224_v29, %v3202_v39 }
 0x24c   :  { %v3307_v50 = vpop.f32.mrf.mxu0  ;;  %v3306_v30 = vadd.f32 %v3305_v52, %v3253_v53  ;;  %v3298_v42 = vadd.f32 %v6115_v6, %v3245_v5  ;;  %v3247_v17 = vadd.f32 %v6228_v16, %v3194_v4  ;;  %v3257_v25 = vadd.f32 %v6229_v18, %v3204_v27 }
 0x24d   :  { %v3360_v57 = vpop.f32.mrf.mxu1  ;;  %v3243_v1 = vadd.f32 %v6217_v61, %v3190_v36  ;;  %v3196_v32 = vadd.f32 %v6226_v13, %v3143_v56  ;;  %v3206_v7 = vadd.f32 %v6227_v14, %v3153_v3  ;;  %v3308_v15 = vadd.f32 %v3307_v50, %v3255_v46 }
 0x24e   :  { %v3309_v9 = vpop.f32.mrf.mxu0  ;;  %v3359_v44 = vadd.f32 %v3358_v31, %v3306_v30  ;;  %v3300_v37 = vadd.f32 %v6126_v33, %v3247_v17  ;;  %v3351_v6 = vadd.f32 %v6118_v55, %v3298_v42 }
 0x24f   :  { %v3362_v59 = vpop.f32.mrf.mxu1  ;;  %v3296_v38 = vadd.f32 %v6225_v10, %v3243_v1  ;;  %v3249_v22 = vadd.f32 %v6230_v21, %v3196_v32  ;;  %v3259_v52 = vadd.f32 %v6231_v34, %v3206_v7  ;;  %v3310_v23 = vadd.f32 %v3309_v9, %v3257_v25 }
 0x250   :  { %v3311_v20 = vpop.f32.mrf.mxu0  ;;  %v3361_v40 = vadd.f32 %v3360_v57, %v3308_v15  ;;  %v3353_v26 = vadd.f32 %v6130_v12, %v3300_v37 }
 0x251   :  { %v3364_v11 = vpop.f32.mrf.mxu1  ;;  %v3349_v19 = vadd.f32 %v6110_v0, %v3296_v38  ;;  %v3302_v48 = vadd.f32 %v6137_v8, %v3249_v22  ;;  %v3312_v49 = vadd.f32 %v3311_v20, %v3259_v52  ;;  %v3363_v39 = vadd.f32 %v3362_v59, %v3310_v23 }
 0x253   :  { %v3355_v55 = vadd.f32 %v6143_v28, %v3302_v48  ;;  %v3365_v57 = vadd.f32 %v3364_v11, %v3312_v49 }
 0x262   :  { %v3401_v35 = vpop.f32.mrf.mxu0 }
 0x263   :  { %v3411_v47 = vpop.f32.mrf.mxu1  ;;  %v3402_v24 = vadd.f32 %v3401_v35, %v3349_v19 }
 0x264   :  { %v3412_v36 = vadd.f32 %v3411_v47, %v3359_v44  ;;  %v3403_v41 = vpop.f32.mrf.mxu0 }
 0x265   :  { %v3413_v0 = vpop.f32.mrf.mxu1  ;;  %v3404_v31 = vadd.f32 %v3403_v41, %v3351_v6  ;;  %v3420_v58 = vmax.f32 %v3402_v24, 0.0 }
 0x266   :  { %v3414_v50 = vadd.f32 %v3413_v0, %v3361_v40  ;;  %v3405_v43 = vpop.f32.mrf.mxu0  ;;  %v3424_v51 = vmax.f32 %v3412_v36, 0.0 }
 0x267   :  { %v3415_v33 = vpop.f32.mrf.mxu1  ;;  %v3421_v61 = vmax.f32 %v3404_v31, 0.0  ;;  %v3406_v62 = vadd.f32 %v3405_v43, %v3353_v26 }
 0x268   :  { %v3425_v1 = vmax.f32 %v3414_v50, 0.0  ;;  %v3416_v53 = vadd.f32 %v3415_v33, %v3363_v39  ;;  %v3407_v8 = vpop.f32.mrf.mxu0 }
 0x269   :  { %v3417_v63 = vpop.f32.mrf.mxu1  ;;  %v3914_v56 = vpack.c.bf16 %v3421_v61, %v3420_v58  ;;  %v3408_v3 = vadd.f32 %v3407_v8, %v3355_v55  ;;  %v3422_v12 = vmax.f32 %v3406_v62, 0.0 }
 0x26a   :  { %v3916_v2 = vpack.c.bf16 %v3425_v1, %v3424_v51  ;;  %v3418_v45 = vadd.f32 %v3417_v63, %v3365_v57  ;;  %v3426_v4 = vmax.f32 %v3416_v53, 0.0 }
 0x26b   :  { %3452 = vst [vmem:[%s6199_s3] sm:$0xff] %v3914_v56  ;;  %v3423_v28 = vmax.f32 %v3408_v3, 0.0 }
 0x26c   :  { %3454 = vst [vmem:[%s6199_s3 + $0x10] sm:$0xff] %v3916_v2  ;;  %v3427_v54 = vmax.f32 %v3418_v45, 0.0 }
 0x26d   :  { %v3915_v27 = vpack.c.bf16 %v3423_v28, %v3422_v12 }
 0x26e   :  { %v3917_v9 = vpack.c.bf16 %v3427_v54, %v3426_v4 }
 0x26f   :  { %3453 = vst [vmem:[%s6199_s3 + $0x8] sm:$0xff] %v3915_v27 }
 0x270   :  { %3455 = vst [vmem:[%s6199_s3 + $0x18] sm:$0xff] %v3917_v9 }

// kernel: alexnet_forward.13
= control target key start
LH: loop header
LB: loop body
LE: loop exit
PB: predicated region body
PF: predicated region fallthrough
CT: control target
= control target key end

     0   :  { %s6478_s1 = inlined_call_operand.vmem [shape: bf16[2304,384], index: 1, kind: input, shape index: {}]   ;;  %s6479_s0 = inlined_call_operand.vmem [shape: bf16[8,2304], index: 0, kind: input, shape index: {}]   ;;  %s6480_s2 = inlined_call_operand.vmem [shape: f32[1,384], index: 2, kind: input, shape index: {}]   ;;  %s6481_s3 = inlined_call_operand.vmem [shape: bf16[8,384], index: 3, kind: output, shape index: {}]  }
   0x1   :  { %v4387_v0 = vld [vmem:[%s6478_s1 + $0xac] ss:$12 sps:$4 sm:$0xff]   ;;  %v4391_v2 = vld [vmem:[%s6478_s1 + $0xa8] ss:$12 sps:$4 sm:$0xff]   ;;  %v4397_v6 = vld [vmem:[%s6478_s1 + $0x90] ss:$12 sps:$4 sm:$0xff]  }
   0x2   :  { %v4389_v1 = vld [vmem:[%s6478_s1 + $0x22c] ss:$12 sps:$4 sm:$0xff]   ;;  %2984 = vmatprep.subr.bf16.mxu0 %v4387_v0  ;;  %v4392_v3 = vld [vmem:[%s6478_s1 + $0x228] ss:$12 sps:$4 sm:$0xff]   ;;  %v4398_v7 = vld [vmem:[%s6478_s1 + $0x210] ss:$12 sps:$4 sm:$0xff]  }
   0x3   :  { %3025 = vmatprep.subr.bf16.mxu1 %v4389_v1  ;;  %v4393_v4 = vld [vmem:[%s6478_s1 + $0x94] ss:$12 sps:$4 sm:$0xff]   ;;  %2985 = vmatpush1.bf16.msra.mxu0 %v4391_v2  ;;  %v4399_v8 = vld [vmem:[%s6478_s1 + $0x7c] ss:$12 sps:$4 sm:$0xff]   ;;  %v4403_v10 = vld [vmem:[%s6478_s1 + $0x78] ss:$12 sps:$4 sm:$0xff]  }
   0x4   :  { %3026 = vmatpush1.bf16.msra.mxu1 %v4392_v3  ;;  %v4395_v5 = vld [vmem:[%s6478_s1 + $0x214] ss:$12 sps:$4 sm:$0xff]   ;;  %2986 = vmatprep.subr.bf16.mxu0 %v4393_v4  ;;  %v4401_v9 = vld [vmem:[%s6478_s1 + $0x1fc] ss:$12 sps:$4 sm:$0xff]   ;;  %v4404_v11 = vld [vmem:[%s6478_s1 + $0x1f8] ss:$12 sps:$4 sm:$0xff]  }
   0x5   :  { %3027 = vmatprep.subr.bf16.mxu1 %v4395_v5  ;;  %v4405_v12 = vld [vmem:[%s6478_s1 + $0x64] ss:$12 sps:$4 sm:$0xff]   ;;  %v4409_v14 = vld [vmem:[%s6478_s1 + $0x60] ss:$12 sps:$4 sm:$0xff]   ;;  %v4415_v18 = vld [vmem:[%s6478_s1 + $0x48] ss:$12 sps:$4 sm:$0xff]  }
   0x6   :  { %v4407_v13 = vld [vmem:[%s6478_s1 + $0x1e4] ss:$12 sps:$4 sm:$0xff]   ;;  %v4410_v15 = vld [vmem:[%s6478_s1 + $0x1e0] ss:$12 sps:$4 sm:$0xff]   ;;  %v4416_v19 = vld [vmem:[%s6478_s1 + $0x1c8] ss:$12 sps:$4 sm:$0xff]  }
   0x7   :  { %2987 = vmatpush1.bf16.msra.mxu0 %v4397_v6  ;;  %v4411_v16 = vld [vmem:[%s6478_s1 + $0x4c] ss:$12 sps:$4 sm:$0xff]   ;;  %v4417_v20 = vld [vmem:[%s6478_s1 + $0x34] ss:$12 sps:$4 sm:$0xff]   ;;  %v4421_v22 = vld [vmem:[%s6478_s1 + $0x30] ss:$12 sps:$4 sm:$0xff]  }
   0x8   :  { %3028 = vmatpush1.bf16.msra.mxu1 %v4398_v7  ;;  %2988 = vmatprep.subr.bf16.mxu0 %v4399_v8  ;;  %v4413_v17 = vld [vmem:[%s6478_s1 + $0x1cc] ss:$12 sps:$4 sm:$0xff]   ;;  %v4419_v21 = vld [vmem:[%s6478_s1 + $0x1b4] ss:$12 sps:$4 sm:$0xff]   ;;  %v4422_v23 = vld [vmem:[%s6478_s1 + $0x1b0] ss:$12 sps:$4 sm:$0xff]  }
   0x9   :  { %3029 = vmatprep.subr.bf16.mxu1 %v4401_v9  ;;  %v4423_v24 = vld [vmem:[%s6478_s1 + $0x1c] ss:$12 sps:$4 sm:$0xff]   ;;  %v4427_v26 = vld [vmem:[%s6478_s1 + $0x18] ss:$12 sps:$4 sm:$0xff]   ;;  %v4433_v30 = vld [vmem:[%s6478_s1] ss:$12 sps:$4 sm:$0xff]  }
   0xa   :  { %v4425_v25 = vld [vmem:[%s6478_s1 + $0x19c] ss:$12 sps:$4 sm:$0xff]   ;;  %v4428_v27 = vld [vmem:[%s6478_s1 + $0x198] ss:$12 sps:$4 sm:$0xff]   ;;  %v4434_v31 = vld [vmem:[%s6478_s1 + $0x180] ss:$12 sps:$4 sm:$0xff]  }
   0xb   :  { %2989 = vmatpush1.bf16.msra.mxu0 %v4403_v10  ;;  %v4429_v28 = vld [vmem:[%s6478_s1 + $0x4] ss:$12 sps:$4 sm:$0xff]   ;;  %v4435_v32 = vld [vmem:[%s6478_s1 + $0x16c] ss:$12 sps:$4 sm:$0xff]   ;;  %v4439_v34 = vld [vmem:[%s6478_s1 + $0x168] ss:$12 sps:$4 sm:$0xff]  }
   0xc   :  { %3030 = vmatpush1.bf16.msra.mxu1 %v4404_v11  ;;  %2990 = vmatprep.subr.bf16.mxu0 %v4405_v12  ;;  %v4431_v29 = vld [vmem:[%s6478_s1 + $0x184] ss:$12 sps:$4 sm:$0xff]   ;;  %v4437_v33 = vld [vmem:[%s6478_s1 + $0x2ec] ss:$12 sps:$4 sm:$0xff]   ;;  %v4440_v35 = vld [vmem:[%s6478_s1 + $0x2e8] ss:$12 sps:$4 sm:$0xff]  }
   0xd   :  { %3031 = vmatprep.subr.bf16.mxu1 %v4407_v13  ;;  %v4441_v36 = vld [vmem:[%s6478_s1 + $0x154] ss:$12 sps:$4 sm:$0xff]   ;;  %v4445_v38 = vld [vmem:[%s6478_s1 + $0x150] ss:$12 sps:$4 sm:$0xff]   ;;  %v4451_v42 = vld [vmem:[%s6478_s1 + $0x138] ss:$12 sps:$4 sm:$0xff]  }
   0xe   :  { %v4443_v37 = vld [vmem:[%s6478_s1 + $0x2d4] ss:$12 sps:$4 sm:$0xff]   ;;  %v4446_v39 = vld [vmem:[%s6478_s1 + $0x2d0] ss:$12 sps:$4 sm:$0xff]   ;;  %v4452_v43 = vld [vmem:[%s6478_s1 + $0x2b8] ss:$12 sps:$4 sm:$0xff]  }
   0xf   :  { %2991 = vmatpush1.bf16.msra.mxu0 %v4409_v14  ;;  %v4447_v40 = vld [vmem:[%s6478_s1 + $0x13c] ss:$12 sps:$4 sm:$0xff]   ;;  %v4453_v44 = vld [vmem:[%s6478_s1 + $0x124] ss:$12 sps:$4 sm:$0xff]   ;;  %v4457_v49 = vld [vmem:[%s6478_s1 + $0x120] ss:$12 sps:$4 sm:$0xff]  }
  0x10   :  { %3032 = vmatpush1.bf16.msra.mxu1 %v4410_v15  ;;  %2992 = vmatprep.subr.bf16.mxu0 %v4411_v16  ;;  %v4449_v41 = vld [vmem:[%s6478_s1 + $0x2bc] ss:$12 sps:$4 sm:$0xff]   ;;  %v4455_v45 = vld [vmem:[%s6478_s1 + $0x2a4] ss:$12 sps:$4 sm:$0xff]   ;;  %v4458_v50 = vld [vmem:[%s6478_s1 + $0x2a0] ss:$12 sps:$4 sm:$0xff]  }
  0x11   :  { %3033 = vmatprep.subr.bf16.mxu1 %v4413_v17  ;;  %v15_v46 = vld [vmem:[%s6479_s0] sm:$0xff]  ;;  %v16_v48 = vld [vmem:[%s6479_s0 + $0x8] sm:$0xff]  ;;  %v4469_v58 = vld [vmem:[%s6478_s1 + $0xf0] ss:$12 sps:$4 sm:$0xff]  }
  0x12   :  { %v5143_v47 = vcombine.high %v15_v46, %v15_v46  ;;  %v5154_v51 = vcombine.high %v16_v48, %v16_v48  ;;  %v4459_v52 = vld [vmem:[%s6478_s1 + $0x10c] ss:$12 sps:$4 sm:$0xff]   ;;  %v4463_v54 = vld [vmem:[%s6478_s1 + $0x108] ss:$12 sps:$4 sm:$0xff]   ;;  %v4470_v59 = vld [vmem:[%s6478_s1 + $0x270] ss:$12 sps:$4 sm:$0xff]   ;;  %v5212_v6 = vcombine.low %v15_v46, %v15_v46  ;;  %v5214_v7 = vcombine.low %v16_v48, %v16_v48 }
  0x13   :  { %2993 = vmatpush1.bf16.msra.mxu0 %v4415_v18  ;;  %v4461_v53 = vld [vmem:[%s6478_s1 + $0x28c] ss:$12 sps:$4 sm:$0xff]   ;;  %v4464_v55 = vld [vmem:[%s6478_s1 + $0x288] ss:$12 sps:$4 sm:$0xff]   ;;  %v4477_v0 = vld [vmem:[%s6478_s1 + $0xc4] ss:$12 sps:$4 sm:$0xff]  }
  0x14   :  { %3034 = vmatpush1.bf16.msra.mxu1 %v4416_v19  ;;  %2994 = vmatprep.subr.bf16.mxu0 %v4417_v20  ;;  %v4465_v56 = vld [vmem:[%s6478_s1 + $0xf4] ss:$12 sps:$4 sm:$0xff]   ;;  %v4471_v60 = vld [vmem:[%s6478_s1 + $0xdc] ss:$12 sps:$4 sm:$0xff]   ;;  %v4475_v62 = vld [vmem:[%s6478_s1 + $0xd8] ss:$12 sps:$4 sm:$0xff]  }
  0x15   :  { %3035 = vmatprep.subr.bf16.mxu1 %v4419_v21  ;;  %3016 = vmatprep.mubr.bf16.mxu0 %v5143_v47  ;;  %v4467_v57 = vld [vmem:[%s6478_s1 + $0x274] ss:$12 sps:$4 sm:$0xff]   ;;  %v4473_v61 = vld [vmem:[%s6478_s1 + $0x25c] ss:$12 sps:$4 sm:$0xff]   ;;  %v4476_v63 = vld [vmem:[%s6478_s1 + $0x258] ss:$12 sps:$4 sm:$0xff]  }
  0x16   :  { %3057 = vmatprep.mubr.bf16.mxu1 %v5154_v51  ;;  %v4479_v1 = vld [vmem:[%s6478_s1 + $0x244] ss:$12 sps:$4 sm:$0xff]   ;;  %v4481_v2 = vld [vmem:[%s6478_s1 + $0xc0] ss:$12 sps:$4 sm:$0xff]   ;;  %v4487_v8 = vld [vmem:[%s6478_s1 + $0x3a8] ss:$12 sps:$4 sm:$0xff]  }
  0x17   :  { %2995 = vmatpush1.bf16.msra.mxu0 %v4421_v22  ;;  %v4482_v3 = vld [vmem:[%s6478_s1 + $0x240] ss:$12 sps:$4 sm:$0xff]   ;;  %v4490_v9 = vld [vmem:[%s6478_s1 + $0x528] ss:$12 sps:$4 sm:$0xff]   ;;  %v4493_v12 = vld [vmem:[%s6478_s1 + $0x390] ss:$12 sps:$4 sm:$0xff]  }
  0x18   :  { %3036 = vmatpush1.bf16.msra.mxu1 %v4422_v23  ;;  %2996 = vmatprep.subr.bf16.mxu0 %v4423_v24  ;;  %v4489_v4 = vld [vmem:[%s6478_s1 + $0x3ac] ss:$12 sps:$4 sm:$0xff]   ;;  %v4495_v10 = vld [vmem:[%s6478_s1 + $0x394] ss:$12 sps:$4 sm:$0xff]   ;;  %v4496_v13 = vld [vmem:[%s6478_s1 + $0x510] ss:$12 sps:$4 sm:$0xff]  }
  0x19   :  { %3037 = vmatprep.subr.bf16.mxu1 %v4425_v25  ;;  %v4492_v5 = vld [vmem:[%s6478_s1 + $0x52c] ss:$12 sps:$4 sm:$0xff]   ;;  %v4498_v11 = vld [vmem:[%s6478_s1 + $0x514] ss:$12 sps:$4 sm:$0xff]   ;;  %v4501_v14 = vld [vmem:[%s6478_s1 + $0x37c] ss:$12 sps:$4 sm:$0xff]  }
  0x1a   :  { %v4504_v15 = vld [vmem:[%s6478_s1 + $0x4fc] ss:$12 sps:$4 sm:$0xff]   ;;  %v4499_v16 = vld [vmem:[%s6478_s1 + $0x378] ss:$12 sps:$4 sm:$0xff]   ;;  %v4505_v20 = vld [vmem:[%s6478_s1 + $0x360] ss:$12 sps:$4 sm:$0xff]  }
  0x1b   :  { %2997 = vmatpush1.bf16.msra.mxu0 %v4427_v26  ;;  %v4502_v17 = vld [vmem:[%s6478_s1 + $0x4f8] ss:$12 sps:$4 sm:$0xff]   ;;  %v4508_v21 = vld [vmem:[%s6478_s1 + $0x4e0] ss:$12 sps:$4 sm:$0xff]   ;;  %v4511_v24 = vld [vmem:[%s6478_s1 + $0x348] ss:$12 sps:$4 sm:$0xff]  }
  0x1c   :  { %3038 = vmatpush1.bf16.msra.mxu1 %v4428_v27  ;;  %2998 = vmatprep.subr.bf16.mxu0 %v4429_v28  ;;  %v4507_v18 = vld [vmem:[%s6478_s1 + $0x364] ss:$12 sps:$4 sm:$0xff]   ;;  %v4513_v22 = vld [vmem:[%s6478_s1 + $0x34c] ss:$12 sps:$4 sm:$0xff]   ;;  %v4514_v25 = vld [vmem:[%s6478_s1 + $0x4c8] ss:$12 sps:$4 sm:$0xff]  }
  0x1d   :  { %3039 = vmatprep.subr.bf16.mxu1 %v4431_v29  ;;  %v4510_v19 = vld [vmem:[%s6478_s1 + $0x4e4] ss:$12 sps:$4 sm:$0xff]   ;;  %v4516_v23 = vld [vmem:[%s6478_s1 + $0x4cc] ss:$12 sps:$4 sm:$0xff]   ;;  %v4519_v26 = vld [vmem:[%s6478_s1 + $0x334] ss:$12 sps:$4 sm:$0xff]  }
  0x1e   :  { %v4522_v27 = vld [vmem:[%s6478_s1 + $0x4b4] ss:$12 sps:$4 sm:$0xff]   ;;  %v4517_v28 = vld [vmem:[%s6478_s1 + $0x330] ss:$12 sps:$4 sm:$0xff]  }
  0x1f   :  { %2999 = vmatpush1.bf16.msra.mxu0 %v4433_v30  ;;  %v4520_v29 = vld [vmem:[%s6478_s1 + $0x4b0] ss:$12 sps:$4 sm:$0xff]   ;;  %v4543_v46 = vld [vmem:[%s6478_s1 + $0x454] ss:$12 sps:$4 sm:$0xff]  }
  0x20   :  { %3040 = vmatpush1.bf16.msra.mxu1 %v4434_v31  ;;  %3000 = vmatprep.subr.bf16.mxu0 %v4435_v32  ;;  %v4525_v30 = vld [vmem:[%s6478_s1 + $0x31c] ss:$12 sps:$4 sm:$0xff]   ;;  %v5293_v32 = vld [vmem:[%s6479_s0 + $0x10] sm:$0xff] }
  0x21   :  { %3041 = vmatprep.subr.bf16.mxu1 %v4437_v33  ;;  %v4528_v31 = vld [vmem:[%s6478_s1 + $0x49c] ss:$12 sps:$4 sm:$0xff]   ;;  %v4546_v48 = vld [vmem:[%s6478_s1 + $0x5d4] ss:$12 sps:$4 sm:$0xff]  }
  0x22   :  { %v5298_v33 = vld [vmem:[%s6479_s0 + $0x18] sm:$0xff] }
  0x23   :  { %3001 = vmatpush2.bf16.msra.mxu0 %v4439_v34  ;;  %v4523_v34 = vld [vmem:[%s6478_s1 + $0x318] ss:$12 sps:$4 sm:$0xff]  }
  0x24   :  { %3042 = vmatpush2.bf16.msra.mxu1 %v4440_v35  ;;  %3002 = vmatprep.subr.bf16.mxu0 %v4441_v36  ;;  %v4526_v35 = vld [vmem:[%s6478_s1 + $0x498] ss:$12 sps:$4 sm:$0xff]   ;;  %v5308_v36 = vcombine.high %v5293_v32, %v5293_v32 }
  0x25   :  { %3043 = vmatprep.subr.bf16.mxu1 %v4443_v37  ;;  %v5312_v37 = vcombine.high %v5298_v33, %v5298_v33 }
  0x27   :  { %3003 = vmatpush2.bf16.msra.mxu0 %v4445_v38  ;;  %v4531_v38 = vld [vmem:[%s6478_s1 + $0x304] ss:$12 sps:$4 sm:$0xff]  }
  0x28   :  { %3044 = vmatpush2.bf16.msra.mxu1 %v4446_v39  ;;  %3004 = vmatprep.subr.bf16.mxu0 %v4447_v40  ;;  %v4534_v39 = vld [vmem:[%s6478_s1 + $0x484] ss:$12 sps:$4 sm:$0xff]   ;;  %v4529_v40 = vld [vmem:[%s6478_s1 + $0x300] ss:$12 sps:$4 sm:$0xff]  }
  0x29   :  { %3045 = vmatprep.subr.bf16.mxu1 %v4449_v41  ;;  %v4532_v41 = vld [vmem:[%s6478_s1 + $0x480] ss:$12 sps:$4 sm:$0xff]  }
  0x2b   :  { %3005 = vmatpush2.bf16.msra.mxu0 %v4451_v42  ;;  %v4537_v42 = vld [vmem:[%s6478_s1 + $0x46c] ss:$12 sps:$4 sm:$0xff]  }
  0x2c   :  { %3046 = vmatpush2.bf16.msra.mxu1 %v4452_v43  ;;  %3006 = vmatprep.subr.bf16.mxu0 %v4453_v44  ;;  %v4540_v43 = vld [vmem:[%s6478_s1 + $0x5ec] ss:$12 sps:$4 sm:$0xff]   ;;  %v4535_v44 = vld [vmem:[%s6478_s1 + $0x468] ss:$12 sps:$4 sm:$0xff]  }
  0x2d   :  { %3047 = vmatprep.subr.bf16.mxu1 %v4455_v45  ;;  %v4538_v45 = vld [vmem:[%s6478_s1 + $0x5e8] ss:$12 sps:$4 sm:$0xff]  }
  0x2f   :  { %3007 = vmatpush2.bf16.msra.mxu0 %v4457_v49  ;;  %v4541_v49 = vld [vmem:[%s6478_s1 + $0x450] ss:$12 sps:$4 sm:$0xff]  }
  0x30   :  { %3048 = vmatpush2.bf16.msra.mxu1 %v4458_v50  ;;  %3008 = vmatprep.subr.bf16.mxu0 %v4459_v52  ;;  %v4544_v50 = vld [vmem:[%s6478_s1 + $0x5d0] ss:$12 sps:$4 sm:$0xff]  }
  0x31   :  { %3049 = vmatprep.subr.bf16.mxu1 %v4461_v53  ;;  %v4549_v52 = vld [vmem:[%s6478_s1 + $0x43c] ss:$12 sps:$4 sm:$0xff]  }
  0x32   :  { %v4552_v53 = vld [vmem:[%s6478_s1 + $0x5bc] ss:$12 sps:$4 sm:$0xff]  }
  0x33   :  { %3009 = vmatpush2.bf16.msra.mxu0 %v4463_v54  ;;  %v4547_v54 = vld [vmem:[%s6478_s1 + $0x438] ss:$12 sps:$4 sm:$0xff]  }
  0x34   :  { %3050 = vmatpush2.bf16.msra.mxu1 %v4464_v55  ;;  %3010 = vmatprep.subr.bf16.mxu0 %v4465_v56  ;;  %v4550_v55 = vld [vmem:[%s6478_s1 + $0x5b8] ss:$12 sps:$4 sm:$0xff]  }
  0x35   :  { %3051 = vmatprep.subr.bf16.mxu1 %v4467_v57  ;;  %v4555_v56 = vld [vmem:[%s6478_s1 + $0x424] ss:$12 sps:$4 sm:$0xff]  }
  0x36   :  { %v4558_v57 = vld [vmem:[%s6478_s1 + $0x5a4] ss:$12 sps:$4 sm:$0xff]  }
  0x37   :  { %3011 = vmatpush2.bf16.msra.mxu0 %v4469_v58  ;;  %v4553_v58 = vld [vmem:[%s6478_s1 + $0x420] ss:$12 sps:$4 sm:$0xff]  }
  0x38   :  { %3052 = vmatpush2.bf16.msra.mxu1 %v4470_v59  ;;  %3012 = vmatprep.subr.bf16.mxu0 %v4471_v60  ;;  %v4556_v59 = vld [vmem:[%s6478_s1 + $0x5a0] ss:$12 sps:$4 sm:$0xff]  }
  0x39   :  { %3053 = vmatprep.subr.bf16.mxu1 %v4473_v61  ;;  %v4561_v60 = vld [vmem:[%s6478_s1 + $0x40c] ss:$12 sps:$4 sm:$0xff]  }
  0x3a   :  { %v4564_v61 = vld [vmem:[%s6478_s1 + $0x58c] ss:$12 sps:$4 sm:$0xff]  }
  0x3b   :  { %3013 = vmatpush2.bf16.msra.mxu0 %v4475_v62  ;;  %v4559_v62 = vld [vmem:[%s6478_s1 + $0x408] ss:$12 sps:$4 sm:$0xff]  }
  0x3c   :  { %3054 = vmatpush2.bf16.msra.mxu1 %v4476_v63  ;;  %3014 = vmatprep.subr.bf16.mxu0 %v4477_v0  ;;  %v4562_v63 = vld [vmem:[%s6478_s1 + $0x588] ss:$12 sps:$4 sm:$0xff]  }
  0x3d   :  { %3055 = vmatprep.subr.bf16.mxu1 %v4479_v1  ;;  %v4567_v0 = vld [vmem:[%s6478_s1 + $0x3f4] ss:$12 sps:$4 sm:$0xff]  }
  0x3e   :  { %v4570_v1 = vld [vmem:[%s6478_s1 + $0x574] ss:$12 sps:$4 sm:$0xff]  }
  0x3f   :  { %3015 = vmatpush2.bf16.msra.mxu0 %v4481_v2  ;;  %v4565_v2 = vld [vmem:[%s6478_s1 + $0x3f0] ss:$12 sps:$4 sm:$0xff]  }
  0x40   :  { %3056 = vmatpush2.bf16.msra.mxu1 %v4482_v3  ;;  %3066 = vmatprep.subr.bf16.mxu0 %v4489_v4  ;;  %v4568_v3 = vld [vmem:[%s6478_s1 + $0x570] ss:$12 sps:$4 sm:$0xff]  }
  0x41   :  { %3107 = vmatprep.subr.bf16.mxu1 %v4492_v5  ;;  %v4573_v4 = vld [vmem:[%s6478_s1 + $0x3dc] ss:$12 sps:$4 sm:$0xff]  }
  0x42   :  { %3017 = vmatmul.mubr.bf16.vlgmr.msra.gmra.mxu0 %v5212_v6  ;;  %v4576_v5 = vld [vmem:[%s6478_s1 + $0x55c] ss:$12 sps:$4 sm:$0xff]  }
  0x43   :  { %3058 = vmatmul.mubr.bf16.vlgmr.msra.gmra.mxu1 %v5214_v7  ;;  %3067 = vmatpush1.bf16.msra.mxu0 %v4487_v8  ;;  %v4571_v8 = vld [vmem:[%s6478_s1 + $0x3d8] ss:$12 sps:$4 sm:$0xff]  }
  0x44   :  { %3108 = vmatpush1.bf16.msra.mxu1 %v4490_v9  ;;  %3068 = vmatprep.subr.bf16.mxu0 %v4495_v10  ;;  %v4574_v9 = vld [vmem:[%s6478_s1 + $0x558] ss:$12 sps:$4 sm:$0xff]  }
  0x45   :  { %3109 = vmatprep.subr.bf16.mxu1 %v4498_v11  ;;  %3098 = vmatprep.mubr.bf16.mxu0 %v5308_v36  ;;  %v4579_v10 = vld [vmem:[%s6478_s1 + $0x3c4] ss:$12 sps:$4 sm:$0xff]  }
  0x46   :  { %3139 = vmatprep.mubr.bf16.mxu1 %v5312_v37  ;;  %v4582_v11 = vld [vmem:[%s6478_s1 + $0x544] ss:$12 sps:$4 sm:$0xff]  }
  0x47   :  { %3069 = vmatpush1.bf16.msra.mxu0 %v4493_v12  ;;  %v4577_v12 = vld [vmem:[%s6478_s1 + $0x3c0] ss:$12 sps:$4 sm:$0xff]  }
  0x48   :  { %3110 = vmatpush1.bf16.msra.mxu1 %v4496_v13  ;;  %3070 = vmatprep.subr.bf16.mxu0 %v4501_v14  ;;  %v4580_v13 = vld [vmem:[%s6478_s1 + $0x540] ss:$12 sps:$4 sm:$0xff]  }
  0x49   :  { %3111 = vmatprep.subr.bf16.mxu1 %v4504_v15  ;;  %v4589_v14 = vld [vmem:[%s6478_s1 + $0x6ac] ss:$12 sps:$4 sm:$0xff]  }
  0x4a   :  { %v4592_v15 = vld [vmem:[%s6478_s1 + $0x82c] ss:$12 sps:$4 sm:$0xff]  }
  0x4b   :  { %3071 = vmatpush1.bf16.msra.mxu0 %v4499_v16  ;;  %v5432_v16 = vcombine.low %v5293_v32, %v5293_v32  ;;  %v4607_v32 = vld [vmem:[%s6478_s1 + $0x664] ss:$12 sps:$4 sm:$0xff]  }
  0x4c   :  { %3112 = vmatpush1.bf16.msra.mxu1 %v4502_v17  ;;  %3072 = vmatprep.subr.bf16.mxu0 %v4507_v18  ;;  %v5436_v17 = vcombine.low %v5298_v33, %v5298_v33  ;;  %v4587_v18 = vld [vmem:[%s6478_s1 + $0x6a8] ss:$12 sps:$4 sm:$0xff]   ;;  %v4610_v33 = vld [vmem:[%s6478_s1 + $0x7e4] ss:$12 sps:$4 sm:$0xff]  }
  0x4d   :  { %3113 = vmatprep.subr.bf16.mxu1 %v4510_v19  ;;  %v4590_v19 = vld [vmem:[%s6478_s1 + $0x828] ss:$12 sps:$4 sm:$0xff]  }
  0x4f   :  { %3073 = vmatpush1.bf16.msra.mxu0 %v4505_v20  ;;  %v4595_v20 = vld [vmem:[%s6478_s1 + $0x694] ss:$12 sps:$4 sm:$0xff]  }
  0x50   :  { %3114 = vmatpush1.bf16.msra.mxu1 %v4508_v21  ;;  %3074 = vmatprep.subr.bf16.mxu0 %v4513_v22  ;;  %v4598_v21 = vld [vmem:[%s6478_s1 + $0x814] ss:$12 sps:$4 sm:$0xff]  }
  0x51   :  { %3115 = vmatprep.subr.bf16.mxu1 %v4516_v23  ;;  %v5453_v22 = vld [vmem:[%s6479_s0 + $0x20] sm:$0xff]  ;;  %v5458_v23 = vld [vmem:[%s6479_s0 + $0x28] sm:$0xff] }
  0x53   :  { %3075 = vmatpush1.bf16.msra.mxu0 %v4511_v24  ;;  %v5462_v24 = vcombine.high %v5453_v22, %v5453_v22 }
  0x54   :  { %3116 = vmatpush1.bf16.msra.mxu1 %v4514_v25  ;;  %3076 = vmatprep.subr.bf16.mxu0 %v4519_v26  ;;  %v5466_v25 = vcombine.high %v5458_v23, %v5458_v23  ;;  %v4593_v26 = vld [vmem:[%s6478_s1 + $0x690] ss:$12 sps:$4 sm:$0xff]  }
  0x55   :  { %3117 = vmatprep.subr.bf16.mxu1 %v4522_v27  ;;  %v4596_v27 = vld [vmem:[%s6478_s1 + $0x810] ss:$12 sps:$4 sm:$0xff]  }
  0x57   :  { %3077 = vmatpush1.bf16.msra.mxu0 %v4517_v28  ;;  %v4601_v28 = vld [vmem:[%s6478_s1 + $0x67c] ss:$12 sps:$4 sm:$0xff]  }
  0x58   :  { %3118 = vmatpush1.bf16.msra.mxu1 %v4520_v29  ;;  %3078 = vmatprep.subr.bf16.mxu0 %v4525_v30  ;;  %v4604_v29 = vld [vmem:[%s6478_s1 + $0x7fc] ss:$12 sps:$4 sm:$0xff]   ;;  %v4599_v30 = vld [vmem:[%s6478_s1 + $0x678] ss:$12 sps:$4 sm:$0xff]  }
  0x59   :  { %3119 = vmatprep.subr.bf16.mxu1 %v4528_v31  ;;  %v4602_v31 = vld [vmem:[%s6478_s1 + $0x7f8] ss:$12 sps:$4 sm:$0xff]  }
  0x5b   :  { %3079 = vmatpush1.bf16.msra.mxu0 %v4523_v34  ;;  %v4605_v34 = vld [vmem:[%s6478_s1 + $0x660] ss:$12 sps:$4 sm:$0xff]  }
  0x5c   :  { %3120 = vmatpush1.bf16.msra.mxu1 %v4526_v35  ;;  %3080 = vmatprep.subr.bf16.mxu0 %v4531_v38  ;;  %v4608_v35 = vld [vmem:[%s6478_s1 + $0x7e0] ss:$12 sps:$4 sm:$0xff]  }
  0x5d   :  { %3121 = vmatprep.subr.bf16.mxu1 %v4534_v39  ;;  %v4613_v38 = vld [vmem:[%s6478_s1 + $0x64c] ss:$12 sps:$4 sm:$0xff]  }
  0x5e   :  { %v4616_v39 = vld [vmem:[%s6478_s1 + $0x7cc] ss:$12 sps:$4 sm:$0xff]  }
  0x5f   :  { %3081 = vmatpush1.bf16.msra.mxu0 %v4529_v40  ;;  %v4611_v40 = vld [vmem:[%s6478_s1 + $0x648] ss:$12 sps:$4 sm:$0xff]  }
  0x60   :  { %3122 = vmatpush1.bf16.msra.mxu1 %v4532_v41  ;;  %3082 = vmatprep.subr.bf16.mxu0 %v4537_v42  ;;  %v4614_v41 = vld [vmem:[%s6478_s1 + $0x7c8] ss:$12 sps:$4 sm:$0xff]  }
  0x61   :  { %3123 = vmatprep.subr.bf16.mxu1 %v4540_v43  ;;  %v4619_v42 = vld [vmem:[%s6478_s1 + $0x634] ss:$12 sps:$4 sm:$0xff]  }
  0x62   :  { %v4622_v43 = vld [vmem:[%s6478_s1 + $0x7b4] ss:$12 sps:$4 sm:$0xff]  }
  0x63   :  { %3083 = vmatpush2.bf16.msra.mxu0 %v4535_v44  ;;  %v4617_v44 = vld [vmem:[%s6478_s1 + $0x630] ss:$12 sps:$4 sm:$0xff]  }
  0x64   :  { %3124 = vmatpush2.bf16.msra.mxu1 %v4538_v45  ;;  %3084 = vmatprep.subr.bf16.mxu0 %v4543_v46  ;;  %v4620_v45 = vld [vmem:[%s6478_s1 + $0x7b0] ss:$12 sps:$4 sm:$0xff]  }
  0x65   :  { %3125 = vmatprep.subr.bf16.mxu1 %v4546_v48  ;;  %v4625_v46 = vld [vmem:[%s6478_s1 + $0x61c] ss:$12 sps:$4 sm:$0xff]  }
  0x66   :  { %v4628_v48 = vld [vmem:[%s6478_s1 + $0x79c] ss:$12 sps:$4 sm:$0xff]  }
  0x67   :  { %3085 = vmatpush2.bf16.msra.mxu0 %v4541_v49  ;;  %v4623_v49 = vld [vmem:[%s6478_s1 + $0x618] ss:$12 sps:$4 sm:$0xff]  }
  0x68   :  { %3126 = vmatpush2.bf16.msra.mxu1 %v4544_v50  ;;  %3086 = vmatprep.subr.bf16.mxu0 %v4549_v52  ;;  %v4626_v50 = vld [vmem:[%s6478_s1 + $0x798] ss:$12 sps:$4 sm:$0xff]  }
  0x69   :  { %3127 = vmatprep.subr.bf16.mxu1 %v4552_v53  ;;  %v4631_v52 = vld [vmem:[%s6478_s1 + $0x604] ss:$12 sps:$4 sm:$0xff]  }
  0x6a   :  { %v4634_v53 = vld [vmem:[%s6478_s1 + $0x784] ss:$12 sps:$4 sm:$0xff]  }
  0x6b   :  { %3087 = vmatpush2.bf16.msra.mxu0 %v4547_v54  ;;  %v4629_v54 = vld [vmem:[%s6478_s1 + $0x600] ss:$12 sps:$4 sm:$0xff]  }
  0x6c   :  { %3128 = vmatpush2.bf16.msra.mxu1 %v4550_v55  ;;  %3088 = vmatprep.subr.bf16.mxu0 %v4555_v56  ;;  %v4632_v55 = vld [vmem:[%s6478_s1 + $0x780] ss:$12 sps:$4 sm:$0xff]  }
  0x6d   :  { %3129 = vmatprep.subr.bf16.mxu1 %v4558_v57  ;;  %v4637_v56 = vld [vmem:[%s6478_s1 + $0x76c] ss:$12 sps:$4 sm:$0xff]  }
  0x6e   :  { %v4640_v57 = vld [vmem:[%s6478_s1 + $0x8ec] ss:$12 sps:$4 sm:$0xff]  }
  0x6f   :  { %3089 = vmatpush2.bf16.msra.mxu0 %v4553_v58  ;;  %v4635_v58 = vld [vmem:[%s6478_s1 + $0x768] ss:$12 sps:$4 sm:$0xff]  }
  0x70   :  { %3130 = vmatpush2.bf16.msra.mxu1 %v4556_v59  ;;  %3090 = vmatprep.subr.bf16.mxu0 %v4561_v60  ;;  %v4638_v59 = vld [vmem:[%s6478_s1 + $0x8e8] ss:$12 sps:$4 sm:$0xff]  }
  0x71   :  { %3131 = vmatprep.subr.bf16.mxu1 %v4564_v61  ;;  %v4643_v60 = vld [vmem:[%s6478_s1 + $0x754] ss:$12 sps:$4 sm:$0xff]  }
  0x72   :  { %v4646_v61 = vld [vmem:[%s6478_s1 + $0x8d4] ss:$12 sps:$4 sm:$0xff]  }
  0x73   :  { %3091 = vmatpush2.bf16.msra.mxu0 %v4559_v62  ;;  %v4641_v62 = vld [vmem:[%s6478_s1 + $0x750] ss:$12 sps:$4 sm:$0xff]  }
  0x74   :  { %3132 = vmatpush2.bf16.msra.mxu1 %v4562_v63  ;;  %3092 = vmatprep.subr.bf16.mxu0 %v4567_v0  ;;  %v4644_v63 = vld [vmem:[%s6478_s1 + $0x8d0] ss:$12 sps:$4 sm:$0xff]  }
  0x75   :  { %3133 = vmatprep.subr.bf16.mxu1 %v4570_v1  ;;  %v4649_v0 = vld [vmem:[%s6478_s1 + $0x73c] ss:$12 sps:$4 sm:$0xff]  }
  0x76   :  { %v4652_v1 = vld [vmem:[%s6478_s1 + $0x8bc] ss:$12 sps:$4 sm:$0xff]  }
  0x77   :  { %3093 = vmatpush2.bf16.msra.mxu0 %v4565_v2  ;;  %v4647_v2 = vld [vmem:[%s6478_s1 + $0x738] ss:$12 sps:$4 sm:$0xff]  }
  0x78   :  { %3134 = vmatpush2.bf16.msra.mxu1 %v4568_v3  ;;  %3094 = vmatprep.subr.bf16.mxu0 %v4573_v4  ;;  %v4650_v3 = vld [vmem:[%s6478_s1 + $0x8b8] ss:$12 sps:$4 sm:$0xff]  }
  0x79   :  { %3135 = vmatprep.subr.bf16.mxu1 %v4576_v5  ;;  %v4655_v4 = vld [vmem:[%s6478_s1 + $0x724] ss:$12 sps:$4 sm:$0xff]  }
  0x7a   :  { %v4658_v5 = vld [vmem:[%s6478_s1 + $0x8a4] ss:$12 sps:$4 sm:$0xff]  }
  0x7b   :  { %3095 = vmatpush2.bf16.msra.mxu0 %v4571_v8  ;;  %v4653_v8 = vld [vmem:[%s6478_s1 + $0x720] ss:$12 sps:$4 sm:$0xff]  }
  0x7c   :  { %3136 = vmatpush2.bf16.msra.mxu1 %v4574_v9  ;;  %3096 = vmatprep.subr.bf16.mxu0 %v4579_v10  ;;  %v4656_v9 = vld [vmem:[%s6478_s1 + $0x8a0] ss:$12 sps:$4 sm:$0xff]  }
  0x7d   :  { %3137 = vmatprep.subr.bf16.mxu1 %v4582_v11  ;;  %v4661_v10 = vld [vmem:[%s6478_s1 + $0x70c] ss:$12 sps:$4 sm:$0xff]  }
  0x7e   :  { %v4664_v11 = vld [vmem:[%s6478_s1 + $0x88c] ss:$12 sps:$4 sm:$0xff]  }
  0x7f   :  { %3097 = vmatpush2.bf16.msra.mxu0 %v4577_v12  ;;  %v4659_v12 = vld [vmem:[%s6478_s1 + $0x708] ss:$12 sps:$4 sm:$0xff]  }
  0x80   :  { %3138 = vmatpush2.bf16.msra.mxu1 %v4580_v13  ;;  %3148 = vmatprep.subr.bf16.mxu0 %v4589_v14  ;;  %v4662_v13 = vld [vmem:[%s6478_s1 + $0x888] ss:$12 sps:$4 sm:$0xff]  }
  0x81   :  { %3189 = vmatprep.subr.bf16.mxu1 %v4592_v15  ;;  %v4667_v14 = vld [vmem:[%s6478_s1 + $0x6f4] ss:$12 sps:$4 sm:$0xff]  }
  0x82   :  { %3099 = vmatmul.mubr.bf16.vlgmr.msra.gmra.mxu0 %v5432_v16  ;;  %v4670_v15 = vld [vmem:[%s6478_s1 + $0x874] ss:$12 sps:$4 sm:$0xff]  }
  0x83   :  { %3140 = vmatmul.mubr.bf16.vlgmr.msra.gmra.mxu1 %v5436_v17  ;;  %3149 = vmatpush1.bf16.msra.mxu0 %v4587_v18  ;;  %v4665_v18 = vld [vmem:[%s6478_s1 + $0x6f0] ss:$12 sps:$4 sm:$0xff]  }
  0x84   :  { %3190 = vmatpush1.bf16.msra.mxu1 %v4590_v19  ;;  %3150 = vmatprep.subr.bf16.mxu0 %v4595_v20  ;;  %v4668_v19 = vld [vmem:[%s6478_s1 + $0x870] ss:$12 sps:$4 sm:$0xff]  }
  0x85   :  { %3191 = vmatprep.subr.bf16.mxu1 %v4598_v21  ;;  %3180 = vmatprep.mubr.bf16.mxu0 %v5462_v24  ;;  %v4673_v20 = vld [vmem:[%s6478_s1 + $0x6dc] ss:$12 sps:$4 sm:$0xff]  }
  0x86   :  { %3221 = vmatprep.mubr.bf16.mxu1 %v5466_v25  ;;  %v4676_v21 = vld [vmem:[%s6478_s1 + $0x85c] ss:$12 sps:$4 sm:$0xff]  }
  0x87   :  { %3151 = vmatpush1.bf16.msra.mxu0 %v4593_v26  ;;  %v4671_v26 = vld [vmem:[%s6478_s1 + $0x6d8] ss:$12 sps:$4 sm:$0xff]  }
  0x88   :  { %3192 = vmatpush1.bf16.msra.mxu1 %v4596_v27  ;;  %3152 = vmatprep.subr.bf16.mxu0 %v4601_v28  ;;  %v4674_v27 = vld [vmem:[%s6478_s1 + $0x858] ss:$12 sps:$4 sm:$0xff]  }
  0x89   :  { %3193 = vmatprep.subr.bf16.mxu1 %v4604_v29  ;;  %v4679_v28 = vld [vmem:[%s6478_s1 + $0x6c4] ss:$12 sps:$4 sm:$0xff]  }
  0x8a   :  { %v4682_v29 = vld [vmem:[%s6478_s1 + $0x844] ss:$12 sps:$4 sm:$0xff]  }
  0x8b   :  { %3153 = vmatpush1.bf16.msra.mxu0 %v4599_v30  ;;  %v4677_v30 = vld [vmem:[%s6478_s1 + $0x6c0] ss:$12 sps:$4 sm:$0xff]  }
  0x8c   :  { %3194 = vmatpush1.bf16.msra.mxu1 %v4602_v31  ;;  %3154 = vmatprep.subr.bf16.mxu0 %v4607_v32  ;;  %v4680_v31 = vld [vmem:[%s6478_s1 + $0x840] ss:$12 sps:$4 sm:$0xff]  }
  0x8d   :  { %3195 = vmatprep.subr.bf16.mxu1 %v4610_v33  ;;  %v4689_v32 = vld [vmem:[%s6478_s1 + $0x9ac] ss:$12 sps:$4 sm:$0xff]  }
  0x8e   :  { %v4692_v33 = vld [vmem:[%s6478_s1 + $0xb2c] ss:$12 sps:$4 sm:$0xff]  }
  0x8f   :  { %3155 = vmatpush1.bf16.msra.mxu0 %v4605_v34  ;;  %v4687_v34 = vld [vmem:[%s6478_s1 + $0x9a8] ss:$12 sps:$4 sm:$0xff]  }
  0x90   :  { %3196 = vmatpush1.bf16.msra.mxu1 %v4608_v35  ;;  %3156 = vmatprep.subr.bf16.mxu0 %v4613_v38  ;;  %v4690_v35 = vld [vmem:[%s6478_s1 + $0xb28] ss:$12 sps:$4 sm:$0xff]   ;;  %v5660_v38 = vcombine.low %v5453_v22, %v5453_v22 }
  0x91   :  { %3197 = vmatprep.subr.bf16.mxu1 %v4616_v39  ;;  %v5664_v39 = vcombine.low %v5458_v23, %v5458_v23  ;;  %v4695_v22 = vld [vmem:[%s6478_s1 + $0x994] ss:$12 sps:$4 sm:$0xff]  }
  0x92   :  { %v4698_v23 = vld [vmem:[%s6478_s1 + $0xb14] ss:$12 sps:$4 sm:$0xff]  }
  0x93   :  { %3157 = vmatpush1.bf16.msra.mxu0 %v4611_v40  ;;  %v5669_v40 = vld [vmem:[%s6479_s0 + $0x30] sm:$0xff] }
  0x94   :  { %3198 = vmatpush1.bf16.msra.mxu1 %v4614_v41  ;;  %3158 = vmatprep.subr.bf16.mxu0 %v4619_v42  ;;  %v5674_v41 = vld [vmem:[%s6479_s0 + $0x38] sm:$0xff] }
  0x95   :  { %3199 = vmatprep.subr.bf16.mxu1 %v4622_v43  ;;  %v4693_v42 = vld [vmem:[%s6478_s1 + $0x990] ss:$12 sps:$4 sm:$0xff]   ;;  %v5687_v43 = vcombine.high %v5669_v40, %v5669_v40 }
  0x97   :  { %3159 = vmatpush1.bf16.msra.mxu0 %v4617_v44  ;;  %v5691_v44 = vcombine.high %v5674_v41, %v5674_v41 }
  0x98   :  { %3200 = vmatpush1.bf16.msra.mxu1 %v4620_v45  ;;  %3160 = vmatprep.subr.bf16.mxu0 %v4625_v46  ;;  %v4696_v45 = vld [vmem:[%s6478_s1 + $0xb10] ss:$12 sps:$4 sm:$0xff]  }
  0x99   :  { %3201 = vmatprep.subr.bf16.mxu1 %v4628_v48  ;;  %v4701_v46 = vld [vmem:[%s6478_s1 + $0x97c] ss:$12 sps:$4 sm:$0xff]  }
  0x9a   :  { %v4704_v48 = vld [vmem:[%s6478_s1 + $0xafc] ss:$12 sps:$4 sm:$0xff]  }
  0x9b   :  { %3161 = vmatpush1.bf16.msra.mxu0 %v4623_v49  ;;  %v4699_v49 = vld [vmem:[%s6478_s1 + $0x978] ss:$12 sps:$4 sm:$0xff]  }
  0x9c   :  { %3202 = vmatpush1.bf16.msra.mxu1 %v4626_v50  ;;  %3162 = vmatprep.subr.bf16.mxu0 %v4631_v52  ;;  %v4702_v50 = vld [vmem:[%s6478_s1 + $0xaf8] ss:$12 sps:$4 sm:$0xff]  }
  0x9d   :  { %3203 = vmatprep.subr.bf16.mxu1 %v4634_v53  ;;  %v4707_v52 = vld [vmem:[%s6478_s1 + $0x964] ss:$12 sps:$4 sm:$0xff]  }
  0x9e   :  { %v4710_v53 = vld [vmem:[%s6478_s1 + $0xae4] ss:$12 sps:$4 sm:$0xff]  }
  0x9f   :  { %3163 = vmatpush1.bf16.msra.mxu0 %v4629_v54  ;;  %v4705_v54 = vld [vmem:[%s6478_s1 + $0x960] ss:$12 sps:$4 sm:$0xff]  }
  0xa0   :  { %3204 = vmatpush1.bf16.msra.mxu1 %v4632_v55  ;;  %3164 = vmatprep.subr.bf16.mxu0 %v4637_v56  ;;  %v4708_v55 = vld [vmem:[%s6478_s1 + $0xae0] ss:$12 sps:$4 sm:$0xff]  }
  0xa1   :  { %3205 = vmatprep.subr.bf16.mxu1 %v4640_v57  ;;  %v4713_v56 = vld [vmem:[%s6478_s1 + $0x94c] ss:$12 sps:$4 sm:$0xff]  }
  0xa2   :  { %v4716_v57 = vld [vmem:[%s6478_s1 + $0xacc] ss:$12 sps:$4 sm:$0xff]  }
  0xa3   :  { %3165 = vmatpush2.bf16.msra.mxu0 %v4635_v58  ;;  %v4711_v58 = vld [vmem:[%s6478_s1 + $0x948] ss:$12 sps:$4 sm:$0xff]  }
  0xa4   :  { %3206 = vmatpush2.bf16.msra.mxu1 %v4638_v59  ;;  %3166 = vmatprep.subr.bf16.mxu0 %v4643_v60  ;;  %v4714_v59 = vld [vmem:[%s6478_s1 + $0xac8] ss:$12 sps:$4 sm:$0xff]  }
  0xa5   :  { %3207 = vmatprep.subr.bf16.mxu1 %v4646_v61  ;;  %v4719_v60 = vld [vmem:[%s6478_s1 + $0x934] ss:$12 sps:$4 sm:$0xff]  }
  0xa6   :  { %v4722_v61 = vld [vmem:[%s6478_s1 + $0xab4] ss:$12 sps:$4 sm:$0xff]  }
  0xa7   :  { %3167 = vmatpush2.bf16.msra.mxu0 %v4641_v62  ;;  %v4717_v62 = vld [vmem:[%s6478_s1 + $0x930] ss:$12 sps:$4 sm:$0xff]  }
  0xa8   :  { %3208 = vmatpush2.bf16.msra.mxu1 %v4644_v63  ;;  %3168 = vmatprep.subr.bf16.mxu0 %v4649_v0  ;;  %v4720_v63 = vld [vmem:[%s6478_s1 + $0xab0] ss:$12 sps:$4 sm:$0xff]  }
  0xa9   :  { %3209 = vmatprep.subr.bf16.mxu1 %v4652_v1  ;;  %v4725_v0 = vld [vmem:[%s6478_s1 + $0x91c] ss:$12 sps:$4 sm:$0xff]  }
  0xaa   :  { %v4728_v1 = vld [vmem:[%s6478_s1 + $0xa9c] ss:$12 sps:$4 sm:$0xff]  }
  0xab   :  { %3169 = vmatpush2.bf16.msra.mxu0 %v4647_v2  ;;  %v4723_v2 = vld [vmem:[%s6478_s1 + $0x918] ss:$12 sps:$4 sm:$0xff]  }
  0xac   :  { %3210 = vmatpush2.bf16.msra.mxu1 %v4650_v3  ;;  %3170 = vmatprep.subr.bf16.mxu0 %v4655_v4  ;;  %v602_v3 = vlaneseq  ;;  %v4726_v4 = vld [vmem:[%s6478_s1 + $0xa98] ss:$12 sps:$4 sm:$0xff]  }
  0xad   :  { %3211 = vmatprep.subr.bf16.mxu1 %v4658_v5  ;;  %v4731_v5 = vld [vmem:[%s6478_s1 + $0x904] ss:$12 sps:$4 sm:$0xff]  }
  0xaf   :  { %3171 = vmatpush2.bf16.msra.mxu0 %v4653_v8  ;;  %v4734_v8 = vld [vmem:[%s6478_s1 + $0xa84] ss:$12 sps:$4 sm:$0xff]  }
  0xb0   :  { %3212 = vmatpush2.bf16.msra.mxu1 %v4656_v9  ;;  %3172 = vmatprep.subr.bf16.mxu0 %v4661_v10  ;;  %v5766_v9 = vshrl.u32 %v602_v3, 7  ;;  %v4729_v10 = vld [vmem:[%s6478_s1 + $0x900] ss:$12 sps:$4 sm:$0xff]  }
  0xb1   :  { %3213 = vmatprep.subr.bf16.mxu1 %v4664_v11  ;;  %v4732_v11 = vld [vmem:[%s6478_s1 + $0xa80] ss:$12 sps:$4 sm:$0xff]  }
  0xb2   :  { %v5898_v3 = vld [vmem:[%s6479_s0 + $0x40] sm:$0xff] }
  0xb3   :  { %3173 = vmatpush2.bf16.msra.mxu0 %v4659_v12  ;;  %v4737_v12 = vld [vmem:[%s6478_s1 + $0xa6c] ss:$12 sps:$4 sm:$0xff]  }
  0xb4   :  { %3214 = vmatpush2.bf16.msra.mxu1 %v4662_v13  ;;  %3174 = vmatprep.subr.bf16.mxu0 %v4667_v14  ;;  %v4740_v13 = vld [vmem:[%s6478_s1 + $0xbec] ss:$12 sps:$4 sm:$0xff]   ;;  %v4735_v14 = vld [vmem:[%s6478_s1 + $0xa68] ss:$12 sps:$4 sm:$0xff]  }
  0xb5   :  { %3215 = vmatprep.subr.bf16.mxu1 %v4670_v15  ;;  %v604_v15 = vsub.s32 0, %v5766_v9 }
  0xb7   :  { %3175 = vmatpush2.bf16.msra.mxu0 %v4665_v18  ;;  %v4738_v18 = vld [vmem:[%s6478_s1 + $0xbe8] ss:$12 sps:$4 sm:$0xff]  }
  0xb8   :  { %3216 = vmatpush2.bf16.msra.mxu1 %v4668_v19  ;;  %3176 = vmatprep.subr.bf16.mxu0 %v4673_v20  ;;  %v4743_v19 = vld [vmem:[%s6478_s1 + $0xa54] ss:$12 sps:$4 sm:$0xff]   ;;  %v608_v20 = vsub.s32 1, %v5766_v9 }
  0xb9   :  { %3217 = vmatprep.subr.bf16.mxu1 %v4676_v21  ;;  %v4746_v21 = vld [vmem:[%s6478_s1 + $0xbd4] ss:$12 sps:$4 sm:$0xff]  }
  0xbb   :  { %3177 = vmatpush2.bf16.msra.mxu0 %v4671_v26  ;;  %v4741_v26 = vld [vmem:[%s6478_s1 + $0xa50] ss:$12 sps:$4 sm:$0xff]  }
  0xbc   :  { %3218 = vmatpush2.bf16.msra.mxu1 %v4674_v27  ;;  %3178 = vmatprep.subr.bf16.mxu0 %v4679_v28  ;;  %v4744_v27 = vld [vmem:[%s6478_s1 + $0xbd0] ss:$12 sps:$4 sm:$0xff]  }
  0xbd   :  { %3219 = vmatprep.subr.bf16.mxu1 %v4682_v29  ;;  %v4749_v28 = vld [vmem:[%s6478_s1 + $0xa3c] ss:$12 sps:$4 sm:$0xff]  }
  0xbe   :  { %v4752_v29 = vld [vmem:[%s6478_s1 + $0xbbc] ss:$12 sps:$4 sm:$0xff]  }
  0xbf   :  { %3179 = vmatpush2.bf16.msra.mxu0 %v4677_v30  ;;  %v4747_v30 = vld [vmem:[%s6478_s1 + $0xa38] ss:$12 sps:$4 sm:$0xff]  }
  0xc0   :  { %3220 = vmatpush2.bf16.msra.mxu1 %v4680_v31  ;;  %3230 = vmatprep.subr.bf16.mxu0 %v4689_v32  ;;  %v4750_v31 = vld [vmem:[%s6478_s1 + $0xbb8] ss:$12 sps:$4 sm:$0xff]  }
  0xc1   :  { %3271 = vmatprep.subr.bf16.mxu1 %v4692_v33  ;;  %v4755_v32 = vld [vmem:[%s6478_s1 + $0xa24] ss:$12 sps:$4 sm:$0xff]  }
  0xc2   :  { %3181 = vmatmul.mubr.bf16.vlgmr.msra.gmra.mxu0 %v5660_v38  ;;  %v4758_v33 = vld [vmem:[%s6478_s1 + $0xba4] ss:$12 sps:$4 sm:$0xff]  }
  0xc3   :  { %3222 = vmatmul.mubr.bf16.vlgmr.msra.gmra.mxu1 %v5664_v39  ;;  %3231 = vmatpush1.bf16.msra.mxu0 %v4687_v34  ;;  %v4753_v34 = vld [vmem:[%s6478_s1 + $0xa20] ss:$12 sps:$4 sm:$0xff]  }
  0xc4   :  { %3272 = vmatpush1.bf16.msra.mxu1 %v4690_v35  ;;  %3232 = vmatprep.subr.bf16.mxu0 %v4695_v22  ;;  %v4756_v35 = vld [vmem:[%s6478_s1 + $0xba0] ss:$12 sps:$4 sm:$0xff]  }
  0xc5   :  { %3273 = vmatprep.subr.bf16.mxu1 %v4698_v23  ;;  %3262 = vmatprep.mubr.bf16.mxu0 %v5687_v43  ;;  %v4761_v22 = vld [vmem:[%s6478_s1 + $0xa0c] ss:$12 sps:$4 sm:$0xff]  }
  0xc6   :  { %3303 = vmatprep.mubr.bf16.mxu1 %v5691_v44  ;;  %v4764_v23 = vld [vmem:[%s6478_s1 + $0xb8c] ss:$12 sps:$4 sm:$0xff]  }
  0xc7   :  { %3233 = vmatpush1.bf16.msra.mxu0 %v4693_v42  ;;  %v4759_v42 = vld [vmem:[%s6478_s1 + $0xa08] ss:$12 sps:$4 sm:$0xff]  }
  0xc8   :  { %3274 = vmatpush1.bf16.msra.mxu1 %v4696_v45  ;;  %3234 = vmatprep.subr.bf16.mxu0 %v4701_v46  ;;  %v4762_v45 = vld [vmem:[%s6478_s1 + $0xb88] ss:$12 sps:$4 sm:$0xff]  }
  0xc9   :  { %3275 = vmatprep.subr.bf16.mxu1 %v4704_v48  ;;  %v4767_v46 = vld [vmem:[%s6478_s1 + $0x9f4] ss:$12 sps:$4 sm:$0xff]  }
  0xca   :  { %v4770_v48 = vld [vmem:[%s6478_s1 + $0xb74] ss:$12 sps:$4 sm:$0xff]  }
  0xcb   :  { %3235 = vmatpush1.bf16.msra.mxu0 %v4699_v49  ;;  %v4765_v49 = vld [vmem:[%s6478_s1 + $0x9f0] ss:$12 sps:$4 sm:$0xff]  }
  0xcc   :  { %3276 = vmatpush1.bf16.msra.mxu1 %v4702_v50  ;;  %3236 = vmatprep.subr.bf16.mxu0 %v4707_v52  ;;  %v4768_v50 = vld [vmem:[%s6478_s1 + $0xb70] ss:$12 sps:$4 sm:$0xff]  }
  0xcd   :  { %3277 = vmatprep.subr.bf16.mxu1 %v4710_v53  ;;  %v4773_v52 = vld [vmem:[%s6478_s1 + $0x9dc] ss:$12 sps:$4 sm:$0xff]  }
  0xce   :  { %v4776_v53 = vld [vmem:[%s6478_s1 + $0xb5c] ss:$12 sps:$4 sm:$0xff]  }
  0xcf   :  { %3237 = vmatpush1.bf16.msra.mxu0 %v4705_v54  ;;  %v4771_v54 = vld [vmem:[%s6478_s1 + $0x9d8] ss:$12 sps:$4 sm:$0xff]  }
  0xd0   :  { %3278 = vmatpush1.bf16.msra.mxu1 %v4708_v55  ;;  %3238 = vmatprep.subr.bf16.mxu0 %v4713_v56  ;;  %v4774_v55 = vld [vmem:[%s6478_s1 + $0xb58] ss:$12 sps:$4 sm:$0xff]  }
  0xd1   :  { %3279 = vmatprep.subr.bf16.mxu1 %v4716_v57  ;;  %v4779_v56 = vld [vmem:[%s6478_s1 + $0x9c4] ss:$12 sps:$4 sm:$0xff]  }
  0xd2   :  { %v4782_v57 = vld [vmem:[%s6478_s1 + $0xb44] ss:$12 sps:$4 sm:$0xff]  }
  0xd3   :  { %3239 = vmatpush1.bf16.msra.mxu0 %v4711_v58  ;;  %v4777_v58 = vld [vmem:[%s6478_s1 + $0x9c0] ss:$12 sps:$4 sm:$0xff]  }
  0xd4   :  { %3280 = vmatpush1.bf16.msra.mxu1 %v4714_v59  ;;  %3240 = vmatprep.subr.bf16.mxu0 %v4719_v60  ;;  %v4780_v59 = vld [vmem:[%s6478_s1 + $0xb40] ss:$12 sps:$4 sm:$0xff]  }
  0xd5   :  { %3281 = vmatprep.subr.bf16.mxu1 %v4722_v61  ;;  %v600_v60 = vld [vmem:[%s6480_s2] sm:$0x7]  ;;  %v4789_v61 = vld [vmem:[%s6478_s1 + $0xcac] ss:$12 sps:$4 sm:$0xff]  }
  0xd7   :  { %3241 = vmatpush1.bf16.msra.mxu0 %v4717_v62  ;;  %v4790_v62 = vld [vmem:[%s6478_s1 + $0x170] ss:$12 sps:$4 sm:$0xff]  }
  0xd8   :  { %3282 = vmatpush1.bf16.msra.mxu1 %v4720_v63  ;;  %3242 = vmatprep.subr.bf16.mxu0 %v4725_v0  ;;  %v4787_v63 = vld [vmem:[%s6478_s1 + $0xca8] ss:$12 sps:$4 sm:$0xff]   ;;  %v4791_v0 = vld [vmem:[%s6478_s1 + $0xb0] ss:$12 sps:$4 sm:$0xff]  }
  0xd9   :  { %3283 = vmatprep.subr.bf16.mxu1 %v4728_v1  ;;  %v5889_v1 = vcombine.low %v5669_v40, %v5669_v40  ;;  %v4795_v40 = vld [vmem:[%s6478_s1 + $0x158] ss:$12 sps:$4 sm:$0xff]  }
  0xdb   :  { %3243 = vmatpush1.bf16.msra.mxu0 %v4723_v2  ;;  %v5893_v2 = vcombine.low %v5674_v41, %v5674_v41  ;;  %v609_v41 = vrot.slane %v600_v60, %v608_v20  ;;  %v4800_v20 = vld [vmem:[%s6478_s1 + $0x140] ss:$12 sps:$4 sm:$0xff]  }
  0xdc   :  { %3284 = vmatpush1.bf16.msra.mxu1 %v4726_v4  ;;  %3244 = vmatprep.subr.bf16.mxu0 %v4731_v5  ;;  %v605_v4 = vrot.slane %v600_v60, %v604_v15  ;;  %v4794_v5 = vld [vmem:[%s6478_s1 + $0xc94] ss:$12 sps:$4 sm:$0xff]   ;;  %v4799_v15 = vld [vmem:[%s6478_s1 + $0xc7c] ss:$12 sps:$4 sm:$0xff]  }
  0xdd   :  { %3285 = vmatprep.subr.bf16.mxu1 %v4734_v8  ;;  %v4792_v8 = vld [vmem:[%s6478_s1 + $0xc90] ss:$12 sps:$4 sm:$0xff]   ;;  %v4826_v60 = vld [vmem:[%s6478_s1 + $0x8] ss:$12 sps:$4 sm:$0xff]  }
  0xdf   :  { %3245 = vmatpush1.bf16.msra.mxu0 %v4729_v10  ;;  %v5915_v10 = vcombine.high %v5898_v3, %v5898_v3 }
  0xe0   :  { %3286 = vmatpush1.bf16.msra.mxu1 %v4732_v11  ;;  %3246 = vmatprep.subr.bf16.mxu0 %v4737_v12 }
  0xe1   :  { %3287 = vmatprep.subr.bf16.mxu1 %v4740_v13  ;;  %v4796_v13 = vld [vmem:[%s6478_s1 + $0x98] ss:$12 sps:$4 sm:$0xff]  }
  0xe3   :  { %3247 = vmatpush2.bf16.msra.mxu0 %v4735_v14 }
  0xe4   :  { %3288 = vmatpush2.bf16.msra.mxu1 %v4738_v18  ;;  %3248 = vmatprep.subr.bf16.mxu0 %v4743_v19 }
  0xe5   :  { %3289 = vmatprep.subr.bf16.mxu1 %v4746_v21 }
  0xe7   :  { %3249 = vmatpush2.bf16.msra.mxu0 %v4741_v26 }
  0xe8   :  { %3290 = vmatpush2.bf16.msra.mxu1 %v4744_v27  ;;  %3250 = vmatprep.subr.bf16.mxu0 %v4749_v28  ;;  %v4797_v27 = vld [vmem:[%s6478_s1 + $0xc78] ss:$12 sps:$4 sm:$0xff]  }
  0xe9   :  { %3291 = vmatprep.subr.bf16.mxu1 %v4752_v29  ;;  %v4801_v29 = vld [vmem:[%s6478_s1 + $0x80] ss:$12 sps:$4 sm:$0xff]  }
  0xeb   :  { %3251 = vmatpush2.bf16.msra.mxu0 %v4747_v30 }
  0xec   :  { %3292 = vmatpush2.bf16.msra.mxu1 %v4750_v31  ;;  %3252 = vmatprep.subr.bf16.mxu0 %v4755_v32  ;;  %v4804_v32 = vld [vmem:[%s6478_s1 + $0xc64] ss:$12 sps:$4 sm:$0xff]  }
  0xed   :  { %3293 = vmatprep.subr.bf16.mxu1 %v4758_v33 }
  0xef   :  { %3253 = vmatpush2.bf16.msra.mxu0 %v4753_v34 }
  0xf0   :  { %3294 = vmatpush2.bf16.msra.mxu1 %v4756_v35  ;;  %3254 = vmatprep.subr.bf16.mxu0 %v4761_v22  ;;  %v4802_v35 = vld [vmem:[%s6478_s1 + $0xc60] ss:$12 sps:$4 sm:$0xff]   ;;  %v4806_v22 = vld [vmem:[%s6478_s1 + $0x68] ss:$12 sps:$4 sm:$0xff]  }
  0xf1   :  { %3295 = vmatprep.subr.bf16.mxu1 %v4764_v23  ;;  %v4809_v23 = vld [vmem:[%s6478_s1 + $0xc4c] ss:$12 sps:$4 sm:$0xff]  }
  0xf3   :  { %3255 = vmatpush2.bf16.msra.mxu0 %v4759_v42  ;;  %v4810_v42 = vld [vmem:[%s6478_s1 + $0x110] ss:$12 sps:$4 sm:$0xff]  }
  0xf4   :  { %3296 = vmatpush2.bf16.msra.mxu1 %v4762_v45  ;;  %3256 = vmatprep.subr.bf16.mxu0 %v4767_v46  ;;  %v4807_v45 = vld [vmem:[%s6478_s1 + $0xc48] ss:$12 sps:$4 sm:$0xff]   ;;  %v4811_v46 = vld [vmem:[%s6478_s1 + $0x50] ss:$12 sps:$4 sm:$0xff]  }
  0xf5   :  { %3297 = vmatprep.subr.bf16.mxu1 %v4770_v48  ;;  %v4814_v48 = vld [vmem:[%s6478_s1 + $0xc34] ss:$12 sps:$4 sm:$0xff]  }
  0xf7   :  { %3257 = vmatpush2.bf16.msra.mxu0 %v4765_v49  ;;  %v4815_v49 = vld [vmem:[%s6478_s1 + $0xf8] ss:$12 sps:$4 sm:$0xff]  }
  0xf8   :  { %3298 = vmatpush2.bf16.msra.mxu1 %v4768_v50  ;;  %3258 = vmatprep.subr.bf16.mxu0 %v4773_v52  ;;  %v4812_v50 = vld [vmem:[%s6478_s1 + $0xc30] ss:$12 sps:$4 sm:$0xff]   ;;  %v4816_v52 = vld [vmem:[%s6478_s1 + $0x38] ss:$12 sps:$4 sm:$0xff]  }
  0xf9   :  { %3299 = vmatprep.subr.bf16.mxu1 %v4776_v53  ;;  %v4819_v53 = vld [vmem:[%s6478_s1 + $0xc1c] ss:$12 sps:$4 sm:$0xff]  }
  0xfb   :  { %3259 = vmatpush2.bf16.msra.mxu0 %v4771_v54  ;;  %v4820_v54 = vld [vmem:[%s6478_s1 + $0xe0] ss:$12 sps:$4 sm:$0xff]  }
  0xfc   :  { %3300 = vmatpush2.bf16.msra.mxu1 %v4774_v55  ;;  %3260 = vmatprep.subr.bf16.mxu0 %v4779_v56  ;;  %v4817_v55 = vld [vmem:[%s6478_s1 + $0xc18] ss:$12 sps:$4 sm:$0xff]   ;;  %v4821_v56 = vld [vmem:[%s6478_s1 + $0x20] ss:$12 sps:$4 sm:$0xff]  }
  0xfd   :  { %3301 = vmatprep.subr.bf16.mxu1 %v4782_v57  ;;  %v4824_v57 = vld [vmem:[%s6478_s1 + $0xc04] ss:$12 sps:$4 sm:$0xff]  }
  0xff   :  { %3261 = vmatpush2.bf16.msra.mxu0 %v4777_v58  ;;  %v4825_v58 = vld [vmem:[%s6478_s1 + $0xc8] ss:$12 sps:$4 sm:$0xff]  }
 0x100   :  { %3302 = vmatpush2.bf16.msra.mxu1 %v4780_v59  ;;  %3312 = vmatprep.subr.bf16.mxu0 %v4789_v61  ;;  %v4822_v59 = vld [vmem:[%s6478_s1 + $0xc00] ss:$12 sps:$4 sm:$0xff]  }
 0x101   :  { %4189 = vmatprep.subr.bf16.mxu1 %v4790_v62  ;;  %v4829_v61 = vld [vmem:[%s6478_s1 + $0xd6c] ss:$12 sps:$4 sm:$0xff]   ;;  %v4830_v62 = vld [vmem:[%s6478_s1 + $0x2f0] ss:$12 sps:$4 sm:$0xff]  }
 0x102   :  { %v3018_v11 = vpop.f32.mrf.mxu0  ;;  %3263 = vmatmul.mubr.bf16.vlgmr.msra.gmra.mxu0 %v5889_v1 }
 0x103   :  { %3304 = vmatmul.mubr.bf16.vlgmr.msra.gmra.mxu1 %v5893_v2  ;;  %v3059_v12 = vpop.f32.mrf.mxu1  ;;  %v3019_v14 = vadd.f32 %v3018_v11, %v605_v4  ;;  %3313 = vmatpush1.bf16.msra.mxu0 %v4787_v63  ;;  %v4827_v63 = vld [vmem:[%s6478_s1 + $0xd68] ss:$12 sps:$4 sm:$0xff]   ;;  %v4840_v11 = vld [vmem:[%s6478_s1 + $0x2c0] ss:$12 sps:$4 sm:$0xff]  }
 0x104   :  { %4190 = vmatpush3.bf16.msra.mxu1 %v4791_v0  ;;  %v3020_v18 = vpop.f32.mrf.mxu0  ;;  %3314 = vmatprep.subr.bf16.mxu0 %v4794_v5  ;;  %v4831_v0 = vld [vmem:[%s6478_s1 + $0x230] ss:$12 sps:$4 sm:$0xff]   ;;  %v4834_v4 = vld [vmem:[%s6478_s1 + $0xd54] ss:$12 sps:$4 sm:$0xff]   ;;  %v4835_v5 = vld [vmem:[%s6478_s1 + $0x2d8] ss:$12 sps:$4 sm:$0xff]  }
 0x105   :  { %v3061_v19 = vpop.f32.mrf.mxu1  ;;  %4191 = vmatprep.subr.bf16.mxu1 %v4795_v40  ;;  %v3021_v21 = vadd.f32 %v3020_v18, %v609_v41  ;;  %v5928_v26 = vadd.f32 %v3059_v12, %v3019_v14  ;;  %3385 = vmatprep.mubr.bf16.mxu1 %v5143_v47  ;;  %v4805_v47 = vld [vmem:[%s6478_s1 + $0x128] ss:$12 sps:$4 sm:$0xff]   ;;  %v4832_v40 = vld [vmem:[%s6478_s1 + $0xd50] ss:$12 sps:$4 sm:$0xff]   ;;  %v4836_v41 = vld [vmem:[%s6478_s1 + $0x218] ss:$12 sps:$4 sm:$0xff]  }
 0x106   :  { %3344 = vmatprep.mubr.bf16.mxu0 %v5915_v10  ;;  %v3022_v28 = vpop.f32.mrf.mxu0  ;;  %v4841_v12 = vld [vmem:[%s6478_s1 + $0x200] ss:$12 sps:$4 sm:$0xff]   ;;  %v4845_v14 = vld [vmem:[%s6478_s1 + $0x2a8] ss:$12 sps:$4 sm:$0xff]  }
 0x107   :  { %v3063_v30 = vpop.f32.mrf.mxu1  ;;  %v5938_v31 = vadd.f32 %v3061_v19, %v3021_v21  ;;  %3315 = vmatpush1.bf16.msra.mxu0 %v4792_v8  ;;  %v4839_v8 = vld [vmem:[%s6478_s1 + $0xd3c] ss:$12 sps:$4 sm:$0xff]   ;;  %v4849_v18 = vld [vmem:[%s6478_s1 + $0xd0c] ss:$12 sps:$4 sm:$0xff]  }
 0x108   :  { %4192 = vmatpush3.bf16.msra.mxu1 %v4796_v13  ;;  %v3023_v33 = vpop.f32.mrf.mxu0  ;;  %3316 = vmatprep.subr.bf16.mxu0 %v4799_v15  ;;  %v4844_v13 = vld [vmem:[%s6478_s1 + $0xd24] ss:$12 sps:$4 sm:$0xff]   ;;  %v4846_v15 = vld [vmem:[%s6478_s1 + $0x1e8] ss:$12 sps:$4 sm:$0xff]  }
 0x109   :  { %4193 = vmatprep.subr.bf16.mxu1 %v4800_v20  ;;  %v3064_v34 = vpop.f32.mrf.mxu1  ;;  %v4850_v19 = vld [vmem:[%s6478_s1 + $0x290] ss:$12 sps:$4 sm:$0xff]   ;;  %v4847_v20 = vld [vmem:[%s6478_s1 + $0xd08] ss:$12 sps:$4 sm:$0xff]   ;;  %v4855_v28 = vld [vmem:[%s6478_s1 + $0x278] ss:$12 sps:$4 sm:$0xff]  }
 0x10a   :  { %v4851_v21 = vld [vmem:[%s6478_s1 + $0x1d0] ss:$12 sps:$4 sm:$0xff]   ;;  %v4856_v30 = vld [vmem:[%s6478_s1 + $0x1b8] ss:$12 sps:$4 sm:$0xff]   ;;  %v4860_v33 = vld [vmem:[%s6478_s1 + $0x260] ss:$12 sps:$4 sm:$0xff]  }
 0x10b   :  { %3317 = vmatpush1.bf16.msra.mxu0 %v4797_v27  ;;  %v4854_v27 = vld [vmem:[%s6478_s1 + $0xcf4] ss:$12 sps:$4 sm:$0xff]  }
 0x10c   :  { %4194 = vmatpush3.bf16.msra.mxu1 %v4801_v29  ;;  %3318 = vmatprep.subr.bf16.mxu0 %v4804_v32  ;;  %v4852_v29 = vld [vmem:[%s6478_s1 + $0xcf0] ss:$12 sps:$4 sm:$0xff]   ;;  %v4861_v34 = vld [vmem:[%s6478_s1 + $0x1a0] ss:$12 sps:$4 sm:$0xff]  }
 0x10d   :  { %4195 = vmatprep.subr.bf16.mxu1 %v4805_v47  ;;  %v4859_v32 = vld [vmem:[%s6478_s1 + $0xcdc] ss:$12 sps:$4 sm:$0xff]   ;;  %v4857_v47 = vld [vmem:[%s6478_s1 + $0xcd8] ss:$12 sps:$4 sm:$0xff]  }
 0x10f   :  { %3319 = vmatpush1.bf16.msra.mxu0 %v4802_v35  ;;  %v4864_v35 = vld [vmem:[%s6478_s1 + $0xcc4] ss:$12 sps:$4 sm:$0xff]  }
 0x110   :  { %4196 = vmatpush3.bf16.msra.mxu1 %v4806_v22  ;;  %3320 = vmatprep.subr.bf16.mxu0 %v4809_v23  ;;  %v4865_v22 = vld [vmem:[%s6478_s1 + $0x248] ss:$12 sps:$4 sm:$0xff]   ;;  %v4862_v23 = vld [vmem:[%s6478_s1 + $0xcc0] ss:$12 sps:$4 sm:$0xff]  }
 0x111   :  { %4197 = vmatprep.subr.bf16.mxu1 %v4810_v42  ;;  %v4866_v42 = vld [vmem:[%s6478_s1 + $0x188] ss:$12 sps:$4 sm:$0xff]  }
 0x113   :  { %3321 = vmatpush1.bf16.msra.mxu0 %v4807_v45  ;;  %v4869_v45 = vld [vmem:[%s6478_s1 + $0x470] ss:$12 sps:$4 sm:$0xff]  }
 0x114   :  { %4198 = vmatpush3.bf16.msra.mxu1 %v4811_v46  ;;  %3322 = vmatprep.subr.bf16.mxu0 %v4814_v48  ;;  %v4871_v46 = vld [vmem:[%s6478_s1 + $0x5f0] ss:$12 sps:$4 sm:$0xff]  }
 0x115   :  { %4199 = vmatprep.subr.bf16.mxu1 %v4815_v49  ;;  %v4870_v48 = vld [vmem:[%s6478_s1 + $0x3b0] ss:$12 sps:$4 sm:$0xff]   ;;  %v6109_v49 = vcombine.low %v5898_v3, %v5898_v3  ;;  %v4874_v3 = vld [vmem:[%s6478_s1 + $0x398] ss:$12 sps:$4 sm:$0xff]  }
 0x117   :  { %3323 = vmatpush1.bf16.msra.mxu0 %v4812_v50  ;;  %v4872_v50 = vld [vmem:[%s6478_s1 + $0x530] ss:$12 sps:$4 sm:$0xff]  }
 0x118   :  { %4200 = vmatpush3.bf16.msra.mxu1 %v4816_v52  ;;  %3324 = vmatprep.subr.bf16.mxu0 %v4819_v53  ;;  %v4873_v52 = vld [vmem:[%s6478_s1 + $0x458] ss:$12 sps:$4 sm:$0xff]  }
 0x119   :  { %4201 = vmatprep.subr.bf16.mxu1 %v4820_v54  ;;  %v4875_v53 = vld [vmem:[%s6478_s1 + $0x5d8] ss:$12 sps:$4 sm:$0xff]  }
 0x11b   :  { %3325 = vmatpush1.bf16.msra.mxu0 %v4817_v55 }
 0x11c   :  { %4202 = vmatpush3.bf16.msra.mxu1 %v4821_v56  ;;  %3326 = vmatprep.subr.bf16.mxu0 %v4824_v57  ;;  %v4876_v56 = vld [vmem:[%s6478_s1 + $0x518] ss:$12 sps:$4 sm:$0xff]  }
 0x11d   :  { %4203 = vmatprep.subr.bf16.mxu1 %v4825_v58  ;;  %v4877_v58 = vld [vmem:[%s6478_s1 + $0x440] ss:$12 sps:$4 sm:$0xff]  }
 0x11f   :  { %3327 = vmatpush1.bf16.msra.mxu0 %v4822_v59 }
 0x120   :  { %4204 = vmatpush3.bf16.msra.mxu1 %v4826_v60  ;;  %3328 = vmatprep.subr.bf16.mxu0 %v4829_v61 }
 0x121   :  { %4211 = vmatprep.subr.bf16.mxu1 %v4830_v62 }
 0x123   :  { %3386 = vmatmul.mubr.bf16.vlgmr.msra.gmra.mxu1 %v5212_v6  ;;  %3329 = vmatpush2.bf16.msra.mxu0 %v4827_v63  ;;  %v4837_v6 = vld [vmem:[%s6478_s1 + $0xd38] ss:$12 sps:$4 sm:$0xff]  }
 0x124   :  { %4212 = vmatpush3.bf16.msra.mxu1 %v4831_v0  ;;  %3330 = vmatprep.subr.bf16.mxu0 %v4834_v4  ;;  %v4880_v0 = vld [vmem:[%s6478_s1 + $0x500] ss:$12 sps:$4 sm:$0xff]  }
 0x125   :  { %4213 = vmatprep.subr.bf16.mxu1 %v4835_v5  ;;  %3425 = vmatprep.mubr.bf16.mxu1 %v5154_v51  ;;  %v4842_v51 = vld [vmem:[%s6478_s1 + $0xd20] ss:$12 sps:$4 sm:$0xff]  }
 0x127   :  { %3331 = vmatpush2.bf16.msra.mxu0 %v4832_v40 }
 0x128   :  { %4214 = vmatpush3.bf16.msra.mxu1 %v4836_v41  ;;  %3332 = vmatprep.subr.bf16.mxu0 %v4839_v8  ;;  %v4882_v41 = vld [vmem:[%s6478_s1 + $0x368] ss:$12 sps:$4 sm:$0xff]  }
 0x129   :  { %4215 = vmatprep.subr.bf16.mxu1 %v4840_v11  ;;  %v4884_v8 = vld [vmem:[%s6478_s1 + $0x4e8] ss:$12 sps:$4 sm:$0xff]   ;;  %v4885_v11 = vld [vmem:[%s6478_s1 + $0x410] ss:$12 sps:$4 sm:$0xff]  }
 0x12b   :  { %3333 = vmatpush2.bf16.msra.mxu0 %v4837_v6  ;;  %v4887_v6 = vld [vmem:[%s6478_s1 + $0x590] ss:$12 sps:$4 sm:$0xff]  }
 0x12c   :  { %4216 = vmatpush3.bf16.msra.mxu1 %v4841_v12  ;;  %3334 = vmatprep.subr.bf16.mxu0 %v4844_v13  ;;  %v4886_v12 = vld [vmem:[%s6478_s1 + $0x350] ss:$12 sps:$4 sm:$0xff]  }
 0x12d   :  { %4217 = vmatprep.subr.bf16.mxu1 %v4845_v14  ;;  %v4888_v13 = vld [vmem:[%s6478_s1 + $0x4d0] ss:$12 sps:$4 sm:$0xff]   ;;  %v4889_v14 = vld [vmem:[%s6478_s1 + $0x3f8] ss:$12 sps:$4 sm:$0xff]  }
 0x12f   :  { %3335 = vmatpush2.bf16.msra.mxu0 %v4842_v51  ;;  %v4891_v51 = vld [vmem:[%s6478_s1 + $0x578] ss:$12 sps:$4 sm:$0xff]  }
 0x130   :  { %4218 = vmatpush3.bf16.msra.mxu1 %v4846_v15  ;;  %3336 = vmatprep.subr.bf16.mxu0 %v4849_v18  ;;  %v4890_v15 = vld [vmem:[%s6478_s1 + $0x338] ss:$12 sps:$4 sm:$0xff]  }
 0x131   :  { %4219 = vmatprep.subr.bf16.mxu1 %v4850_v19  ;;  %v4892_v18 = vld [vmem:[%s6478_s1 + $0x4b8] ss:$12 sps:$4 sm:$0xff]   ;;  %v4893_v19 = vld [vmem:[%s6478_s1 + $0x3e0] ss:$12 sps:$4 sm:$0xff]  }
 0x133   :  { %3337 = vmatpush2.bf16.msra.mxu0 %v4847_v20  ;;  %v4895_v20 = vld [vmem:[%s6478_s1 + $0x560] ss:$12 sps:$4 sm:$0xff]  }
 0x134   :  { %4220 = vmatpush3.bf16.msra.mxu1 %v4851_v21  ;;  %3338 = vmatprep.subr.bf16.mxu0 %v4854_v27  ;;  %v4894_v21 = vld [vmem:[%s6478_s1 + $0x320] ss:$12 sps:$4 sm:$0xff]  }
 0x135   :  { %4221 = vmatprep.subr.bf16.mxu1 %v4855_v28  ;;  %v4896_v27 = vld [vmem:[%s6478_s1 + $0x4a0] ss:$12 sps:$4 sm:$0xff]   ;;  %v4897_v28 = vld [vmem:[%s6478_s1 + $0x3c8] ss:$12 sps:$4 sm:$0xff]  }
 0x137   :  { %3339 = vmatpush2.bf16.msra.mxu0 %v4852_v29  ;;  %v4899_v29 = vld [vmem:[%s6478_s1 + $0x548] ss:$12 sps:$4 sm:$0xff]  }
 0x138   :  { %4222 = vmatpush3.bf16.msra.mxu1 %v4856_v30  ;;  %3340 = vmatprep.subr.bf16.mxu0 %v4859_v32  ;;  %v4898_v30 = vld [vmem:[%s6478_s1 + $0x308] ss:$12 sps:$4 sm:$0xff]  }
 0x139   :  { %4223 = vmatprep.subr.bf16.mxu1 %v4860_v33  ;;  %v4900_v32 = vld [vmem:[%s6478_s1 + $0x488] ss:$12 sps:$4 sm:$0xff]   ;;  %v4901_v33 = vld [vmem:[%s6478_s1 + $0x770] ss:$12 sps:$4 sm:$0xff]  }
 0x13b   :  { %3341 = vmatpush2.bf16.msra.mxu0 %v4857_v47  ;;  %v4903_v47 = vld [vmem:[%s6478_s1 + $0x8f0] ss:$12 sps:$4 sm:$0xff]  }
 0x13c   :  { %4224 = vmatpush3.bf16.msra.mxu1 %v4861_v34  ;;  %3342 = vmatprep.subr.bf16.mxu0 %v4864_v35  ;;  %v4902_v34 = vld [vmem:[%s6478_s1 + $0x6b0] ss:$12 sps:$4 sm:$0xff]  }
 0x13d   :  { %4225 = vmatprep.subr.bf16.mxu1 %v4865_v22  ;;  %v4904_v35 = vld [vmem:[%s6478_s1 + $0x830] ss:$12 sps:$4 sm:$0xff]   ;;  %v4905_v22 = vld [vmem:[%s6478_s1 + $0x758] ss:$12 sps:$4 sm:$0xff]  }
 0x13f   :  { %3343 = vmatpush2.bf16.msra.mxu0 %v4862_v23  ;;  %v4907_v23 = vld [vmem:[%s6478_s1 + $0x8d8] ss:$12 sps:$4 sm:$0xff]  }
 0x140   :  { %4226 = vmatpush3.bf16.msra.mxu1 %v4866_v42  ;;  %4233 = vmatprep.subr.bf16.mxu0 %v4869_v45  ;;  %v4906_v42 = vld [vmem:[%s6478_s1 + $0x698] ss:$12 sps:$4 sm:$0xff]  }
 0x141   :  { %4255 = vmatprep.subr.bf16.mxu1 %v4871_v46  ;;  %v4908_v45 = vld [vmem:[%s6478_s1 + $0x818] ss:$12 sps:$4 sm:$0xff]   ;;  %v4909_v46 = vld [vmem:[%s6478_s1 + $0x740] ss:$12 sps:$4 sm:$0xff]  }
 0x142   :  { %v3100_v54 = vpop.f32.mrf.mxu0  ;;  %3345 = vmatmul.mubr.bf16.vlgmr.msra.gmra.mxu0 %v6109_v49 }
 0x143   :  { %3426 = vmatmul.mubr.bf16.vlgmr.msra.gmra.mxu1 %v5214_v7  ;;  %v3141_v55 = vpop.f32.mrf.mxu1  ;;  %v3101_v57 = vadd.f32 %v3100_v54, %v5928_v26  ;;  %4234 = vmatpush3.bf16.msra.mxu0 %v4870_v48  ;;  %v4879_v7 = vld [vmem:[%s6478_s1 + $0x5c0] ss:$12 sps:$4 sm:$0xff]   ;;  %v4918_v54 = vld [vmem:[%s6478_s1 + $0x650] ss:$12 sps:$4 sm:$0xff]  }
 0x144   :  { %4256 = vmatpush3.bf16.msra.mxu1 %v4872_v50  ;;  %v3102_v59 = vpop.f32.mrf.mxu0  ;;  %4235 = vmatprep.subr.bf16.mxu0 %v4873_v52  ;;  %v4878_v26 = vld [vmem:[%s6478_s1 + $0x380] ss:$12 sps:$4 sm:$0xff]   ;;  %v4913_v50 = vld [vmem:[%s6478_s1 + $0x728] ss:$12 sps:$4 sm:$0xff]  }
 0x145   :  { %v3143_v60 = vpop.f32.mrf.mxu1  ;;  %4257 = vmatprep.subr.bf16.mxu1 %v4875_v53  ;;  %v3103_v61 = vadd.f32 %v3102_v59, %v5938_v31  ;;  %v6136_v62 = vadd.f32 %v3141_v55, %v3101_v57  ;;  %3465 = vmatprep.mubr.bf16.mxu0 %v5308_v36  ;;  %v4881_v31 = vld [vmem:[%s6478_s1 + $0x428] ss:$12 sps:$4 sm:$0xff]   ;;  %v4912_v48 = vld [vmem:[%s6478_s1 + $0x800] ss:$12 sps:$4 sm:$0xff]   ;;  %v4917_v53 = vld [vmem:[%s6478_s1 + $0x710] ss:$12 sps:$4 sm:$0xff]  }
 0x146   :  { %3505 = vmatprep.mubr.bf16.mxu1 %v5312_v37  ;;  %v3104_v63 = vpop.f32.mrf.mxu0  ;;  %v4883_v36 = vld [vmem:[%s6478_s1 + $0x5a8] ss:$12 sps:$4 sm:$0xff]   ;;  %v4920_v55 = vld [vmem:[%s6478_s1 + $0x7d0] ss:$12 sps:$4 sm:$0xff]   ;;  %v4923_v57 = vld [vmem:[%s6478_s1 + $0x878] ss:$12 sps:$4 sm:$0xff]  }
 0x147   :  { %v3145_v4 = vpop.f32.mrf.mxu1  ;;  %v6146_v5 = vadd.f32 %v3143_v60, %v3103_v61  ;;  %4236 = vmatpush3.bf16.msra.mxu0 %v4874_v3  ;;  %v4916_v52 = vld [vmem:[%s6478_s1 + $0x7e8] ss:$12 sps:$4 sm:$0xff]   ;;  %v4919_v3 = vld [vmem:[%s6478_s1 + $0x890] ss:$12 sps:$4 sm:$0xff]   ;;  %v4924_v59 = vld [vmem:[%s6478_s1 + $0x7b8] ss:$12 sps:$4 sm:$0xff]  }
 0x148   :  { %4258 = vmatpush3.bf16.msra.mxu1 %v4876_v56  ;;  %v3105_v40 = vpop.f32.mrf.mxu0  ;;  %4237 = vmatprep.subr.bf16.mxu0 %v4877_v58  ;;  %v4921_v56 = vld [vmem:[%s6478_s1 + $0x6f8] ss:$12 sps:$4 sm:$0xff]   ;;  %v4925_v60 = vld [vmem:[%s6478_s1 + $0x6e0] ss:$12 sps:$4 sm:$0xff]   ;;  %v4929_v63 = vld [vmem:[%s6478_s1 + $0x6c8] ss:$12 sps:$4 sm:$0xff]  }
 0x149   :  { %4259 = vmatprep.subr.bf16.mxu1 %v4879_v7  ;;  %v3146_v37 = vpop.f32.mrf.mxu1  ;;  %v4922_v58 = vld [vmem:[%s6478_s1 + $0x638] ss:$12 sps:$4 sm:$0xff]   ;;  %v4927_v7 = vld [vmem:[%s6478_s1 + $0x860] ss:$12 sps:$4 sm:$0xff]   ;;  %v4930_v4 = vld [vmem:[%s6478_s1 + $0x608] ss:$12 sps:$4 sm:$0xff]  }
 0x14a   :  { %v4926_v61 = vld [vmem:[%s6478_s1 + $0x620] ss:$12 sps:$4 sm:$0xff]   ;;  %v4933_v40 = vld [vmem:[%s6478_s1 + $0xa70] ss:$12 sps:$4 sm:$0xff]  }
 0x14b   :  { %4238 = vmatpush3.bf16.msra.mxu0 %v4878_v26  ;;  %v4928_v26 = vld [vmem:[%s6478_s1 + $0x7a0] ss:$12 sps:$4 sm:$0xff]   ;;  %v4934_v37 = vld [vmem:[%s6478_s1 + $0x9b0] ss:$12 sps:$4 sm:$0xff]  }
 0x14c   :  { %4260 = vmatpush3.bf16.msra.mxu1 %v4880_v0  ;;  %4239 = vmatprep.subr.bf16.mxu0 %v4881_v31  ;;  %v4931_v0 = vld [vmem:[%s6478_s1 + $0x848] ss:$12 sps:$4 sm:$0xff]  }
 0x14d   :  { %4261 = vmatprep.subr.bf16.mxu1 %v4883_v36  ;;  %v4932_v31 = vld [vmem:[%s6478_s1 + $0x788] ss:$12 sps:$4 sm:$0xff]   ;;  %v4935_v36 = vld [vmem:[%s6478_s1 + $0xbf0] ss:$12 sps:$4 sm:$0xff]  }
 0x14f   :  { %4240 = vmatpush3.bf16.msra.mxu0 %v4882_v41  ;;  %v4936_v41 = vld [vmem:[%s6478_s1 + $0xb30] ss:$12 sps:$4 sm:$0xff]  }
 0x150   :  { %4262 = vmatpush3.bf16.msra.mxu1 %v4884_v8  ;;  %4241 = vmatprep.subr.bf16.mxu0 %v4885_v11  ;;  %v4937_v8 = vld [vmem:[%s6478_s1 + $0xa58] ss:$12 sps:$4 sm:$0xff]  }
 0x151   :  { %4263 = vmatprep.subr.bf16.mxu1 %v4887_v6  ;;  %v4939_v11 = vld [vmem:[%s6478_s1 + $0xbd8] ss:$12 sps:$4 sm:$0xff]  }
 0x153   :  { %4242 = vmatpush3.bf16.msra.mxu0 %v4886_v12 }
 0x154   :  { %4264 = vmatpush3.bf16.msra.mxu1 %v4888_v13  ;;  %4243 = vmatprep.subr.bf16.mxu0 %v4889_v14  ;;  %v4938_v14 = vld [vmem:[%s6478_s1 + $0x998] ss:$12 sps:$4 sm:$0xff]  }
 0x155   :  { %4265 = vmatprep.subr.bf16.mxu1 %v4891_v51  ;;  %v4940_v51 = vld [vmem:[%s6478_s1 + $0xb18] ss:$12 sps:$4 sm:$0xff]  }
 0x157   :  { %4244 = vmatpush3.bf16.msra.mxu0 %v4890_v15 }
 0x158   :  { %4266 = vmatpush3.bf16.msra.mxu1 %v4892_v18  ;;  %4245 = vmatprep.subr.bf16.mxu0 %v4893_v19 }
 0x159   :  { %4267 = vmatprep.subr.bf16.mxu1 %v4895_v20 }
 0x15b   :  { %4246 = vmatpush3.bf16.msra.mxu0 %v4894_v21 }
 0x15c   :  { %4268 = vmatpush3.bf16.msra.mxu1 %v4896_v27  ;;  %4247 = vmatprep.subr.bf16.mxu0 %v4897_v28  ;;  %v4942_v28 = vld [vmem:[%s6478_s1 + $0x980] ss:$12 sps:$4 sm:$0xff]  }
 0x15d   :  { %4269 = vmatprep.subr.bf16.mxu1 %v4899_v29 }
 0x15f   :  { %4248 = vmatpush3.bf16.msra.mxu0 %v4898_v30 }
 0x160   :  { %4270 = vmatpush3.bf16.msra.mxu1 %v4900_v32  ;;  %4277 = vmatprep.subr.bf16.mxu0 %v4901_v33  ;;  %v4946_v32 = vld [vmem:[%s6478_s1 + $0x968] ss:$12 sps:$4 sm:$0xff]  }
 0x161   :  { %4299 = vmatprep.subr.bf16.mxu1 %v4903_v47  ;;  %v4948_v33 = vld [vmem:[%s6478_s1 + $0xae8] ss:$12 sps:$4 sm:$0xff]   ;;  %v4949_v47 = vld [vmem:[%s6478_s1 + $0xa10] ss:$12 sps:$4 sm:$0xff]  }
 0x162   :  { %3466 = vmatmul.mubr.bf16.vlgmr.msra.gmra.mxu0 %v5432_v16  ;;  %v4911_v16 = vld [vmem:[%s6478_s1 + $0x8c0] ss:$12 sps:$4 sm:$0xff]  }
 0x163   :  { %3506 = vmatmul.mubr.bf16.vlgmr.msra.gmra.mxu1 %v5436_v17  ;;  %4278 = vmatpush3.bf16.msra.mxu0 %v4902_v34  ;;  %v4910_v17 = vld [vmem:[%s6478_s1 + $0x680] ss:$12 sps:$4 sm:$0xff]   ;;  %v4951_v34 = vld [vmem:[%s6478_s1 + $0xb90] ss:$12 sps:$4 sm:$0xff]  }
 0x164   :  { %4300 = vmatpush3.bf16.msra.mxu1 %v4904_v35  ;;  %4279 = vmatprep.subr.bf16.mxu0 %v4905_v22  ;;  %v4950_v35 = vld [vmem:[%s6478_s1 + $0x950] ss:$12 sps:$4 sm:$0xff]  }
 0x165   :  { %4301 = vmatprep.subr.bf16.mxu1 %v4907_v23  ;;  %3545 = vmatprep.mubr.bf16.mxu0 %v5462_v24  ;;  %v4915_v24 = vld [vmem:[%s6478_s1 + $0x8a8] ss:$12 sps:$4 sm:$0xff]   ;;  %v4952_v22 = vld [vmem:[%s6478_s1 + $0xad0] ss:$12 sps:$4 sm:$0xff]   ;;  %v4953_v23 = vld [vmem:[%s6478_s1 + $0x9f8] ss:$12 sps:$4 sm:$0xff]  }
 0x166   :  { %3585 = vmatprep.mubr.bf16.mxu1 %v5466_v25  ;;  %v4914_v25 = vld [vmem:[%s6478_s1 + $0x668] ss:$12 sps:$4 sm:$0xff]  }
 0x167   :  { %4280 = vmatpush3.bf16.msra.mxu0 %v4906_v42  ;;  %v4955_v42 = vld [vmem:[%s6478_s1 + $0xb78] ss:$12 sps:$4 sm:$0xff]  }
 0x168   :  { %4302 = vmatpush3.bf16.msra.mxu1 %v4908_v45  ;;  %4281 = vmatprep.subr.bf16.mxu0 %v4909_v46  ;;  %v4954_v45 = vld [vmem:[%s6478_s1 + $0x938] ss:$12 sps:$4 sm:$0xff]  }
 0x169   :  { %4303 = vmatprep.subr.bf16.mxu1 %v4911_v16  ;;  %v4956_v46 = vld [vmem:[%s6478_s1 + $0xab8] ss:$12 sps:$4 sm:$0xff]   ;;  %v4957_v16 = vld [vmem:[%s6478_s1 + $0x9e0] ss:$12 sps:$4 sm:$0xff]  }
 0x16b   :  { %4282 = vmatpush3.bf16.msra.mxu0 %v4910_v17  ;;  %v4959_v17 = vld [vmem:[%s6478_s1 + $0xb60] ss:$12 sps:$4 sm:$0xff]  }
 0x16c   :  { %4304 = vmatpush3.bf16.msra.mxu1 %v4912_v48  ;;  %4283 = vmatprep.subr.bf16.mxu0 %v4913_v50  ;;  %v4958_v48 = vld [vmem:[%s6478_s1 + $0x920] ss:$12 sps:$4 sm:$0xff]  }
 0x16d   :  { %4305 = vmatprep.subr.bf16.mxu1 %v4915_v24  ;;  %v4960_v50 = vld [vmem:[%s6478_s1 + $0xaa0] ss:$12 sps:$4 sm:$0xff]   ;;  %v4961_v24 = vld [vmem:[%s6478_s1 + $0x9c8] ss:$12 sps:$4 sm:$0xff]  }
 0x16f   :  { %4284 = vmatpush3.bf16.msra.mxu0 %v4914_v25  ;;  %v4963_v25 = vld [vmem:[%s6478_s1 + $0xb48] ss:$12 sps:$4 sm:$0xff]  }
 0x170   :  { %4306 = vmatpush3.bf16.msra.mxu1 %v4916_v52  ;;  %4285 = vmatprep.subr.bf16.mxu0 %v4917_v53  ;;  %v4962_v52 = vld [vmem:[%s6478_s1 + $0x908] ss:$12 sps:$4 sm:$0xff]  }
 0x171   :  { %4307 = vmatprep.subr.bf16.mxu1 %v4919_v3  ;;  %v4964_v53 = vld [vmem:[%s6478_s1 + $0xa88] ss:$12 sps:$4 sm:$0xff]   ;;  %v4965_v3 = vld [vmem:[%s6478_s1 + $0xd70] ss:$12 sps:$4 sm:$0xff]  }
 0x173   :  { %4286 = vmatpush3.bf16.msra.mxu0 %v4918_v54  ;;  %v4966_v54 = vld [vmem:[%s6478_s1 + $0xcb0] ss:$12 sps:$4 sm:$0xff]  }
 0x174   :  { %4308 = vmatpush3.bf16.msra.mxu1 %v4920_v55  ;;  %4287 = vmatprep.subr.bf16.mxu0 %v4921_v56  ;;  %v4967_v55 = vld [vmem:[%s6478_s1 + $0xd58] ss:$12 sps:$4 sm:$0xff]  }
 0x175   :  { %4309 = vmatprep.subr.bf16.mxu1 %v4923_v57  ;;  %v4968_v56 = vld [vmem:[%s6478_s1 + $0xc98] ss:$12 sps:$4 sm:$0xff]   ;;  %v4969_v57 = vld [vmem:[%s6478_s1 + $0xd40] ss:$12 sps:$4 sm:$0xff]  }
 0x177   :  { %4288 = vmatpush3.bf16.msra.mxu0 %v4922_v58  ;;  %v4970_v58 = vld [vmem:[%s6478_s1 + $0xc80] ss:$12 sps:$4 sm:$0xff]  }
 0x178   :  { %4310 = vmatpush3.bf16.msra.mxu1 %v4924_v59  ;;  %4289 = vmatprep.subr.bf16.mxu0 %v4925_v60  ;;  %v4974_v59 = vld [vmem:[%s6478_s1 + $0xc50] ss:$12 sps:$4 sm:$0xff]   ;;  %v4975_v60 = vld [vmem:[%s6478_s1 + $0xcf8] ss:$12 sps:$4 sm:$0xff]  }
 0x179   :  { %4311 = vmatprep.subr.bf16.mxu1 %v4927_v7  ;;  %v4976_v7 = vld [vmem:[%s6478_s1 + $0xc38] ss:$12 sps:$4 sm:$0xff]  }
 0x17b   :  { %4290 = vmatpush3.bf16.msra.mxu0 %v4926_v61  ;;  %v4977_v61 = vld [vmem:[%s6478_s1 + $0xce0] ss:$12 sps:$4 sm:$0xff]  }
 0x17c   :  { %4312 = vmatpush3.bf16.msra.mxu1 %v4928_v26  ;;  %4291 = vmatprep.subr.bf16.mxu0 %v4929_v63  ;;  %v4978_v26 = vld [vmem:[%s6478_s1 + $0xc20] ss:$12 sps:$4 sm:$0xff]   ;;  %v4979_v63 = vld [vmem:[%s6478_s1 + $0xcc8] ss:$12 sps:$4 sm:$0xff]  }
 0x17d   :  { %4313 = vmatprep.subr.bf16.mxu1 %v4931_v0  ;;  %v4980_v0 = vld [vmem:[%s6478_s1 + $0xc08] ss:$12 sps:$4 sm:$0xff]  }
 0x17f   :  { %4292 = vmatpush3.bf16.msra.mxu0 %v4930_v4 }
 0x180   :  { %4314 = vmatpush3.bf16.msra.mxu1 %v4932_v31  ;;  %4321 = vmatprep.subr.bf16.mxu0 %v4933_v40 }
 0x181   :  { %4343 = vmatprep.subr.bf16.mxu1 %v4935_v36 }
 0x182   :  { %v3182_v6 = vpop.f32.mrf.mxu0  ;;  %3546 = vmatmul.mubr.bf16.vlgmr.msra.gmra.mxu0 %v5660_v38  ;;  %v4941_v38 = vld [vmem:[%s6478_s1 + $0xa40] ss:$12 sps:$4 sm:$0xff]  }
 0x183   :  { %v3223_v12 = vpop.f32.mrf.mxu1  ;;  %3586 = vmatmul.mubr.bf16.vlgmr.msra.gmra.mxu1 %v5664_v39  ;;  %v3183_v13 = vadd.f32 %v3182_v6, %v6136_v62  ;;  %4322 = vmatpush3.bf16.msra.mxu0 %v4934_v37  ;;  %v4943_v39 = vld [vmem:[%s6478_s1 + $0xbc0] ss:$12 sps:$4 sm:$0xff]  }
 0x184   :  { %4344 = vmatpush3.bf16.msra.mxu1 %v4936_v41  ;;  %v3184_v15 = vpop.f32.mrf.mxu0  ;;  %4323 = vmatprep.subr.bf16.mxu0 %v4937_v8 }
 0x185   :  { %v3225_v18 = vpop.f32.mrf.mxu1  ;;  %4345 = vmatprep.subr.bf16.mxu1 %v4939_v11  ;;  %v3185_v62 = vadd.f32 %v3184_v15, %v6146_v5  ;;  %v6342_v19 = vadd.f32 %v3223_v12, %v3183_v13  ;;  %3625 = vmatprep.mubr.bf16.mxu0 %v5687_v43  ;;  %v4944_v5 = vld [vmem:[%s6478_s1 + $0xb00] ss:$12 sps:$4 sm:$0xff]   ;;  %v4945_v43 = vld [vmem:[%s6478_s1 + $0xa28] ss:$12 sps:$4 sm:$0xff]  }
 0x186   :  { %3665 = vmatprep.mubr.bf16.mxu1 %v5691_v44  ;;  %v3186_v20 = vpop.f32.mrf.mxu0  ;;  %v4947_v44 = vld [vmem:[%s6478_s1 + $0xba8] ss:$12 sps:$4 sm:$0xff]  }
 0x187   :  { %v3227_v21 = vpop.f32.mrf.mxu1  ;;  %v6346_v27 = vadd.f32 %v3225_v18, %v3185_v62  ;;  %4324 = vmatpush3.bf16.msra.mxu0 %v4938_v14 }
 0x188   :  { %4346 = vmatpush3.bf16.msra.mxu1 %v4940_v51  ;;  %v3187_v29 = vpop.f32.mrf.mxu0  ;;  %4325 = vmatprep.subr.bf16.mxu0 %v4941_v38  ;;  %v612_v38 = vsub.s32 2, %v5766_v9 }
 0x189   :  { %4347 = vmatprep.subr.bf16.mxu1 %v4943_v39  ;;  %v3228_v30 = vpop.f32.mrf.mxu1 }
 0x18b   :  { %4326 = vmatpush3.bf16.msra.mxu0 %v4942_v28 }
 0x18c   :  { %4348 = vmatpush3.bf16.msra.mxu1 %v4944_v5  ;;  %4327 = vmatprep.subr.bf16.mxu0 %v4945_v43 }
 0x18d   :  { %4349 = vmatprep.subr.bf16.mxu1 %v4947_v44 }
 0x18f   :  { %4328 = vmatpush3.bf16.msra.mxu0 %v4946_v32 }
 0x190   :  { %4350 = vmatpush3.bf16.msra.mxu1 %v4948_v33  ;;  %4329 = vmatprep.subr.bf16.mxu0 %v4949_v47 }
 0x191   :  { %4351 = vmatprep.subr.bf16.mxu1 %v4951_v34 }
 0x193   :  { %4330 = vmatpush3.bf16.msra.mxu0 %v4950_v35 }
 0x194   :  { %4352 = vmatpush3.bf16.msra.mxu1 %v4952_v22  ;;  %4331 = vmatprep.subr.bf16.mxu0 %v4953_v23 }
 0x195   :  { %4353 = vmatprep.subr.bf16.mxu1 %v4955_v42 }
 0x197   :  { %4332 = vmatpush3.bf16.msra.mxu0 %v4954_v45 }
 0x198   :  { %4354 = vmatpush3.bf16.msra.mxu1 %v4956_v46  ;;  %4333 = vmatprep.subr.bf16.mxu0 %v4957_v16 }
 0x199   :  { %4355 = vmatprep.subr.bf16.mxu1 %v4959_v17 }
 0x19b   :  { %4334 = vmatpush3.bf16.msra.mxu0 %v4958_v48 }
 0x19c   :  { %4356 = vmatpush3.bf16.msra.mxu1 %v4960_v50  ;;  %4335 = vmatprep.subr.bf16.mxu0 %v4961_v24 }
 0x19d   :  { %4357 = vmatprep.subr.bf16.mxu1 %v4963_v25 }
 0x19f   :  { %4336 = vmatpush3.bf16.msra.mxu0 %v4962_v52 }
 0x1a0   :  { %4358 = vmatpush3.bf16.msra.mxu1 %v4964_v53  ;;  %4365 = vmatprep.subr.bf16.mxu0 %v4965_v3 }
 0x1a2   :  { %3626 = vmatmul.mubr.bf16.vlgmr.msra.gmra.mxu0 %v5889_v1  ;;  %v4971_v1 = vld [vmem:[%s6478_s1 + $0xd28] ss:$12 sps:$4 sm:$0xff]  }
 0x1a3   :  { %3666 = vmatmul.mubr.bf16.vlgmr.msra.gmra.mxu1 %v5893_v2  ;;  %4366 = vmatpush3.bf16.msra.mxu0 %v4966_v54  ;;  %v4972_v2 = vld [vmem:[%s6478_s1 + $0xc68] ss:$12 sps:$4 sm:$0xff]  }
 0x1a4   :  { %3705 = vmatprep.mubr.bf16.mxu0 %v5915_v10  ;;  %4367 = vmatprep.subr.bf16.mxu0 %v4967_v55  ;;  %v4973_v10 = vld [vmem:[%s6478_s1 + $0xd10] ss:$12 sps:$4 sm:$0xff]  }
 0x1a7   :  { %4368 = vmatpush3.bf16.msra.mxu0 %v4968_v56 }
 0x1a8   :  { %4369 = vmatprep.subr.bf16.mxu0 %v4969_v57 }
 0x1ab   :  { %4370 = vmatpush3.bf16.msra.mxu0 %v4970_v58 }
 0x1ac   :  { %4371 = vmatprep.subr.bf16.mxu0 %v4971_v1 }
 0x1af   :  { %4372 = vmatpush3.bf16.msra.mxu0 %v4972_v2 }
 0x1b0   :  { %4373 = vmatprep.subr.bf16.mxu0 %v4973_v10 }
 0x1b3   :  { %4374 = vmatpush3.bf16.msra.mxu0 %v4974_v59 }
 0x1b4   :  { %4375 = vmatprep.subr.bf16.mxu0 %v4975_v60 }
 0x1b7   :  { %4376 = vmatpush3.bf16.msra.mxu0 %v4976_v7 }
 0x1b8   :  { %4377 = vmatprep.subr.bf16.mxu0 %v4977_v61 }
 0x1bb   :  { %4378 = vmatpush3.bf16.msra.mxu0 %v4978_v26 }
 0x1bc   :  { %4379 = vmatprep.subr.bf16.mxu0 %v4979_v63 }
 0x1bf   :  { %4380 = vmatpush3.bf16.msra.mxu0 %v4980_v0 }
 0x1c2   :  { %v3264_v4 = vpop.f32.mrf.mxu0  ;;  %3706 = vmatmul.mubr.bf16.vlgmr.msra.gmra.mxu0 %v6109_v49  ;;  %v4981_v49 = vld [vmem:[%s6480_s2] sm:$0x7] }
 0x1c3   :  { %v3305_v31 = vpop.f32.mrf.mxu1  ;;  %v3265_v40 = vadd.f32 %v3264_v4, %v6342_v19  ;;  %v613_v62 = vrot.slane %v4981_v49, %v612_v38 }
 0x1c4   :  { %v3266_v36 = vpop.f32.mrf.mxu0 }
 0x1c5   :  { %v3307_v37 = vpop.f32.mrf.mxu1  ;;  %v3306_v41 = vadd.f32 %v3305_v31, %v3265_v40  ;;  %v3267_v39 = vadd.f32 %v3266_v36, %v6346_v27 }
 0x1c6   :  { %v3268_v8 = vpop.f32.mrf.mxu0 }
 0x1c7   :  { %v3309_v11 = vpop.f32.mrf.mxu1  ;;  %v3308_v21 = vadd.f32 %v3307_v37, %v3267_v39 }
 0x1c8   :  { %v3269_v6 = vpop.f32.mrf.mxu0 }
 0x1c9   :  { %v3310_v12 = vpop.f32.mrf.mxu1 }
 0x1e3   :  { %v4205_v13 = vpop.f32.mrf.mxu1 }
 0x1e5   :  { %v4206_v14 = vpop.f32.mrf.mxu1 }
 0x1e6   :  { %v4207_v51 = vadd.f32 %v4206_v14, %v4205_v13 }
 0x1e7   :  { %v4208_v15 = vpop.f32.mrf.mxu1 }
 0x1e8   :  { %v3388_v28 = vadd.f32 %v4207_v51, %v613_v62 }
 0x1e9   :  { %v4209_v18 = vpop.f32.mrf.mxu1 }
 0x202   :  { %v3346_v19 = vpop.f32.mrf.mxu0 }
 0x203   :  { %v4227_v20 = vpop.f32.mrf.mxu1  ;;  %v3347_v5 = vadd.f32 %v3346_v19, %v3306_v41 }
 0x204   :  { %v3348_v29 = vpop.f32.mrf.mxu0 }
 0x205   :  { %v4228_v43 = vpop.f32.mrf.mxu1  ;;  %v3349_v44 = vadd.f32 %v3348_v29, %v3308_v21  ;;  %v3713_v47 = vmax.f32 %v3347_v5, 0.0 }
 0x206   :  { %v4229_v30 = vadd.f32 %v4228_v43, %v4227_v20  ;;  %v3350_v32 = vpop.f32.mrf.mxu0 }
 0x207   :  { %v4230_v33 = vpop.f32.mrf.mxu1  ;;  %v3714_v9 = vmax.f32 %v3349_v44, 0.0 }
 0x208   :  { %v3428_v34 = vadd.f32 %v4229_v30, %v3388_v28  ;;  %v3351_v27 = vpop.f32.mrf.mxu0 }
 0x209   :  { %v4231_v35 = vpop.f32.mrf.mxu1  ;;  %v4187_v22 = vpack.c.bf16 %v3714_v9, %v3713_v47 }
 0x20b   :  { %3729 = vst [vmem:[%s6481_s3] sm:$0xff] %v4187_v22 }
 0x222   :  { %v4249_v23 = vpop.f32.mrf.mxu0 }
 0x223   :  { %v4271_v42 = vpop.f32.mrf.mxu1 }
 0x224   :  { %v4250_v45 = vpop.f32.mrf.mxu0 }
 0x225   :  { %v4272_v46 = vpop.f32.mrf.mxu1  ;;  %v4251_v16 = vadd.f32 %v4250_v45, %v4249_v23 }
 0x226   :  { %v4273_v17 = vadd.f32 %v4272_v46, %v4271_v42  ;;  %v4252_v48 = vpop.f32.mrf.mxu0 }
 0x227   :  { %v4274_v50 = vpop.f32.mrf.mxu1  ;;  %v3468_v24 = vadd.f32 %v4251_v16, %v3428_v34 }
 0x228   :  { %v4253_v25 = vpop.f32.mrf.mxu0 }
 0x229   :  { %v4275_v52 = vpop.f32.mrf.mxu1  ;;  %v3508_v53 = vadd.f32 %v4273_v17, %v3468_v24 }
 0x242   :  { %v4293_v3 = vpop.f32.mrf.mxu0 }
 0x243   :  { %v4315_v54 = vpop.f32.mrf.mxu1 }
 0x244   :  { %v4294_v55 = vpop.f32.mrf.mxu0 }
 0x245   :  { %v4316_v56 = vpop.f32.mrf.mxu1  ;;  %v4295_v4 = vadd.f32 %v4294_v55, %v4293_v3 }
 0x246   :  { %v4296_v57 = vpop.f32.mrf.mxu0  ;;  %v4317_v40 = vadd.f32 %v4316_v56, %v4315_v54 }
 0x247   :  { %v4318_v58 = vpop.f32.mrf.mxu1  ;;  %v3548_v31 = vadd.f32 %v4295_v4, %v3508_v53 }
 0x248   :  { %v4297_v1 = vpop.f32.mrf.mxu0 }
 0x249   :  { %v4319_v2 = vpop.f32.mrf.mxu1  ;;  %v3588_v37 = vadd.f32 %v4317_v40, %v3548_v31 }
 0x262   :  { %v4337_v10 = vpop.f32.mrf.mxu0 }
 0x263   :  { %v4359_v59 = vpop.f32.mrf.mxu1 }
 0x264   :  { %v4338_v60 = vpop.f32.mrf.mxu0 }
 0x265   :  { %v4360_v7 = vpop.f32.mrf.mxu1  ;;  %v4339_v36 = vadd.f32 %v4338_v60, %v4337_v10 }
 0x266   :  { %v4340_v61 = vpop.f32.mrf.mxu0  ;;  %v4361_v8 = vadd.f32 %v4360_v7, %v4359_v59 }
 0x267   :  { %v4362_v26 = vpop.f32.mrf.mxu1  ;;  %v3628_v41 = vadd.f32 %v4339_v36, %v3588_v37 }
 0x268   :  { %v4341_v63 = vpop.f32.mrf.mxu0 }
 0x269   :  { %v4363_v0 = vpop.f32.mrf.mxu1  ;;  %v3668_v12 = vadd.f32 %v4361_v8, %v3628_v41 }
 0x282   :  { %v4381_v11 = vpop.f32.mrf.mxu0 }
 0x284   :  { %v4382_v6 = vpop.f32.mrf.mxu0 }
 0x285   :  { %v4383_v13 = vadd.f32 %v4382_v6, %v4381_v11 }
 0x286   :  { %v4384_v14 = vpop.f32.mrf.mxu0 }
 0x287   :  { %v3708_v51 = vadd.f32 %v4383_v13, %v3668_v12 }
 0x288   :  { %v4385_v15 = vpop.f32.mrf.mxu0 }
 0x289   :  { %v3715_v18 = vmax.f32 %v3708_v51, 0.0 }
 0x28b   :  { %v4188_v38 = vpack.c.bf16 %v3715_v18, %v3715_v18 }
 0x28d   :  { %3730 = vst [vmem:[%s6481_s3 + $0x8] sm:$0xf] %v4188_v38 }

// kernel: alexnet_forward.16
= control target key start
LH: loop header
LB: loop body
LE: loop exit
PB: predicated region body
PF: predicated region fallthrough
CT: control target
= control target key end

     0   :  { %s38_s0 = inlined_call_operand.vmem [shape: bf16[2,1024], index: 0, kind: input, shape index: {}]   ;;  %s39_s1 = inlined_call_operand.vmem [shape: bf16[2,256], index: 1, kind: output, shape index: {}]  }
   0x1   :  { %v8_v0 = vld [vmem:[%s38_s0] sm:$0xff] }
   0x2   :  { %v10_v1 = vrot.slane %v8_v0, 4 }
   0x4   :  { %v12_v2 = vmax.bf16 %v10_v1, %v8_v0 }
   0x6   :  { %v14_v3 = vrot.slane %v12_v2, 2 }
   0x8   :  { %v16_v4 = vmax.bf16 %v14_v3, %v12_v2 }
   0xa   :  { %17 = vst [vmem:[%s39_s1] sm:$0x3] %v16_v4 }

// kernel: alexnet_forward.15
= control target key start
LH: loop header
LB: loop body
LE: loop exit
PB: predicated region body
PF: predicated region fallthrough
CT: control target
= control target key end

     0   :  { %s5903_s1 = inlined_call_operand.vmem [shape: bf16[3456,256], index: 1, kind: input, shape index: {}]   ;;  %s5904_s0 = inlined_call_operand.vmem [shape: bf16[8,3456], index: 0, kind: input, shape index: {}]   ;;  %s5905_s2 = inlined_call_operand.vmem [shape: f32[1,256], index: 2, kind: input, shape index: {}]   ;;  %s5906_s3 = inlined_call_operand.vmem [shape: bf16[8,256], index: 3, kind: output, shape index: {}]  }
   0x1   :  { %v3779_v0 = vld [vmem:[%s5903_s1 + $0x74] ss:$8 sps:$4 sm:$0xff]   ;;  %v3781_v1 = vld [vmem:[%s5903_s1 + $0x70] ss:$8 sps:$4 sm:$0xff]   ;;  %v3785_v4 = vld [vmem:[%s5903_s1 + $0x64] ss:$8 sps:$4 sm:$0xff]  }
   0x2   :  { %2728 = vmatprep.subr.bf16.mxu0 %v3779_v0  ;;  %v3782_v2 = vld [vmem:[%s5903_s1 + $0x174] ss:$8 sps:$4 sm:$0xff]   ;;  %v3784_v3 = vld [vmem:[%s5903_s1 + $0x170] ss:$8 sps:$4 sm:$0xff]   ;;  %v3787_v5 = vld [vmem:[%s5903_s1 + $0x60] ss:$8 sps:$4 sm:$0xff]  }
   0x3   :  { %2729 = vmatpush1.bf16.msra.mxu0 %v3781_v1  ;;  %2769 = vmatprep.subr.bf16.mxu1 %v3782_v2  ;;  %v3788_v6 = vld [vmem:[%s5903_s1 + $0x164] ss:$8 sps:$4 sm:$0xff]   ;;  %v3790_v7 = vld [vmem:[%s5903_s1 + $0x160] ss:$8 sps:$4 sm:$0xff]   ;;  %v3791_v8 = vld [vmem:[%s5903_s1 + $0x54] ss:$8 sps:$4 sm:$0xff]  }
   0x4   :  { %2770 = vmatpush1.bf16.msra.mxu1 %v3784_v3  ;;  %2730 = vmatprep.subr.bf16.mxu0 %v3785_v4  ;;  %v3793_v9 = vld [vmem:[%s5903_s1 + $0x50] ss:$8 sps:$4 sm:$0xff]   ;;  %v3794_v10 = vld [vmem:[%s5903_s1 + $0x154] ss:$8 sps:$4 sm:$0xff]   ;;  %v3797_v11 = vld [vmem:[%s5903_s1 + $0x44] ss:$8 sps:$4 sm:$0xff]  }
   0x5   :  { %2771 = vmatprep.subr.bf16.mxu1 %v3788_v6  ;;  %v3796_v12 = vld [vmem:[%s5903_s1 + $0x150] ss:$8 sps:$4 sm:$0xff]   ;;  %v3800_v13 = vld [vmem:[%s5903_s1 + $0x144] ss:$8 sps:$4 sm:$0xff]   ;;  %v3799_v14 = vld [vmem:[%s5903_s1 + $0x40] ss:$8 sps:$4 sm:$0xff]  }
   0x6   :  { %v3803_v15 = vld [vmem:[%s5903_s1 + $0x34] ss:$8 sps:$4 sm:$0xff]   ;;  %v3802_v16 = vld [vmem:[%s5903_s1 + $0x140] ss:$8 sps:$4 sm:$0xff]   ;;  %v3805_v18 = vld [vmem:[%s5903_s1 + $0x30] ss:$8 sps:$4 sm:$0xff]  }
   0x7   :  { %2731 = vmatpush1.bf16.msra.mxu0 %v3787_v5  ;;  %v3806_v17 = vld [vmem:[%s5903_s1 + $0x134] ss:$8 sps:$4 sm:$0xff]   ;;  %v3809_v19 = vld [vmem:[%s5903_s1 + $0x24] ss:$8 sps:$4 sm:$0xff]   ;;  %v3808_v20 = vld [vmem:[%s5903_s1 + $0x130] ss:$8 sps:$4 sm:$0xff]  }
   0x8   :  { %2732 = vmatprep.subr.bf16.mxu0 %v3791_v8  ;;  %2772 = vmatpush1.bf16.msra.mxu1 %v3790_v7  ;;  %v3812_v21 = vld [vmem:[%s5903_s1 + $0x124] ss:$8 sps:$4 sm:$0xff]   ;;  %v3811_v22 = vld [vmem:[%s5903_s1 + $0x20] ss:$8 sps:$4 sm:$0xff]   ;;  %v3815_v23 = vld [vmem:[%s5903_s1 + $0x14] ss:$8 sps:$4 sm:$0xff]  }
   0x9   :  { %2773 = vmatprep.subr.bf16.mxu1 %v3794_v10  ;;  %v3814_v24 = vld [vmem:[%s5903_s1 + $0x120] ss:$8 sps:$4 sm:$0xff]   ;;  %v3818_v25 = vld [vmem:[%s5903_s1 + $0x114] ss:$8 sps:$4 sm:$0xff]   ;;  %v3817_v26 = vld [vmem:[%s5903_s1 + $0x10] ss:$8 sps:$4 sm:$0xff]  }
   0xa   :  { %v3821_v27 = vld [vmem:[%s5903_s1 + $0x4] ss:$8 sps:$4 sm:$0xff]   ;;  %v3820_v28 = vld [vmem:[%s5903_s1 + $0x110] ss:$8 sps:$4 sm:$0xff]   ;;  %v3823_v30 = vld [vmem:[%s5903_s1] ss:$8 sps:$4 sm:$0xff]  }
   0xb   :  { %2733 = vmatpush1.bf16.msra.mxu0 %v3793_v9  ;;  %v3824_v29 = vld [vmem:[%s5903_s1 + $0x104] ss:$8 sps:$4 sm:$0xff]   ;;  %v3827_v31 = vld [vmem:[%s5903_s1 + $0xf4] ss:$8 sps:$4 sm:$0xff]   ;;  %v3826_v32 = vld [vmem:[%s5903_s1 + $0x100] ss:$8 sps:$4 sm:$0xff]  }
   0xc   :  { %2734 = vmatprep.subr.bf16.mxu0 %v3797_v11  ;;  %2774 = vmatpush1.bf16.msra.mxu1 %v3796_v12  ;;  %v3830_v33 = vld [vmem:[%s5903_s1 + $0x1f4] ss:$8 sps:$4 sm:$0xff]   ;;  %v3829_v34 = vld [vmem:[%s5903_s1 + $0xf0] ss:$8 sps:$4 sm:$0xff]   ;;  %v3833_v35 = vld [vmem:[%s5903_s1 + $0xe4] ss:$8 sps:$4 sm:$0xff]  }
   0xd   :  { %2775 = vmatprep.subr.bf16.mxu1 %v3800_v13  ;;  %v3832_v36 = vld [vmem:[%s5903_s1 + $0x1f0] ss:$8 sps:$4 sm:$0xff]   ;;  %v3836_v37 = vld [vmem:[%s5903_s1 + $0x1e4] ss:$8 sps:$4 sm:$0xff]   ;;  %v3835_v38 = vld [vmem:[%s5903_s1 + $0xe0] ss:$8 sps:$4 sm:$0xff]  }
   0xe   :  { %v3839_v39 = vld [vmem:[%s5903_s1 + $0xd4] ss:$8 sps:$4 sm:$0xff]   ;;  %v3838_v40 = vld [vmem:[%s5903_s1 + $0x1e0] ss:$8 sps:$4 sm:$0xff]   ;;  %v3841_v42 = vld [vmem:[%s5903_s1 + $0xd0] ss:$8 sps:$4 sm:$0xff]  }
   0xf   :  { %2735 = vmatpush1.bf16.msra.mxu0 %v3799_v14  ;;  %v3842_v41 = vld [vmem:[%s5903_s1 + $0x1d4] ss:$8 sps:$4 sm:$0xff]   ;;  %v3845_v43 = vld [vmem:[%s5903_s1 + $0xc4] ss:$8 sps:$4 sm:$0xff]   ;;  %v3844_v44 = vld [vmem:[%s5903_s1 + $0x1d0] ss:$8 sps:$4 sm:$0xff]  }
  0x10   :  { %2736 = vmatprep.subr.bf16.mxu0 %v3803_v15  ;;  %2776 = vmatpush1.bf16.msra.mxu1 %v3802_v16  ;;  %v3848_v45 = vld [vmem:[%s5903_s1 + $0x1c4] ss:$8 sps:$4 sm:$0xff]   ;;  %v3847_v47 = vld [vmem:[%s5903_s1 + $0xc0] ss:$8 sps:$4 sm:$0xff]   ;;  %v3851_v49 = vld [vmem:[%s5903_s1 + $0xb4] ss:$8 sps:$4 sm:$0xff]  }
  0x11   :  { %2777 = vmatprep.subr.bf16.mxu1 %v3806_v17  ;;  %v15_v46 = vld [vmem:[%s5904_s0] sm:$0xff]  ;;  %v16_v50 = vld [vmem:[%s5904_s0 + $0x8] sm:$0xff]  ;;  %v3854_v53 = vld [vmem:[%s5903_s1 + $0x1b4] ss:$8 sps:$4 sm:$0xff]  }
  0x12   :  { %v3318_v48 = vcombine.high %v15_v46, %v15_v46  ;;  %v3850_v51 = vld [vmem:[%s5903_s1 + $0x1c0] ss:$8 sps:$4 sm:$0xff]   ;;  %v3320_v52 = vcombine.high %v16_v50, %v16_v50  ;;  %v3853_v54 = vld [vmem:[%s5903_s1 + $0xb0] ss:$8 sps:$4 sm:$0xff]   ;;  %v3857_v55 = vld [vmem:[%s5903_s1 + $0xa4] ss:$8 sps:$4 sm:$0xff]   ;;  %v3317_v5 = vcombine.low %v15_v46, %v15_v46  ;;  %v3319_v8 = vcombine.low %v16_v50, %v16_v50 }
  0x13   :  { %2737 = vmatpush1.bf16.msra.mxu0 %v3805_v18  ;;  %v3856_v56 = vld [vmem:[%s5903_s1 + $0x1b0] ss:$8 sps:$4 sm:$0xff]   ;;  %v3860_v57 = vld [vmem:[%s5903_s1 + $0x1a4] ss:$8 sps:$4 sm:$0xff]   ;;  %v3859_v58 = vld [vmem:[%s5903_s1 + $0xa0] ss:$8 sps:$4 sm:$0xff]  }
  0x14   :  { %2738 = vmatprep.subr.bf16.mxu0 %v3809_v19  ;;  %2778 = vmatpush1.bf16.msra.mxu1 %v3808_v20  ;;  %v3863_v59 = vld [vmem:[%s5903_s1 + $0x94] ss:$8 sps:$4 sm:$0xff]   ;;  %v3862_v60 = vld [vmem:[%s5903_s1 + $0x1a0] ss:$8 sps:$4 sm:$0xff]   ;;  %v3865_v62 = vld [vmem:[%s5903_s1 + $0x90] ss:$8 sps:$4 sm:$0xff]  }
  0x15   :  { %2779 = vmatprep.subr.bf16.mxu1 %v3812_v21  ;;  %2760 = vmatprep.mubr.bf16.mxu0 %v3318_v48  ;;  %v3866_v61 = vld [vmem:[%s5903_s1 + $0x194] ss:$8 sps:$4 sm:$0xff]   ;;  %v3869_v63 = vld [vmem:[%s5903_s1 + $0x84] ss:$8 sps:$4 sm:$0xff]   ;;  %v3868_v0 = vld [vmem:[%s5903_s1 + $0x190] ss:$8 sps:$4 sm:$0xff]  }
  0x16   :  { %2801 = vmatprep.mubr.bf16.mxu1 %v3320_v52  ;;  %v3872_v1 = vld [vmem:[%s5903_s1 + $0x184] ss:$8 sps:$4 sm:$0xff]   ;;  %v3871_v2 = vld [vmem:[%s5903_s1 + $0x80] ss:$8 sps:$4 sm:$0xff]   ;;  %v3879_v3 = vld [vmem:[%s5903_s1 + $0x274] ss:$8 sps:$4 sm:$0xff]  }
  0x17   :  { %2739 = vmatpush1.bf16.msra.mxu0 %v3811_v22  ;;  %v3876_v4 = vld [vmem:[%s5903_s1 + $0x180] ss:$8 sps:$4 sm:$0xff]   ;;  %v3884_v6 = vld [vmem:[%s5903_s1 + $0x374] ss:$8 sps:$4 sm:$0xff]   ;;  %v3877_v7 = vld [vmem:[%s5903_s1 + $0x270] ss:$8 sps:$4 sm:$0xff]  }
  0x18   :  { %2740 = vmatprep.subr.bf16.mxu0 %v3815_v23  ;;  %2780 = vmatpush1.bf16.msra.mxu1 %v3814_v24  ;;  %v3887_v9 = vld [vmem:[%s5903_s1 + $0x264] ss:$8 sps:$4 sm:$0xff]   ;;  %v3882_v10 = vld [vmem:[%s5903_s1 + $0x370] ss:$8 sps:$4 sm:$0xff]   ;;  %v3885_v12 = vld [vmem:[%s5903_s1 + $0x260] ss:$8 sps:$4 sm:$0xff]  }
  0x19   :  { %2781 = vmatprep.subr.bf16.mxu1 %v3818_v25  ;;  %v3890_v11 = vld [vmem:[%s5903_s1 + $0x364] ss:$8 sps:$4 sm:$0xff]   ;;  %v3893_v13 = vld [vmem:[%s5903_s1 + $0x254] ss:$8 sps:$4 sm:$0xff]   ;;  %v3888_v14 = vld [vmem:[%s5903_s1 + $0x360] ss:$8 sps:$4 sm:$0xff]  }
  0x1a   :  { %v3896_v15 = vld [vmem:[%s5903_s1 + $0x354] ss:$8 sps:$4 sm:$0xff]   ;;  %v3891_v16 = vld [vmem:[%s5903_s1 + $0x250] ss:$8 sps:$4 sm:$0xff]   ;;  %v3899_v17 = vld [vmem:[%s5903_s1 + $0x244] ss:$8 sps:$4 sm:$0xff]  }
  0x1b   :  { %2741 = vmatpush1.bf16.msra.mxu0 %v3817_v26  ;;  %v3894_v18 = vld [vmem:[%s5903_s1 + $0x350] ss:$8 sps:$4 sm:$0xff]   ;;  %v3902_v19 = vld [vmem:[%s5903_s1 + $0x344] ss:$8 sps:$4 sm:$0xff]   ;;  %v3897_v20 = vld [vmem:[%s5903_s1 + $0x240] ss:$8 sps:$4 sm:$0xff]  }
  0x1c   :  { %2742 = vmatprep.subr.bf16.mxu0 %v3821_v27  ;;  %2782 = vmatpush1.bf16.msra.mxu1 %v3820_v28  ;;  %v3905_v21 = vld [vmem:[%s5903_s1 + $0x234] ss:$8 sps:$4 sm:$0xff]   ;;  %v3900_v22 = vld [vmem:[%s5903_s1 + $0x340] ss:$8 sps:$4 sm:$0xff]   ;;  %v3903_v24 = vld [vmem:[%s5903_s1 + $0x230] ss:$8 sps:$4 sm:$0xff]  }
  0x1d   :  { %2783 = vmatprep.subr.bf16.mxu1 %v3824_v29  ;;  %v3908_v23 = vld [vmem:[%s5903_s1 + $0x334] ss:$8 sps:$4 sm:$0xff]   ;;  %v3911_v25 = vld [vmem:[%s5903_s1 + $0x224] ss:$8 sps:$4 sm:$0xff]   ;;  %v3906_v26 = vld [vmem:[%s5903_s1 + $0x330] ss:$8 sps:$4 sm:$0xff]  }
  0x1e   :  { %v3914_v27 = vld [vmem:[%s5903_s1 + $0x324] ss:$8 sps:$4 sm:$0xff]   ;;  %v3909_v28 = vld [vmem:[%s5903_s1 + $0x220] ss:$8 sps:$4 sm:$0xff]   ;;  %v3917_v29 = vld [vmem:[%s5903_s1 + $0x214] ss:$8 sps:$4 sm:$0xff]  }
  0x1f   :  { %2743 = vmatpush1.bf16.msra.mxu0 %v3823_v30  ;;  %v3912_v30 = vld [vmem:[%s5903_s1 + $0x320] ss:$8 sps:$4 sm:$0xff]   ;;  %v3930_v46 = vld [vmem:[%s5903_s1 + $0x3f0] ss:$8 sps:$4 sm:$0xff]  }
  0x20   :  { %2744 = vmatprep.subr.bf16.mxu0 %v3827_v31  ;;  %2784 = vmatpush1.bf16.msra.mxu1 %v3826_v32  ;;  %v3920_v31 = vld [vmem:[%s5903_s1 + $0x314] ss:$8 sps:$4 sm:$0xff]   ;;  %v3933_v48 = vld [vmem:[%s5903_s1 + $0x2e0] ss:$8 sps:$4 sm:$0xff]   ;;  %v3939_v52 = vld [vmem:[%s5903_s1 + $0x2d0] ss:$8 sps:$4 sm:$0xff]  }
  0x21   :  { %2785 = vmatprep.subr.bf16.mxu1 %v3830_v33  ;;  %v4754_v32 = vld [vmem:[%s5904_s0 + $0x10] sm:$0xff]  ;;  %v3936_v50 = vld [vmem:[%s5903_s1 + $0x3e0] ss:$8 sps:$4 sm:$0xff]  }
  0x22   :  { %v3915_v33 = vld [vmem:[%s5903_s1 + $0x210] ss:$8 sps:$4 sm:$0xff]  }
  0x23   :  { %2745 = vmatpush2.bf16.msra.mxu0 %v3829_v34  ;;  %v3322_v34 = vcombine.high %v4754_v32, %v4754_v32 }
  0x24   :  { %2746 = vmatprep.subr.bf16.mxu0 %v3833_v35  ;;  %2786 = vmatpush2.bf16.msra.mxu1 %v3832_v36  ;;  %v4764_v35 = vld [vmem:[%s5904_s0 + $0x18] sm:$0xff]  ;;  %v3923_v36 = vld [vmem:[%s5903_s1 + $0x204] ss:$8 sps:$4 sm:$0xff]  }
  0x25   :  { %2787 = vmatprep.subr.bf16.mxu1 %v3836_v37  ;;  %v3324_v37 = vcombine.high %v4764_v35, %v4764_v35 }
  0x27   :  { %2747 = vmatpush2.bf16.msra.mxu0 %v3835_v38  ;;  %v3918_v38 = vld [vmem:[%s5903_s1 + $0x310] ss:$8 sps:$4 sm:$0xff]  }
  0x28   :  { %2748 = vmatprep.subr.bf16.mxu0 %v3839_v39  ;;  %2788 = vmatpush2.bf16.msra.mxu1 %v3838_v40  ;;  %v3926_v39 = vld [vmem:[%s5903_s1 + $0x304] ss:$8 sps:$4 sm:$0xff]   ;;  %v3921_v40 = vld [vmem:[%s5903_s1 + $0x200] ss:$8 sps:$4 sm:$0xff]  }
  0x29   :  { %2789 = vmatprep.subr.bf16.mxu1 %v3842_v41  ;;  %v3929_v41 = vld [vmem:[%s5903_s1 + $0x2f4] ss:$8 sps:$4 sm:$0xff]  }
  0x2b   :  { %2749 = vmatpush2.bf16.msra.mxu0 %v3841_v42  ;;  %v3924_v42 = vld [vmem:[%s5903_s1 + $0x300] ss:$8 sps:$4 sm:$0xff]  }
  0x2c   :  { %2750 = vmatprep.subr.bf16.mxu0 %v3845_v43  ;;  %2790 = vmatpush2.bf16.msra.mxu1 %v3844_v44  ;;  %v3932_v43 = vld [vmem:[%s5903_s1 + $0x3f4] ss:$8 sps:$4 sm:$0xff]   ;;  %v3927_v44 = vld [vmem:[%s5903_s1 + $0x2f0] ss:$8 sps:$4 sm:$0xff]  }
  0x2d   :  { %2791 = vmatprep.subr.bf16.mxu1 %v3848_v45  ;;  %v3935_v45 = vld [vmem:[%s5903_s1 + $0x2e4] ss:$8 sps:$4 sm:$0xff]  }
  0x2f   :  { %2751 = vmatpush2.bf16.msra.mxu0 %v3847_v47  ;;  %v3938_v47 = vld [vmem:[%s5903_s1 + $0x3e4] ss:$8 sps:$4 sm:$0xff]  }
  0x30   :  { %2752 = vmatprep.subr.bf16.mxu0 %v3851_v49  ;;  %2792 = vmatpush2.bf16.msra.mxu1 %v3850_v51  ;;  %v3941_v49 = vld [vmem:[%s5903_s1 + $0x2d4] ss:$8 sps:$4 sm:$0xff]  }
  0x31   :  { %2793 = vmatprep.subr.bf16.mxu1 %v3854_v53  ;;  %v3944_v51 = vld [vmem:[%s5903_s1 + $0x3d4] ss:$8 sps:$4 sm:$0xff]   ;;  %v3947_v53 = vld [vmem:[%s5903_s1 + $0x2c4] ss:$8 sps:$4 sm:$0xff]  }
  0x33   :  { %2753 = vmatpush2.bf16.msra.mxu0 %v3853_v54  ;;  %v3942_v54 = vld [vmem:[%s5903_s1 + $0x3d0] ss:$8 sps:$4 sm:$0xff]  }
  0x34   :  { %2754 = vmatprep.subr.bf16.mxu0 %v3857_v55  ;;  %2794 = vmatpush2.bf16.msra.mxu1 %v3856_v56  ;;  %v3950_v55 = vld [vmem:[%s5903_s1 + $0x3c4] ss:$8 sps:$4 sm:$0xff]   ;;  %v3945_v56 = vld [vmem:[%s5903_s1 + $0x2c0] ss:$8 sps:$4 sm:$0xff]  }
  0x35   :  { %2795 = vmatprep.subr.bf16.mxu1 %v3860_v57  ;;  %v3953_v57 = vld [vmem:[%s5903_s1 + $0x2b4] ss:$8 sps:$4 sm:$0xff]  }
  0x37   :  { %2755 = vmatpush2.bf16.msra.mxu0 %v3859_v58  ;;  %v3948_v58 = vld [vmem:[%s5903_s1 + $0x3c0] ss:$8 sps:$4 sm:$0xff]  }
  0x38   :  { %2756 = vmatprep.subr.bf16.mxu0 %v3863_v59  ;;  %2796 = vmatpush2.bf16.msra.mxu1 %v3862_v60  ;;  %v3956_v59 = vld [vmem:[%s5903_s1 + $0x3b4] ss:$8 sps:$4 sm:$0xff]   ;;  %v3951_v60 = vld [vmem:[%s5903_s1 + $0x2b0] ss:$8 sps:$4 sm:$0xff]  }
  0x39   :  { %2797 = vmatprep.subr.bf16.mxu1 %v3866_v61  ;;  %v3959_v61 = vld [vmem:[%s5903_s1 + $0x2a4] ss:$8 sps:$4 sm:$0xff]  }
  0x3b   :  { %2757 = vmatpush2.bf16.msra.mxu0 %v3865_v62  ;;  %v3954_v62 = vld [vmem:[%s5903_s1 + $0x3b0] ss:$8 sps:$4 sm:$0xff]  }
  0x3c   :  { %2758 = vmatprep.subr.bf16.mxu0 %v3869_v63  ;;  %2798 = vmatpush2.bf16.msra.mxu1 %v3868_v0  ;;  %v3962_v63 = vld [vmem:[%s5903_s1 + $0x3a4] ss:$8 sps:$4 sm:$0xff]   ;;  %v3957_v0 = vld [vmem:[%s5903_s1 + $0x2a0] ss:$8 sps:$4 sm:$0xff]  }
  0x3d   :  { %2799 = vmatprep.subr.bf16.mxu1 %v3872_v1  ;;  %v3965_v1 = vld [vmem:[%s5903_s1 + $0x294] ss:$8 sps:$4 sm:$0xff]  }
  0x3f   :  { %2759 = vmatpush2.bf16.msra.mxu0 %v3871_v2  ;;  %v3960_v2 = vld [vmem:[%s5903_s1 + $0x3a0] ss:$8 sps:$4 sm:$0xff]  }
  0x40   :  { %2810 = vmatprep.subr.bf16.mxu0 %v3879_v3  ;;  %2800 = vmatpush2.bf16.msra.mxu1 %v3876_v4  ;;  %v3968_v3 = vld [vmem:[%s5903_s1 + $0x394] ss:$8 sps:$4 sm:$0xff]   ;;  %v3963_v4 = vld [vmem:[%s5903_s1 + $0x290] ss:$8 sps:$4 sm:$0xff]  }
  0x41   :  { %2851 = vmatprep.subr.bf16.mxu1 %v3884_v6  ;;  %v3966_v6 = vld [vmem:[%s5903_s1 + $0x390] ss:$8 sps:$4 sm:$0xff]  }
  0x42   :  { %2761 = vmatmul.mubr.bf16.vlgmr.msra.gmra.mxu0 %v3317_v5  ;;  %v3971_v5 = vld [vmem:[%s5903_s1 + $0x284] ss:$8 sps:$4 sm:$0xff]  }
  0x43   :  { %2811 = vmatpush1.bf16.msra.mxu0 %v3877_v7  ;;  %2802 = vmatmul.mubr.bf16.vlgmr.msra.gmra.mxu1 %v3319_v8  ;;  %v3974_v7 = vld [vmem:[%s5903_s1 + $0x384] ss:$8 sps:$4 sm:$0xff]   ;;  %v3969_v8 = vld [vmem:[%s5903_s1 + $0x280] ss:$8 sps:$4 sm:$0xff]  }
  0x44   :  { %2812 = vmatprep.subr.bf16.mxu0 %v3887_v9  ;;  %2852 = vmatpush1.bf16.msra.mxu1 %v3882_v10  ;;  %v3979_v9 = vld [vmem:[%s5903_s1 + $0x474] ss:$8 sps:$4 sm:$0xff]   ;;  %v3972_v10 = vld [vmem:[%s5903_s1 + $0x380] ss:$8 sps:$4 sm:$0xff]  }
  0x45   :  { %2853 = vmatprep.subr.bf16.mxu1 %v3890_v11  ;;  %2842 = vmatprep.mubr.bf16.mxu0 %v3322_v34  ;;  %v3321_v11 = vcombine.low %v4754_v32, %v4754_v32  ;;  %v4000_v32 = vld [vmem:[%s5903_s1 + $0x540] ss:$8 sps:$4 sm:$0xff]   ;;  %v4003_v34 = vld [vmem:[%s5903_s1 + $0x430] ss:$8 sps:$4 sm:$0xff]  }
  0x46   :  { %2883 = vmatprep.mubr.bf16.mxu1 %v3324_v37  ;;  %v4014_v37 = vld [vmem:[%s5903_s1 + $0x524] ss:$8 sps:$4 sm:$0xff]  }
  0x47   :  { %2813 = vmatpush1.bf16.msra.mxu0 %v3885_v12  ;;  %v3984_v12 = vld [vmem:[%s5903_s1 + $0x574] ss:$8 sps:$4 sm:$0xff]  }
  0x48   :  { %2814 = vmatprep.subr.bf16.mxu0 %v3893_v13  ;;  %2854 = vmatpush1.bf16.msra.mxu1 %v3888_v14  ;;  %v3977_v13 = vld [vmem:[%s5903_s1 + $0x470] ss:$8 sps:$4 sm:$0xff]   ;;  %v3323_v14 = vcombine.low %v4764_v35, %v4764_v35  ;;  %v4011_v35 = vld [vmem:[%s5903_s1 + $0x424] ss:$8 sps:$4 sm:$0xff]  }
  0x49   :  { %2855 = vmatprep.subr.bf16.mxu1 %v3896_v15  ;;  %v3987_v15 = vld [vmem:[%s5903_s1 + $0x464] ss:$8 sps:$4 sm:$0xff]  }
  0x4b   :  { %2815 = vmatpush1.bf16.msra.mxu0 %v3891_v16  ;;  %v3982_v16 = vld [vmem:[%s5903_s1 + $0x570] ss:$8 sps:$4 sm:$0xff]  }
  0x4c   :  { %2816 = vmatprep.subr.bf16.mxu0 %v3899_v17  ;;  %2856 = vmatpush1.bf16.msra.mxu1 %v3894_v18  ;;  %v4901_v17 = vld [vmem:[%s5904_s0 + $0x20] sm:$0xff] }
  0x4d   :  { %2857 = vmatprep.subr.bf16.mxu1 %v3902_v19  ;;  %v3985_v18 = vld [vmem:[%s5903_s1 + $0x460] ss:$8 sps:$4 sm:$0xff]   ;;  %v3990_v19 = vld [vmem:[%s5903_s1 + $0x564] ss:$8 sps:$4 sm:$0xff]  }
  0x4f   :  { %2817 = vmatpush1.bf16.msra.mxu0 %v3897_v20  ;;  %v3326_v20 = vcombine.high %v4901_v17, %v4901_v17 }
  0x50   :  { %2818 = vmatprep.subr.bf16.mxu0 %v3905_v21  ;;  %2858 = vmatpush1.bf16.msra.mxu1 %v3900_v22  ;;  %v4914_v21 = vld [vmem:[%s5904_s0 + $0x28] sm:$0xff]  ;;  %v3993_v22 = vld [vmem:[%s5903_s1 + $0x454] ss:$8 sps:$4 sm:$0xff]  }
  0x51   :  { %2859 = vmatprep.subr.bf16.mxu1 %v3908_v23  ;;  %v3328_v23 = vcombine.high %v4914_v21, %v4914_v21 }
  0x53   :  { %2819 = vmatpush1.bf16.msra.mxu0 %v3903_v24  ;;  %v3988_v24 = vld [vmem:[%s5903_s1 + $0x560] ss:$8 sps:$4 sm:$0xff]  }
  0x54   :  { %2820 = vmatprep.subr.bf16.mxu0 %v3911_v25  ;;  %2860 = vmatpush1.bf16.msra.mxu1 %v3906_v26  ;;  %v3996_v25 = vld [vmem:[%s5903_s1 + $0x554] ss:$8 sps:$4 sm:$0xff]   ;;  %v3991_v26 = vld [vmem:[%s5903_s1 + $0x450] ss:$8 sps:$4 sm:$0xff]  }
  0x55   :  { %2861 = vmatprep.subr.bf16.mxu1 %v3914_v27  ;;  %v3999_v27 = vld [vmem:[%s5903_s1 + $0x444] ss:$8 sps:$4 sm:$0xff]  }
  0x57   :  { %2821 = vmatpush1.bf16.msra.mxu0 %v3909_v28  ;;  %v3994_v28 = vld [vmem:[%s5903_s1 + $0x550] ss:$8 sps:$4 sm:$0xff]  }
  0x58   :  { %2822 = vmatprep.subr.bf16.mxu0 %v3917_v29  ;;  %2862 = vmatpush1.bf16.msra.mxu1 %v3912_v30  ;;  %v4002_v29 = vld [vmem:[%s5903_s1 + $0x544] ss:$8 sps:$4 sm:$0xff]   ;;  %v3997_v30 = vld [vmem:[%s5903_s1 + $0x440] ss:$8 sps:$4 sm:$0xff]  }
  0x59   :  { %2863 = vmatprep.subr.bf16.mxu1 %v3920_v31  ;;  %v4005_v31 = vld [vmem:[%s5903_s1 + $0x434] ss:$8 sps:$4 sm:$0xff]  }
  0x5b   :  { %2823 = vmatpush1.bf16.msra.mxu0 %v3915_v33  ;;  %v4008_v33 = vld [vmem:[%s5903_s1 + $0x534] ss:$8 sps:$4 sm:$0xff]  }
  0x5c   :  { %2824 = vmatprep.subr.bf16.mxu0 %v3923_v36  ;;  %2864 = vmatpush1.bf16.msra.mxu1 %v3918_v38  ;;  %v4006_v36 = vld [vmem:[%s5903_s1 + $0x530] ss:$8 sps:$4 sm:$0xff]   ;;  %v4009_v38 = vld [vmem:[%s5903_s1 + $0x420] ss:$8 sps:$4 sm:$0xff]  }
  0x5d   :  { %2865 = vmatprep.subr.bf16.mxu1 %v3926_v39  ;;  %v4017_v39 = vld [vmem:[%s5903_s1 + $0x414] ss:$8 sps:$4 sm:$0xff]  }
  0x5f   :  { %2825 = vmatpush1.bf16.msra.mxu0 %v3921_v40  ;;  %v4012_v40 = vld [vmem:[%s5903_s1 + $0x520] ss:$8 sps:$4 sm:$0xff]  }
  0x60   :  { %2826 = vmatprep.subr.bf16.mxu0 %v3929_v41  ;;  %2866 = vmatpush1.bf16.msra.mxu1 %v3924_v42  ;;  %v4020_v41 = vld [vmem:[%s5903_s1 + $0x514] ss:$8 sps:$4 sm:$0xff]   ;;  %v4015_v42 = vld [vmem:[%s5903_s1 + $0x410] ss:$8 sps:$4 sm:$0xff]  }
  0x61   :  { %2867 = vmatprep.subr.bf16.mxu1 %v3932_v43  ;;  %v4023_v43 = vld [vmem:[%s5903_s1 + $0x404] ss:$8 sps:$4 sm:$0xff]  }
  0x63   :  { %2827 = vmatpush2.bf16.msra.mxu0 %v3927_v44  ;;  %v4018_v44 = vld [vmem:[%s5903_s1 + $0x510] ss:$8 sps:$4 sm:$0xff]  }
  0x64   :  { %2828 = vmatprep.subr.bf16.mxu0 %v3935_v45  ;;  %2868 = vmatpush2.bf16.msra.mxu1 %v3930_v46  ;;  %v4026_v45 = vld [vmem:[%s5903_s1 + $0x504] ss:$8 sps:$4 sm:$0xff]   ;;  %v4021_v46 = vld [vmem:[%s5903_s1 + $0x400] ss:$8 sps:$4 sm:$0xff]  }
  0x65   :  { %2869 = vmatprep.subr.bf16.mxu1 %v3938_v47  ;;  %v4029_v47 = vld [vmem:[%s5903_s1 + $0x4f4] ss:$8 sps:$4 sm:$0xff]  }
  0x67   :  { %2829 = vmatpush2.bf16.msra.mxu0 %v3933_v48  ;;  %v4024_v48 = vld [vmem:[%s5903_s1 + $0x500] ss:$8 sps:$4 sm:$0xff]  }
  0x68   :  { %2830 = vmatprep.subr.bf16.mxu0 %v3941_v49  ;;  %2870 = vmatpush2.bf16.msra.mxu1 %v3936_v50  ;;  %v4032_v49 = vld [vmem:[%s5903_s1 + $0x5f4] ss:$8 sps:$4 sm:$0xff]   ;;  %v4027_v50 = vld [vmem:[%s5903_s1 + $0x4f0] ss:$8 sps:$4 sm:$0xff]  }
  0x69   :  { %2871 = vmatprep.subr.bf16.mxu1 %v3944_v51  ;;  %v4035_v51 = vld [vmem:[%s5903_s1 + $0x4e4] ss:$8 sps:$4 sm:$0xff]  }
  0x6b   :  { %2831 = vmatpush2.bf16.msra.mxu0 %v3939_v52  ;;  %v4030_v52 = vld [vmem:[%s5903_s1 + $0x5f0] ss:$8 sps:$4 sm:$0xff]  }
  0x6c   :  { %2832 = vmatprep.subr.bf16.mxu0 %v3947_v53  ;;  %2872 = vmatpush2.bf16.msra.mxu1 %v3942_v54  ;;  %v4038_v53 = vld [vmem:[%s5903_s1 + $0x5e4] ss:$8 sps:$4 sm:$0xff]   ;;  %v4033_v54 = vld [vmem:[%s5903_s1 + $0x4e0] ss:$8 sps:$4 sm:$0xff]  }
  0x6d   :  { %2873 = vmatprep.subr.bf16.mxu1 %v3950_v55  ;;  %v4041_v55 = vld [vmem:[%s5903_s1 + $0x4d4] ss:$8 sps:$4 sm:$0xff]  }
  0x6f   :  { %2833 = vmatpush2.bf16.msra.mxu0 %v3945_v56  ;;  %v4036_v56 = vld [vmem:[%s5903_s1 + $0x5e0] ss:$8 sps:$4 sm:$0xff]  }
  0x70   :  { %2834 = vmatprep.subr.bf16.mxu0 %v3953_v57  ;;  %2874 = vmatpush2.bf16.msra.mxu1 %v3948_v58  ;;  %v4044_v57 = vld [vmem:[%s5903_s1 + $0x5d4] ss:$8 sps:$4 sm:$0xff]   ;;  %v4039_v58 = vld [vmem:[%s5903_s1 + $0x4d0] ss:$8 sps:$4 sm:$0xff]  }
  0x71   :  { %2875 = vmatprep.subr.bf16.mxu1 %v3956_v59  ;;  %v4047_v59 = vld [vmem:[%s5903_s1 + $0x4c4] ss:$8 sps:$4 sm:$0xff]  }
  0x73   :  { %2835 = vmatpush2.bf16.msra.mxu0 %v3951_v60  ;;  %v4042_v60 = vld [vmem:[%s5903_s1 + $0x5d0] ss:$8 sps:$4 sm:$0xff]  }
  0x74   :  { %2836 = vmatprep.subr.bf16.mxu0 %v3959_v61  ;;  %2876 = vmatpush2.bf16.msra.mxu1 %v3954_v62  ;;  %v4050_v61 = vld [vmem:[%s5903_s1 + $0x5c4] ss:$8 sps:$4 sm:$0xff]   ;;  %v4045_v62 = vld [vmem:[%s5903_s1 + $0x4c0] ss:$8 sps:$4 sm:$0xff]  }
  0x75   :  { %2877 = vmatprep.subr.bf16.mxu1 %v3962_v63  ;;  %v4053_v63 = vld [vmem:[%s5903_s1 + $0x4b4] ss:$8 sps:$4 sm:$0xff]  }
  0x77   :  { %2837 = vmatpush2.bf16.msra.mxu0 %v3957_v0  ;;  %v4048_v0 = vld [vmem:[%s5903_s1 + $0x5c0] ss:$8 sps:$4 sm:$0xff]  }
  0x78   :  { %2838 = vmatprep.subr.bf16.mxu0 %v3965_v1  ;;  %2878 = vmatpush2.bf16.msra.mxu1 %v3960_v2  ;;  %v4056_v1 = vld [vmem:[%s5903_s1 + $0x5b4] ss:$8 sps:$4 sm:$0xff]   ;;  %v4051_v2 = vld [vmem:[%s5903_s1 + $0x4b0] ss:$8 sps:$4 sm:$0xff]  }
  0x79   :  { %2879 = vmatprep.subr.bf16.mxu1 %v3968_v3  ;;  %v4059_v3 = vld [vmem:[%s5903_s1 + $0x4a4] ss:$8 sps:$4 sm:$0xff]  }
  0x7b   :  { %2839 = vmatpush2.bf16.msra.mxu0 %v3963_v4  ;;  %v4054_v4 = vld [vmem:[%s5903_s1 + $0x5b0] ss:$8 sps:$4 sm:$0xff]  }
  0x7c   :  { %2840 = vmatprep.subr.bf16.mxu0 %v3971_v5  ;;  %2880 = vmatpush2.bf16.msra.mxu1 %v3966_v6  ;;  %v4062_v5 = vld [vmem:[%s5903_s1 + $0x5a4] ss:$8 sps:$4 sm:$0xff]   ;;  %v4057_v6 = vld [vmem:[%s5903_s1 + $0x4a0] ss:$8 sps:$4 sm:$0xff]  }
  0x7d   :  { %2881 = vmatprep.subr.bf16.mxu1 %v3974_v7  ;;  %v4065_v7 = vld [vmem:[%s5903_s1 + $0x494] ss:$8 sps:$4 sm:$0xff]  }
  0x7f   :  { %2841 = vmatpush2.bf16.msra.mxu0 %v3969_v8  ;;  %v4060_v8 = vld [vmem:[%s5903_s1 + $0x5a0] ss:$8 sps:$4 sm:$0xff]  }
  0x80   :  { %2892 = vmatprep.subr.bf16.mxu0 %v3979_v9  ;;  %2882 = vmatpush2.bf16.msra.mxu1 %v3972_v10  ;;  %v4068_v9 = vld [vmem:[%s5903_s1 + $0x594] ss:$8 sps:$4 sm:$0xff]   ;;  %v4063_v10 = vld [vmem:[%s5903_s1 + $0x490] ss:$8 sps:$4 sm:$0xff]  }
  0x81   :  { %2933 = vmatprep.subr.bf16.mxu1 %v3984_v12  ;;  %v4066_v12 = vld [vmem:[%s5903_s1 + $0x590] ss:$8 sps:$4 sm:$0xff]  }
  0x82   :  { %2843 = vmatmul.mubr.bf16.vlgmr.msra.gmra.mxu0 %v3321_v11  ;;  %v4071_v11 = vld [vmem:[%s5903_s1 + $0x484] ss:$8 sps:$4 sm:$0xff]  }
  0x83   :  { %2893 = vmatpush1.bf16.msra.mxu0 %v3977_v13  ;;  %2884 = vmatmul.mubr.bf16.vlgmr.msra.gmra.mxu1 %v3323_v14  ;;  %v4069_v13 = vld [vmem:[%s5903_s1 + $0x480] ss:$8 sps:$4 sm:$0xff]   ;;  %v4074_v14 = vld [vmem:[%s5903_s1 + $0x584] ss:$8 sps:$4 sm:$0xff]  }
  0x84   :  { %2894 = vmatprep.subr.bf16.mxu0 %v3987_v15  ;;  %2934 = vmatpush1.bf16.msra.mxu1 %v3982_v16  ;;  %v4079_v15 = vld [vmem:[%s5903_s1 + $0x674] ss:$8 sps:$4 sm:$0xff]  }
  0x85   :  { %2924 = vmatprep.mubr.bf16.mxu0 %v3326_v20  ;;  %2935 = vmatprep.subr.bf16.mxu1 %v3990_v19  ;;  %v5092_v16 = vld [vmem:[%s5904_s0 + $0x30] sm:$0xff]  ;;  %v3325_v19 = vcombine.low %v4901_v17, %v4901_v17  ;;  %v3327_v17 = vcombine.low %v4914_v21, %v4914_v21  ;;  %v4085_v21 = vld [vmem:[%s5903_s1 + $0x660] ss:$8 sps:$4 sm:$0xff]  }
  0x86   :  { %2965 = vmatprep.mubr.bf16.mxu1 %v3328_v23  ;;  %v4084_v20 = vld [vmem:[%s5903_s1 + $0x774] ss:$8 sps:$4 sm:$0xff]   ;;  %v4077_v23 = vld [vmem:[%s5903_s1 + $0x670] ss:$8 sps:$4 sm:$0xff]  }
  0x87   :  { %2895 = vmatpush1.bf16.msra.mxu0 %v3985_v18  ;;  %v4072_v18 = vld [vmem:[%s5903_s1 + $0x580] ss:$8 sps:$4 sm:$0xff]  }
  0x88   :  { %2896 = vmatprep.subr.bf16.mxu0 %v3993_v22  ;;  %2936 = vmatpush1.bf16.msra.mxu1 %v3988_v24  ;;  %v5105_v22 = vld [vmem:[%s5904_s0 + $0x38] sm:$0xff]  ;;  %v3330_v24 = vcombine.high %v5092_v16, %v5092_v16 }
  0x89   :  { %2937 = vmatprep.subr.bf16.mxu1 %v3996_v25  ;;  %v4087_v25 = vld [vmem:[%s5903_s1 + $0x664] ss:$8 sps:$4 sm:$0xff]  }
  0x8b   :  { %2897 = vmatpush1.bf16.msra.mxu0 %v3991_v26  ;;  %v4082_v26 = vld [vmem:[%s5903_s1 + $0x770] ss:$8 sps:$4 sm:$0xff]  }
  0x8c   :  { %2898 = vmatprep.subr.bf16.mxu0 %v3999_v27  ;;  %2938 = vmatpush1.bf16.msra.mxu1 %v3994_v28  ;;  %v3332_v27 = vcombine.high %v5105_v22, %v5105_v22  ;;  %v4090_v28 = vld [vmem:[%s5903_s1 + $0x764] ss:$8 sps:$4 sm:$0xff]  }
  0x8d   :  { %2939 = vmatprep.subr.bf16.mxu1 %v4002_v29  ;;  %v4093_v29 = vld [vmem:[%s5903_s1 + $0x654] ss:$8 sps:$4 sm:$0xff]  }
  0x8f   :  { %2899 = vmatpush1.bf16.msra.mxu0 %v3997_v30  ;;  %v4088_v30 = vld [vmem:[%s5903_s1 + $0x760] ss:$8 sps:$4 sm:$0xff]  }
  0x90   :  { %2900 = vmatprep.subr.bf16.mxu0 %v4005_v31  ;;  %2940 = vmatpush1.bf16.msra.mxu1 %v4000_v32  ;;  %v4096_v31 = vld [vmem:[%s5903_s1 + $0x754] ss:$8 sps:$4 sm:$0xff]   ;;  %v4091_v32 = vld [vmem:[%s5903_s1 + $0x650] ss:$8 sps:$4 sm:$0xff]  }
  0x91   :  { %2941 = vmatprep.subr.bf16.mxu1 %v4008_v33  ;;  %v4099_v33 = vld [vmem:[%s5903_s1 + $0x644] ss:$8 sps:$4 sm:$0xff]  }
  0x93   :  { %2901 = vmatpush1.bf16.msra.mxu0 %v4003_v34  ;;  %v4094_v34 = vld [vmem:[%s5903_s1 + $0x750] ss:$8 sps:$4 sm:$0xff]  }
  0x94   :  { %2902 = vmatprep.subr.bf16.mxu0 %v4011_v35  ;;  %2942 = vmatpush1.bf16.msra.mxu1 %v4006_v36  ;;  %v4102_v35 = vld [vmem:[%s5903_s1 + $0x744] ss:$8 sps:$4 sm:$0xff]   ;;  %v4097_v36 = vld [vmem:[%s5903_s1 + $0x640] ss:$8 sps:$4 sm:$0xff]  }
  0x95   :  { %2943 = vmatprep.subr.bf16.mxu1 %v4014_v37  ;;  %v4105_v37 = vld [vmem:[%s5903_s1 + $0x634] ss:$8 sps:$4 sm:$0xff]  }
  0x97   :  { %2903 = vmatpush1.bf16.msra.mxu0 %v4009_v38  ;;  %v4100_v38 = vld [vmem:[%s5903_s1 + $0x740] ss:$8 sps:$4 sm:$0xff]  }
  0x98   :  { %2904 = vmatprep.subr.bf16.mxu0 %v4017_v39  ;;  %2944 = vmatpush1.bf16.msra.mxu1 %v4012_v40  ;;  %v4108_v39 = vld [vmem:[%s5903_s1 + $0x734] ss:$8 sps:$4 sm:$0xff]   ;;  %v4103_v40 = vld [vmem:[%s5903_s1 + $0x630] ss:$8 sps:$4 sm:$0xff]  }
  0x99   :  { %2945 = vmatprep.subr.bf16.mxu1 %v4020_v41  ;;  %v4111_v41 = vld [vmem:[%s5903_s1 + $0x624] ss:$8 sps:$4 sm:$0xff]  }
  0x9b   :  { %2905 = vmatpush1.bf16.msra.mxu0 %v4015_v42  ;;  %v4106_v42 = vld [vmem:[%s5903_s1 + $0x730] ss:$8 sps:$4 sm:$0xff]  }
  0x9c   :  { %2906 = vmatprep.subr.bf16.mxu0 %v4023_v43  ;;  %2946 = vmatpush1.bf16.msra.mxu1 %v4018_v44  ;;  %v4114_v43 = vld [vmem:[%s5903_s1 + $0x724] ss:$8 sps:$4 sm:$0xff]   ;;  %v4109_v44 = vld [vmem:[%s5903_s1 + $0x620] ss:$8 sps:$4 sm:$0xff]  }
  0x9d   :  { %2947 = vmatprep.subr.bf16.mxu1 %v4026_v45  ;;  %v4117_v45 = vld [vmem:[%s5903_s1 + $0x614] ss:$8 sps:$4 sm:$0xff]  }
  0x9f   :  { %2907 = vmatpush1.bf16.msra.mxu0 %v4021_v46  ;;  %v4112_v46 = vld [vmem:[%s5903_s1 + $0x720] ss:$8 sps:$4 sm:$0xff]  }
  0xa0   :  { %2908 = vmatprep.subr.bf16.mxu0 %v4029_v47  ;;  %2948 = vmatpush1.bf16.msra.mxu1 %v4024_v48  ;;  %v4120_v47 = vld [vmem:[%s5903_s1 + $0x714] ss:$8 sps:$4 sm:$0xff]   ;;  %v4115_v48 = vld [vmem:[%s5903_s1 + $0x610] ss:$8 sps:$4 sm:$0xff]  }
  0xa1   :  { %2949 = vmatprep.subr.bf16.mxu1 %v4032_v49  ;;  %v4123_v49 = vld [vmem:[%s5903_s1 + $0x604] ss:$8 sps:$4 sm:$0xff]  }
  0xa3   :  { %2909 = vmatpush2.bf16.msra.mxu0 %v4027_v50  ;;  %v4118_v50 = vld [vmem:[%s5903_s1 + $0x710] ss:$8 sps:$4 sm:$0xff]  }
  0xa4   :  { %2910 = vmatprep.subr.bf16.mxu0 %v4035_v51  ;;  %2950 = vmatpush2.bf16.msra.mxu1 %v4030_v52  ;;  %v4126_v51 = vld [vmem:[%s5903_s1 + $0x704] ss:$8 sps:$4 sm:$0xff]   ;;  %v4121_v52 = vld [vmem:[%s5903_s1 + $0x600] ss:$8 sps:$4 sm:$0xff]  }
  0xa5   :  { %2951 = vmatprep.subr.bf16.mxu1 %v4038_v53  ;;  %v4129_v53 = vld [vmem:[%s5903_s1 + $0x6f4] ss:$8 sps:$4 sm:$0xff]  }
  0xa7   :  { %2911 = vmatpush2.bf16.msra.mxu0 %v4033_v54  ;;  %v4124_v54 = vld [vmem:[%s5903_s1 + $0x700] ss:$8 sps:$4 sm:$0xff]  }
  0xa8   :  { %2912 = vmatprep.subr.bf16.mxu0 %v4041_v55  ;;  %2952 = vmatpush2.bf16.msra.mxu1 %v4036_v56  ;;  %v4132_v55 = vld [vmem:[%s5903_s1 + $0x7f4] ss:$8 sps:$4 sm:$0xff]   ;;  %v4127_v56 = vld [vmem:[%s5903_s1 + $0x6f0] ss:$8 sps:$4 sm:$0xff]  }
  0xa9   :  { %2953 = vmatprep.subr.bf16.mxu1 %v4044_v57  ;;  %v4135_v57 = vld [vmem:[%s5903_s1 + $0x6e4] ss:$8 sps:$4 sm:$0xff]  }
  0xab   :  { %2913 = vmatpush2.bf16.msra.mxu0 %v4039_v58  ;;  %v4130_v58 = vld [vmem:[%s5903_s1 + $0x7f0] ss:$8 sps:$4 sm:$0xff]  }
  0xac   :  { %2914 = vmatprep.subr.bf16.mxu0 %v4047_v59  ;;  %2954 = vmatpush2.bf16.msra.mxu1 %v4042_v60  ;;  %v4138_v59 = vld [vmem:[%s5903_s1 + $0x7e4] ss:$8 sps:$4 sm:$0xff]   ;;  %v4133_v60 = vld [vmem:[%s5903_s1 + $0x6e0] ss:$8 sps:$4 sm:$0xff]  }
  0xad   :  { %2955 = vmatprep.subr.bf16.mxu1 %v4050_v61  ;;  %v4141_v61 = vld [vmem:[%s5903_s1 + $0x6d4] ss:$8 sps:$4 sm:$0xff]  }
  0xaf   :  { %2915 = vmatpush2.bf16.msra.mxu0 %v4045_v62  ;;  %v4136_v62 = vld [vmem:[%s5903_s1 + $0x7e0] ss:$8 sps:$4 sm:$0xff]  }
  0xb0   :  { %2916 = vmatprep.subr.bf16.mxu0 %v4053_v63  ;;  %2956 = vmatpush2.bf16.msra.mxu1 %v4048_v0  ;;  %v4144_v63 = vld [vmem:[%s5903_s1 + $0x7d4] ss:$8 sps:$4 sm:$0xff]   ;;  %v4139_v0 = vld [vmem:[%s5903_s1 + $0x6d0] ss:$8 sps:$4 sm:$0xff]  }
  0xb1   :  { %2957 = vmatprep.subr.bf16.mxu1 %v4056_v1  ;;  %v4147_v1 = vld [vmem:[%s5903_s1 + $0x6c4] ss:$8 sps:$4 sm:$0xff]  }
  0xb3   :  { %2917 = vmatpush2.bf16.msra.mxu0 %v4051_v2  ;;  %v4142_v2 = vld [vmem:[%s5903_s1 + $0x7d0] ss:$8 sps:$4 sm:$0xff]  }
  0xb4   :  { %2918 = vmatprep.subr.bf16.mxu0 %v4059_v3  ;;  %2958 = vmatpush2.bf16.msra.mxu1 %v4054_v4  ;;  %v4150_v3 = vld [vmem:[%s5903_s1 + $0x7c4] ss:$8 sps:$4 sm:$0xff]   ;;  %v4145_v4 = vld [vmem:[%s5903_s1 + $0x6c0] ss:$8 sps:$4 sm:$0xff]  }
  0xb5   :  { %2959 = vmatprep.subr.bf16.mxu1 %v4062_v5  ;;  %v4153_v5 = vld [vmem:[%s5903_s1 + $0x6b4] ss:$8 sps:$4 sm:$0xff]  }
  0xb7   :  { %2919 = vmatpush2.bf16.msra.mxu0 %v4057_v6  ;;  %v4148_v6 = vld [vmem:[%s5903_s1 + $0x7c0] ss:$8 sps:$4 sm:$0xff]  }
  0xb8   :  { %2920 = vmatprep.subr.bf16.mxu0 %v4065_v7  ;;  %2960 = vmatpush2.bf16.msra.mxu1 %v4060_v8  ;;  %v4156_v7 = vld [vmem:[%s5903_s1 + $0x7b4] ss:$8 sps:$4 sm:$0xff]   ;;  %v4151_v8 = vld [vmem:[%s5903_s1 + $0x6b0] ss:$8 sps:$4 sm:$0xff]  }
  0xb9   :  { %2961 = vmatprep.subr.bf16.mxu1 %v4068_v9  ;;  %v4159_v9 = vld [vmem:[%s5903_s1 + $0x6a4] ss:$8 sps:$4 sm:$0xff]  }
  0xbb   :  { %2921 = vmatpush2.bf16.msra.mxu0 %v4063_v10  ;;  %v4154_v10 = vld [vmem:[%s5903_s1 + $0x7b0] ss:$8 sps:$4 sm:$0xff]  }
  0xbc   :  { %2922 = vmatprep.subr.bf16.mxu0 %v4071_v11  ;;  %2962 = vmatpush2.bf16.msra.mxu1 %v4066_v12  ;;  %v4162_v11 = vld [vmem:[%s5903_s1 + $0x7a4] ss:$8 sps:$4 sm:$0xff]   ;;  %v4157_v12 = vld [vmem:[%s5903_s1 + $0x6a0] ss:$8 sps:$4 sm:$0xff]  }
  0xbd   :  { %2963 = vmatprep.subr.bf16.mxu1 %v4074_v14  ;;  %v4165_v14 = vld [vmem:[%s5903_s1 + $0x694] ss:$8 sps:$4 sm:$0xff]  }
  0xbf   :  { %2923 = vmatpush2.bf16.msra.mxu0 %v4069_v13  ;;  %v463_v13 = vlaneseq }
  0xc0   :  { %2974 = vmatprep.subr.bf16.mxu0 %v4079_v15  ;;  %2964 = vmatpush2.bf16.msra.mxu1 %v4072_v18  ;;  %v4160_v15 = vld [vmem:[%s5903_s1 + $0x7a0] ss:$8 sps:$4 sm:$0xff]   ;;  %v4168_v18 = vld [vmem:[%s5903_s1 + $0x794] ss:$8 sps:$4 sm:$0xff]  }
  0xc1   :  { %3015 = vmatprep.subr.bf16.mxu1 %v4084_v20  ;;  %v464_v20 = vshrl.u32 %v463_v13, 7  ;;  %v4221_v13 = vld [vmem:[%s5903_s1 + $0x800] ss:$8 sps:$4 sm:$0xff]  }
  0xc2   :  { %2925 = vmatmul.mubr.bf16.vlgmr.msra.gmra.mxu0 %v3325_v19  ;;  %v4163_v19 = vld [vmem:[%s5903_s1 + $0x690] ss:$8 sps:$4 sm:$0xff]  }
  0xc3   :  { %2975 = vmatpush1.bf16.msra.mxu0 %v4077_v23  ;;  %3006 = vmatprep.mubr.bf16.mxu0 %v3330_v24  ;;  %v4166_v23 = vld [vmem:[%s5903_s1 + $0x790] ss:$8 sps:$4 sm:$0xff]   ;;  %v4171_v24 = vld [vmem:[%s5903_s1 + $0x684] ss:$8 sps:$4 sm:$0xff]  }
  0xc4   :  { %2966 = vmatmul.mubr.bf16.vlgmr.msra.gmra.mxu1 %v3327_v17  ;;  %2976 = vmatprep.subr.bf16.mxu0 %v4087_v25  ;;  %v4169_v17 = vld [vmem:[%s5903_s1 + $0x680] ss:$8 sps:$4 sm:$0xff]   ;;  %v4174_v25 = vld [vmem:[%s5903_s1 + $0x784] ss:$8 sps:$4 sm:$0xff]  }
  0xc5   :  { %3016 = vmatpush1.bf16.msra.mxu1 %v4082_v26  ;;  %3047 = vmatprep.mubr.bf16.mxu1 %v3332_v27  ;;  %v4172_v26 = vld [vmem:[%s5903_s1 + $0x780] ss:$8 sps:$4 sm:$0xff]  }
  0xc6   :  { %3017 = vmatprep.subr.bf16.mxu1 %v4090_v28  ;;  %v461_v27 = vld [vmem:[%s5905_s2] sm:$0x3]  ;;  %v465_v28 = vsub.s32 0, %v464_v20 }
  0xc7   :  { %2977 = vmatpush1.bf16.msra.mxu0 %v4085_v21  ;;  %v4179_v21 = vld [vmem:[%s5903_s1 + $0x874] ss:$8 sps:$4 sm:$0xff]  }
  0xc8   :  { %2978 = vmatprep.subr.bf16.mxu0 %v4093_v29  ;;  %v5308_v29 = vld [vmem:[%s5904_s0 + $0x40] sm:$0xff] }
  0xc9   :  { %3018 = vmatpush1.bf16.msra.mxu1 %v4088_v30  ;;  %v469_v30 = vsub.s32 1, %v464_v20  ;;  %v4235_v20 = vld [vmem:[%s5903_s1 + $0x8e4] ss:$8 sps:$4 sm:$0xff]  }
  0xca   :  { %3019 = vmatprep.subr.bf16.mxu1 %v4096_v31  ;;  %v4184_v31 = vld [vmem:[%s5903_s1 + $0x974] ss:$8 sps:$4 sm:$0xff]  }
  0xcb   :  { %2979 = vmatpush1.bf16.msra.mxu0 %v4091_v32  ;;  %v3329_v32 = vcombine.low %v5092_v16, %v5092_v16  ;;  %v4187_v16 = vld [vmem:[%s5903_s1 + $0x864] ss:$8 sps:$4 sm:$0xff]  }
  0xcc   :  { %2980 = vmatprep.subr.bf16.mxu0 %v4099_v33  ;;  %v5318_v33 = vld [vmem:[%s5904_s0 + $0x48] sm:$0xff] }
  0xcd   :  { %3020 = vmatpush1.bf16.msra.mxu1 %v4094_v34  ;;  %v466_v34 = vrot.slane %v461_v27, %v465_v28  ;;  %v4239_v28 = vld [vmem:[%s5903_s1 + $0x8d0] ss:$8 sps:$4 sm:$0xff]  }
  0xce   :  { %3021 = vmatprep.subr.bf16.mxu1 %v4102_v35  ;;  %v4177_v35 = vld [vmem:[%s5903_s1 + $0x870] ss:$8 sps:$4 sm:$0xff]  }
  0xcf   :  { %2981 = vmatpush1.bf16.msra.mxu0 %v4097_v36  ;;  %v3334_v36 = vcombine.high %v5308_v29, %v5308_v29 }
  0xd0   :  { %2982 = vmatprep.subr.bf16.mxu0 %v4105_v37  ;;  %v3331_v37 = vcombine.low %v5105_v22, %v5105_v22  ;;  %v4190_v22 = vld [vmem:[%s5903_s1 + $0x964] ss:$8 sps:$4 sm:$0xff]  }
  0xd1   :  { %3022 = vmatpush1.bf16.msra.mxu1 %v4100_v38  ;;  %v470_v38 = vrot.slane %v461_v27, %v469_v30  ;;  %v4244_v27 = vld [vmem:[%s5903_s1 + $0x9d4] ss:$8 sps:$4 sm:$0xff]   ;;  %v4242_v30 = vld [vmem:[%s5903_s1 + $0x9d0] ss:$8 sps:$4 sm:$0xff]  }
  0xd2   :  { %3023 = vmatprep.subr.bf16.mxu1 %v4108_v39  ;;  %v4182_v39 = vld [vmem:[%s5903_s1 + $0x970] ss:$8 sps:$4 sm:$0xff]  }
  0xd3   :  { %2983 = vmatpush1.bf16.msra.mxu0 %v4103_v40  ;;  %v3336_v40 = vcombine.high %v5318_v33, %v5318_v33 }
  0xd4   :  { %2984 = vmatprep.subr.bf16.mxu0 %v4111_v41 }
  0xd5   :  { %3024 = vmatpush1.bf16.msra.mxu1 %v4106_v42 }
  0xd6   :  { %3025 = vmatprep.subr.bf16.mxu1 %v4114_v43  ;;  %v4185_v43 = vld [vmem:[%s5903_s1 + $0x860] ss:$8 sps:$4 sm:$0xff]  }
  0xd7   :  { %2985 = vmatpush1.bf16.msra.mxu0 %v4109_v44 }
  0xd8   :  { %2986 = vmatprep.subr.bf16.mxu0 %v4117_v45 }
  0xd9   :  { %3026 = vmatpush1.bf16.msra.mxu1 %v4112_v46  ;;  %v4193_v46 = vld [vmem:[%s5903_s1 + $0x854] ss:$8 sps:$4 sm:$0xff]  }
  0xda   :  { %3027 = vmatprep.subr.bf16.mxu1 %v4120_v47 }
  0xdb   :  { %2987 = vmatpush1.bf16.msra.mxu0 %v4115_v48 }
  0xdc   :  { %2988 = vmatprep.subr.bf16.mxu0 %v4123_v49  ;;  %v4188_v49 = vld [vmem:[%s5903_s1 + $0x960] ss:$8 sps:$4 sm:$0xff]  }
  0xdd   :  { %3028 = vmatpush1.bf16.msra.mxu1 %v4118_v50 }
  0xde   :  { %3029 = vmatprep.subr.bf16.mxu1 %v4126_v51 }
  0xdf   :  { %2989 = vmatpush1.bf16.msra.mxu0 %v4121_v52  ;;  %v4191_v52 = vld [vmem:[%s5903_s1 + $0x850] ss:$8 sps:$4 sm:$0xff]  }
  0xe0   :  { %2990 = vmatprep.subr.bf16.mxu0 %v4129_v53  ;;  %v4196_v53 = vld [vmem:[%s5903_s1 + $0x954] ss:$8 sps:$4 sm:$0xff]  }
  0xe1   :  { %3030 = vmatpush1.bf16.msra.mxu1 %v4124_v54 }
  0xe2   :  { %3031 = vmatprep.subr.bf16.mxu1 %v4132_v55  ;;  %v4194_v55 = vld [vmem:[%s5903_s1 + $0x950] ss:$8 sps:$4 sm:$0xff]  }
  0xe3   :  { %2991 = vmatpush2.bf16.msra.mxu0 %v4127_v56 }
  0xe4   :  { %2992 = vmatprep.subr.bf16.mxu0 %v4135_v57  ;;  %v4199_v57 = vld [vmem:[%s5903_s1 + $0x844] ss:$8 sps:$4 sm:$0xff]  }
  0xe5   :  { %3032 = vmatpush2.bf16.msra.mxu1 %v4130_v58  ;;  %v4202_v58 = vld [vmem:[%s5903_s1 + $0x944] ss:$8 sps:$4 sm:$0xff]  }
  0xe6   :  { %3033 = vmatprep.subr.bf16.mxu1 %v4138_v59 }
  0xe7   :  { %2993 = vmatpush2.bf16.msra.mxu0 %v4133_v60  ;;  %v4197_v60 = vld [vmem:[%s5903_s1 + $0x840] ss:$8 sps:$4 sm:$0xff]  }
  0xe8   :  { %2994 = vmatprep.subr.bf16.mxu0 %v4141_v61 }
  0xe9   :  { %3034 = vmatpush2.bf16.msra.mxu1 %v4136_v62  ;;  %v4200_v62 = vld [vmem:[%s5903_s1 + $0x940] ss:$8 sps:$4 sm:$0xff]  }
  0xea   :  { %3035 = vmatprep.subr.bf16.mxu1 %v4144_v63  ;;  %v4205_v63 = vld [vmem:[%s5903_s1 + $0x834] ss:$8 sps:$4 sm:$0xff]  }
  0xeb   :  { %2995 = vmatpush2.bf16.msra.mxu0 %v4139_v0  ;;  %v4208_v0 = vld [vmem:[%s5903_s1 + $0x934] ss:$8 sps:$4 sm:$0xff]  }
  0xec   :  { %2996 = vmatprep.subr.bf16.mxu0 %v4147_v1  ;;  %v4203_v1 = vld [vmem:[%s5903_s1 + $0x830] ss:$8 sps:$4 sm:$0xff]  }
  0xed   :  { %3036 = vmatpush2.bf16.msra.mxu1 %v4142_v2  ;;  %v4206_v2 = vld [vmem:[%s5903_s1 + $0x930] ss:$8 sps:$4 sm:$0xff]  }
  0xee   :  { %3037 = vmatprep.subr.bf16.mxu1 %v4150_v3  ;;  %v4211_v3 = vld [vmem:[%s5903_s1 + $0x824] ss:$8 sps:$4 sm:$0xff]  }
  0xef   :  { %2997 = vmatpush2.bf16.msra.mxu0 %v4145_v4  ;;  %v4214_v4 = vld [vmem:[%s5903_s1 + $0x924] ss:$8 sps:$4 sm:$0xff]  }
  0xf0   :  { %2998 = vmatprep.subr.bf16.mxu0 %v4153_v5  ;;  %v4209_v5 = vld [vmem:[%s5903_s1 + $0x820] ss:$8 sps:$4 sm:$0xff]  }
  0xf1   :  { %3038 = vmatpush2.bf16.msra.mxu1 %v4148_v6  ;;  %v4212_v6 = vld [vmem:[%s5903_s1 + $0x920] ss:$8 sps:$4 sm:$0xff]  }
  0xf2   :  { %3039 = vmatprep.subr.bf16.mxu1 %v4156_v7  ;;  %v4217_v7 = vld [vmem:[%s5903_s1 + $0x814] ss:$8 sps:$4 sm:$0xff]  }
  0xf3   :  { %2999 = vmatpush2.bf16.msra.mxu0 %v4151_v8  ;;  %v4220_v8 = vld [vmem:[%s5903_s1 + $0x914] ss:$8 sps:$4 sm:$0xff]  }
  0xf4   :  { %3000 = vmatprep.subr.bf16.mxu0 %v4159_v9  ;;  %v4215_v9 = vld [vmem:[%s5903_s1 + $0x810] ss:$8 sps:$4 sm:$0xff]  }
  0xf5   :  { %3040 = vmatpush2.bf16.msra.mxu1 %v4154_v10  ;;  %v4223_v10 = vld [vmem:[%s5903_s1 + $0x804] ss:$8 sps:$4 sm:$0xff]  }
  0xf6   :  { %3041 = vmatprep.subr.bf16.mxu1 %v4162_v11  ;;  %v4218_v11 = vld [vmem:[%s5903_s1 + $0x910] ss:$8 sps:$4 sm:$0xff]  }
  0xf7   :  { %3001 = vmatpush2.bf16.msra.mxu0 %v4157_v12  ;;  %v4226_v12 = vld [vmem:[%s5903_s1 + $0x904] ss:$8 sps:$4 sm:$0xff]  }
  0xf8   :  { %3002 = vmatprep.subr.bf16.mxu0 %v4165_v14  ;;  %v4229_v14 = vld [vmem:[%s5903_s1 + $0x8f4] ss:$8 sps:$4 sm:$0xff]  }
  0xf9   :  { %3042 = vmatpush2.bf16.msra.mxu1 %v4160_v15  ;;  %v4224_v15 = vld [vmem:[%s5903_s1 + $0x900] ss:$8 sps:$4 sm:$0xff]  }
  0xfa   :  { %3043 = vmatprep.subr.bf16.mxu1 %v4168_v18  ;;  %v4232_v18 = vld [vmem:[%s5903_s1 + $0x9f4] ss:$8 sps:$4 sm:$0xff]  }
  0xfb   :  { %3003 = vmatpush2.bf16.msra.mxu0 %v4163_v19  ;;  %v4227_v19 = vld [vmem:[%s5903_s1 + $0x8f0] ss:$8 sps:$4 sm:$0xff]  }
  0xfc   :  { %3004 = vmatprep.subr.bf16.mxu0 %v4171_v24  ;;  %v4238_v24 = vld [vmem:[%s5903_s1 + $0x9e4] ss:$8 sps:$4 sm:$0xff]  }
  0xfd   :  { %3044 = vmatpush2.bf16.msra.mxu1 %v4166_v23  ;;  %v4230_v23 = vld [vmem:[%s5903_s1 + $0x9f0] ss:$8 sps:$4 sm:$0xff]  }
  0xfe   :  { %3045 = vmatprep.subr.bf16.mxu1 %v4174_v25  ;;  %v4241_v25 = vld [vmem:[%s5903_s1 + $0x8d4] ss:$8 sps:$4 sm:$0xff]  }
  0xff   :  { %3005 = vmatpush2.bf16.msra.mxu0 %v4169_v17  ;;  %v4233_v17 = vld [vmem:[%s5903_s1 + $0x8e0] ss:$8 sps:$4 sm:$0xff]  }
 0x100   :  { %3056 = vmatprep.subr.bf16.mxu0 %v4179_v21  ;;  %v4247_v21 = vld [vmem:[%s5903_s1 + $0x8c4] ss:$8 sps:$4 sm:$0xff]  }
 0x101   :  { %3046 = vmatpush2.bf16.msra.mxu1 %v4172_v26  ;;  %v4236_v26 = vld [vmem:[%s5903_s1 + $0x9e0] ss:$8 sps:$4 sm:$0xff]  }
 0x102   :  { %v2762_v41 = vpop.f32.mrf.mxu0  ;;  %3007 = vmatmul.mubr.bf16.vlgmr.msra.gmra.mxu0 %v3329_v32  ;;  %3097 = vmatprep.subr.bf16.mxu1 %v4184_v31  ;;  %v4250_v31 = vld [vmem:[%s5903_s1 + $0x9c4] ss:$8 sps:$4 sm:$0xff]   ;;  %v4245_v32 = vld [vmem:[%s5903_s1 + $0x8c0] ss:$8 sps:$4 sm:$0xff]  }
 0x103   :  { %v2763_v42 = vadd.f32 %v2762_v41, %v466_v34  ;;  %3057 = vmatpush1.bf16.msra.mxu0 %v4177_v35  ;;  %3088 = vmatprep.mubr.bf16.mxu0 %v3334_v36  ;;  %v2803_v45 = vpop.f32.mrf.mxu1  ;;  %v4253_v34 = vld [vmem:[%s5903_s1 + $0x8b4] ss:$8 sps:$4 sm:$0xff]   ;;  %v4248_v35 = vld [vmem:[%s5903_s1 + $0x9c0] ss:$8 sps:$4 sm:$0xff]  }
 0x104   :  { %v2764_v44 = vpop.f32.mrf.mxu0  ;;  %3048 = vmatmul.mubr.bf16.vlgmr.msra.gmra.mxu1 %v3331_v37  ;;  %3058 = vmatprep.subr.bf16.mxu0 %v4187_v16  ;;  %v4256_v36 = vld [vmem:[%s5903_s1 + $0x9b4] ss:$8 sps:$4 sm:$0xff]   ;;  %v4251_v37 = vld [vmem:[%s5903_s1 + $0x8b0] ss:$8 sps:$4 sm:$0xff]   ;;  %v4259_v16 = vld [vmem:[%s5903_s1 + $0x8a4] ss:$8 sps:$4 sm:$0xff]  }
 0x105   :  { %v2765_v47 = vadd.f32 %v2764_v44, %v470_v38  ;;  %v5344_v48 = vadd.f32 %v2803_v45, %v2763_v42  ;;  %3098 = vmatpush1.bf16.msra.mxu1 %v4182_v39  ;;  %3129 = vmatprep.mubr.bf16.mxu1 %v3336_v40  ;;  %v2805_v51 = vpop.f32.mrf.mxu1  ;;  %v4254_v38 = vld [vmem:[%s5903_s1 + $0x9b0] ss:$8 sps:$4 sm:$0xff]   ;;  %v4262_v39 = vld [vmem:[%s5903_s1 + $0x9a4] ss:$8 sps:$4 sm:$0xff]   ;;  %v4257_v40 = vld [vmem:[%s5903_s1 + $0x8a0] ss:$8 sps:$4 sm:$0xff]  }
 0x106   :  { %v2766_v50 = vpop.f32.mrf.mxu0  ;;  %3099 = vmatprep.subr.bf16.mxu1 %v4190_v22  ;;  %v4265_v41 = vld [vmem:[%s5903_s1 + $0x894] ss:$8 sps:$4 sm:$0xff]   ;;  %v4260_v22 = vld [vmem:[%s5903_s1 + $0x9a0] ss:$8 sps:$4 sm:$0xff]   ;;  %v4271_v44 = vld [vmem:[%s5903_s1 + $0x884] ss:$8 sps:$4 sm:$0xff]  }
 0x107   :  { %v5355_v54 = vadd.f32 %v2805_v51, %v2765_v47  ;;  %3059 = vmatpush1.bf16.msra.mxu0 %v4185_v43  ;;  %v2807_v59 = vpop.f32.mrf.mxu1  ;;  %v4268_v42 = vld [vmem:[%s5903_s1 + $0x994] ss:$8 sps:$4 sm:$0xff]   ;;  %v4263_v43 = vld [vmem:[%s5903_s1 + $0x890] ss:$8 sps:$4 sm:$0xff]   ;;  %v4269_v47 = vld [vmem:[%s5903_s1 + $0x880] ss:$8 sps:$4 sm:$0xff]  }
 0x108   :  { %v2767_v56 = vpop.f32.mrf.mxu0  ;;  %3060 = vmatprep.subr.bf16.mxu0 %v4193_v46  ;;  %v4266_v45 = vld [vmem:[%s5903_s1 + $0x990] ss:$8 sps:$4 sm:$0xff]   ;;  %v4274_v46 = vld [vmem:[%s5903_s1 + $0x984] ss:$8 sps:$4 sm:$0xff]   ;;  %v4272_v51 = vld [vmem:[%s5903_s1 + $0x980] ss:$8 sps:$4 sm:$0xff]  }
 0x109   :  { %3100 = vmatpush1.bf16.msra.mxu1 %v4188_v49  ;;  %v2808_v61 = vpop.f32.mrf.mxu1  ;;  %v4279_v49 = vld [vmem:[%s5903_s1 + $0xa74] ss:$8 sps:$4 sm:$0xff]   ;;  %v4277_v56 = vld [vmem:[%s5903_s1 + $0xa70] ss:$8 sps:$4 sm:$0xff]  }
 0x10a   :  { %3101 = vmatprep.subr.bf16.mxu1 %v4196_v53  ;;  %v5519_v50 = vld [vmem:[%s5904_s0 + $0x50] sm:$0xff] }
 0x10b   :  { %3061 = vmatpush1.bf16.msra.mxu0 %v4191_v52  ;;  %v3333_v52 = vcombine.low %v5308_v29, %v5308_v29  ;;  %v4284_v53 = vld [vmem:[%s5903_s1 + $0xb74] ss:$8 sps:$4 sm:$0xff]   ;;  %v3335_v29 = vcombine.low %v5318_v33, %v5318_v33  ;;  %v4282_v59 = vld [vmem:[%s5903_s1 + $0xb70] ss:$8 sps:$4 sm:$0xff]  }
 0x10c   :  { %3062 = vmatprep.subr.bf16.mxu0 %v4199_v57  ;;  %v3338_v57 = vcombine.high %v5519_v50, %v5519_v50 }
 0x10d   :  { %3102 = vmatpush1.bf16.msra.mxu1 %v4194_v55  ;;  %v5532_v55 = vld [vmem:[%s5904_s0 + $0x58] sm:$0xff] }
 0x10e   :  { %3103 = vmatprep.subr.bf16.mxu1 %v4202_v58  ;;  %v4287_v58 = vld [vmem:[%s5903_s1 + $0xa64] ss:$8 sps:$4 sm:$0xff]  }
 0x10f   :  { %3063 = vmatpush1.bf16.msra.mxu0 %v4197_v60  ;;  %v3340_v60 = vcombine.high %v5532_v55, %v5532_v55 }
 0x110   :  { %3064 = vmatprep.subr.bf16.mxu0 %v4205_v63  ;;  %v4285_v63 = vld [vmem:[%s5903_s1 + $0xa60] ss:$8 sps:$4 sm:$0xff]  }
 0x111   :  { %3104 = vmatpush1.bf16.msra.mxu1 %v4200_v62  ;;  %v4290_v62 = vld [vmem:[%s5903_s1 + $0xb64] ss:$8 sps:$4 sm:$0xff]  }
 0x112   :  { %3105 = vmatprep.subr.bf16.mxu1 %v4208_v0 }
 0x113   :  { %3065 = vmatpush1.bf16.msra.mxu0 %v4203_v1 }
 0x114   :  { %3066 = vmatprep.subr.bf16.mxu0 %v4211_v3 }
 0x115   :  { %3106 = vmatpush1.bf16.msra.mxu1 %v4206_v2  ;;  %v4293_v2 = vld [vmem:[%s5903_s1 + $0xa54] ss:$8 sps:$4 sm:$0xff]  }
 0x116   :  { %3107 = vmatprep.subr.bf16.mxu1 %v4214_v4 }
 0x117   :  { %3067 = vmatpush1.bf16.msra.mxu0 %v4209_v5 }
 0x118   :  { %3068 = vmatprep.subr.bf16.mxu0 %v4217_v7  ;;  %v4296_v7 = vld [vmem:[%s5903_s1 + $0xb54] ss:$8 sps:$4 sm:$0xff]  }
 0x119   :  { %3108 = vmatpush1.bf16.msra.mxu1 %v4212_v6 }
 0x11a   :  { %3109 = vmatprep.subr.bf16.mxu1 %v4220_v8 }
 0x11b   :  { %3069 = vmatpush1.bf16.msra.mxu0 %v4215_v9 }
 0x11c   :  { %3070 = vmatprep.subr.bf16.mxu0 %v4223_v10  ;;  %v4299_v10 = vld [vmem:[%s5903_s1 + $0xa44] ss:$8 sps:$4 sm:$0xff]  }
 0x11d   :  { %3110 = vmatpush1.bf16.msra.mxu1 %v4218_v11 }
 0x11e   :  { %3111 = vmatprep.subr.bf16.mxu1 %v4226_v12  ;;  %v4294_v12 = vld [vmem:[%s5903_s1 + $0xb50] ss:$8 sps:$4 sm:$0xff]  }
 0x11f   :  { %3071 = vmatpush1.bf16.msra.mxu0 %v4221_v13  ;;  %v4302_v13 = vld [vmem:[%s5903_s1 + $0xb44] ss:$8 sps:$4 sm:$0xff]  }
 0x120   :  { %3072 = vmatprep.subr.bf16.mxu0 %v4229_v14 }
 0x121   :  { %3112 = vmatpush1.bf16.msra.mxu1 %v4224_v15  ;;  %v4297_v15 = vld [vmem:[%s5903_s1 + $0xa40] ss:$8 sps:$4 sm:$0xff]  }
 0x122   :  { %3113 = vmatprep.subr.bf16.mxu1 %v4232_v18  ;;  %v4305_v18 = vld [vmem:[%s5903_s1 + $0xa34] ss:$8 sps:$4 sm:$0xff]  }
 0x123   :  { %3073 = vmatpush2.bf16.msra.mxu0 %v4227_v19  ;;  %v4300_v19 = vld [vmem:[%s5903_s1 + $0xb40] ss:$8 sps:$4 sm:$0xff]  }
 0x124   :  { %3074 = vmatprep.subr.bf16.mxu0 %v4235_v20  ;;  %v4308_v20 = vld [vmem:[%s5903_s1 + $0xb34] ss:$8 sps:$4 sm:$0xff]  }
 0x125   :  { %3114 = vmatpush2.bf16.msra.mxu1 %v4230_v23  ;;  %v4303_v23 = vld [vmem:[%s5903_s1 + $0xa30] ss:$8 sps:$4 sm:$0xff]  }
 0x126   :  { %3115 = vmatprep.subr.bf16.mxu1 %v4238_v24  ;;  %v4311_v24 = vld [vmem:[%s5903_s1 + $0xa24] ss:$8 sps:$4 sm:$0xff]  }
 0x127   :  { %3075 = vmatpush2.bf16.msra.mxu0 %v4233_v17  ;;  %v4306_v17 = vld [vmem:[%s5903_s1 + $0xb30] ss:$8 sps:$4 sm:$0xff]  }
 0x128   :  { %3076 = vmatprep.subr.bf16.mxu0 %v4241_v25  ;;  %v4314_v25 = vld [vmem:[%s5903_s1 + $0xb24] ss:$8 sps:$4 sm:$0xff]  }
 0x129   :  { %3116 = vmatpush2.bf16.msra.mxu1 %v4236_v26  ;;  %v4309_v26 = vld [vmem:[%s5903_s1 + $0xa20] ss:$8 sps:$4 sm:$0xff]  }
 0x12a   :  { %3117 = vmatprep.subr.bf16.mxu1 %v4244_v27  ;;  %v4317_v27 = vld [vmem:[%s5903_s1 + $0xa14] ss:$8 sps:$4 sm:$0xff]  }
 0x12b   :  { %3077 = vmatpush2.bf16.msra.mxu0 %v4239_v28  ;;  %v4312_v28 = vld [vmem:[%s5903_s1 + $0xb20] ss:$8 sps:$4 sm:$0xff]  }
 0x12c   :  { %3078 = vmatprep.subr.bf16.mxu0 %v4247_v21  ;;  %v4320_v21 = vld [vmem:[%s5903_s1 + $0xb14] ss:$8 sps:$4 sm:$0xff]  }
 0x12d   :  { %3118 = vmatpush2.bf16.msra.mxu1 %v4242_v30  ;;  %v4315_v30 = vld [vmem:[%s5903_s1 + $0xa10] ss:$8 sps:$4 sm:$0xff]  }
 0x12e   :  { %3119 = vmatprep.subr.bf16.mxu1 %v4250_v31  ;;  %v4323_v31 = vld [vmem:[%s5903_s1 + $0xa04] ss:$8 sps:$4 sm:$0xff]  }
 0x12f   :  { %3079 = vmatpush2.bf16.msra.mxu0 %v4245_v32  ;;  %v4318_v32 = vld [vmem:[%s5903_s1 + $0xb10] ss:$8 sps:$4 sm:$0xff]  }
 0x130   :  { %3080 = vmatprep.subr.bf16.mxu0 %v4253_v34  ;;  %v4326_v34 = vld [vmem:[%s5903_s1 + $0xb04] ss:$8 sps:$4 sm:$0xff]  }
 0x131   :  { %3120 = vmatpush2.bf16.msra.mxu1 %v4248_v35  ;;  %v4321_v35 = vld [vmem:[%s5903_s1 + $0xa00] ss:$8 sps:$4 sm:$0xff]  }
 0x132   :  { %3121 = vmatprep.subr.bf16.mxu1 %v4256_v36  ;;  %v4329_v36 = vld [vmem:[%s5903_s1 + $0xaf4] ss:$8 sps:$4 sm:$0xff]  }
 0x133   :  { %3081 = vmatpush2.bf16.msra.mxu0 %v4251_v37  ;;  %v4324_v37 = vld [vmem:[%s5903_s1 + $0xb00] ss:$8 sps:$4 sm:$0xff]  }
 0x134   :  { %3082 = vmatprep.subr.bf16.mxu0 %v4259_v16  ;;  %v4332_v16 = vld [vmem:[%s5903_s1 + $0xbf4] ss:$8 sps:$4 sm:$0xff]  }
 0x135   :  { %3122 = vmatpush2.bf16.msra.mxu1 %v4254_v38  ;;  %v4327_v38 = vld [vmem:[%s5903_s1 + $0xaf0] ss:$8 sps:$4 sm:$0xff]  }
 0x136   :  { %3123 = vmatprep.subr.bf16.mxu1 %v4262_v39  ;;  %v4335_v39 = vld [vmem:[%s5903_s1 + $0xae4] ss:$8 sps:$4 sm:$0xff]  }
 0x137   :  { %3083 = vmatpush2.bf16.msra.mxu0 %v4257_v40  ;;  %v4330_v40 = vld [vmem:[%s5903_s1 + $0xbf0] ss:$8 sps:$4 sm:$0xff]  }
 0x138   :  { %3084 = vmatprep.subr.bf16.mxu0 %v4265_v41  ;;  %v4338_v41 = vld [vmem:[%s5903_s1 + $0xbe4] ss:$8 sps:$4 sm:$0xff]  }
 0x139   :  { %3124 = vmatpush2.bf16.msra.mxu1 %v4260_v22  ;;  %v4333_v22 = vld [vmem:[%s5903_s1 + $0xae0] ss:$8 sps:$4 sm:$0xff]  }
 0x13a   :  { %3125 = vmatprep.subr.bf16.mxu1 %v4268_v42  ;;  %v4341_v42 = vld [vmem:[%s5903_s1 + $0xad4] ss:$8 sps:$4 sm:$0xff]  }
 0x13b   :  { %3085 = vmatpush2.bf16.msra.mxu0 %v4263_v43  ;;  %v4336_v43 = vld [vmem:[%s5903_s1 + $0xbe0] ss:$8 sps:$4 sm:$0xff]  }
 0x13c   :  { %3086 = vmatprep.subr.bf16.mxu0 %v4271_v44  ;;  %v4344_v44 = vld [vmem:[%s5903_s1 + $0xbd4] ss:$8 sps:$4 sm:$0xff]  }
 0x13d   :  { %3126 = vmatpush2.bf16.msra.mxu1 %v4266_v45  ;;  %v4339_v45 = vld [vmem:[%s5903_s1 + $0xad0] ss:$8 sps:$4 sm:$0xff]  }
 0x13e   :  { %3127 = vmatprep.subr.bf16.mxu1 %v4274_v46  ;;  %v4347_v46 = vld [vmem:[%s5903_s1 + $0xac4] ss:$8 sps:$4 sm:$0xff]  }
 0x13f   :  { %3087 = vmatpush2.bf16.msra.mxu0 %v4269_v47  ;;  %v4342_v47 = vld [vmem:[%s5903_s1 + $0xbd0] ss:$8 sps:$4 sm:$0xff]  }
 0x140   :  { %3138 = vmatprep.subr.bf16.mxu0 %v4279_v49  ;;  %v4350_v49 = vld [vmem:[%s5903_s1 + $0xbc4] ss:$8 sps:$4 sm:$0xff]  }
 0x141   :  { %3128 = vmatpush2.bf16.msra.mxu1 %v4272_v51  ;;  %v4345_v51 = vld [vmem:[%s5903_s1 + $0xac0] ss:$8 sps:$4 sm:$0xff]  }
 0x142   :  { %v2844_v61 = vpop.f32.mrf.mxu0  ;;  %3089 = vmatmul.mubr.bf16.vlgmr.msra.gmra.mxu0 %v3333_v52  ;;  %3179 = vmatprep.subr.bf16.mxu1 %v4284_v53  ;;  %v4353_v52 = vld [vmem:[%s5903_s1 + $0xab4] ss:$8 sps:$4 sm:$0xff]   ;;  %v4348_v53 = vld [vmem:[%s5903_s1 + $0xbc0] ss:$8 sps:$4 sm:$0xff]  }
 0x143   :  { %v2845_v33 = vadd.f32 %v2844_v61, %v5344_v48  ;;  %3139 = vmatpush1.bf16.msra.mxu0 %v4277_v56  ;;  %3170 = vmatprep.mubr.bf16.mxu0 %v3338_v57  ;;  %v2885_v1 = vpop.f32.mrf.mxu1  ;;  %v4288_v48 = vld [vmem:[%s5903_s1 + $0xb60] ss:$8 sps:$4 sm:$0xff]   ;;  %v4356_v56 = vld [vmem:[%s5903_s1 + $0xbb4] ss:$8 sps:$4 sm:$0xff]   ;;  %v4351_v57 = vld [vmem:[%s5903_s1 + $0xab0] ss:$8 sps:$4 sm:$0xff]  }
 0x144   :  { %v2846_v0 = vpop.f32.mrf.mxu0  ;;  %3130 = vmatmul.mubr.bf16.vlgmr.msra.gmra.mxu1 %v3335_v29  ;;  %3140 = vmatprep.subr.bf16.mxu0 %v4287_v58  ;;  %v4359_v29 = vld [vmem:[%s5903_s1 + $0xaa4] ss:$8 sps:$4 sm:$0xff]   ;;  %v4354_v58 = vld [vmem:[%s5903_s1 + $0xbb0] ss:$8 sps:$4 sm:$0xff]   ;;  %v4365_v61 = vld [vmem:[%s5903_s1 + $0xa94] ss:$8 sps:$4 sm:$0xff]  }
 0x145   :  { %v2847_v3 = vadd.f32 %v2846_v0, %v5355_v54  ;;  %v5560_v4 = vadd.f32 %v2885_v1, %v2845_v33  ;;  %3180 = vmatpush1.bf16.msra.mxu1 %v4282_v59  ;;  %3211 = vmatprep.mubr.bf16.mxu1 %v3340_v60  ;;  %v2887_v6 = vpop.f32.mrf.mxu1  ;;  %v4291_v54 = vld [vmem:[%s5903_s1 + $0xa50] ss:$8 sps:$4 sm:$0xff]   ;;  %v4362_v59 = vld [vmem:[%s5903_s1 + $0xba4] ss:$8 sps:$4 sm:$0xff]   ;;  %v4357_v60 = vld [vmem:[%s5903_s1 + $0xaa0] ss:$8 sps:$4 sm:$0xff]  }
 0x146   :  { %v2848_v5 = vpop.f32.mrf.mxu0  ;;  %3181 = vmatprep.subr.bf16.mxu1 %v4290_v62  ;;  %v4360_v62 = vld [vmem:[%s5903_s1 + $0xba0] ss:$8 sps:$4 sm:$0xff]   ;;  %v4368_v33 = vld [vmem:[%s5903_s1 + $0xb94] ss:$8 sps:$4 sm:$0xff]   ;;  %v4371_v0 = vld [vmem:[%s5903_s1 + $0xa84] ss:$8 sps:$4 sm:$0xff]  }
 0x147   :  { %v5568_v8 = vadd.f32 %v2887_v6, %v2847_v3  ;;  %3141 = vmatpush1.bf16.msra.mxu0 %v4285_v63  ;;  %v2889_v11 = vpop.f32.mrf.mxu1  ;;  %v4363_v63 = vld [vmem:[%s5903_s1 + $0xa90] ss:$8 sps:$4 sm:$0xff]   ;;  %v4369_v3 = vld [vmem:[%s5903_s1 + $0xa80] ss:$8 sps:$4 sm:$0xff]  }
 0x148   :  { %v2849_v9 = vpop.f32.mrf.mxu0  ;;  %3142 = vmatprep.subr.bf16.mxu0 %v4293_v2  ;;  %v4366_v1 = vld [vmem:[%s5903_s1 + $0xb90] ss:$8 sps:$4 sm:$0xff]   ;;  %v4374_v2 = vld [vmem:[%s5903_s1 + $0xb84] ss:$8 sps:$4 sm:$0xff]   ;;  %v4372_v6 = vld [vmem:[%s5903_s1 + $0xb80] ss:$8 sps:$4 sm:$0xff]   ;;  %v3339_v11 = vcombine.low %v5532_v55, %v5532_v55 }
 0x149   :  { %3182 = vmatpush1.bf16.msra.mxu1 %v4288_v48  ;;  %v2890_v14 = vpop.f32.mrf.mxu1  ;;  %v4379_v48 = vld [vmem:[%s5903_s1 + $0xc74] ss:$8 sps:$4 sm:$0xff]   ;;  %v5735_v5 = vld [vmem:[%s5904_s0 + $0x60] sm:$0xff]  ;;  %v4377_v9 = vld [vmem:[%s5903_s1 + $0xc70] ss:$8 sps:$4 sm:$0xff]  }
 0x14a   :  { %3183 = vmatprep.subr.bf16.mxu1 %v4296_v7  ;;  %v3337_v7 = vcombine.low %v5519_v50, %v5519_v50  ;;  %v4384_v50 = vld [vmem:[%s5903_s1 + $0xc64] ss:$8 sps:$4 sm:$0xff]   ;;  %v4382_v55 = vld [vmem:[%s5903_s1 + $0xc60] ss:$8 sps:$4 sm:$0xff]  }
 0x14b   :  { %3143 = vmatpush1.bf16.msra.mxu0 %v4291_v54  ;;  %v4405_v54 = vld [vmem:[%s5903_s1 + $0xd74] ss:$8 sps:$4 sm:$0xff]   ;;  %v4411_v14 = vld [vmem:[%s5903_s1 + $0xd64] ss:$8 sps:$4 sm:$0xff]  }
 0x14c   :  { %3144 = vmatprep.subr.bf16.mxu0 %v4299_v10  ;;  %v3342_v10 = vcombine.high %v5735_v5, %v5735_v5 }
 0x14d   :  { %3184 = vmatpush1.bf16.msra.mxu1 %v4294_v12  ;;  %v4403_v12 = vld [vmem:[%s5903_s1 + $0xd70] ss:$8 sps:$4 sm:$0xff]  }
 0x14e   :  { %3185 = vmatprep.subr.bf16.mxu1 %v4302_v13 }
 0x14f   :  { %3145 = vmatpush1.bf16.msra.mxu0 %v4297_v15 }
 0x150   :  { %3146 = vmatprep.subr.bf16.mxu0 %v4305_v18 }
 0x151   :  { %3186 = vmatpush1.bf16.msra.mxu1 %v4300_v19 }
 0x152   :  { %3187 = vmatprep.subr.bf16.mxu1 %v4308_v20  ;;  %v4387_v20 = vld [vmem:[%s5903_s1 + $0xc54] ss:$8 sps:$4 sm:$0xff]  }
 0x153   :  { %3147 = vmatpush1.bf16.msra.mxu0 %v4303_v23 }
 0x154   :  { %3148 = vmatprep.subr.bf16.mxu0 %v4311_v24 }
 0x155   :  { %3188 = vmatpush1.bf16.msra.mxu1 %v4306_v17  ;;  %v4454_v17 = vmov 0  }
 0x156   :  { %3189 = vmatprep.subr.bf16.mxu1 %v4314_v25 }
 0x157   :  { %3149 = vmatpush1.bf16.msra.mxu0 %v4309_v26 }
 0x158   :  { %3150 = vmatprep.subr.bf16.mxu0 %v4317_v27  ;;  %v4417_v27 = vld [vmem:[%s5903_s1 + $0xd54] ss:$8 sps:$4 sm:$0xff]  }
 0x159   :  { %3190 = vmatpush1.bf16.msra.mxu1 %v4312_v28 }
 0x15a   :  { %3191 = vmatprep.subr.bf16.mxu1 %v4320_v21 }
 0x15b   :  { %3151 = vmatpush1.bf16.msra.mxu0 %v4315_v30  ;;  %v4390_v30 = vld [vmem:[%s5903_s1 + $0xc44] ss:$8 sps:$4 sm:$0xff]  }
 0x15c   :  { %3152 = vmatprep.subr.bf16.mxu0 %v4323_v31 }
 0x15d   :  { %3192 = vmatpush1.bf16.msra.mxu1 %v4318_v32  ;;  %v4415_v32 = vld [vmem:[%s5903_s1 + $0xd50] ss:$8 sps:$4 sm:$0xff]  }
 0x15e   :  { %3193 = vmatprep.subr.bf16.mxu1 %v4326_v34 }
 0x15f   :  { %3153 = vmatpush1.bf16.msra.mxu0 %v4321_v35  ;;  %v4423_v35 = vld [vmem:[%s5903_s1 + $0xd44] ss:$8 sps:$4 sm:$0xff]  }
 0x160   :  { %3154 = vmatprep.subr.bf16.mxu0 %v4329_v36  ;;  %v4388_v36 = vld [vmem:[%s5903_s1 + $0xc40] ss:$8 sps:$4 sm:$0xff]  }
 0x161   :  { %3194 = vmatpush1.bf16.msra.mxu1 %v4324_v37  ;;  %v4393_v37 = vld [vmem:[%s5903_s1 + $0xc34] ss:$8 sps:$4 sm:$0xff]  }
 0x162   :  { %3195 = vmatprep.subr.bf16.mxu1 %v4332_v16  ;;  %v4421_v16 = vld [vmem:[%s5903_s1 + $0xd40] ss:$8 sps:$4 sm:$0xff]  }
 0x163   :  { %3155 = vmatpush2.bf16.msra.mxu0 %v4327_v38  ;;  %v4429_v38 = vld [vmem:[%s5903_s1 + $0xd34] ss:$8 sps:$4 sm:$0xff]  }
 0x164   :  { %3156 = vmatprep.subr.bf16.mxu0 %v4335_v39  ;;  %v4391_v39 = vld [vmem:[%s5903_s1 + $0xc30] ss:$8 sps:$4 sm:$0xff]  }
 0x165   :  { %3196 = vmatpush2.bf16.msra.mxu1 %v4330_v40  ;;  %v4396_v40 = vld [vmem:[%s5903_s1 + $0xc24] ss:$8 sps:$4 sm:$0xff]  }
 0x166   :  { %3197 = vmatprep.subr.bf16.mxu1 %v4338_v41  ;;  %v4427_v41 = vld [vmem:[%s5903_s1 + $0xd30] ss:$8 sps:$4 sm:$0xff]  }
 0x167   :  { %3157 = vmatpush2.bf16.msra.mxu0 %v4333_v22  ;;  %v4435_v22 = vld [vmem:[%s5903_s1 + $0xd24] ss:$8 sps:$4 sm:$0xff]  }
 0x168   :  { %3158 = vmatprep.subr.bf16.mxu0 %v4341_v42  ;;  %v4394_v42 = vld [vmem:[%s5903_s1 + $0xc20] ss:$8 sps:$4 sm:$0xff]  }
 0x169   :  { %3198 = vmatpush2.bf16.msra.mxu1 %v4336_v43  ;;  %v4399_v43 = vld [vmem:[%s5903_s1 + $0xc14] ss:$8 sps:$4 sm:$0xff]  }
 0x16a   :  { %3199 = vmatprep.subr.bf16.mxu1 %v4344_v44  ;;  %v4433_v44 = vld [vmem:[%s5903_s1 + $0xd20] ss:$8 sps:$4 sm:$0xff]  }
 0x16b   :  { %3159 = vmatpush2.bf16.msra.mxu0 %v4339_v45  ;;  %v4441_v45 = vld [vmem:[%s5903_s1 + $0xd14] ss:$8 sps:$4 sm:$0xff]  }
 0x16c   :  { %3160 = vmatprep.subr.bf16.mxu0 %v4347_v46  ;;  %v4397_v46 = vld [vmem:[%s5903_s1 + $0xc10] ss:$8 sps:$4 sm:$0xff]  }
 0x16d   :  { %3200 = vmatpush2.bf16.msra.mxu1 %v4342_v47  ;;  %v4402_v47 = vld [vmem:[%s5903_s1 + $0xc04] ss:$8 sps:$4 sm:$0xff]  }
 0x16e   :  { %3201 = vmatprep.subr.bf16.mxu1 %v4350_v49  ;;  %v4439_v49 = vld [vmem:[%s5903_s1 + $0xd10] ss:$8 sps:$4 sm:$0xff]  }
 0x16f   :  { %3161 = vmatpush2.bf16.msra.mxu0 %v4345_v51  ;;  %v4447_v51 = vld [vmem:[%s5903_s1 + $0xd04] ss:$8 sps:$4 sm:$0xff]  }
 0x170   :  { %3162 = vmatprep.subr.bf16.mxu0 %v4353_v52  ;;  %v4400_v52 = vld [vmem:[%s5903_s1 + $0xc00] ss:$8 sps:$4 sm:$0xff]  }
 0x171   :  { %3202 = vmatpush2.bf16.msra.mxu1 %v4348_v53  ;;  %v4408_v53 = vld [vmem:[%s5903_s1 + $0xcf4] ss:$8 sps:$4 sm:$0xff]  }
 0x172   :  { %3203 = vmatprep.subr.bf16.mxu1 %v4356_v56  ;;  %v4445_v56 = vld [vmem:[%s5903_s1 + $0xd00] ss:$8 sps:$4 sm:$0xff]  }
 0x173   :  { %3163 = vmatpush2.bf16.msra.mxu0 %v4351_v57  ;;  %v4406_v57 = vld [vmem:[%s5903_s1 + $0xcf0] ss:$8 sps:$4 sm:$0xff]  }
 0x174   :  { %3164 = vmatprep.subr.bf16.mxu0 %v4359_v29  ;;  %v4414_v29 = vld [vmem:[%s5903_s1 + $0xce4] ss:$8 sps:$4 sm:$0xff]  }
 0x175   :  { %3204 = vmatpush2.bf16.msra.mxu1 %v4354_v58  ;;  %v4451_v58 = vld [vmem:[%s5904_s0 + $0x68] ss:$0 sps:$4 sm:$0xff]  }
 0x176   :  { %3205 = vmatprep.subr.bf16.mxu1 %v4362_v59  ;;  %v4412_v59 = vld [vmem:[%s5903_s1 + $0xce0] ss:$8 sps:$4 sm:$0xff]  }
 0x177   :  { %3165 = vmatpush2.bf16.msra.mxu0 %v4357_v60  ;;  %v4420_v60 = vld [vmem:[%s5903_s1 + $0xcd4] ss:$8 sps:$4 sm:$0xff]  }
 0x178   :  { %3166 = vmatprep.subr.bf16.mxu0 %v4365_v61  ;;  %v4418_v61 = vld [vmem:[%s5903_s1 + $0xcd0] ss:$8 sps:$4 sm:$0xff]  }
 0x179   :  { %3206 = vmatpush2.bf16.msra.mxu1 %v4360_v62  ;;  %v4426_v62 = vld [vmem:[%s5903_s1 + $0xcc4] ss:$8 sps:$4 sm:$0xff]  }
 0x17a   :  { %3207 = vmatprep.subr.bf16.mxu1 %v4368_v33  ;;  %v4424_v33 = vld [vmem:[%s5903_s1 + $0xcc0] ss:$8 sps:$4 sm:$0xff]  }
 0x17b   :  { %3167 = vmatpush2.bf16.msra.mxu0 %v4363_v63  ;;  %v4432_v63 = vld [vmem:[%s5903_s1 + $0xcb4] ss:$8 sps:$4 sm:$0xff]  }
 0x17c   :  { %3168 = vmatprep.subr.bf16.mxu0 %v4371_v0  ;;  %v4430_v0 = vld [vmem:[%s5903_s1 + $0xcb0] ss:$8 sps:$4 sm:$0xff]  }
 0x17d   :  { %3208 = vmatpush2.bf16.msra.mxu1 %v4366_v1  ;;  %v4438_v1 = vld [vmem:[%s5903_s1 + $0xca4] ss:$8 sps:$4 sm:$0xff]  }
 0x17e   :  { %3209 = vmatprep.subr.bf16.mxu1 %v4374_v2  ;;  %v4436_v2 = vld [vmem:[%s5903_s1 + $0xca0] ss:$8 sps:$4 sm:$0xff]  }
 0x17f   :  { %3169 = vmatpush2.bf16.msra.mxu0 %v4369_v3  ;;  %v4444_v3 = vld [vmem:[%s5903_s1 + $0xc94] ss:$8 sps:$4 sm:$0xff]  }
 0x180   :  { %3220 = vmatprep.subr.bf16.mxu0 %v4379_v48  ;;  %v4442_v48 = vld [vmem:[%s5903_s1 + $0xc90] ss:$8 sps:$4 sm:$0xff]  }
 0x181   :  { %3210 = vmatpush2.bf16.msra.mxu1 %v4372_v6  ;;  %v4450_v6 = vld [vmem:[%s5903_s1 + $0xc84] ss:$8 sps:$4 sm:$0xff]  }
 0x182   :  { %v2926_v13 = vpop.f32.mrf.mxu0  ;;  %3171 = vmatmul.mubr.bf16.vlgmr.msra.gmra.mxu0 %v3337_v7  ;;  %3261 = vmatprep.subr.bf16.mxu1 %v4405_v54  ;;  %v4448_v7 = vld [vmem:[%s5903_s1 + $0xc80] ss:$8 sps:$4 sm:$0xff]   ;;  %v3341_v54 = vcombine.low %v5735_v5, %v5735_v5 }
 0x183   :  { %v2927_v15 = vadd.f32 %v2926_v13, %v5560_v4  ;;  %3221 = vmatpush1.bf16.msra.mxu0 %v4377_v9  ;;  %3252 = vmatprep.mubr.bf16.mxu0 %v3342_v10  ;;  %v4409_v4 = vld [vmem:[%s5903_s1 + $0xd60] ss:$8 sps:$4 sm:$0xff]  }
 0x184   :  { %v2928_v18 = vpop.f32.mrf.mxu0  ;;  %v2967_v19 = vpop.f32.mrf.mxu1  ;;  %3212 = vmatmul.mubr.bf16.vlgmr.msra.gmra.mxu1 %v3339_v11  ;;  %3222 = vmatprep.subr.bf16.mxu0 %v4384_v50 }
 0x185   :  { %v2929_v23 = vadd.f32 %v2928_v18, %v5568_v8  ;;  %v5769_v24 = vadd.f32 %v2967_v19, %v2927_v15  ;;  %3262 = vmatpush1.bf16.msra.mxu1 %v4403_v12  ;;  %3293 = vmatprep.mubr.bf16.mxu1 %v4454_v17  ;;  %v4385_v8 = vld [vmem:[%s5903_s1 + $0xc50] ss:$8 sps:$4 sm:$0xff]  }
 0x186   :  { %v2930_v25 = vpop.f32.mrf.mxu0  ;;  %v2969_v26 = vpop.f32.mrf.mxu1  ;;  %3263 = vmatprep.subr.bf16.mxu1 %v4411_v14 }
 0x187   :  { %v5777_v28 = vadd.f32 %v2969_v26, %v2929_v23  ;;  %3223 = vmatpush1.bf16.msra.mxu0 %v4382_v55 }
 0x188   :  { %v2931_v21 = vpop.f32.mrf.mxu0  ;;  %3224 = vmatprep.subr.bf16.mxu0 %v4387_v20  ;;  %v2971_v31 = vpop.f32.mrf.mxu1 }
 0x189   :  { %3264 = vmatpush1.bf16.msra.mxu1 %v4409_v4 }
 0x18a   :  { %v2972_v34 = vpop.f32.mrf.mxu1  ;;  %3265 = vmatprep.subr.bf16.mxu1 %v4417_v27 }
 0x18b   :  { %3225 = vmatpush1.bf16.msra.mxu0 %v4385_v8 }
 0x18c   :  { %3226 = vmatprep.subr.bf16.mxu0 %v4390_v30 }
 0x18d   :  { %3266 = vmatpush1.bf16.msra.mxu1 %v4415_v32 }
 0x18e   :  { %3267 = vmatprep.subr.bf16.mxu1 %v4423_v35 }
 0x18f   :  { %3227 = vmatpush1.bf16.msra.mxu0 %v4388_v36 }
 0x190   :  { %3228 = vmatprep.subr.bf16.mxu0 %v4393_v37 }
 0x191   :  { %3268 = vmatpush1.bf16.msra.mxu1 %v4421_v16 }
 0x192   :  { %3269 = vmatprep.subr.bf16.mxu1 %v4429_v38 }
 0x193   :  { %3229 = vmatpush1.bf16.msra.mxu0 %v4391_v39 }
 0x194   :  { %3230 = vmatprep.subr.bf16.mxu0 %v4396_v40 }
 0x195   :  { %3270 = vmatpush1.bf16.msra.mxu1 %v4427_v41 }
 0x196   :  { %3271 = vmatprep.subr.bf16.mxu1 %v4435_v22 }
 0x197   :  { %3231 = vmatpush1.bf16.msra.mxu0 %v4394_v42 }
 0x198   :  { %3232 = vmatprep.subr.bf16.mxu0 %v4399_v43 }
 0x199   :  { %3272 = vmatpush1.bf16.msra.mxu1 %v4433_v44 }
 0x19a   :  { %3273 = vmatprep.subr.bf16.mxu1 %v4441_v45 }
 0x19b   :  { %3233 = vmatpush1.bf16.msra.mxu0 %v4397_v46 }
 0x19c   :  { %3234 = vmatprep.subr.bf16.mxu0 %v4402_v47 }
 0x19d   :  { %3274 = vmatpush1.bf16.msra.mxu1 %v4439_v49 }
 0x19e   :  { %3275 = vmatprep.subr.bf16.mxu1 %v4447_v51 }
 0x19f   :  { %3235 = vmatpush1.bf16.msra.mxu0 %v4400_v52 }
 0x1a0   :  { %3236 = vmatprep.subr.bf16.mxu0 %v4408_v53 }
 0x1a1   :  { %3276 = vmatpush1.bf16.msra.mxu1 %v4445_v56 }
 0x1a3   :  { %3237 = vmatpush2.bf16.msra.mxu0 %v4406_v57 }
 0x1a4   :  { %3238 = vmatprep.subr.bf16.mxu0 %v4414_v29  ;;  %3294 = vmatmul.mubr.bf16.vlgmr.msra.gmra.mxu1 %v4451_v58 }
 0x1a7   :  { %3239 = vmatpush2.bf16.msra.mxu0 %v4412_v59 }
 0x1a8   :  { %3240 = vmatprep.subr.bf16.mxu0 %v4420_v60 }
 0x1ab   :  { %3241 = vmatpush2.bf16.msra.mxu0 %v4418_v61 }
 0x1ac   :  { %3242 = vmatprep.subr.bf16.mxu0 %v4426_v62 }
 0x1af   :  { %3243 = vmatpush2.bf16.msra.mxu0 %v4424_v33 }
 0x1b0   :  { %3244 = vmatprep.subr.bf16.mxu0 %v4432_v63 }
 0x1b3   :  { %3245 = vmatpush2.bf16.msra.mxu0 %v4430_v0 }
 0x1b4   :  { %3246 = vmatprep.subr.bf16.mxu0 %v4438_v1 }
 0x1b7   :  { %3247 = vmatpush2.bf16.msra.mxu0 %v4436_v2 }
 0x1b8   :  { %3248 = vmatprep.subr.bf16.mxu0 %v4444_v3 }
 0x1bb   :  { %3249 = vmatpush2.bf16.msra.mxu0 %v4442_v48 }
 0x1bc   :  { %3250 = vmatprep.subr.bf16.mxu0 %v4450_v6 }
 0x1bf   :  { %3251 = vmatpush2.bf16.msra.mxu0 %v4448_v7 }
 0x1c2   :  { %v3008_v9 = vpop.f32.mrf.mxu0  ;;  %3253 = vmatmul.mubr.bf16.vlgmr.msra.gmra.mxu0 %v3341_v54 }
 0x1c3   :  { %v3009_v10 = vadd.f32 %v3008_v9, %v5769_v24 }
 0x1c4   :  { %v3010_v11 = vpop.f32.mrf.mxu0  ;;  %v3049_v50 = vpop.f32.mrf.mxu1 }
 0x1c5   :  { %v3011_v12 = vadd.f32 %v3010_v11, %v5777_v28  ;;  %v3050_v13 = vadd.f32 %v3049_v50, %v3009_v10 }
 0x1c6   :  { %v3012_v14 = vpop.f32.mrf.mxu0  ;;  %v3051_v15 = vpop.f32.mrf.mxu1 }
 0x1c7   :  { %v3052_v55 = vadd.f32 %v3051_v15, %v3011_v12 }
 0x1c8   :  { %v3013_v18 = vpop.f32.mrf.mxu0  ;;  %v3053_v19 = vpop.f32.mrf.mxu1 }
 0x1ca   :  { %v3054_v20 = vpop.f32.mrf.mxu1 }
 0x202   :  { %v3090_v23 = vpop.f32.mrf.mxu0 }
 0x203   :  { %v3091_v4 = vadd.f32 %v3090_v23, %v3050_v13 }
 0x204   :  { %v3092_v17 = vpop.f32.mrf.mxu0  ;;  %v3131_v5 = vpop.f32.mrf.mxu1 }
 0x205   :  { %v3093_v25 = vadd.f32 %v3092_v17, %v3052_v55  ;;  %v3132_v26 = vadd.f32 %v3131_v5, %v3091_v4 }
 0x206   :  { %v3094_v27 = vpop.f32.mrf.mxu0  ;;  %v3133_v8 = vpop.f32.mrf.mxu1 }
 0x207   :  { %v3134_v24 = vadd.f32 %v3133_v8, %v3093_v25 }
 0x208   :  { %v3095_v21 = vpop.f32.mrf.mxu0  ;;  %v3135_v30 = vpop.f32.mrf.mxu1 }
 0x20a   :  { %v3136_v31 = vpop.f32.mrf.mxu1 }
 0x242   :  { %v3172_v28 = vpop.f32.mrf.mxu0 }
 0x243   :  { %v3173_v42 = vadd.f32 %v3172_v28, %v3132_v26 }
 0x244   :  { %v3174_v32 = vpop.f32.mrf.mxu0  ;;  %v3213_v34 = vpop.f32.mrf.mxu1 }
 0x245   :  { %v3175_v43 = vadd.f32 %v3174_v32, %v3134_v24  ;;  %v3214_v44 = vadd.f32 %v3213_v34, %v3173_v42 }
 0x246   :  { %v3176_v35 = vpop.f32.mrf.mxu0  ;;  %v3215_v36 = vpop.f32.mrf.mxu1 }
 0x247   :  { %v3216_v46 = vadd.f32 %v3215_v36, %v3175_v43 }
 0x248   :  { %v3177_v37 = vpop.f32.mrf.mxu0  ;;  %v3217_v16 = vpop.f32.mrf.mxu1 }
 0x24a   :  { %v3218_v38 = vpop.f32.mrf.mxu1 }
 0x264   :  { %v3295_v39 = vpop.f32.mrf.mxu1 }
 0x266   :  { %v3297_v40 = vpop.f32.mrf.mxu1 }
 0x268   :  { %v3299_v41 = vpop.f32.mrf.mxu1 }
 0x26a   :  { %v3300_v22 = vpop.f32.mrf.mxu1 }
 0x282   :  { %v3254_v45 = vpop.f32.mrf.mxu0 }
 0x283   :  { %v3255_v47 = vadd.f32 %v3254_v45, %v3214_v44 }
 0x284   :  { %v3256_v49 = vpop.f32.mrf.mxu0 }
 0x285   :  { %v3296_v51 = vadd.f32 %v3295_v39, %v3255_v47  ;;  %v3257_v52 = vadd.f32 %v3256_v49, %v3216_v46 }
 0x286   :  { %v3258_v53 = vpop.f32.mrf.mxu0 }
 0x287   :  { %v3298_v56 = vadd.f32 %v3297_v40, %v3257_v52  ;;  %v3302_v29 = vmax.f32 %v3296_v51, 0.0 }
 0x288   :  { %v3259_v57 = vpop.f32.mrf.mxu0 }
 0x289   :  { %v3303_v58 = vmax.f32 %v3298_v56, 0.0 }
 0x28b   :  { %v3777_v59 = vpack.c.bf16 %v3303_v58, %v3302_v29 }
 0x28d   :  { %3312 = vst [vmem:[%s5906_s3] sm:$0xff] %v3777_v59 }

// kernel: alexnet_forward.14
= control target key start
LH: loop header
LB: loop body
LE: loop exit
PB: predicated region body
PF: predicated region fallthrough
CT: control target
= control target key end

     0   :  { %vm7509_vm0 = vmmov 0   ;;  %s9754_s1 = inlined_call_operand.vmem [shape: bf16[3456,384], index: 1, kind: input, shape index: {}]   ;;  %s9755_s0 = inlined_call_operand.vmem [shape: bf16[8,3456], index: 0, kind: input, shape index: {}]   ;;  %s9756_s2 = inlined_call_operand.vmem [shape: f32[1,384], index: 2, kind: input, shape index: {}]   ;;  %s9757_s3 = inlined_call_operand.vmem [shape: bf16[8,384], index: 3, kind: output, shape index: {}]  }
   0x1   :  { %v6614_v0 = vld [vmem:[%s9754_s1 + $0xac] ss:$12 sps:$4 sm:$0xff]   ;;  %v6616_v1 = vld [vmem:[%s9754_s1 + $0xa8] ss:$12 sps:$4 sm:$0xff]   ;;  %v6622_v5 = vld [vmem:[%s9754_s1 + $0x90] ss:$12 sps:$4 sm:$0xff]  }
   0x2   :  { %4461 = vmatprep.subr.bf16.mxu0 %v6614_v0  ;;  %v6617_v2 = vld [vmem:[%s9754_s1 + $0x22c] ss:$12 sps:$4 sm:$0xff]   ;;  %v6619_v3 = vld [vmem:[%s9754_s1 + $0x228] ss:$12 sps:$4 sm:$0xff]   ;;  %v6625_v7 = vld [vmem:[%s9754_s1 + $0x210] ss:$12 sps:$4 sm:$0xff]  }
   0x3   :  { %4462 = vmatpush1.bf16.msra.mxu0 %v6616_v1  ;;  %v6620_v4 = vld [vmem:[%s9754_s1 + $0x94] ss:$12 sps:$4 sm:$0xff]   ;;  %4502 = vmatprep.subr.bf16.mxu1 %v6617_v2  ;;  %v6626_v8 = vld [vmem:[%s9754_s1 + $0x7c] ss:$12 sps:$4 sm:$0xff]   ;;  %v6628_v9 = vld [vmem:[%s9754_s1 + $0x78] ss:$12 sps:$4 sm:$0xff]  }
   0x4   :  { %v6623_v6 = vld [vmem:[%s9754_s1 + $0x214] ss:$12 sps:$4 sm:$0xff]   ;;  %4503 = vmatpush1.bf16.msra.mxu1 %v6619_v3  ;;  %4463 = vmatprep.subr.bf16.mxu0 %v6620_v4  ;;  %v6629_v10 = vld [vmem:[%s9754_s1 + $0x1fc] ss:$12 sps:$4 sm:$0xff]   ;;  %v6632_v11 = vld [vmem:[%s9754_s1 + $0x64] ss:$12 sps:$4 sm:$0xff]  }
   0x5   :  { %4504 = vmatprep.subr.bf16.mxu1 %v6623_v6  ;;  %v6631_v12 = vld [vmem:[%s9754_s1 + $0x1f8] ss:$12 sps:$4 sm:$0xff]   ;;  %v6634_v14 = vld [vmem:[%s9754_s1 + $0x60] ss:$12 sps:$4 sm:$0xff]   ;;  %v6640_v18 = vld [vmem:[%s9754_s1 + $0x48] ss:$12 sps:$4 sm:$0xff]  }
   0x6   :  { %v6635_v13 = vld [vmem:[%s9754_s1 + $0x1e4] ss:$12 sps:$4 sm:$0xff]   ;;  %v6638_v15 = vld [vmem:[%s9754_s1 + $0x4c] ss:$12 sps:$4 sm:$0xff]   ;;  %v6644_v19 = vld [vmem:[%s9754_s1 + $0x34] ss:$12 sps:$4 sm:$0xff]  }
   0x7   :  { %4464 = vmatpush1.bf16.msra.mxu0 %v6622_v5  ;;  %v6637_v16 = vld [vmem:[%s9754_s1 + $0x1e0] ss:$12 sps:$4 sm:$0xff]   ;;  %v6643_v20 = vld [vmem:[%s9754_s1 + $0x1c8] ss:$12 sps:$4 sm:$0xff]   ;;  %v6646_v22 = vld [vmem:[%s9754_s1 + $0x30] ss:$12 sps:$4 sm:$0xff]  }
   0x8   :  { %4465 = vmatprep.subr.bf16.mxu0 %v6626_v8  ;;  %4505 = vmatpush1.bf16.msra.mxu1 %v6625_v7  ;;  %v6641_v17 = vld [vmem:[%s9754_s1 + $0x1cc] ss:$12 sps:$4 sm:$0xff]   ;;  %v6647_v21 = vld [vmem:[%s9754_s1 + $0x1b4] ss:$12 sps:$4 sm:$0xff]   ;;  %v6650_v23 = vld [vmem:[%s9754_s1 + $0x1c] ss:$12 sps:$4 sm:$0xff]  }
   0x9   :  { %4506 = vmatprep.subr.bf16.mxu1 %v6629_v10  ;;  %v6649_v24 = vld [vmem:[%s9754_s1 + $0x1b0] ss:$12 sps:$4 sm:$0xff]   ;;  %v6652_v26 = vld [vmem:[%s9754_s1 + $0x18] ss:$12 sps:$4 sm:$0xff]   ;;  %v6658_v30 = vld [vmem:[%s9754_s1] ss:$12 sps:$4 sm:$0xff]  }
   0xa   :  { %v6653_v25 = vld [vmem:[%s9754_s1 + $0x19c] ss:$12 sps:$4 sm:$0xff]   ;;  %v6656_v27 = vld [vmem:[%s9754_s1 + $0x4] ss:$12 sps:$4 sm:$0xff]   ;;  %v6662_v31 = vld [vmem:[%s9754_s1 + $0x16c] ss:$12 sps:$4 sm:$0xff]  }
   0xb   :  { %4466 = vmatpush1.bf16.msra.mxu0 %v6628_v9  ;;  %v6655_v28 = vld [vmem:[%s9754_s1 + $0x198] ss:$12 sps:$4 sm:$0xff]   ;;  %v6661_v32 = vld [vmem:[%s9754_s1 + $0x180] ss:$12 sps:$4 sm:$0xff]   ;;  %v6664_v34 = vld [vmem:[%s9754_s1 + $0x168] ss:$12 sps:$4 sm:$0xff]  }
   0xc   :  { %4467 = vmatprep.subr.bf16.mxu0 %v6632_v11  ;;  %4507 = vmatpush1.bf16.msra.mxu1 %v6631_v12  ;;  %v6659_v29 = vld [vmem:[%s9754_s1 + $0x184] ss:$12 sps:$4 sm:$0xff]   ;;  %v6665_v33 = vld [vmem:[%s9754_s1 + $0x2ec] ss:$12 sps:$4 sm:$0xff]   ;;  %v6668_v35 = vld [vmem:[%s9754_s1 + $0x154] ss:$12 sps:$4 sm:$0xff]  }
   0xd   :  { %4508 = vmatprep.subr.bf16.mxu1 %v6635_v13  ;;  %v6667_v36 = vld [vmem:[%s9754_s1 + $0x2e8] ss:$12 sps:$4 sm:$0xff]   ;;  %v6670_v38 = vld [vmem:[%s9754_s1 + $0x150] ss:$12 sps:$4 sm:$0xff]   ;;  %v6676_v42 = vld [vmem:[%s9754_s1 + $0x138] ss:$12 sps:$4 sm:$0xff]  }
   0xe   :  { %v6671_v37 = vld [vmem:[%s9754_s1 + $0x2d4] ss:$12 sps:$4 sm:$0xff]   ;;  %v6674_v39 = vld [vmem:[%s9754_s1 + $0x13c] ss:$12 sps:$4 sm:$0xff]   ;;  %v6680_v43 = vld [vmem:[%s9754_s1 + $0x124] ss:$12 sps:$4 sm:$0xff]  }
   0xf   :  { %4468 = vmatpush1.bf16.msra.mxu0 %v6634_v14  ;;  %v6673_v40 = vld [vmem:[%s9754_s1 + $0x2d0] ss:$12 sps:$4 sm:$0xff]   ;;  %v6679_v44 = vld [vmem:[%s9754_s1 + $0x2b8] ss:$12 sps:$4 sm:$0xff]   ;;  %v6682_v47 = vld [vmem:[%s9754_s1 + $0x120] ss:$12 sps:$4 sm:$0xff]  }
  0x10   :  { %4469 = vmatprep.subr.bf16.mxu0 %v6638_v15  ;;  %4509 = vmatpush1.bf16.msra.mxu1 %v6637_v16  ;;  %v6677_v41 = vld [vmem:[%s9754_s1 + $0x2bc] ss:$12 sps:$4 sm:$0xff]   ;;  %v6683_v45 = vld [vmem:[%s9754_s1 + $0x2a4] ss:$12 sps:$4 sm:$0xff]   ;;  %v6686_v49 = vld [vmem:[%s9754_s1 + $0x10c] ss:$12 sps:$4 sm:$0xff]  }
  0x11   :  { %4510 = vmatprep.subr.bf16.mxu1 %v6641_v17  ;;  %v15_v46 = vld [vmem:[%s9755_s0] sm:$0xff]  ;;  %v16_v50 = vld [vmem:[%s9755_s0 + $0x8] sm:$0xff]  ;;  %v6694_v58 = vld [vmem:[%s9754_s1 + $0xf0] ss:$12 sps:$4 sm:$0xff]  }
  0x12   :  { %v7674_v48 = vcombine.high %v15_v46, %v15_v46  ;;  %v6685_v51 = vld [vmem:[%s9754_s1 + $0x2a0] ss:$12 sps:$4 sm:$0xff]   ;;  %v7686_v52 = vcombine.high %v16_v50, %v16_v50  ;;  %v6688_v54 = vld [vmem:[%s9754_s1 + $0x108] ss:$12 sps:$4 sm:$0xff]   ;;  %v6697_v60 = vld [vmem:[%s9754_s1 + $0x270] ss:$12 sps:$4 sm:$0xff]   ;;  %v7737_v5 = vcombine.low %v15_v46, %v15_v46  ;;  %v7745_v8 = vcombine.low %v16_v50, %v16_v50 }
  0x13   :  { %4470 = vmatpush1.bf16.msra.mxu0 %v6640_v18  ;;  %v6689_v53 = vld [vmem:[%s9754_s1 + $0x28c] ss:$12 sps:$4 sm:$0xff]   ;;  %v6692_v55 = vld [vmem:[%s9754_s1 + $0xf4] ss:$12 sps:$4 sm:$0xff]   ;;  %v6698_v59 = vld [vmem:[%s9754_s1 + $0xdc] ss:$12 sps:$4 sm:$0xff]  }
  0x14   :  { %4471 = vmatprep.subr.bf16.mxu0 %v6644_v19  ;;  %4511 = vmatpush1.bf16.msra.mxu1 %v6643_v20  ;;  %v6691_v56 = vld [vmem:[%s9754_s1 + $0x288] ss:$12 sps:$4 sm:$0xff]   ;;  %v6700_v62 = vld [vmem:[%s9754_s1 + $0xd8] ss:$12 sps:$4 sm:$0xff]   ;;  %v6706_v2 = vld [vmem:[%s9754_s1 + $0xc0] ss:$12 sps:$4 sm:$0xff]  }
  0x15   :  { %4512 = vmatprep.subr.bf16.mxu1 %v6647_v21  ;;  %4493 = vmatprep.mubr.bf16.mxu0 %v7674_v48  ;;  %v6695_v57 = vld [vmem:[%s9754_s1 + $0x274] ss:$12 sps:$4 sm:$0xff]   ;;  %v6701_v61 = vld [vmem:[%s9754_s1 + $0x25c] ss:$12 sps:$4 sm:$0xff]   ;;  %v6704_v63 = vld [vmem:[%s9754_s1 + $0xc4] ss:$12 sps:$4 sm:$0xff]  }
  0x16   :  { %4534 = vmatprep.mubr.bf16.mxu1 %v7686_v52  ;;  %v6703_v0 = vld [vmem:[%s9754_s1 + $0x258] ss:$12 sps:$4 sm:$0xff]   ;;  %v6711_v4 = vld [vmem:[%s9754_s1 + $0x240] ss:$12 sps:$4 sm:$0xff]   ;;  %v6712_v7 = vld [vmem:[%s9754_s1 + $0x3a8] ss:$12 sps:$4 sm:$0xff]  }
  0x17   :  { %4472 = vmatpush1.bf16.msra.mxu0 %v6646_v22  ;;  %v6707_v1 = vld [vmem:[%s9754_s1 + $0x244] ss:$12 sps:$4 sm:$0xff]   ;;  %v6714_v3 = vld [vmem:[%s9754_s1 + $0x3ac] ss:$12 sps:$4 sm:$0xff]   ;;  %v6722_v9 = vld [vmem:[%s9754_s1 + $0x394] ss:$12 sps:$4 sm:$0xff]  }
  0x18   :  { %4473 = vmatprep.subr.bf16.mxu0 %v6650_v23  ;;  %4513 = vmatpush1.bf16.msra.mxu1 %v6649_v24  ;;  %v6719_v6 = vld [vmem:[%s9754_s1 + $0x52c] ss:$12 sps:$4 sm:$0xff]   ;;  %v6717_v10 = vld [vmem:[%s9754_s1 + $0x528] ss:$12 sps:$4 sm:$0xff]   ;;  %v6720_v12 = vld [vmem:[%s9754_s1 + $0x390] ss:$12 sps:$4 sm:$0xff]  }
  0x19   :  { %4514 = vmatprep.subr.bf16.mxu1 %v6653_v25  ;;  %v6725_v11 = vld [vmem:[%s9754_s1 + $0x514] ss:$12 sps:$4 sm:$0xff]   ;;  %v6728_v13 = vld [vmem:[%s9754_s1 + $0x37c] ss:$12 sps:$4 sm:$0xff]   ;;  %v6726_v16 = vld [vmem:[%s9754_s1 + $0x378] ss:$12 sps:$4 sm:$0xff]  }
  0x1a   :  { %v6723_v14 = vld [vmem:[%s9754_s1 + $0x510] ss:$12 sps:$4 sm:$0xff]   ;;  %v6729_v18 = vld [vmem:[%s9754_s1 + $0x4f8] ss:$12 sps:$4 sm:$0xff]   ;;  %v6732_v20 = vld [vmem:[%s9754_s1 + $0x360] ss:$12 sps:$4 sm:$0xff]  }
  0x1b   :  { %4474 = vmatpush1.bf16.msra.mxu0 %v6652_v26  ;;  %v6731_v15 = vld [vmem:[%s9754_s1 + $0x4fc] ss:$12 sps:$4 sm:$0xff]   ;;  %v6734_v17 = vld [vmem:[%s9754_s1 + $0x364] ss:$12 sps:$4 sm:$0xff]   ;;  %v6740_v21 = vld [vmem:[%s9754_s1 + $0x34c] ss:$12 sps:$4 sm:$0xff]  }
  0x1c   :  { %4475 = vmatprep.subr.bf16.mxu0 %v6656_v27  ;;  %4515 = vmatpush1.bf16.msra.mxu1 %v6655_v28  ;;  %v6737_v19 = vld [vmem:[%s9754_s1 + $0x4e4] ss:$12 sps:$4 sm:$0xff]   ;;  %v6735_v22 = vld [vmem:[%s9754_s1 + $0x4e0] ss:$12 sps:$4 sm:$0xff]   ;;  %v6738_v24 = vld [vmem:[%s9754_s1 + $0x348] ss:$12 sps:$4 sm:$0xff]  }
  0x1d   :  { %4516 = vmatprep.subr.bf16.mxu1 %v6659_v29  ;;  %v6743_v23 = vld [vmem:[%s9754_s1 + $0x4cc] ss:$12 sps:$4 sm:$0xff]   ;;  %v6746_v25 = vld [vmem:[%s9754_s1 + $0x334] ss:$12 sps:$4 sm:$0xff]   ;;  %v6744_v28 = vld [vmem:[%s9754_s1 + $0x330] ss:$12 sps:$4 sm:$0xff]  }
  0x1e   :  { %v6741_v26 = vld [vmem:[%s9754_s1 + $0x4c8] ss:$12 sps:$4 sm:$0xff]  }
  0x1f   :  { %4476 = vmatpush1.bf16.msra.mxu0 %v6658_v30  ;;  %v6749_v27 = vld [vmem:[%s9754_s1 + $0x4b4] ss:$12 sps:$4 sm:$0xff]   ;;  %v6752_v29 = vld [vmem:[%s9754_s1 + $0x31c] ss:$12 sps:$4 sm:$0xff]  }
  0x20   :  { %4477 = vmatprep.subr.bf16.mxu0 %v6662_v31  ;;  %4517 = vmatpush1.bf16.msra.mxu1 %v6661_v32  ;;  %v6747_v30 = vld [vmem:[%s9754_s1 + $0x4b0] ss:$12 sps:$4 sm:$0xff]   ;;  %v6765_v46 = vld [vmem:[%s9754_s1 + $0x5e8] ss:$12 sps:$4 sm:$0xff]  }
  0x21   :  { %4518 = vmatprep.subr.bf16.mxu1 %v6665_v33  ;;  %v6755_v31 = vld [vmem:[%s9754_s1 + $0x49c] ss:$12 sps:$4 sm:$0xff]   ;;  %v7821_v32 = vld [vmem:[%s9755_s0 + $0x10] sm:$0xff]  ;;  %v6750_v33 = vld [vmem:[%s9754_s1 + $0x318] ss:$12 sps:$4 sm:$0xff]  }
  0x22   :  { %v6776_v50 = vld [vmem:[%s9754_s1 + $0x43c] ss:$12 sps:$4 sm:$0xff]  }
  0x23   :  { %4478 = vmatpush2.bf16.msra.mxu0 %v6664_v34  ;;  %v7828_v34 = vcombine.high %v7821_v32, %v7821_v32 }
  0x24   :  { %4479 = vmatprep.subr.bf16.mxu0 %v6668_v35  ;;  %4519 = vmatpush2.bf16.msra.mxu1 %v6667_v36  ;;  %v7833_v35 = vld [vmem:[%s9755_s0 + $0x18] sm:$0xff]  ;;  %v6758_v36 = vld [vmem:[%s9754_s1 + $0x304] ss:$12 sps:$4 sm:$0xff]  }
  0x25   :  { %4520 = vmatprep.subr.bf16.mxu1 %v6671_v37  ;;  %v7840_v37 = vcombine.high %v7833_v35, %v7833_v35 }
  0x27   :  { %4480 = vmatpush2.bf16.msra.mxu0 %v6670_v38  ;;  %v6753_v38 = vld [vmem:[%s9754_s1 + $0x498] ss:$12 sps:$4 sm:$0xff]  }
  0x28   :  { %4481 = vmatprep.subr.bf16.mxu0 %v6674_v39  ;;  %4521 = vmatpush2.bf16.msra.mxu1 %v6673_v40  ;;  %v6761_v39 = vld [vmem:[%s9754_s1 + $0x484] ss:$12 sps:$4 sm:$0xff]   ;;  %v6756_v40 = vld [vmem:[%s9754_s1 + $0x300] ss:$12 sps:$4 sm:$0xff]  }
  0x29   :  { %4522 = vmatprep.subr.bf16.mxu1 %v6677_v41  ;;  %v6764_v41 = vld [vmem:[%s9754_s1 + $0x46c] ss:$12 sps:$4 sm:$0xff]  }
  0x2b   :  { %4482 = vmatpush2.bf16.msra.mxu0 %v6676_v42  ;;  %v6759_v42 = vld [vmem:[%s9754_s1 + $0x480] ss:$12 sps:$4 sm:$0xff]  }
  0x2c   :  { %4483 = vmatprep.subr.bf16.mxu0 %v6680_v43  ;;  %4523 = vmatpush2.bf16.msra.mxu1 %v6679_v44  ;;  %v6767_v43 = vld [vmem:[%s9754_s1 + $0x5ec] ss:$12 sps:$4 sm:$0xff]   ;;  %v6762_v44 = vld [vmem:[%s9754_s1 + $0x468] ss:$12 sps:$4 sm:$0xff]  }
  0x2d   :  { %4524 = vmatprep.subr.bf16.mxu1 %v6683_v45  ;;  %v6770_v45 = vld [vmem:[%s9754_s1 + $0x454] ss:$12 sps:$4 sm:$0xff]  }
  0x2f   :  { %4484 = vmatpush2.bf16.msra.mxu0 %v6682_v47  ;;  %v6773_v47 = vld [vmem:[%s9754_s1 + $0x5d4] ss:$12 sps:$4 sm:$0xff]  }
  0x30   :  { %4485 = vmatprep.subr.bf16.mxu0 %v6686_v49  ;;  %4525 = vmatpush2.bf16.msra.mxu1 %v6685_v51  ;;  %v6768_v49 = vld [vmem:[%s9754_s1 + $0x450] ss:$12 sps:$4 sm:$0xff]  }
  0x31   :  { %4526 = vmatprep.subr.bf16.mxu1 %v6689_v53  ;;  %v6771_v51 = vld [vmem:[%s9754_s1 + $0x5d0] ss:$12 sps:$4 sm:$0xff]  }
  0x32   :  { %v6779_v53 = vld [vmem:[%s9754_s1 + $0x5bc] ss:$12 sps:$4 sm:$0xff]  }
  0x33   :  { %4486 = vmatpush2.bf16.msra.mxu0 %v6688_v54  ;;  %v6774_v54 = vld [vmem:[%s9754_s1 + $0x438] ss:$12 sps:$4 sm:$0xff]  }
  0x34   :  { %4487 = vmatprep.subr.bf16.mxu0 %v6692_v55  ;;  %4527 = vmatpush2.bf16.msra.mxu1 %v6691_v56  ;;  %v6782_v55 = vld [vmem:[%s9754_s1 + $0x424] ss:$12 sps:$4 sm:$0xff]  }
  0x35   :  { %4528 = vmatprep.subr.bf16.mxu1 %v6695_v57  ;;  %v6777_v56 = vld [vmem:[%s9754_s1 + $0x5b8] ss:$12 sps:$4 sm:$0xff]  }
  0x36   :  { %v6785_v57 = vld [vmem:[%s9754_s1 + $0x5a4] ss:$12 sps:$4 sm:$0xff]  }
  0x37   :  { %4488 = vmatpush2.bf16.msra.mxu0 %v6694_v58  ;;  %v6780_v58 = vld [vmem:[%s9754_s1 + $0x420] ss:$12 sps:$4 sm:$0xff]  }
  0x38   :  { %4489 = vmatprep.subr.bf16.mxu0 %v6698_v59  ;;  %4529 = vmatpush2.bf16.msra.mxu1 %v6697_v60  ;;  %v6788_v59 = vld [vmem:[%s9754_s1 + $0x40c] ss:$12 sps:$4 sm:$0xff]  }
  0x39   :  { %4530 = vmatprep.subr.bf16.mxu1 %v6701_v61  ;;  %v6783_v60 = vld [vmem:[%s9754_s1 + $0x5a0] ss:$12 sps:$4 sm:$0xff]  }
  0x3a   :  { %v6791_v61 = vld [vmem:[%s9754_s1 + $0x58c] ss:$12 sps:$4 sm:$0xff]  }
  0x3b   :  { %4490 = vmatpush2.bf16.msra.mxu0 %v6700_v62  ;;  %v6786_v62 = vld [vmem:[%s9754_s1 + $0x408] ss:$12 sps:$4 sm:$0xff]  }
  0x3c   :  { %4491 = vmatprep.subr.bf16.mxu0 %v6704_v63  ;;  %4531 = vmatpush2.bf16.msra.mxu1 %v6703_v0  ;;  %v6794_v63 = vld [vmem:[%s9754_s1 + $0x3f4] ss:$12 sps:$4 sm:$0xff]  }
  0x3d   :  { %4532 = vmatprep.subr.bf16.mxu1 %v6707_v1  ;;  %v6789_v0 = vld [vmem:[%s9754_s1 + $0x588] ss:$12 sps:$4 sm:$0xff]  }
  0x3e   :  { %v6797_v1 = vld [vmem:[%s9754_s1 + $0x574] ss:$12 sps:$4 sm:$0xff]  }
  0x3f   :  { %4492 = vmatpush2.bf16.msra.mxu0 %v6706_v2  ;;  %v6792_v2 = vld [vmem:[%s9754_s1 + $0x3f0] ss:$12 sps:$4 sm:$0xff]  }
  0x40   :  { %4543 = vmatprep.subr.bf16.mxu0 %v6714_v3  ;;  %4533 = vmatpush2.bf16.msra.mxu1 %v6711_v4  ;;  %v6800_v3 = vld [vmem:[%s9754_s1 + $0x3dc] ss:$12 sps:$4 sm:$0xff]  }
  0x41   :  { %4584 = vmatprep.subr.bf16.mxu1 %v6719_v6  ;;  %v6795_v4 = vld [vmem:[%s9754_s1 + $0x570] ss:$12 sps:$4 sm:$0xff]  }
  0x42   :  { %4494 = vmatmul.mubr.bf16.vlgmr.msra.gmra.mxu0 %v7737_v5  ;;  %v6803_v6 = vld [vmem:[%s9754_s1 + $0x55c] ss:$12 sps:$4 sm:$0xff]  }
  0x43   :  { %4544 = vmatpush1.bf16.msra.mxu0 %v6712_v7  ;;  %4535 = vmatmul.mubr.bf16.vlgmr.msra.gmra.mxu1 %v7745_v8  ;;  %v6798_v7 = vld [vmem:[%s9754_s1 + $0x3d8] ss:$12 sps:$4 sm:$0xff]  }
  0x44   :  { %4545 = vmatprep.subr.bf16.mxu0 %v6722_v9  ;;  %4585 = vmatpush1.bf16.msra.mxu1 %v6717_v10  ;;  %v6806_v9 = vld [vmem:[%s9754_s1 + $0x3c4] ss:$12 sps:$4 sm:$0xff]  }
  0x45   :  { %4586 = vmatprep.subr.bf16.mxu1 %v6725_v11  ;;  %4575 = vmatprep.mubr.bf16.mxu0 %v7828_v34  ;;  %v6801_v10 = vld [vmem:[%s9754_s1 + $0x558] ss:$12 sps:$4 sm:$0xff]  }
  0x46   :  { %4616 = vmatprep.mubr.bf16.mxu1 %v7840_v37  ;;  %v6809_v11 = vld [vmem:[%s9754_s1 + $0x544] ss:$12 sps:$4 sm:$0xff]  }
  0x47   :  { %4546 = vmatpush1.bf16.msra.mxu0 %v6720_v12  ;;  %v6804_v12 = vld [vmem:[%s9754_s1 + $0x3c0] ss:$12 sps:$4 sm:$0xff]  }
  0x48   :  { %4547 = vmatprep.subr.bf16.mxu0 %v6728_v13  ;;  %4587 = vmatpush1.bf16.msra.mxu1 %v6723_v14  ;;  %v6814_v13 = vld [vmem:[%s9754_s1 + $0x6ac] ss:$12 sps:$4 sm:$0xff]  }
  0x49   :  { %4588 = vmatprep.subr.bf16.mxu1 %v6731_v15  ;;  %v6807_v14 = vld [vmem:[%s9754_s1 + $0x540] ss:$12 sps:$4 sm:$0xff]   ;;  %v7957_v15 = vcombine.low %v7821_v32, %v7821_v32  ;;  %v6829_v32 = vld [vmem:[%s9754_s1 + $0x7f8] ss:$12 sps:$4 sm:$0xff]  }
  0x4b   :  { %4548 = vmatpush1.bf16.msra.mxu0 %v6726_v16  ;;  %v6819_v16 = vld [vmem:[%s9754_s1 + $0x82c] ss:$12 sps:$4 sm:$0xff]  }
  0x4c   :  { %4549 = vmatprep.subr.bf16.mxu0 %v6734_v17  ;;  %4589 = vmatpush1.bf16.msra.mxu1 %v6729_v18  ;;  %v6812_v17 = vld [vmem:[%s9754_s1 + $0x6a8] ss:$12 sps:$4 sm:$0xff]   ;;  %v7967_v18 = vcombine.low %v7833_v35, %v7833_v35  ;;  %v6832_v35 = vld [vmem:[%s9754_s1 + $0x660] ss:$12 sps:$4 sm:$0xff]  }
  0x4d   :  { %4590 = vmatprep.subr.bf16.mxu1 %v6737_v19  ;;  %v6822_v19 = vld [vmem:[%s9754_s1 + $0x694] ss:$12 sps:$4 sm:$0xff]  }
  0x4f   :  { %4550 = vmatpush1.bf16.msra.mxu0 %v6732_v20  ;;  %v6817_v20 = vld [vmem:[%s9754_s1 + $0x828] ss:$12 sps:$4 sm:$0xff]  }
  0x50   :  { %4551 = vmatprep.subr.bf16.mxu0 %v6740_v21  ;;  %4591 = vmatpush1.bf16.msra.mxu1 %v6735_v22  ;;  %v7978_v21 = vld [vmem:[%s9755_s0 + $0x20] sm:$0xff]  ;;  %v6820_v22 = vld [vmem:[%s9754_s1 + $0x690] ss:$12 sps:$4 sm:$0xff]  }
  0x51   :  { %4592 = vmatprep.subr.bf16.mxu1 %v6743_v23  ;;  %v6825_v23 = vld [vmem:[%s9754_s1 + $0x814] ss:$12 sps:$4 sm:$0xff]  }
  0x53   :  { %4552 = vmatpush1.bf16.msra.mxu0 %v6738_v24  ;;  %v7989_v24 = vcombine.high %v7978_v21, %v7978_v21 }
  0x54   :  { %4553 = vmatprep.subr.bf16.mxu0 %v6746_v25  ;;  %4593 = vmatpush1.bf16.msra.mxu1 %v6741_v26  ;;  %v7994_v25 = vld [vmem:[%s9755_s0 + $0x28] sm:$0xff] }
  0x55   :  { %4594 = vmatprep.subr.bf16.mxu1 %v6749_v27  ;;  %v6828_v26 = vld [vmem:[%s9754_s1 + $0x67c] ss:$12 sps:$4 sm:$0xff]   ;;  %v8002_v27 = vcombine.high %v7994_v25, %v7994_v25 }
  0x57   :  { %4554 = vmatpush1.bf16.msra.mxu0 %v6744_v28  ;;  %v6823_v28 = vld [vmem:[%s9754_s1 + $0x810] ss:$12 sps:$4 sm:$0xff]  }
  0x58   :  { %4555 = vmatprep.subr.bf16.mxu0 %v6752_v29  ;;  %4595 = vmatpush1.bf16.msra.mxu1 %v6747_v30  ;;  %v6831_v29 = vld [vmem:[%s9754_s1 + $0x7fc] ss:$12 sps:$4 sm:$0xff]   ;;  %v6826_v30 = vld [vmem:[%s9754_s1 + $0x678] ss:$12 sps:$4 sm:$0xff]  }
  0x59   :  { %4596 = vmatprep.subr.bf16.mxu1 %v6755_v31  ;;  %v6834_v31 = vld [vmem:[%s9754_s1 + $0x664] ss:$12 sps:$4 sm:$0xff]  }
  0x5b   :  { %4556 = vmatpush1.bf16.msra.mxu0 %v6750_v33  ;;  %v6837_v33 = vld [vmem:[%s9754_s1 + $0x7e4] ss:$12 sps:$4 sm:$0xff]  }
  0x5c   :  { %4557 = vmatprep.subr.bf16.mxu0 %v6758_v36  ;;  %4597 = vmatpush1.bf16.msra.mxu1 %v6753_v38  ;;  %v6840_v36 = vld [vmem:[%s9754_s1 + $0x64c] ss:$12 sps:$4 sm:$0xff]  }
  0x5d   :  { %4598 = vmatprep.subr.bf16.mxu1 %v6761_v39  ;;  %v6835_v38 = vld [vmem:[%s9754_s1 + $0x7e0] ss:$12 sps:$4 sm:$0xff]  }
  0x5e   :  { %v6843_v39 = vld [vmem:[%s9754_s1 + $0x7cc] ss:$12 sps:$4 sm:$0xff]  }
  0x5f   :  { %4558 = vmatpush1.bf16.msra.mxu0 %v6756_v40  ;;  %v6838_v40 = vld [vmem:[%s9754_s1 + $0x648] ss:$12 sps:$4 sm:$0xff]  }
  0x60   :  { %4559 = vmatprep.subr.bf16.mxu0 %v6764_v41  ;;  %4599 = vmatpush1.bf16.msra.mxu1 %v6759_v42  ;;  %v6846_v41 = vld [vmem:[%s9754_s1 + $0x634] ss:$12 sps:$4 sm:$0xff]  }
  0x61   :  { %4600 = vmatprep.subr.bf16.mxu1 %v6767_v43  ;;  %v6841_v42 = vld [vmem:[%s9754_s1 + $0x7c8] ss:$12 sps:$4 sm:$0xff]  }
  0x62   :  { %v6849_v43 = vld [vmem:[%s9754_s1 + $0x7b4] ss:$12 sps:$4 sm:$0xff]  }
  0x63   :  { %4560 = vmatpush2.bf16.msra.mxu0 %v6762_v44  ;;  %v6844_v44 = vld [vmem:[%s9754_s1 + $0x630] ss:$12 sps:$4 sm:$0xff]  }
  0x64   :  { %4561 = vmatprep.subr.bf16.mxu0 %v6770_v45  ;;  %4601 = vmatpush2.bf16.msra.mxu1 %v6765_v46  ;;  %v6852_v45 = vld [vmem:[%s9754_s1 + $0x61c] ss:$12 sps:$4 sm:$0xff]  }
  0x65   :  { %4602 = vmatprep.subr.bf16.mxu1 %v6773_v47  ;;  %v6847_v46 = vld [vmem:[%s9754_s1 + $0x7b0] ss:$12 sps:$4 sm:$0xff]  }
  0x66   :  { %v6855_v47 = vld [vmem:[%s9754_s1 + $0x79c] ss:$12 sps:$4 sm:$0xff]  }
  0x67   :  { %4562 = vmatpush2.bf16.msra.mxu0 %v6768_v49  ;;  %v6850_v49 = vld [vmem:[%s9754_s1 + $0x618] ss:$12 sps:$4 sm:$0xff]  }
  0x68   :  { %4563 = vmatprep.subr.bf16.mxu0 %v6776_v50  ;;  %4603 = vmatpush2.bf16.msra.mxu1 %v6771_v51  ;;  %v6858_v50 = vld [vmem:[%s9754_s1 + $0x604] ss:$12 sps:$4 sm:$0xff]  }
  0x69   :  { %4604 = vmatprep.subr.bf16.mxu1 %v6779_v53  ;;  %v6853_v51 = vld [vmem:[%s9754_s1 + $0x798] ss:$12 sps:$4 sm:$0xff]  }
  0x6a   :  { %v6861_v53 = vld [vmem:[%s9754_s1 + $0x784] ss:$12 sps:$4 sm:$0xff]  }
  0x6b   :  { %4564 = vmatpush2.bf16.msra.mxu0 %v6774_v54  ;;  %v6856_v54 = vld [vmem:[%s9754_s1 + $0x600] ss:$12 sps:$4 sm:$0xff]  }
  0x6c   :  { %4565 = vmatprep.subr.bf16.mxu0 %v6782_v55  ;;  %4605 = vmatpush2.bf16.msra.mxu1 %v6777_v56  ;;  %v6864_v55 = vld [vmem:[%s9754_s1 + $0x76c] ss:$12 sps:$4 sm:$0xff]  }
  0x6d   :  { %4606 = vmatprep.subr.bf16.mxu1 %v6785_v57  ;;  %v6859_v56 = vld [vmem:[%s9754_s1 + $0x780] ss:$12 sps:$4 sm:$0xff]  }
  0x6e   :  { %v6867_v57 = vld [vmem:[%s9754_s1 + $0x8ec] ss:$12 sps:$4 sm:$0xff]  }
  0x6f   :  { %4566 = vmatpush2.bf16.msra.mxu0 %v6780_v58  ;;  %v6862_v58 = vld [vmem:[%s9754_s1 + $0x768] ss:$12 sps:$4 sm:$0xff]  }
  0x70   :  { %4567 = vmatprep.subr.bf16.mxu0 %v6788_v59  ;;  %4607 = vmatpush2.bf16.msra.mxu1 %v6783_v60  ;;  %v6870_v59 = vld [vmem:[%s9754_s1 + $0x754] ss:$12 sps:$4 sm:$0xff]  }
  0x71   :  { %4608 = vmatprep.subr.bf16.mxu1 %v6791_v61  ;;  %v6865_v60 = vld [vmem:[%s9754_s1 + $0x8e8] ss:$12 sps:$4 sm:$0xff]  }
  0x72   :  { %v6873_v61 = vld [vmem:[%s9754_s1 + $0x8d4] ss:$12 sps:$4 sm:$0xff]  }
  0x73   :  { %4568 = vmatpush2.bf16.msra.mxu0 %v6786_v62  ;;  %v6868_v62 = vld [vmem:[%s9754_s1 + $0x750] ss:$12 sps:$4 sm:$0xff]  }
  0x74   :  { %4569 = vmatprep.subr.bf16.mxu0 %v6794_v63  ;;  %4609 = vmatpush2.bf16.msra.mxu1 %v6789_v0  ;;  %v6876_v63 = vld [vmem:[%s9754_s1 + $0x73c] ss:$12 sps:$4 sm:$0xff]  }
  0x75   :  { %4610 = vmatprep.subr.bf16.mxu1 %v6797_v1  ;;  %v6871_v0 = vld [vmem:[%s9754_s1 + $0x8d0] ss:$12 sps:$4 sm:$0xff]  }
  0x76   :  { %v6879_v1 = vld [vmem:[%s9754_s1 + $0x8bc] ss:$12 sps:$4 sm:$0xff]  }
  0x77   :  { %4570 = vmatpush2.bf16.msra.mxu0 %v6792_v2  ;;  %v6874_v2 = vld [vmem:[%s9754_s1 + $0x738] ss:$12 sps:$4 sm:$0xff]  }
  0x78   :  { %4571 = vmatprep.subr.bf16.mxu0 %v6800_v3  ;;  %4611 = vmatpush2.bf16.msra.mxu1 %v6795_v4  ;;  %v6882_v3 = vld [vmem:[%s9754_s1 + $0x724] ss:$12 sps:$4 sm:$0xff]  }
  0x79   :  { %4612 = vmatprep.subr.bf16.mxu1 %v6803_v6  ;;  %v6877_v4 = vld [vmem:[%s9754_s1 + $0x8b8] ss:$12 sps:$4 sm:$0xff]  }
  0x7a   :  { %v6885_v6 = vld [vmem:[%s9754_s1 + $0x8a4] ss:$12 sps:$4 sm:$0xff]  }
  0x7b   :  { %4572 = vmatpush2.bf16.msra.mxu0 %v6798_v7  ;;  %v6880_v7 = vld [vmem:[%s9754_s1 + $0x720] ss:$12 sps:$4 sm:$0xff]  }
  0x7c   :  { %4573 = vmatprep.subr.bf16.mxu0 %v6806_v9  ;;  %4613 = vmatpush2.bf16.msra.mxu1 %v6801_v10  ;;  %v6888_v9 = vld [vmem:[%s9754_s1 + $0x70c] ss:$12 sps:$4 sm:$0xff]  }
  0x7d   :  { %4614 = vmatprep.subr.bf16.mxu1 %v6809_v11  ;;  %v6883_v10 = vld [vmem:[%s9754_s1 + $0x8a0] ss:$12 sps:$4 sm:$0xff]  }
  0x7e   :  { %v6891_v11 = vld [vmem:[%s9754_s1 + $0x88c] ss:$12 sps:$4 sm:$0xff]  }
  0x7f   :  { %4574 = vmatpush2.bf16.msra.mxu0 %v6804_v12  ;;  %v6886_v12 = vld [vmem:[%s9754_s1 + $0x708] ss:$12 sps:$4 sm:$0xff]  }
  0x80   :  { %4625 = vmatprep.subr.bf16.mxu0 %v6814_v13  ;;  %4615 = vmatpush2.bf16.msra.mxu1 %v6807_v14  ;;  %v6894_v13 = vld [vmem:[%s9754_s1 + $0x6f4] ss:$12 sps:$4 sm:$0xff]  }
  0x81   :  { %4666 = vmatprep.subr.bf16.mxu1 %v6819_v16  ;;  %v6889_v14 = vld [vmem:[%s9754_s1 + $0x888] ss:$12 sps:$4 sm:$0xff]  }
  0x82   :  { %4576 = vmatmul.mubr.bf16.vlgmr.msra.gmra.mxu0 %v7957_v15  ;;  %v6897_v16 = vld [vmem:[%s9754_s1 + $0x874] ss:$12 sps:$4 sm:$0xff]  }
  0x83   :  { %4626 = vmatpush1.bf16.msra.mxu0 %v6812_v17  ;;  %4617 = vmatmul.mubr.bf16.vlgmr.msra.gmra.mxu1 %v7967_v18  ;;  %v6892_v17 = vld [vmem:[%s9754_s1 + $0x6f0] ss:$12 sps:$4 sm:$0xff]  }
  0x84   :  { %4627 = vmatprep.subr.bf16.mxu0 %v6822_v19  ;;  %4667 = vmatpush1.bf16.msra.mxu1 %v6817_v20  ;;  %v6900_v19 = vld [vmem:[%s9754_s1 + $0x6dc] ss:$12 sps:$4 sm:$0xff]  }
  0x85   :  { %4657 = vmatprep.mubr.bf16.mxu0 %v7989_v24  ;;  %4668 = vmatprep.subr.bf16.mxu1 %v6825_v23  ;;  %v6895_v20 = vld [vmem:[%s9754_s1 + $0x870] ss:$12 sps:$4 sm:$0xff]   ;;  %v6898_v23 = vld [vmem:[%s9754_s1 + $0x6d8] ss:$12 sps:$4 sm:$0xff]  }
  0x86   :  { %4698 = vmatprep.mubr.bf16.mxu1 %v8002_v27 }
  0x87   :  { %4628 = vmatpush1.bf16.msra.mxu0 %v6820_v22  ;;  %v6903_v22 = vld [vmem:[%s9754_s1 + $0x85c] ss:$12 sps:$4 sm:$0xff]  }
  0x88   :  { %4629 = vmatprep.subr.bf16.mxu0 %v6828_v26  ;;  %4669 = vmatpush1.bf16.msra.mxu1 %v6823_v28  ;;  %v6906_v26 = vld [vmem:[%s9754_s1 + $0x6c4] ss:$12 sps:$4 sm:$0xff]  }
  0x89   :  { %4670 = vmatprep.subr.bf16.mxu1 %v6831_v29  ;;  %v6901_v28 = vld [vmem:[%s9754_s1 + $0x858] ss:$12 sps:$4 sm:$0xff]   ;;  %v6904_v29 = vld [vmem:[%s9754_s1 + $0x6c0] ss:$12 sps:$4 sm:$0xff]  }
  0x8b   :  { %4630 = vmatpush1.bf16.msra.mxu0 %v6826_v30  ;;  %v6909_v30 = vld [vmem:[%s9754_s1 + $0x844] ss:$12 sps:$4 sm:$0xff]  }
  0x8c   :  { %4631 = vmatprep.subr.bf16.mxu0 %v6834_v31  ;;  %4671 = vmatpush1.bf16.msra.mxu1 %v6829_v32  ;;  %v6914_v31 = vld [vmem:[%s9754_s1 + $0x9ac] ss:$12 sps:$4 sm:$0xff]   ;;  %v8177_v32 = vld [vmem:[%s9755_s0 + $0x30] sm:$0xff] }
  0x8d   :  { %4672 = vmatprep.subr.bf16.mxu1 %v6837_v33  ;;  %v6907_v33 = vld [vmem:[%s9754_s1 + $0x840] ss:$12 sps:$4 sm:$0xff]  }
  0x8f   :  { %4632 = vmatpush1.bf16.msra.mxu0 %v6832_v35  ;;  %v8184_v35 = vcombine.low %v7978_v21, %v7978_v21  ;;  %v8203_v21 = vcombine.low %v7994_v25, %v7994_v25  ;;  %v6925_v25 = vld [vmem:[%s9754_s1 + $0xb14] ss:$12 sps:$4 sm:$0xff]  }
  0x90   :  { %4633 = vmatprep.subr.bf16.mxu0 %v6840_v36  ;;  %4673 = vmatpush1.bf16.msra.mxu1 %v6835_v38  ;;  %v6919_v36 = vld [vmem:[%s9754_s1 + $0xb2c] ss:$12 sps:$4 sm:$0xff]  }
  0x91   :  { %4674 = vmatprep.subr.bf16.mxu1 %v6843_v39  ;;  %v8192_v38 = vld [vmem:[%s9755_s0 + $0x38] sm:$0xff]  ;;  %v6912_v39 = vld [vmem:[%s9754_s1 + $0x9a8] ss:$12 sps:$4 sm:$0xff]  }
  0x93   :  { %4634 = vmatpush1.bf16.msra.mxu0 %v6838_v40  ;;  %v8199_v40 = vcombine.high %v8177_v32, %v8177_v32 }
  0x94   :  { %4635 = vmatprep.subr.bf16.mxu0 %v6846_v41  ;;  %4675 = vmatpush1.bf16.msra.mxu1 %v6841_v42  ;;  %v6922_v41 = vld [vmem:[%s9754_s1 + $0x994] ss:$12 sps:$4 sm:$0xff]  }
  0x95   :  { %4676 = vmatprep.subr.bf16.mxu1 %v6849_v43  ;;  %v6917_v42 = vld [vmem:[%s9754_s1 + $0xb28] ss:$12 sps:$4 sm:$0xff]   ;;  %v8213_v43 = vcombine.high %v8192_v38, %v8192_v38 }
  0x97   :  { %4636 = vmatpush1.bf16.msra.mxu0 %v6844_v44  ;;  %v6920_v44 = vld [vmem:[%s9754_s1 + $0x990] ss:$12 sps:$4 sm:$0xff]  }
  0x98   :  { %4637 = vmatprep.subr.bf16.mxu0 %v6852_v45  ;;  %4677 = vmatpush1.bf16.msra.mxu1 %v6847_v46  ;;  %v6928_v45 = vld [vmem:[%s9754_s1 + $0x97c] ss:$12 sps:$4 sm:$0xff]  }
  0x99   :  { %4678 = vmatprep.subr.bf16.mxu1 %v6855_v47  ;;  %v6923_v46 = vld [vmem:[%s9754_s1 + $0xb10] ss:$12 sps:$4 sm:$0xff]  }
  0x9a   :  { %v6931_v47 = vld [vmem:[%s9754_s1 + $0xafc] ss:$12 sps:$4 sm:$0xff]  }
  0x9b   :  { %4638 = vmatpush1.bf16.msra.mxu0 %v6850_v49  ;;  %v6926_v49 = vld [vmem:[%s9754_s1 + $0x978] ss:$12 sps:$4 sm:$0xff]  }
  0x9c   :  { %4639 = vmatprep.subr.bf16.mxu0 %v6858_v50  ;;  %4679 = vmatpush1.bf16.msra.mxu1 %v6853_v51  ;;  %v6934_v50 = vld [vmem:[%s9754_s1 + $0x964] ss:$12 sps:$4 sm:$0xff]  }
  0x9d   :  { %4680 = vmatprep.subr.bf16.mxu1 %v6861_v53  ;;  %v6929_v51 = vld [vmem:[%s9754_s1 + $0xaf8] ss:$12 sps:$4 sm:$0xff]  }
  0x9e   :  { %v6937_v53 = vld [vmem:[%s9754_s1 + $0xae4] ss:$12 sps:$4 sm:$0xff]  }
  0x9f   :  { %4640 = vmatpush1.bf16.msra.mxu0 %v6856_v54  ;;  %v6932_v54 = vld [vmem:[%s9754_s1 + $0x960] ss:$12 sps:$4 sm:$0xff]  }
  0xa0   :  { %4641 = vmatprep.subr.bf16.mxu0 %v6864_v55  ;;  %4681 = vmatpush1.bf16.msra.mxu1 %v6859_v56  ;;  %v6940_v55 = vld [vmem:[%s9754_s1 + $0x94c] ss:$12 sps:$4 sm:$0xff]  }
  0xa1   :  { %4682 = vmatprep.subr.bf16.mxu1 %v6867_v57  ;;  %v6935_v56 = vld [vmem:[%s9754_s1 + $0xae0] ss:$12 sps:$4 sm:$0xff]  }
  0xa2   :  { %v6943_v57 = vld [vmem:[%s9754_s1 + $0xacc] ss:$12 sps:$4 sm:$0xff]  }
  0xa3   :  { %4642 = vmatpush2.bf16.msra.mxu0 %v6862_v58  ;;  %v6938_v58 = vld [vmem:[%s9754_s1 + $0x948] ss:$12 sps:$4 sm:$0xff]  }
  0xa4   :  { %4643 = vmatprep.subr.bf16.mxu0 %v6870_v59  ;;  %4683 = vmatpush2.bf16.msra.mxu1 %v6865_v60  ;;  %v6946_v59 = vld [vmem:[%s9754_s1 + $0x934] ss:$12 sps:$4 sm:$0xff]  }
  0xa5   :  { %4684 = vmatprep.subr.bf16.mxu1 %v6873_v61  ;;  %v6941_v60 = vld [vmem:[%s9754_s1 + $0xac8] ss:$12 sps:$4 sm:$0xff]  }
  0xa6   :  { %v6949_v61 = vld [vmem:[%s9754_s1 + $0xab4] ss:$12 sps:$4 sm:$0xff]  }
  0xa7   :  { %4644 = vmatpush2.bf16.msra.mxu0 %v6868_v62  ;;  %v6944_v62 = vld [vmem:[%s9754_s1 + $0x930] ss:$12 sps:$4 sm:$0xff]  }
  0xa8   :  { %4645 = vmatprep.subr.bf16.mxu0 %v6876_v63  ;;  %4685 = vmatpush2.bf16.msra.mxu1 %v6871_v0  ;;  %v6952_v63 = vld [vmem:[%s9754_s1 + $0x91c] ss:$12 sps:$4 sm:$0xff]  }
  0xa9   :  { %4686 = vmatprep.subr.bf16.mxu1 %v6879_v1  ;;  %v6947_v0 = vld [vmem:[%s9754_s1 + $0xab0] ss:$12 sps:$4 sm:$0xff]  }
  0xaa   :  { %v6955_v1 = vld [vmem:[%s9754_s1 + $0xa9c] ss:$12 sps:$4 sm:$0xff]  }
  0xab   :  { %4646 = vmatpush2.bf16.msra.mxu0 %v6874_v2  ;;  %v6950_v2 = vld [vmem:[%s9754_s1 + $0x918] ss:$12 sps:$4 sm:$0xff]  }
  0xac   :  { %4647 = vmatprep.subr.bf16.mxu0 %v6882_v3  ;;  %4687 = vmatpush2.bf16.msra.mxu1 %v6877_v4  ;;  %v6958_v3 = vld [vmem:[%s9754_s1 + $0x904] ss:$12 sps:$4 sm:$0xff]  }
  0xad   :  { %4688 = vmatprep.subr.bf16.mxu1 %v6885_v6  ;;  %v6953_v4 = vld [vmem:[%s9754_s1 + $0xa98] ss:$12 sps:$4 sm:$0xff]  }
  0xae   :  { %v6961_v6 = vld [vmem:[%s9754_s1 + $0xa84] ss:$12 sps:$4 sm:$0xff]  }
  0xaf   :  { %4648 = vmatpush2.bf16.msra.mxu0 %v6880_v7  ;;  %v6956_v7 = vld [vmem:[%s9754_s1 + $0x900] ss:$12 sps:$4 sm:$0xff]  }
  0xb0   :  { %4649 = vmatprep.subr.bf16.mxu0 %v6888_v9  ;;  %4689 = vmatpush2.bf16.msra.mxu1 %v6883_v10  ;;  %v6964_v9 = vld [vmem:[%s9754_s1 + $0xa6c] ss:$12 sps:$4 sm:$0xff]  }
  0xb1   :  { %4690 = vmatprep.subr.bf16.mxu1 %v6891_v11  ;;  %v6959_v10 = vld [vmem:[%s9754_s1 + $0xa80] ss:$12 sps:$4 sm:$0xff]  }
  0xb2   :  { %v6967_v11 = vld [vmem:[%s9754_s1 + $0xbec] ss:$12 sps:$4 sm:$0xff]  }
  0xb3   :  { %4650 = vmatpush2.bf16.msra.mxu0 %v6886_v12  ;;  %v6962_v12 = vld [vmem:[%s9754_s1 + $0xa68] ss:$12 sps:$4 sm:$0xff]  }
  0xb4   :  { %4651 = vmatprep.subr.bf16.mxu0 %v6894_v13  ;;  %4691 = vmatpush2.bf16.msra.mxu1 %v6889_v14  ;;  %v6970_v13 = vld [vmem:[%s9754_s1 + $0xa54] ss:$12 sps:$4 sm:$0xff]  }
  0xb5   :  { %4692 = vmatprep.subr.bf16.mxu1 %v6897_v16  ;;  %v6965_v14 = vld [vmem:[%s9754_s1 + $0xbe8] ss:$12 sps:$4 sm:$0xff]  }
  0xb6   :  { %v6973_v16 = vld [vmem:[%s9754_s1 + $0xbd4] ss:$12 sps:$4 sm:$0xff]  }
  0xb7   :  { %4652 = vmatpush2.bf16.msra.mxu0 %v6892_v17  ;;  %v6968_v17 = vld [vmem:[%s9754_s1 + $0xa50] ss:$12 sps:$4 sm:$0xff]  }
  0xb8   :  { %4653 = vmatprep.subr.bf16.mxu0 %v6900_v19  ;;  %4693 = vmatpush2.bf16.msra.mxu1 %v6895_v20  ;;  %v6976_v19 = vld [vmem:[%s9754_s1 + $0xa3c] ss:$12 sps:$4 sm:$0xff]  }
  0xb9   :  { %4694 = vmatprep.subr.bf16.mxu1 %v6903_v22  ;;  %v6971_v20 = vld [vmem:[%s9754_s1 + $0xbd0] ss:$12 sps:$4 sm:$0xff]  }
  0xba   :  { %v6979_v22 = vld [vmem:[%s9754_s1 + $0xbbc] ss:$12 sps:$4 sm:$0xff]  }
  0xbb   :  { %4654 = vmatpush2.bf16.msra.mxu0 %v6898_v23  ;;  %v6974_v23 = vld [vmem:[%s9754_s1 + $0xa38] ss:$12 sps:$4 sm:$0xff]  }
  0xbc   :  { %4655 = vmatprep.subr.bf16.mxu0 %v6906_v26  ;;  %4695 = vmatpush2.bf16.msra.mxu1 %v6901_v28  ;;  %v6982_v26 = vld [vmem:[%s9754_s1 + $0xa24] ss:$12 sps:$4 sm:$0xff]  }
  0xbd   :  { %4696 = vmatprep.subr.bf16.mxu1 %v6909_v30  ;;  %v6977_v28 = vld [vmem:[%s9754_s1 + $0xbb8] ss:$12 sps:$4 sm:$0xff]   ;;  %v6980_v30 = vld [vmem:[%s9754_s1 + $0xa20] ss:$12 sps:$4 sm:$0xff]  }
  0xbf   :  { %4656 = vmatpush2.bf16.msra.mxu0 %v6904_v29  ;;  %v6985_v29 = vld [vmem:[%s9754_s1 + $0xba4] ss:$12 sps:$4 sm:$0xff]  }
  0xc0   :  { %4707 = vmatprep.subr.bf16.mxu0 %v6914_v31  ;;  %4697 = vmatpush2.bf16.msra.mxu1 %v6907_v33  ;;  %v6988_v31 = vld [vmem:[%s9754_s1 + $0xa0c] ss:$12 sps:$4 sm:$0xff]  }
  0xc1   :  { %4748 = vmatprep.subr.bf16.mxu1 %v6919_v36  ;;  %v6983_v33 = vld [vmem:[%s9754_s1 + $0xba0] ss:$12 sps:$4 sm:$0xff]  }
  0xc2   :  { %4658 = vmatmul.mubr.bf16.vlgmr.msra.gmra.mxu0 %v8184_v35  ;;  %v6991_v36 = vld [vmem:[%s9754_s1 + $0xb8c] ss:$12 sps:$4 sm:$0xff]  }
  0xc3   :  { %4708 = vmatpush1.bf16.msra.mxu0 %v6912_v39  ;;  %4739 = vmatprep.mubr.bf16.mxu0 %v8199_v40  ;;  %v6986_v39 = vld [vmem:[%s9754_s1 + $0xa08] ss:$12 sps:$4 sm:$0xff]  }
  0xc4   :  { %4699 = vmatmul.mubr.bf16.vlgmr.msra.gmra.mxu1 %v8203_v21  ;;  %4709 = vmatprep.subr.bf16.mxu0 %v6922_v41  ;;  %v6994_v41 = vld [vmem:[%s9754_s1 + $0x9f4] ss:$12 sps:$4 sm:$0xff]  }
  0xc5   :  { %4749 = vmatpush1.bf16.msra.mxu1 %v6917_v42  ;;  %4780 = vmatprep.mubr.bf16.mxu1 %v8213_v43  ;;  %v6989_v42 = vld [vmem:[%s9754_s1 + $0xb88] ss:$12 sps:$4 sm:$0xff]  }
  0xc6   :  { %4750 = vmatprep.subr.bf16.mxu1 %v6925_v25  ;;  %v6997_v25 = vld [vmem:[%s9754_s1 + $0xb74] ss:$12 sps:$4 sm:$0xff]  }
  0xc7   :  { %4710 = vmatpush1.bf16.msra.mxu0 %v6920_v44  ;;  %v6992_v44 = vld [vmem:[%s9754_s1 + $0x9f0] ss:$12 sps:$4 sm:$0xff]  }
  0xc8   :  { %4711 = vmatprep.subr.bf16.mxu0 %v6928_v45  ;;  %v895_v45 = vlaneseq }
  0xc9   :  { %4751 = vmatpush1.bf16.msra.mxu1 %v6923_v46  ;;  %v7000_v46 = vld [vmem:[%s9754_s1 + $0x9dc] ss:$12 sps:$4 sm:$0xff]  }
  0xca   :  { %4752 = vmatprep.subr.bf16.mxu1 %v6931_v47  ;;  %v6995_v47 = vld [vmem:[%s9754_s1 + $0xb70] ss:$12 sps:$4 sm:$0xff]  }
  0xcb   :  { %4712 = vmatpush1.bf16.msra.mxu0 %v6926_v49  ;;  %v7003_v49 = vld [vmem:[%s9754_s1 + $0xb5c] ss:$12 sps:$4 sm:$0xff]  }
  0xcc   :  { %4713 = vmatprep.subr.bf16.mxu0 %v6934_v50  ;;  %v6998_v50 = vld [vmem:[%s9754_s1 + $0x9d8] ss:$12 sps:$4 sm:$0xff]  }
  0xcd   :  { %4753 = vmatpush1.bf16.msra.mxu1 %v6929_v51  ;;  %v8381_v51 = vshrl.u32 %v895_v45, 7  ;;  %v7035_v45 = vld [vmem:[%s9754_s1 + $0xde0] ss:$12 sps:$4 sm:$0xff]  }
  0xce   :  { %4754 = vmatprep.subr.bf16.mxu1 %v6937_v53  ;;  %v7001_v53 = vld [vmem:[%s9754_s1 + $0xb58] ss:$12 sps:$4 sm:$0xff]  }
  0xcf   :  { %4714 = vmatpush1.bf16.msra.mxu0 %v6932_v54  ;;  %v7006_v54 = vld [vmem:[%s9754_s1 + $0x9c4] ss:$12 sps:$4 sm:$0xff]  }
  0xd0   :  { %4715 = vmatprep.subr.bf16.mxu0 %v6940_v55  ;;  %v7004_v55 = vld [vmem:[%s9754_s1 + $0x9c0] ss:$12 sps:$4 sm:$0xff]  }
  0xd1   :  { %4755 = vmatpush1.bf16.msra.mxu1 %v6935_v56  ;;  %v7009_v56 = vld [vmem:[%s9754_s1 + $0xb44] ss:$12 sps:$4 sm:$0xff]  }
  0xd2   :  { %4756 = vmatprep.subr.bf16.mxu1 %v6943_v57  ;;  %v7007_v57 = vld [vmem:[%s9754_s1 + $0xb40] ss:$12 sps:$4 sm:$0xff]  }
  0xd3   :  { %4716 = vmatpush1.bf16.msra.mxu0 %v6938_v58  ;;  %v893_v58 = vld [vmem:[%s9756_s2] sm:$0x7] }
  0xd4   :  { %4717 = vmatprep.subr.bf16.mxu0 %v6946_v59  ;;  %v897_v59 = vsub.s32 0, %v8381_v51 }
  0xd5   :  { %4757 = vmatpush1.bf16.msra.mxu1 %v6941_v60  ;;  %v7014_v60 = vld [vmem:[%s9754_s1 + $0xcac] ss:$12 sps:$4 sm:$0xff]  }
  0xd6   :  { %4758 = vmatprep.subr.bf16.mxu1 %v6949_v61  ;;  %v8408_v61 = vld [vmem:[%s9755_s0 + $0x40] sm:$0xff] }
  0xd7   :  { %4718 = vmatpush1.bf16.msra.mxu0 %v6944_v62  ;;  %v901_v62 = vsub.s32 1, %v8381_v51 }
  0xd8   :  { %4719 = vmatprep.subr.bf16.mxu0 %v6952_v63  ;;  %v7019_v63 = vld [vmem:[%s9754_s1 + $0xe2c] ss:$12 sps:$4 sm:$0xff]  }
  0xd9   :  { %4759 = vmatpush1.bf16.msra.mxu1 %v6947_v0  ;;  %v8416_v0 = vcombine.low %v8177_v32, %v8177_v32  ;;  %v8432_v32 = vcombine.low %v8192_v38, %v8192_v38  ;;  %v7025_v38 = vld [vmem:[%s9754_s1 + $0xe14] ss:$12 sps:$4 sm:$0xff]  }
  0xda   :  { %4760 = vmatprep.subr.bf16.mxu1 %v6955_v1  ;;  %v8421_v1 = vld [vmem:[%s9755_s0 + $0x48] sm:$0xff] }
  0xdb   :  { %4720 = vmatpush1.bf16.msra.mxu0 %v6950_v2  ;;  %v898_v2 = vrot.slane %v893_v58, %v897_v59  ;;  %v7058_v59 = vld [vmem:[%s9754_s1 + $0xc04] ss:$12 sps:$4 sm:$0xff]  }
  0xdc   :  { %4721 = vmatprep.subr.bf16.mxu0 %v6958_v3  ;;  %v7012_v3 = vld [vmem:[%s9754_s1 + $0xca8] ss:$12 sps:$4 sm:$0xff]  }
  0xdd   :  { %4761 = vmatpush1.bf16.msra.mxu1 %v6953_v4  ;;  %v8428_v4 = vcombine.high %v8408_v61, %v8408_v61 }
  0xde   :  { %4762 = vmatprep.subr.bf16.mxu1 %v6961_v6  ;;  %v7022_v6 = vld [vmem:[%s9754_s1 + $0xc94] ss:$12 sps:$4 sm:$0xff]  }
  0xdf   :  { %4722 = vmatpush1.bf16.msra.mxu0 %v6956_v7  ;;  %v902_v7 = vrot.slane %v893_v58, %v901_v62  ;;  %v7050_v58 = vld [vmem:[%s9754_s1 + $0xc18] ss:$12 sps:$4 sm:$0xff]  }
  0xe0   :  { %4723 = vmatprep.subr.bf16.mxu0 %v6964_v9  ;;  %v7017_v9 = vld [vmem:[%s9754_s1 + $0xe28] ss:$12 sps:$4 sm:$0xff]   ;;  %v7061_v62 = vld [vmem:[%s9754_s1 + $0xd84] ss:$12 sps:$4 sm:$0xff]  }
  0xe1   :  { %4763 = vmatpush1.bf16.msra.mxu1 %v6959_v10  ;;  %v8442_v10 = vcombine.high %v8421_v1, %v8421_v1 }
  0xe2   :  { %4764 = vmatprep.subr.bf16.mxu1 %v6967_v11 }
  0xe3   :  { %4724 = vmatpush2.bf16.msra.mxu0 %v6962_v12 }
  0xe4   :  { %4725 = vmatprep.subr.bf16.mxu0 %v6970_v13  ;;  %v7020_v13 = vld [vmem:[%s9754_s1 + $0xc90] ss:$12 sps:$4 sm:$0xff]  }
  0xe5   :  { %4765 = vmatpush2.bf16.msra.mxu1 %v6965_v14 }
  0xe6   :  { %4766 = vmatprep.subr.bf16.mxu1 %v6973_v16 }
  0xe7   :  { %4726 = vmatpush2.bf16.msra.mxu0 %v6968_v17  ;;  %v7028_v17 = vld [vmem:[%s9754_s1 + $0xc7c] ss:$12 sps:$4 sm:$0xff]  }
  0xe8   :  { %4727 = vmatprep.subr.bf16.mxu0 %v6976_v19 }
  0xe9   :  { %4767 = vmatpush2.bf16.msra.mxu1 %v6971_v20 }
  0xea   :  { %4768 = vmatprep.subr.bf16.mxu1 %v6979_v22  ;;  %v7023_v22 = vld [vmem:[%s9754_s1 + $0xe10] ss:$12 sps:$4 sm:$0xff]  }
  0xeb   :  { %4728 = vmatpush2.bf16.msra.mxu0 %v6974_v23 }
  0xec   :  { %4729 = vmatprep.subr.bf16.mxu0 %v6982_v26 }
  0xed   :  { %4769 = vmatpush2.bf16.msra.mxu1 %v6977_v28  ;;  %v7031_v28 = vld [vmem:[%s9754_s1 + $0xdfc] ss:$12 sps:$4 sm:$0xff]  }
  0xee   :  { %4770 = vmatprep.subr.bf16.mxu1 %v6985_v29 }
  0xef   :  { %4730 = vmatpush2.bf16.msra.mxu0 %v6980_v30  ;;  %v7026_v30 = vld [vmem:[%s9754_s1 + $0xc78] ss:$12 sps:$4 sm:$0xff]  }
  0xf0   :  { %4731 = vmatprep.subr.bf16.mxu0 %v6988_v31 }
  0xf1   :  { %4771 = vmatpush2.bf16.msra.mxu1 %v6983_v33  ;;  %v7034_v33 = vld [vmem:[%s9754_s1 + $0xc64] ss:$12 sps:$4 sm:$0xff]  }
  0xf2   :  { %4772 = vmatprep.subr.bf16.mxu1 %v6991_v36 }
  0xf3   :  { %4732 = vmatpush2.bf16.msra.mxu0 %v6986_v39  ;;  %v7029_v39 = vld [vmem:[%s9754_s1 + $0xdf8] ss:$12 sps:$4 sm:$0xff]  }
  0xf4   :  { %4733 = vmatprep.subr.bf16.mxu0 %v6994_v41  ;;  %v7037_v41 = vld [vmem:[%s9754_s1 + $0xde4] ss:$12 sps:$4 sm:$0xff]  }
  0xf5   :  { %4773 = vmatpush2.bf16.msra.mxu1 %v6989_v42 }
  0xf6   :  { %4774 = vmatprep.subr.bf16.mxu1 %v6997_v25  ;;  %v7032_v25 = vld [vmem:[%s9754_s1 + $0xc60] ss:$12 sps:$4 sm:$0xff]  }
  0xf7   :  { %4734 = vmatpush2.bf16.msra.mxu0 %v6992_v44  ;;  %v7040_v44 = vld [vmem:[%s9754_s1 + $0xc4c] ss:$12 sps:$4 sm:$0xff]  }
  0xf8   :  { %4735 = vmatprep.subr.bf16.mxu0 %v7000_v46  ;;  %v7043_v46 = vld [vmem:[%s9754_s1 + $0xdcc] ss:$12 sps:$4 sm:$0xff]  }
  0xf9   :  { %4775 = vmatpush2.bf16.msra.mxu1 %v6995_v47  ;;  %v7038_v47 = vld [vmem:[%s9754_s1 + $0xc48] ss:$12 sps:$4 sm:$0xff]  }
  0xfa   :  { %4776 = vmatprep.subr.bf16.mxu1 %v7003_v49  ;;  %v7046_v49 = vld [vmem:[%s9754_s1 + $0xc34] ss:$12 sps:$4 sm:$0xff]  }
  0xfb   :  { %4736 = vmatpush2.bf16.msra.mxu0 %v6998_v50  ;;  %v7041_v50 = vld [vmem:[%s9754_s1 + $0xdc8] ss:$12 sps:$4 sm:$0xff]  }
  0xfc   :  { %4737 = vmatprep.subr.bf16.mxu0 %v7006_v54  ;;  %v7044_v54 = vld [vmem:[%s9754_s1 + $0xc30] ss:$12 sps:$4 sm:$0xff]  }
  0xfd   :  { %4777 = vmatpush2.bf16.msra.mxu1 %v7001_v53  ;;  %v7049_v53 = vld [vmem:[%s9754_s1 + $0xdb4] ss:$12 sps:$4 sm:$0xff]  }
  0xfe   :  { %4778 = vmatprep.subr.bf16.mxu1 %v7009_v56  ;;  %v7047_v56 = vld [vmem:[%s9754_s1 + $0xdb0] ss:$12 sps:$4 sm:$0xff]  }
  0xff   :  { %4738 = vmatpush2.bf16.msra.mxu0 %v7004_v55  ;;  %v7052_v55 = vld [vmem:[%s9754_s1 + $0xc1c] ss:$12 sps:$4 sm:$0xff]  }
 0x100   :  { %4789 = vmatprep.subr.bf16.mxu0 %v7014_v60  ;;  %v7053_v60 = vld [vmem:[%s9754_s1 + $0xd98] ss:$12 sps:$4 sm:$0xff]  }
 0x101   :  { %4779 = vmatpush2.bf16.msra.mxu1 %v7007_v57  ;;  %v7055_v57 = vld [vmem:[%s9754_s1 + $0xd9c] ss:$12 sps:$4 sm:$0xff]  }
 0x102   :  { %v4495_v11 = vpop.f32.mrf.mxu0  ;;  %4740 = vmatmul.mubr.bf16.vlgmr.msra.gmra.mxu0 %v8416_v0  ;;  %4830 = vmatprep.subr.bf16.mxu1 %v7019_v63  ;;  %v7056_v63 = vld [vmem:[%s9754_s1 + $0xc00] ss:$12 sps:$4 sm:$0xff]  }
 0x103   :  { %v4496_v12 = vadd.f32 %v4495_v11, %v898_v2  ;;  %4790 = vmatpush1.bf16.msra.mxu0 %v7012_v3  ;;  %4821 = vmatprep.mubr.bf16.mxu0 %v8428_v4  ;;  %v4536_v16 = vpop.f32.mrf.mxu1  ;;  %v7064_v2 = vld [vmem:[%s9754_s1 + $0xd6c] ss:$12 sps:$4 sm:$0xff]   ;;  %v7065_v11 = vld [vmem:[%s9754_s1 + $0xee8] ss:$12 sps:$4 sm:$0xff]  }
 0x104   :  { %v4497_v14 = vpop.f32.mrf.mxu0  ;;  %4781 = vmatmul.mubr.bf16.vlgmr.msra.gmra.mxu1 %v8432_v32  ;;  %4791 = vmatprep.subr.bf16.mxu0 %v7022_v6  ;;  %v7059_v3 = vld [vmem:[%s9754_s1 + $0xd80] ss:$12 sps:$4 sm:$0xff]  }
 0x105   :  { %v4498_v19 = vadd.f32 %v4497_v14, %v902_v7  ;;  %v8456_v20 = vadd.f32 %v4536_v16, %v4496_v12  ;;  %4831 = vmatpush1.bf16.msra.mxu1 %v7017_v9  ;;  %4862 = vmatprep.mubr.bf16.mxu1 %v8442_v10  ;;  %v4538_v26 = vpop.f32.mrf.mxu1  ;;  %v7067_v6 = vld [vmem:[%s9754_s1 + $0xeec] ss:$12 sps:$4 sm:$0xff]   ;;  %v7062_v7 = vld [vmem:[%s9754_s1 + $0xd68] ss:$12 sps:$4 sm:$0xff]   ;;  %v7068_v12 = vld [vmem:[%s9754_s1 + $0xd50] ss:$12 sps:$4 sm:$0xff]  }
 0x106   :  { %v4499_v23 = vpop.f32.mrf.mxu0  ;;  %4832 = vmatprep.subr.bf16.mxu1 %v7025_v38  ;;  %v7070_v9 = vld [vmem:[%s9754_s1 + $0xd54] ss:$12 sps:$4 sm:$0xff]   ;;  %v7076_v14 = vld [vmem:[%s9754_s1 + $0xd3c] ss:$12 sps:$4 sm:$0xff]   ;;  %v7074_v16 = vld [vmem:[%s9754_s1 + $0xd38] ss:$12 sps:$4 sm:$0xff]  }
 0x107   :  { %v8465_v29 = vadd.f32 %v4538_v26, %v4498_v19  ;;  %4792 = vmatpush1.bf16.msra.mxu0 %v7020_v13  ;;  %v4540_v36 = vpop.f32.mrf.mxu1  ;;  %v7073_v38 = vld [vmem:[%s9754_s1 + $0xed4] ss:$12 sps:$4 sm:$0xff]   ;;  %v7071_v13 = vld [vmem:[%s9754_s1 + $0xed0] ss:$12 sps:$4 sm:$0xff]   ;;  %v7077_v19 = vld [vmem:[%s9754_s1 + $0xeb8] ss:$12 sps:$4 sm:$0xff]  }
 0x108   :  { %v4500_v31 = vpop.f32.mrf.mxu0  ;;  %4793 = vmatprep.subr.bf16.mxu0 %v7028_v17  ;;  %v7079_v17 = vld [vmem:[%s9754_s1 + $0xebc] ss:$12 sps:$4 sm:$0xff]   ;;  %v7080_v23 = vld [vmem:[%s9754_s1 + $0xd20] ss:$12 sps:$4 sm:$0xff]   ;;  %v7085_v26 = vld [vmem:[%s9754_s1 + $0xea4] ss:$12 sps:$4 sm:$0xff]  }
 0x109   :  { %4833 = vmatpush1.bf16.msra.mxu1 %v7023_v22  ;;  %v4541_v42 = vpop.f32.mrf.mxu1  ;;  %v7082_v22 = vld [vmem:[%s9754_s1 + $0xd24] ss:$12 sps:$4 sm:$0xff]   ;;  %v7086_v31 = vld [vmem:[%s9754_s1 + $0xd08] ss:$12 sps:$4 sm:$0xff]  }
 0x10a   :  { %4834 = vmatprep.subr.bf16.mxu1 %v7031_v28  ;;  %v7083_v28 = vld [vmem:[%s9754_s1 + $0xea0] ss:$12 sps:$4 sm:$0xff]   ;;  %v7089_v36 = vld [vmem:[%s9754_s1 + $0xe88] ss:$12 sps:$4 sm:$0xff]  }
 0x10b   :  { %4794 = vmatpush1.bf16.msra.mxu0 %v7026_v30  ;;  %v7088_v30 = vld [vmem:[%s9754_s1 + $0xd0c] ss:$12 sps:$4 sm:$0xff]   ;;  %v7097_v42 = vld [vmem:[%s9754_s1 + $0xe74] ss:$12 sps:$4 sm:$0xff]  }
 0x10c   :  { %4795 = vmatprep.subr.bf16.mxu0 %v7034_v33  ;;  %v7091_v33 = vld [vmem:[%s9754_s1 + $0xe8c] ss:$12 sps:$4 sm:$0xff]  }
 0x10d   :  { %4835 = vmatpush1.bf16.msra.mxu1 %v7029_v39  ;;  %v7094_v39 = vld [vmem:[%s9754_s1 + $0xcf4] ss:$12 sps:$4 sm:$0xff]  }
 0x10e   :  { %4836 = vmatprep.subr.bf16.mxu1 %v7037_v41  ;;  %v7092_v41 = vld [vmem:[%s9754_s1 + $0xcf0] ss:$12 sps:$4 sm:$0xff]  }
 0x10f   :  { %4796 = vmatpush1.bf16.msra.mxu0 %v7032_v25  ;;  %v7095_v25 = vld [vmem:[%s9754_s1 + $0xe70] ss:$12 sps:$4 sm:$0xff]  }
 0x110   :  { %4797 = vmatprep.subr.bf16.mxu0 %v7040_v44  ;;  %v7100_v44 = vld [vmem:[%s9754_s1 + $0xcdc] ss:$12 sps:$4 sm:$0xff]  }
 0x111   :  { %4837 = vmatpush1.bf16.msra.mxu1 %v7035_v45  ;;  %v7098_v45 = vld [vmem:[%s9754_s1 + $0xcd8] ss:$12 sps:$4 sm:$0xff]  }
 0x112   :  { %4838 = vmatprep.subr.bf16.mxu1 %v7043_v46  ;;  %v7103_v46 = vld [vmem:[%s9754_s1 + $0xe5c] ss:$12 sps:$4 sm:$0xff]  }
 0x113   :  { %4798 = vmatpush1.bf16.msra.mxu0 %v7038_v47  ;;  %v7101_v47 = vld [vmem:[%s9754_s1 + $0xe58] ss:$12 sps:$4 sm:$0xff]  }
 0x114   :  { %4799 = vmatprep.subr.bf16.mxu0 %v7046_v49  ;;  %v7106_v49 = vld [vmem:[%s9754_s1 + $0xcc4] ss:$12 sps:$4 sm:$0xff]  }
 0x115   :  { %4839 = vmatpush1.bf16.msra.mxu1 %v7041_v50  ;;  %v7104_v50 = vld [vmem:[%s9754_s1 + $0xcc0] ss:$12 sps:$4 sm:$0xff]  }
 0x116   :  { %4840 = vmatprep.subr.bf16.mxu1 %v7049_v53  ;;  %v7109_v53 = vld [vmem:[%s9754_s1 + $0xe44] ss:$12 sps:$4 sm:$0xff]  }
 0x117   :  { %4800 = vmatpush1.bf16.msra.mxu0 %v7044_v54  ;;  %v7107_v54 = vld [vmem:[%s9754_s1 + $0xe40] ss:$12 sps:$4 sm:$0xff]  }
 0x118   :  { %4801 = vmatprep.subr.bf16.mxu0 %v7052_v55  ;;  %v7114_v55 = vld [vmem:[%s9754_s1 + $0xfac] ss:$12 sps:$4 sm:$0xff]  }
 0x119   :  { %4841 = vmatpush1.bf16.msra.mxu1 %v7047_v56  ;;  %v8635_v56 = vld [vmem:[%s9755_s0 + $0x50] sm:$0xff] }
 0x11a   :  { %4842 = vmatprep.subr.bf16.mxu1 %v7055_v57  ;;  %v7112_v57 = vld [vmem:[%s9754_s1 + $0xfa8] ss:$12 sps:$4 sm:$0xff]  }
 0x11b   :  { %4802 = vmatpush1.bf16.msra.mxu0 %v7050_v58  ;;  %v8642_v58 = vcombine.low %v8408_v61, %v8408_v61  ;;  %v8661_v61 = vcombine.low %v8421_v1, %v8421_v1  ;;  %v7125_v1 = vld [vmem:[%s9754_s1 + $0x1114] ss:$12 sps:$4 sm:$0xff]  }
 0x11c   :  { %4803 = vmatprep.subr.bf16.mxu0 %v7058_v59  ;;  %v7119_v59 = vld [vmem:[%s9754_s1 + $0x112c] ss:$12 sps:$4 sm:$0xff]  }
 0x11d   :  { %4843 = vmatpush1.bf16.msra.mxu1 %v7053_v60  ;;  %v8650_v60 = vld [vmem:[%s9755_s0 + $0x58] sm:$0xff] }
 0x11e   :  { %4844 = vmatprep.subr.bf16.mxu1 %v7061_v62  ;;  %v7117_v62 = vld [vmem:[%s9754_s1 + $0x1128] ss:$12 sps:$4 sm:$0xff]  }
 0x11f   :  { %4804 = vmatpush1.bf16.msra.mxu0 %v7056_v63  ;;  %v8657_v63 = vcombine.high %v8635_v56, %v8635_v56 }
 0x120   :  { %4805 = vmatprep.subr.bf16.mxu0 %v7064_v2  ;;  %v7122_v2 = vld [vmem:[%s9754_s1 + $0xf94] ss:$12 sps:$4 sm:$0xff]  }
 0x121   :  { %4845 = vmatpush1.bf16.msra.mxu1 %v7059_v3  ;;  %v7120_v3 = vld [vmem:[%s9754_s1 + $0xf90] ss:$12 sps:$4 sm:$0xff]  }
 0x122   :  { %4846 = vmatprep.subr.bf16.mxu1 %v7067_v6  ;;  %v8671_v6 = vcombine.high %v8650_v60, %v8650_v60 }
 0x123   :  { %4806 = vmatpush2.bf16.msra.mxu0 %v7062_v7 }
 0x124   :  { %4807 = vmatprep.subr.bf16.mxu0 %v7070_v9 }
 0x125   :  { %4847 = vmatpush2.bf16.msra.mxu1 %v7065_v11  ;;  %v7123_v11 = vld [vmem:[%s9754_s1 + $0x1110] ss:$12 sps:$4 sm:$0xff]  }
 0x126   :  { %4848 = vmatprep.subr.bf16.mxu1 %v7073_v38 }
 0x127   :  { %4808 = vmatpush2.bf16.msra.mxu0 %v7068_v12 }
 0x128   :  { %4809 = vmatprep.subr.bf16.mxu0 %v7076_v14 }
 0x129   :  { %4849 = vmatpush2.bf16.msra.mxu1 %v7071_v13  ;;  %v7128_v13 = vld [vmem:[%s9754_s1 + $0xf7c] ss:$12 sps:$4 sm:$0xff]  }
 0x12a   :  { %4850 = vmatprep.subr.bf16.mxu1 %v7079_v17 }
 0x12b   :  { %4810 = vmatpush2.bf16.msra.mxu0 %v7074_v16 }
 0x12c   :  { %4811 = vmatprep.subr.bf16.mxu0 %v7082_v22  ;;  %v7131_v22 = vld [vmem:[%s9754_s1 + $0x10fc] ss:$12 sps:$4 sm:$0xff]  }
 0x12d   :  { %4851 = vmatpush2.bf16.msra.mxu1 %v7077_v19 }
 0x12e   :  { %4852 = vmatprep.subr.bf16.mxu1 %v7085_v26 }
 0x12f   :  { %4812 = vmatpush2.bf16.msra.mxu0 %v7080_v23 }
 0x130   :  { %4813 = vmatprep.subr.bf16.mxu0 %v7088_v30 }
 0x131   :  { %4853 = vmatpush2.bf16.msra.mxu1 %v7083_v28  ;;  %v7134_v28 = vld [vmem:[%s9754_s1 + $0xf64] ss:$12 sps:$4 sm:$0xff]  }
 0x132   :  { %4854 = vmatprep.subr.bf16.mxu1 %v7091_v33  ;;  %v7137_v33 = vld [vmem:[%s9754_s1 + $0x10e4] ss:$12 sps:$4 sm:$0xff]  }
 0x133   :  { %4814 = vmatpush2.bf16.msra.mxu0 %v7086_v31  ;;  %v7132_v31 = vld [vmem:[%s9754_s1 + $0xf60] ss:$12 sps:$4 sm:$0xff]  }
 0x134   :  { %4815 = vmatprep.subr.bf16.mxu0 %v7094_v39  ;;  %v7135_v39 = vld [vmem:[%s9754_s1 + $0x10e0] ss:$12 sps:$4 sm:$0xff]  }
 0x135   :  { %4855 = vmatpush2.bf16.msra.mxu1 %v7089_v36 }
 0x136   :  { %4856 = vmatprep.subr.bf16.mxu1 %v7097_v42  ;;  %v7138_v42 = vld [vmem:[%s9754_s1 + $0xf48] ss:$12 sps:$4 sm:$0xff]  }
 0x137   :  { %4816 = vmatpush2.bf16.msra.mxu0 %v7092_v41  ;;  %v7140_v41 = vld [vmem:[%s9754_s1 + $0xf4c] ss:$12 sps:$4 sm:$0xff]  }
 0x138   :  { %4817 = vmatprep.subr.bf16.mxu0 %v7100_v44  ;;  %v7141_v44 = vld [vmem:[%s9754_s1 + $0x10c8] ss:$12 sps:$4 sm:$0xff]  }
 0x139   :  { %4857 = vmatpush2.bf16.msra.mxu1 %v7095_v25  ;;  %v7143_v25 = vld [vmem:[%s9754_s1 + $0x10cc] ss:$12 sps:$4 sm:$0xff]  }
 0x13a   :  { %4858 = vmatprep.subr.bf16.mxu1 %v7103_v46  ;;  %v7144_v46 = vld [vmem:[%s9754_s1 + $0xf30] ss:$12 sps:$4 sm:$0xff]  }
 0x13b   :  { %4818 = vmatpush2.bf16.msra.mxu0 %v7098_v45  ;;  %v7146_v45 = vld [vmem:[%s9754_s1 + $0xf34] ss:$12 sps:$4 sm:$0xff]  }
 0x13c   :  { %4819 = vmatprep.subr.bf16.mxu0 %v7106_v49  ;;  %v7147_v49 = vld [vmem:[%s9754_s1 + $0x10b0] ss:$12 sps:$4 sm:$0xff]  }
 0x13d   :  { %4859 = vmatpush2.bf16.msra.mxu1 %v7101_v47  ;;  %v7149_v47 = vld [vmem:[%s9754_s1 + $0x10b4] ss:$12 sps:$4 sm:$0xff]  }
 0x13e   :  { %4860 = vmatprep.subr.bf16.mxu1 %v7109_v53  ;;  %v7150_v53 = vld [vmem:[%s9754_s1 + $0xf18] ss:$12 sps:$4 sm:$0xff]  }
 0x13f   :  { %4820 = vmatpush2.bf16.msra.mxu0 %v7104_v50  ;;  %v7152_v50 = vld [vmem:[%s9754_s1 + $0xf1c] ss:$12 sps:$4 sm:$0xff]  }
 0x140   :  { %4871 = vmatprep.subr.bf16.mxu0 %v7114_v55  ;;  %v7153_v55 = vld [vmem:[%s9754_s1 + $0x1098] ss:$12 sps:$4 sm:$0xff]  }
 0x141   :  { %4861 = vmatpush2.bf16.msra.mxu1 %v7107_v54  ;;  %v7155_v54 = vld [vmem:[%s9754_s1 + $0x109c] ss:$12 sps:$4 sm:$0xff]  }
 0x142   :  { %v4577_v7 = vpop.f32.mrf.mxu0  ;;  %4822 = vmatmul.mubr.bf16.vlgmr.msra.gmra.mxu0 %v8642_v58  ;;  %4912 = vmatprep.subr.bf16.mxu1 %v7119_v59  ;;  %v7156_v59 = vld [vmem:[%s9754_s1 + $0xf00] ss:$12 sps:$4 sm:$0xff]  }
 0x143   :  { %v4578_v9 = vadd.f32 %v4577_v7, %v8456_v20  ;;  %4872 = vmatpush1.bf16.msra.mxu0 %v7112_v57  ;;  %4903 = vmatprep.mubr.bf16.mxu0 %v8657_v63  ;;  %v4618_v12 = vpop.f32.mrf.mxu1  ;;  %v7126_v20 = vld [vmem:[%s9754_s1 + $0xf78] ss:$12 sps:$4 sm:$0xff]   ;;  %v7162_v7 = vld [vmem:[%s9754_s1 + $0x1068] ss:$12 sps:$4 sm:$0xff]  }
 0x144   :  { %v4579_v38 = vpop.f32.mrf.mxu0  ;;  %4863 = vmatmul.mubr.bf16.vlgmr.msra.gmra.mxu1 %v8661_v61  ;;  %4873 = vmatprep.subr.bf16.mxu0 %v7122_v2  ;;  %v7158_v57 = vld [vmem:[%s9754_s1 + $0xf04] ss:$12 sps:$4 sm:$0xff]   ;;  %v7159_v2 = vld [vmem:[%s9754_s1 + $0x1080] ss:$12 sps:$4 sm:$0xff]  }
 0x145   :  { %v4580_v14 = vadd.f32 %v4579_v38, %v8465_v29  ;;  %v8687_v16 = vadd.f32 %v4618_v12, %v4578_v9  ;;  %4913 = vmatpush1.bf16.msra.mxu1 %v7117_v62  ;;  %4944 = vmatprep.mubr.bf16.mxu1 %v8671_v6  ;;  %v4620_v19 = vpop.f32.mrf.mxu1  ;;  %v7129_v29 = vld [vmem:[%s9754_s1 + $0x10f8] ss:$12 sps:$4 sm:$0xff]   ;;  %v7165_v9 = vld [vmem:[%s9754_s1 + $0x11e8] ss:$12 sps:$4 sm:$0xff]   ;;  %v7168_v38 = vld [vmem:[%s9754_s1 + $0x1050] ss:$12 sps:$4 sm:$0xff]  }
 0x146   :  { %v4581_v17 = vpop.f32.mrf.mxu0  ;;  %4914 = vmatprep.subr.bf16.mxu1 %v7125_v1  ;;  %v7161_v62 = vld [vmem:[%s9754_s1 + $0x1084] ss:$12 sps:$4 sm:$0xff]   ;;  %v7167_v1 = vld [vmem:[%s9754_s1 + $0x11ec] ss:$12 sps:$4 sm:$0xff]   ;;  %v7173_v12 = vld [vmem:[%s9754_s1 + $0x11d4] ss:$12 sps:$4 sm:$0xff]  }
 0x147   :  { %v8696_v23 = vadd.f32 %v4620_v19, %v4580_v14  ;;  %4874 = vmatpush1.bf16.msra.mxu0 %v7120_v3  ;;  %v4622_v30 = vpop.f32.mrf.mxu1  ;;  %v7164_v3 = vld [vmem:[%s9754_s1 + $0x106c] ss:$12 sps:$4 sm:$0xff]   ;;  %v7176_v14 = vld [vmem:[%s9754_s1 + $0x103c] ss:$12 sps:$4 sm:$0xff]  }
 0x148   :  { %v4582_v26 = vpop.f32.mrf.mxu0  ;;  %4875 = vmatprep.subr.bf16.mxu0 %v7128_v13  ;;  %v7171_v13 = vld [vmem:[%s9754_s1 + $0x11d0] ss:$12 sps:$4 sm:$0xff]   ;;  %v7177_v19 = vld [vmem:[%s9754_s1 + $0x11b8] ss:$12 sps:$4 sm:$0xff]  }
 0x149   :  { %4915 = vmatpush1.bf16.msra.mxu1 %v7123_v11  ;;  %v4623_v36 = vpop.f32.mrf.mxu1  ;;  %v7170_v11 = vld [vmem:[%s9754_s1 + $0x1054] ss:$12 sps:$4 sm:$0xff]   ;;  %v7179_v17 = vld [vmem:[%s9754_s1 + $0x11bc] ss:$12 sps:$4 sm:$0xff]   ;;  %v7185_v26 = vld [vmem:[%s9754_s1 + $0x11a4] ss:$12 sps:$4 sm:$0xff]  }
 0x14a   :  { %4916 = vmatprep.subr.bf16.mxu1 %v7131_v22  ;;  %v7182_v22 = vld [vmem:[%s9754_s1 + $0x1024] ss:$12 sps:$4 sm:$0xff]   ;;  %v7188_v30 = vld [vmem:[%s9754_s1 + $0x100c] ss:$12 sps:$4 sm:$0xff]   ;;  %v7189_v36 = vld [vmem:[%s9754_s1 + $0x1188] ss:$12 sps:$4 sm:$0xff]  }
 0x14b   :  { %4876 = vmatpush1.bf16.msra.mxu0 %v7126_v20  ;;  %v7174_v20 = vld [vmem:[%s9754_s1 + $0x1038] ss:$12 sps:$4 sm:$0xff]  }
 0x14c   :  { %4877 = vmatprep.subr.bf16.mxu0 %v7134_v28  ;;  %v7183_v28 = vld [vmem:[%s9754_s1 + $0x11a0] ss:$12 sps:$4 sm:$0xff]  }
 0x14d   :  { %4917 = vmatpush1.bf16.msra.mxu1 %v7129_v29  ;;  %v7180_v29 = vld [vmem:[%s9754_s1 + $0x1020] ss:$12 sps:$4 sm:$0xff]  }
 0x14e   :  { %4918 = vmatprep.subr.bf16.mxu1 %v7137_v33  ;;  %v7191_v33 = vld [vmem:[%s9754_s1 + $0x118c] ss:$12 sps:$4 sm:$0xff]  }
 0x14f   :  { %4878 = vmatpush1.bf16.msra.mxu0 %v7132_v31  ;;  %v7186_v31 = vld [vmem:[%s9754_s1 + $0x1008] ss:$12 sps:$4 sm:$0xff]  }
 0x150   :  { %4879 = vmatprep.subr.bf16.mxu0 %v7140_v41  ;;  %v7192_v41 = vld [vmem:[%s9754_s1 + $0xff0] ss:$12 sps:$4 sm:$0xff]  }
 0x151   :  { %4919 = vmatpush1.bf16.msra.mxu1 %v7135_v39  ;;  %v7194_v39 = vld [vmem:[%s9754_s1 + $0xff4] ss:$12 sps:$4 sm:$0xff]  }
 0x152   :  { %4920 = vmatprep.subr.bf16.mxu1 %v7143_v25  ;;  %v7195_v25 = vld [vmem:[%s9754_s1 + $0x1170] ss:$12 sps:$4 sm:$0xff]  }
 0x153   :  { %4880 = vmatpush1.bf16.msra.mxu0 %v7138_v42  ;;  %v7197_v42 = vld [vmem:[%s9754_s1 + $0x1174] ss:$12 sps:$4 sm:$0xff]  }
 0x154   :  { %4881 = vmatprep.subr.bf16.mxu0 %v7146_v45  ;;  %v7198_v45 = vld [vmem:[%s9754_s1 + $0xfd8] ss:$12 sps:$4 sm:$0xff]  }
 0x155   :  { %4921 = vmatpush1.bf16.msra.mxu1 %v7141_v44  ;;  %v7200_v44 = vld [vmem:[%s9754_s1 + $0xfdc] ss:$12 sps:$4 sm:$0xff]  }
 0x156   :  { %4922 = vmatprep.subr.bf16.mxu1 %v7149_v47  ;;  %v7201_v47 = vld [vmem:[%s9754_s1 + $0x1158] ss:$12 sps:$4 sm:$0xff]  }
 0x157   :  { %4882 = vmatpush1.bf16.msra.mxu0 %v7144_v46  ;;  %v7203_v46 = vld [vmem:[%s9754_s1 + $0x115c] ss:$12 sps:$4 sm:$0xff]  }
 0x158   :  { %4883 = vmatprep.subr.bf16.mxu0 %v7152_v50  ;;  %v7204_v50 = vld [vmem:[%s9754_s1 + $0xfc0] ss:$12 sps:$4 sm:$0xff]  }
 0x159   :  { %4923 = vmatpush1.bf16.msra.mxu1 %v7147_v49  ;;  %v7206_v49 = vld [vmem:[%s9754_s1 + $0xfc4] ss:$12 sps:$4 sm:$0xff]  }
 0x15a   :  { %4924 = vmatprep.subr.bf16.mxu1 %v7155_v54  ;;  %v7207_v54 = vld [vmem:[%s9754_s1 + $0x1140] ss:$12 sps:$4 sm:$0xff]  }
 0x15b   :  { %4884 = vmatpush1.bf16.msra.mxu0 %v7150_v53  ;;  %v7209_v53 = vld [vmem:[%s9754_s1 + $0x1144] ss:$12 sps:$4 sm:$0xff]  }
 0x15c   :  { %4885 = vmatprep.subr.bf16.mxu0 %v7158_v57  ;;  %v8863_v57 = vld [vmem:[%s9755_s0 + $0x60] sm:$0xff] }
 0x15d   :  { %4925 = vmatpush1.bf16.msra.mxu1 %v7153_v55  ;;  %v7214_v55 = vld [vmem:[%s9754_s1 + $0x12ac] ss:$12 sps:$4 sm:$0xff]  }
 0x15e   :  { %4926 = vmatprep.subr.bf16.mxu1 %v7161_v62  ;;  %v8870_v62 = vcombine.low %v8635_v56, %v8635_v56  ;;  %v7222_v56 = vld [vmem:[%s9754_s1 + $0x1294] ss:$12 sps:$4 sm:$0xff]  }
 0x15f   :  { %4886 = vmatpush1.bf16.msra.mxu0 %v7156_v59  ;;  %v7212_v59 = vld [vmem:[%s9754_s1 + $0x12a8] ss:$12 sps:$4 sm:$0xff]  }
 0x160   :  { %4887 = vmatprep.subr.bf16.mxu0 %v7164_v3  ;;  %v7217_v3 = vld [vmem:[%s9754_s1 + $0x1428] ss:$12 sps:$4 sm:$0xff]  }
 0x161   :  { %4927 = vmatpush1.bf16.msra.mxu1 %v7159_v2  ;;  %v7219_v2 = vld [vmem:[%s9754_s1 + $0x142c] ss:$12 sps:$4 sm:$0xff]  }
 0x162   :  { %4928 = vmatprep.subr.bf16.mxu1 %v7167_v1  ;;  %v8884_v1 = vcombine.low %v8650_v60, %v8650_v60 }
 0x163   :  { %4888 = vmatpush2.bf16.msra.mxu0 %v7162_v7  ;;  %v8880_v7 = vcombine.high %v8863_v57, %v8863_v57 }
 0x164   :  { %4889 = vmatprep.subr.bf16.mxu0 %v7170_v11  ;;  %v7225_v11 = vld [vmem:[%s9754_s1 + $0x1414] ss:$12 sps:$4 sm:$0xff]  }
 0x165   :  { %4929 = vmatpush2.bf16.msra.mxu1 %v7165_v9  ;;  %v7220_v9 = vld [vmem:[%s9754_s1 + $0x1290] ss:$12 sps:$4 sm:$0xff]  }
 0x166   :  { %4930 = vmatprep.subr.bf16.mxu1 %v7173_v12  ;;  %v7223_v12 = vld [vmem:[%s9754_s1 + $0x1410] ss:$12 sps:$4 sm:$0xff]  }
 0x167   :  { %4890 = vmatpush2.bf16.msra.mxu0 %v7168_v38 }
 0x168   :  { %4891 = vmatprep.subr.bf16.mxu0 %v7176_v14 }
 0x169   :  { %4931 = vmatpush2.bf16.msra.mxu1 %v7171_v13 }
 0x16a   :  { %4932 = vmatprep.subr.bf16.mxu1 %v7179_v17 }
 0x16b   :  { %4892 = vmatpush2.bf16.msra.mxu0 %v7174_v20  ;;  %v7228_v20 = vld [vmem:[%s9754_s1 + $0x127c] ss:$12 sps:$4 sm:$0xff]  }
 0x16c   :  { %4893 = vmatprep.subr.bf16.mxu0 %v7182_v22  ;;  %v7507_v22 = vmov 0  }
 0x16d   :  { %4933 = vmatpush2.bf16.msra.mxu1 %v7177_v19 }
 0x16e   :  { %4934 = vmatprep.subr.bf16.mxu1 %v7185_v26 }
 0x16f   :  { %4894 = vmatpush2.bf16.msra.mxu0 %v7180_v29 }
 0x170   :  { %4895 = vmatprep.subr.bf16.mxu0 %v7188_v30 }
 0x171   :  { %4935 = vmatpush2.bf16.msra.mxu1 %v7183_v28  ;;  %v7231_v28 = vld [vmem:[%s9754_s1 + $0x13fc] ss:$12 sps:$4 sm:$0xff]  }
 0x172   :  { %4936 = vmatprep.subr.bf16.mxu1 %v7191_v33  ;;  %v7234_v33 = vld [vmem:[%s9754_s1 + $0x1264] ss:$12 sps:$4 sm:$0xff]  }
 0x173   :  { %4896 = vmatpush2.bf16.msra.mxu0 %v7186_v31 }
 0x174   :  { %4897 = vmatprep.subr.bf16.mxu0 %v7194_v39  ;;  %v7232_v39 = vld [vmem:[%s9754_s1 + $0x1260] ss:$12 sps:$4 sm:$0xff]  }
 0x175   :  { %4937 = vmatpush2.bf16.msra.mxu1 %v7189_v36 }
 0x176   :  { %4938 = vmatprep.subr.bf16.mxu1 %v7197_v42 }
 0x177   :  { %4898 = vmatpush2.bf16.msra.mxu0 %v7192_v41  ;;  %v7237_v41 = vld [vmem:[%s9754_s1 + $0x13e4] ss:$12 sps:$4 sm:$0xff]  }
 0x178   :  { %4899 = vmatprep.subr.bf16.mxu0 %v7200_v44  ;;  %v7240_v44 = vld [vmem:[%s9754_s1 + $0x124c] ss:$12 sps:$4 sm:$0xff]  }
 0x179   :  { %4939 = vmatpush2.bf16.msra.mxu1 %v7195_v25  ;;  %v7235_v25 = vld [vmem:[%s9754_s1 + $0x13e0] ss:$12 sps:$4 sm:$0xff]  }
 0x17a   :  { %4940 = vmatprep.subr.bf16.mxu1 %v7203_v46  ;;  %v7243_v46 = vld [vmem:[%s9754_s1 + $0x13cc] ss:$12 sps:$4 sm:$0xff]  }
 0x17b   :  { %4900 = vmatpush2.bf16.msra.mxu0 %v7198_v45  ;;  %v7238_v45 = vld [vmem:[%s9754_s1 + $0x1248] ss:$12 sps:$4 sm:$0xff]  }
 0x17c   :  { %4901 = vmatprep.subr.bf16.mxu0 %v7206_v49  ;;  %v7246_v49 = vld [vmem:[%s9754_s1 + $0x1234] ss:$12 sps:$4 sm:$0xff]  }
 0x17d   :  { %4941 = vmatpush2.bf16.msra.mxu1 %v7201_v47  ;;  %v7241_v47 = vld [vmem:[%s9754_s1 + $0x13c8] ss:$12 sps:$4 sm:$0xff]  }
 0x17e   :  { %4942 = vmatprep.subr.bf16.mxu1 %v7209_v53  ;;  %v7249_v53 = vld [vmem:[%s9754_s1 + $0x13b4] ss:$12 sps:$4 sm:$0xff]  }
 0x17f   :  { %4902 = vmatpush2.bf16.msra.mxu0 %v7204_v50  ;;  %v7244_v50 = vld [vmem:[%s9754_s1 + $0x1230] ss:$12 sps:$4 sm:$0xff]  }
 0x180   :  { %4953 = vmatprep.subr.bf16.mxu0 %v7214_v55  ;;  %v7252_v55 = vld [vmem:[%s9754_s1 + $0x121c] ss:$12 sps:$4 sm:$0xff]  }
 0x181   :  { %4943 = vmatpush2.bf16.msra.mxu1 %v7207_v54  ;;  %v7247_v54 = vld [vmem:[%s9754_s1 + $0x13b0] ss:$12 sps:$4 sm:$0xff]  }
 0x182   :  { %v4659_v38 = vpop.f32.mrf.mxu0  ;;  %4904 = vmatmul.mubr.bf16.vlgmr.msra.gmra.mxu0 %v8870_v62  ;;  %4994 = vmatprep.subr.bf16.mxu1 %v7219_v2  ;;  %v7255_v2 = vld [vmem:[%s9754_s1 + $0x139c] ss:$12 sps:$4 sm:$0xff]  }
 0x183   :  { %v4660_v60 = vadd.f32 %v4659_v38, %v8687_v16  ;;  %4954 = vmatpush1.bf16.msra.mxu0 %v7212_v59  ;;  %4985 = vmatprep.mubr.bf16.mxu0 %v8880_v7  ;;  %v7226_v16 = vld [vmem:[%s9754_s1 + $0x1278] ss:$12 sps:$4 sm:$0xff]   ;;  %v7259_v38 = vld [vmem:[%s9754_s1 + $0x1380] ss:$12 sps:$4 sm:$0xff]  }
 0x184   :  { %v4661_v13 = vpop.f32.mrf.mxu0  ;;  %v4700_v14 = vpop.f32.mrf.mxu1  ;;  %4945 = vmatmul.mubr.bf16.vlgmr.msra.gmra.mxu1 %v8884_v1  ;;  %4955 = vmatprep.subr.bf16.mxu0 %v7222_v56  ;;  %v7250_v59 = vld [vmem:[%s9754_s1 + $0x1218] ss:$12 sps:$4 sm:$0xff]  }
 0x185   :  { %v4662_v17 = vadd.f32 %v4661_v13, %v8696_v23  ;;  %v8906_v19 = vadd.f32 %v4700_v14, %v4660_v60  ;;  %4995 = vmatpush1.bf16.msra.mxu1 %v7217_v3  ;;  %5026 = vmatprep.mubr.bf16.mxu1 %v7507_v22  ;;  %v7229_v23 = vld [vmem:[%s9754_s1 + $0x13f8] ss:$12 sps:$4 sm:$0xff]   ;;  %v7265_v13 = vld [vmem:[%s9754_s1 + $0x170] ss:$12 sps:$4 sm:$0xff]   ;;  %v7266_v14 = vld [vmem:[%s9755_s0 + $0x68] ss:$0 sps:$4 sm:$0xff]  }
 0x186   :  { %v4663_v29 = vpop.f32.mrf.mxu0  ;;  %v4702_v26 = vpop.f32.mrf.mxu1  ;;  %4996 = vmatprep.subr.bf16.mxu1 %v7225_v11  ;;  %v7253_v3 = vld [vmem:[%s9754_s1 + $0x1398] ss:$12 sps:$4 sm:$0xff]   ;;  %v7268_v22 = vld [vmem:[%s9754_s1 + $0x1350] ss:$12 sps:$4 sm:$0xff]  }
 0x187   :  { %v8914_v30 = vadd.f32 %v4702_v26, %v4662_v17  ;;  %4956 = vmatpush1.bf16.msra.mxu0 %v7220_v9  ;;  %v7258_v56 = vld [vmem:[%s9754_s1 + $0x1204] ss:$12 sps:$4 sm:$0xff]   ;;  %v7256_v9 = vld [vmem:[%s9754_s1 + $0x1200] ss:$12 sps:$4 sm:$0xff]   ;;  %v7275_v29 = vld [vmem:[%s9754_s1 + $0x133c] ss:$12 sps:$4 sm:$0xff]  }
 0x188   :  { %v4664_v31 = vpop.f32.mrf.mxu0  ;;  %4957 = vmatprep.subr.bf16.mxu0 %v7228_v20  ;;  %v4704_v36 = vpop.f32.mrf.mxu1  ;;  %v7261_v11 = vld [vmem:[%s9754_s1 + $0x1384] ss:$12 sps:$4 sm:$0xff]   ;;  %v7264_v60 = vld [vmem:[%s9754_s1 + $0x136c] ss:$12 sps:$4 sm:$0xff]   ;;  %v7270_v20 = vld [vmem:[%s9754_s1 + $0x1354] ss:$12 sps:$4 sm:$0xff]  }
 0x189   :  { %4997 = vmatpush1.bf16.msra.mxu1 %v7223_v12  ;;  %v7262_v12 = vld [vmem:[%s9754_s1 + $0x1368] ss:$12 sps:$4 sm:$0xff]   ;;  %v7267_v17 = vld [vmem:[%s9754_s1 + $0xb0] ss:$12 sps:$4 sm:$0xff]   ;;  %v7272_v26 = vld [vmem:[%s9754_s1 + $0x98] ss:$12 sps:$4 sm:$0xff]  }
 0x18a   :  { %4998 = vmatprep.subr.bf16.mxu1 %v7231_v28  ;;  %v4705_v42 = vpop.f32.mrf.mxu1  ;;  %v7276_v28 = vld [vmem:[%s9754_s1 + $0x140] ss:$12 sps:$4 sm:$0xff]   ;;  %v7280_v31 = vld [vmem:[%s9754_s1 + $0x1324] ss:$12 sps:$4 sm:$0xff]  }
 0x18b   :  { %4958 = vmatpush1.bf16.msra.mxu0 %v7226_v16  ;;  %v7271_v16 = vld [vmem:[%s9754_s1 + $0x158] ss:$12 sps:$4 sm:$0xff]   ;;  %v7278_v36 = vld [vmem:[%s9754_s1 + $0x1320] ss:$12 sps:$4 sm:$0xff]   ;;  %v7286_v42 = vld [vmem:[%s9754_s1 + $0x110] ss:$12 sps:$4 sm:$0xff]  }
 0x18c   :  { %4959 = vmatprep.subr.bf16.mxu0 %v7234_v33  ;;  %v7281_v33 = vld [vmem:[%s9754_s1 + $0x128] ss:$12 sps:$4 sm:$0xff]  }
 0x18d   :  { %4999 = vmatpush1.bf16.msra.mxu1 %v7229_v23  ;;  %v7273_v23 = vld [vmem:[%s9754_s1 + $0x1338] ss:$12 sps:$4 sm:$0xff]  }
 0x18e   :  { %5000 = vmatprep.subr.bf16.mxu1 %v7237_v41  ;;  %v7282_v41 = vld [vmem:[%s9754_s1 + $0x68] ss:$12 sps:$4 sm:$0xff]  }
 0x18f   :  { %4960 = vmatpush1.bf16.msra.mxu0 %v7232_v39  ;;  %v7285_v39 = vld [vmem:[%s9754_s1 + $0x130c] ss:$12 sps:$4 sm:$0xff]  }
 0x190   :  { %4961 = vmatprep.subr.bf16.mxu0 %v7240_v44  ;;  %v7290_v44 = vld [vmem:[%s9754_s1 + $0x12f4] ss:$12 sps:$4 sm:$0xff]  }
 0x191   :  { %5001 = vmatpush1.bf16.msra.mxu1 %v7235_v25  ;;  %v7283_v25 = vld [vmem:[%s9754_s1 + $0x1308] ss:$12 sps:$4 sm:$0xff]  }
 0x192   :  { %5002 = vmatprep.subr.bf16.mxu1 %v7243_v46  ;;  %v7291_v46 = vld [vmem:[%s9754_s1 + $0xf8] ss:$12 sps:$4 sm:$0xff]  }
 0x193   :  { %4962 = vmatpush1.bf16.msra.mxu0 %v7238_v45  ;;  %v7287_v45 = vld [vmem:[%s9754_s1 + $0x50] ss:$12 sps:$4 sm:$0xff]  }
 0x194   :  { %4963 = vmatprep.subr.bf16.mxu0 %v7246_v49  ;;  %v7295_v49 = vld [vmem:[%s9754_s1 + $0x12dc] ss:$12 sps:$4 sm:$0xff]  }
 0x195   :  { %5003 = vmatpush1.bf16.msra.mxu1 %v7241_v47  ;;  %v7288_v47 = vld [vmem:[%s9754_s1 + $0x12f0] ss:$12 sps:$4 sm:$0xff]  }
 0x196   :  { %5004 = vmatprep.subr.bf16.mxu1 %v7249_v53  ;;  %v7296_v53 = vld [vmem:[%s9754_s1 + $0xe0] ss:$12 sps:$4 sm:$0xff]  }
 0x197   :  { %4964 = vmatpush1.bf16.msra.mxu0 %v7244_v50  ;;  %v7292_v50 = vld [vmem:[%s9754_s1 + $0x38] ss:$12 sps:$4 sm:$0xff]  }
 0x198   :  { %4965 = vmatprep.subr.bf16.mxu0 %v7252_v55  ;;  %v7300_v55 = vld [vmem:[%s9754_s1 + $0x12c4] ss:$12 sps:$4 sm:$0xff]  }
 0x199   :  { %5005 = vmatpush1.bf16.msra.mxu1 %v7247_v54  ;;  %v7293_v54 = vld [vmem:[%s9754_s1 + $0x12d8] ss:$12 sps:$4 sm:$0xff]  }
 0x19a   :  { %5006 = vmatprep.subr.bf16.mxu1 %v7255_v2  ;;  %v7301_v2 = vld [vmem:[%s9754_s1 + $0xc8] ss:$12 sps:$4 sm:$0xff]  }
 0x19b   :  { %4966 = vmatpush1.bf16.msra.mxu0 %v7250_v59  ;;  %v7297_v59 = vld [vmem:[%s9754_s1 + $0x20] ss:$12 sps:$4 sm:$0xff]  }
 0x19c   :  { %4967 = vmatprep.subr.bf16.mxu0 %v7258_v56  ;;  %v7305_v56 = vld [vmem:[%s9754_s1 + $0x2f0] ss:$12 sps:$4 sm:$0xff]  }
 0x19d   :  { %5007 = vmatpush1.bf16.msra.mxu1 %v7253_v3  ;;  %v7298_v3 = vld [vmem:[%s9754_s1 + $0x12c0] ss:$12 sps:$4 sm:$0xff]  }
 0x19e   :  { %5008 = vmatprep.subr.bf16.mxu1 %v7261_v11  ;;  %v9084_v11 = vcombine.low %v8863_v57, %v8863_v57  ;;  %v7308_v57 = vld [vmem:[%s9754_s1 + $0x3b0] ss:$12 sps:$4 sm:$0xff]  }
 0x19f   :  { %4968 = vmatpush1.bf16.msra.mxu0 %v7256_v9  ;;  %v7304_v9 = vld [vmem:[%s9754_s1 + $0x8] ss:$12 sps:$4 sm:$0xff]  }
 0x1a0   :  { %4969 = vmatprep.subr.bf16.mxu0 %v7264_v60  ;;  %v7306_v60 = vld [vmem:[%s9754_s1 + $0x230] ss:$12 sps:$4 sm:$0xff]  }
 0x1a1   :  { %5009 = vmatpush1.bf16.msra.mxu1 %v7259_v38  ;;  %v7307_v38 = vld [vmem:[%s9754_s1 + $0x470] ss:$12 sps:$4 sm:$0xff]  }
 0x1a2   :  { %6296 = vmatprep.subr.bf16.mxu1 %v7265_v13 }
 0x1a3   :  { %4970 = vmatpush2.bf16.msra.mxu0 %v7262_v12  ;;  %v7309_v12 = vld [vmem:[%s9754_s1 + $0x2d8] ss:$12 sps:$4 sm:$0xff]  }
 0x1a4   :  { %5027 = vmatmul.mubr.bf16.vlgmr.msra.gmra.mxu1 %v7266_v14  ;;  %4971 = vmatprep.subr.bf16.mxu0 %v7270_v20  ;;  %v7311_v14 = vld [vmem:[%s9754_s1 + $0x458] ss:$12 sps:$4 sm:$0xff]  }
 0x1a5   :  { %6297 = vmatpush3.bf16.msra.mxu1 %v7267_v17  ;;  %5067 = vmatprep.mubr.bf16.mxu1 %v7674_v48  ;;  %v7277_v48 = vld [vmem:[%s9754_s1 + $0x80] ss:$12 sps:$4 sm:$0xff]   ;;  %v7310_v17 = vld [vmem:[%s9754_s1 + $0x218] ss:$12 sps:$4 sm:$0xff]  }
 0x1a6   :  { %6298 = vmatprep.subr.bf16.mxu1 %v7271_v16 }
 0x1a7   :  { %4972 = vmatpush2.bf16.msra.mxu0 %v7268_v22 }
 0x1a8   :  { %4973 = vmatprep.subr.bf16.mxu0 %v7275_v29  ;;  %v7313_v29 = vld [vmem:[%s9754_s1 + $0x2c0] ss:$12 sps:$4 sm:$0xff]  }
 0x1a9   :  { %6299 = vmatpush3.bf16.msra.mxu1 %v7272_v26 }
 0x1aa   :  { %6300 = vmatprep.subr.bf16.mxu1 %v7276_v28 }
 0x1ab   :  { %4974 = vmatpush2.bf16.msra.mxu0 %v7273_v23 }
 0x1ac   :  { %4975 = vmatprep.subr.bf16.mxu0 %v7280_v31 }
 0x1ad   :  { %6301 = vmatpush3.bf16.msra.mxu1 %v7277_v48 }
 0x1ae   :  { %6302 = vmatprep.subr.bf16.mxu1 %v7281_v33 }
 0x1af   :  { %4976 = vmatpush2.bf16.msra.mxu0 %v7278_v36  ;;  %v7316_v36 = vld [vmem:[%s9754_s1 + $0x380] ss:$12 sps:$4 sm:$0xff]  }
 0x1b0   :  { %4977 = vmatprep.subr.bf16.mxu0 %v7285_v39  ;;  %v7319_v39 = vld [vmem:[%s9754_s1 + $0x428] ss:$12 sps:$4 sm:$0xff]  }
 0x1b1   :  { %6303 = vmatpush3.bf16.msra.mxu1 %v7282_v41 }
 0x1b2   :  { %6304 = vmatprep.subr.bf16.mxu1 %v7286_v42  ;;  %v7318_v42 = vld [vmem:[%s9754_s1 + $0x1e8] ss:$12 sps:$4 sm:$0xff]  }
 0x1b3   :  { %4978 = vmatpush2.bf16.msra.mxu0 %v7283_v25  ;;  %v7321_v25 = vld [vmem:[%s9754_s1 + $0x290] ss:$12 sps:$4 sm:$0xff]  }
 0x1b4   :  { %4979 = vmatprep.subr.bf16.mxu0 %v7290_v44  ;;  %v7320_v44 = vld [vmem:[%s9754_s1 + $0x368] ss:$12 sps:$4 sm:$0xff]  }
 0x1b5   :  { %6305 = vmatpush3.bf16.msra.mxu1 %v7287_v45  ;;  %v7323_v45 = vld [vmem:[%s9754_s1 + $0x410] ss:$12 sps:$4 sm:$0xff]  }
 0x1b6   :  { %6306 = vmatprep.subr.bf16.mxu1 %v7291_v46  ;;  %v7322_v46 = vld [vmem:[%s9754_s1 + $0x1d0] ss:$12 sps:$4 sm:$0xff]  }
 0x1b7   :  { %4980 = vmatpush2.bf16.msra.mxu0 %v7288_v47  ;;  %v7325_v47 = vld [vmem:[%s9754_s1 + $0x278] ss:$12 sps:$4 sm:$0xff]  }
 0x1b8   :  { %4981 = vmatprep.subr.bf16.mxu0 %v7295_v49  ;;  %v7324_v49 = vld [vmem:[%s9754_s1 + $0x350] ss:$12 sps:$4 sm:$0xff]  }
 0x1b9   :  { %6307 = vmatpush3.bf16.msra.mxu1 %v7292_v50  ;;  %v7327_v50 = vld [vmem:[%s9754_s1 + $0x3f8] ss:$12 sps:$4 sm:$0xff]  }
 0x1ba   :  { %6308 = vmatprep.subr.bf16.mxu1 %v7296_v53  ;;  %v7326_v53 = vld [vmem:[%s9754_s1 + $0x1b8] ss:$12 sps:$4 sm:$0xff]  }
 0x1bb   :  { %4982 = vmatpush2.bf16.msra.mxu0 %v7293_v54  ;;  %v7329_v54 = vld [vmem:[%s9754_s1 + $0x260] ss:$12 sps:$4 sm:$0xff]  }
 0x1bc   :  { %4983 = vmatprep.subr.bf16.mxu0 %v7300_v55  ;;  %v7328_v55 = vld [vmem:[%s9754_s1 + $0x338] ss:$12 sps:$4 sm:$0xff]  }
 0x1bd   :  { %6309 = vmatpush3.bf16.msra.mxu1 %v7297_v59  ;;  %v7331_v59 = vld [vmem:[%s9754_s1 + $0x3e0] ss:$12 sps:$4 sm:$0xff]  }
 0x1be   :  { %6310 = vmatprep.subr.bf16.mxu1 %v7301_v2  ;;  %v7330_v2 = vld [vmem:[%s9754_s1 + $0x1a0] ss:$12 sps:$4 sm:$0xff]  }
 0x1bf   :  { %4984 = vmatpush2.bf16.msra.mxu0 %v7298_v3  ;;  %v7333_v3 = vld [vmem:[%s9754_s1 + $0x248] ss:$12 sps:$4 sm:$0xff]  }
 0x1c0   :  { %6318 = vmatprep.subr.bf16.mxu0 %v7305_v56  ;;  %v7332_v56 = vld [vmem:[%s9754_s1 + $0x320] ss:$12 sps:$4 sm:$0xff]  }
 0x1c1   :  { %6311 = vmatpush3.bf16.msra.mxu1 %v7304_v9  ;;  %v7335_v9 = vld [vmem:[%s9754_s1 + $0x3c8] ss:$12 sps:$4 sm:$0xff]  }
 0x1c2   :  { %v4741_v13 = vpop.f32.mrf.mxu0  ;;  %4986 = vmatmul.mubr.bf16.vlgmr.msra.gmra.mxu0 %v9084_v11  ;;  %6340 = vmatprep.subr.bf16.mxu1 %v7307_v38  ;;  %v7334_v38 = vld [vmem:[%s9754_s1 + $0x188] ss:$12 sps:$4 sm:$0xff]  }
 0x1c3   :  { %v4742_v20 = vadd.f32 %v4741_v13, %v8906_v19  ;;  %6319 = vmatpush3.bf16.msra.mxu0 %v7306_v60  ;;  %5107 = vmatprep.mubr.bf16.mxu0 %v7686_v52  ;;  %v7312_v19 = vld [vmem:[%s9754_s1 + $0x398] ss:$12 sps:$4 sm:$0xff]   ;;  %v7337_v60 = vld [vmem:[%s9754_s1 + $0x5f0] ss:$12 sps:$4 sm:$0xff]  }
 0x1c4   :  { %v4743_v16 = vpop.f32.mrf.mxu0  ;;  %v4782_v22 = vpop.f32.mrf.mxu1  ;;  %5068 = vmatmul.mubr.bf16.vlgmr.msra.gmra.mxu1 %v7737_v5  ;;  %6320 = vmatprep.subr.bf16.mxu0 %v7309_v12  ;;  %v7315_v5 = vld [vmem:[%s9754_s1 + $0x440] ss:$12 sps:$4 sm:$0xff]   ;;  %v7336_v12 = vld [vmem:[%s9754_s1 + $0x308] ss:$12 sps:$4 sm:$0xff]   ;;  %v7338_v13 = vld [vmem:[%s9754_s1 + $0x530] ss:$12 sps:$4 sm:$0xff]  }
 0x1c5   :  { %v4744_v26 = vadd.f32 %v4743_v16, %v8914_v30  ;;  %v9112_v28 = vadd.f32 %v4782_v22, %v4742_v20  ;;  %6341 = vmatpush3.bf16.msra.mxu1 %v7308_v57  ;;  %5147 = vmatprep.mubr.bf16.mxu1 %v7828_v34  ;;  %v7314_v30 = vld [vmem:[%s9754_s1 + $0x200] ss:$12 sps:$4 sm:$0xff]   ;;  %v7317_v34 = vld [vmem:[%s9754_s1 + $0x2a8] ss:$12 sps:$4 sm:$0xff]   ;;  %v7339_v57 = vld [vmem:[%s9754_s1 + $0x770] ss:$12 sps:$4 sm:$0xff]  }
 0x1c6   :  { %v4745_v52 = vpop.f32.mrf.mxu0  ;;  %v4784_v23 = vpop.f32.mrf.mxu1  ;;  %6342 = vmatprep.subr.bf16.mxu1 %v7311_v14  ;;  %v7341_v14 = vld [vmem:[%s9754_s1 + $0x5d8] ss:$12 sps:$4 sm:$0xff]   ;;  %v7340_v20 = vld [vmem:[%s9754_s1 + $0x6b0] ss:$12 sps:$4 sm:$0xff]   ;;  %v7345_v22 = vld [vmem:[%s9754_s1 + $0x5c0] ss:$12 sps:$4 sm:$0xff]  }
 0x1c7   :  { %v9121_v31 = vadd.f32 %v4784_v23, %v4744_v26  ;;  %6321 = vmatpush3.bf16.msra.mxu0 %v7310_v17  ;;  %v7343_v17 = vld [vmem:[%s9754_s1 + $0x758] ss:$12 sps:$4 sm:$0xff]   ;;  %v7351_v26 = vld [vmem:[%s9754_s1 + $0x728] ss:$12 sps:$4 sm:$0xff]   ;;  %v7353_v52 = vld [vmem:[%s9754_s1 + $0x590] ss:$12 sps:$4 sm:$0xff]  }
 0x1c8   :  { %v4746_v48 = vpop.f32.mrf.mxu0  ;;  %6322 = vmatprep.subr.bf16.mxu0 %v7313_v29  ;;  %v4786_v33 = vpop.f32.mrf.mxu1  ;;  %v7342_v16 = vld [vmem:[%s9754_s1 + $0x518] ss:$12 sps:$4 sm:$0xff]   ;;  %v7347_v29 = vld [vmem:[%s9754_s1 + $0x740] ss:$12 sps:$4 sm:$0xff]   ;;  %v7352_v23 = vld [vmem:[%s9754_s1 + $0x668] ss:$12 sps:$4 sm:$0xff]  }
 0x1c9   :  { %6343 = vmatpush3.bf16.msra.mxu1 %v7312_v19  ;;  %v7350_v19 = vld [vmem:[%s9754_s1 + $0x4e8] ss:$12 sps:$4 sm:$0xff]   ;;  %v7357_v48 = vld [vmem:[%s9754_s1 + $0x578] ss:$12 sps:$4 sm:$0xff]  }
 0x1ca   :  { %6344 = vmatprep.subr.bf16.mxu1 %v7315_v5  ;;  %v4787_v41 = vpop.f32.mrf.mxu1  ;;  %v7355_v5 = vld [vmem:[%s9754_s1 + $0x710] ss:$12 sps:$4 sm:$0xff]   ;;  %v7359_v33 = vld [vmem:[%s9754_s1 + $0x6f8] ss:$12 sps:$4 sm:$0xff]  }
 0x1cb   :  { %6323 = vmatpush3.bf16.msra.mxu0 %v7314_v30  ;;  %v7354_v30 = vld [vmem:[%s9754_s1 + $0x4d0] ss:$12 sps:$4 sm:$0xff]   ;;  %v7360_v41 = vld [vmem:[%s9754_s1 + $0x638] ss:$12 sps:$4 sm:$0xff]  }
 0x1cc   :  { %6324 = vmatprep.subr.bf16.mxu0 %v7317_v34  ;;  %v7356_v34 = vld [vmem:[%s9754_s1 + $0x650] ss:$12 sps:$4 sm:$0xff]  }
 0x1cd   :  { %6345 = vmatpush3.bf16.msra.mxu1 %v7316_v36  ;;  %v7358_v36 = vld [vmem:[%s9754_s1 + $0x4b8] ss:$12 sps:$4 sm:$0xff]  }
 0x1ce   :  { %6346 = vmatprep.subr.bf16.mxu1 %v7319_v39  ;;  %v7361_v39 = vld [vmem:[%s9754_s1 + $0x560] ss:$12 sps:$4 sm:$0xff]  }
 0x1cf   :  { %6325 = vmatpush3.bf16.msra.mxu0 %v7318_v42  ;;  %v7363_v42 = vld [vmem:[%s9754_s1 + $0x6e0] ss:$12 sps:$4 sm:$0xff]  }
 0x1d0   :  { %6326 = vmatprep.subr.bf16.mxu0 %v7321_v25  ;;  %v7362_v25 = vld [vmem:[%s9754_s1 + $0x4a0] ss:$12 sps:$4 sm:$0xff]  }
 0x1d1   :  { %6347 = vmatpush3.bf16.msra.mxu1 %v7320_v44  ;;  %v7365_v44 = vld [vmem:[%s9754_s1 + $0x548] ss:$12 sps:$4 sm:$0xff]  }
 0x1d2   :  { %6348 = vmatprep.subr.bf16.mxu1 %v7323_v45  ;;  %v7364_v45 = vld [vmem:[%s9754_s1 + $0x620] ss:$12 sps:$4 sm:$0xff]  }
 0x1d3   :  { %6327 = vmatpush3.bf16.msra.mxu0 %v7322_v46  ;;  %v7367_v46 = vld [vmem:[%s9754_s1 + $0x6c8] ss:$12 sps:$4 sm:$0xff]  }
 0x1d4   :  { %6328 = vmatprep.subr.bf16.mxu0 %v7325_v47  ;;  %v7366_v47 = vld [vmem:[%s9754_s1 + $0x488] ss:$12 sps:$4 sm:$0xff]  }
 0x1d5   :  { %6349 = vmatpush3.bf16.msra.mxu1 %v7324_v49  ;;  %v7369_v49 = vld [vmem:[%s9754_s1 + $0x8f0] ss:$12 sps:$4 sm:$0xff]  }
 0x1d6   :  { %6350 = vmatprep.subr.bf16.mxu1 %v7327_v50  ;;  %v7368_v50 = vld [vmem:[%s9754_s1 + $0x608] ss:$12 sps:$4 sm:$0xff]  }
 0x1d7   :  { %6329 = vmatpush3.bf16.msra.mxu0 %v7326_v53  ;;  %v7371_v53 = vld [vmem:[%s9754_s1 + $0xa70] ss:$12 sps:$4 sm:$0xff]  }
 0x1d8   :  { %6330 = vmatprep.subr.bf16.mxu0 %v7329_v54  ;;  %v7370_v54 = vld [vmem:[%s9754_s1 + $0x830] ss:$12 sps:$4 sm:$0xff]  }
 0x1d9   :  { %6351 = vmatpush3.bf16.msra.mxu1 %v7328_v55  ;;  %v7373_v55 = vld [vmem:[%s9754_s1 + $0x8d8] ss:$12 sps:$4 sm:$0xff]  }
 0x1da   :  { %6352 = vmatprep.subr.bf16.mxu1 %v7331_v59  ;;  %v7372_v59 = vld [vmem:[%s9754_s1 + $0x9b0] ss:$12 sps:$4 sm:$0xff]  }
 0x1db   :  { %6331 = vmatpush3.bf16.msra.mxu0 %v7330_v2 }
 0x1dc   :  { %6332 = vmatprep.subr.bf16.mxu0 %v7333_v3  ;;  %v7375_v3 = vld [vmem:[%s9754_s1 + $0xa58] ss:$12 sps:$4 sm:$0xff]  }
 0x1dd   :  { %6353 = vmatpush3.bf16.msra.mxu1 %v7332_v56 }
 0x1de   :  { %6354 = vmatprep.subr.bf16.mxu1 %v7335_v9  ;;  %v7374_v9 = vld [vmem:[%s9754_s1 + $0x818] ss:$12 sps:$4 sm:$0xff]  }
 0x1df   :  { %6333 = vmatpush3.bf16.msra.mxu0 %v7334_v38 }
 0x1e0   :  { %6362 = vmatprep.subr.bf16.mxu0 %v7337_v60 }
 0x1e1   :  { %6355 = vmatpush3.bf16.msra.mxu1 %v7336_v12 }
 0x1e2   :  { %5108 = vmatmul.mubr.bf16.vlgmr.msra.gmra.mxu0 %v7745_v8  ;;  %6384 = vmatprep.subr.bf16.mxu1 %v7339_v57  ;;  %v7344_v8 = vld [vmem:[%s9754_s1 + $0x698] ss:$12 sps:$4 sm:$0xff]  }
 0x1e3   :  { %6363 = vmatpush3.bf16.msra.mxu0 %v7338_v13  ;;  %5187 = vmatprep.mubr.bf16.mxu0 %v7840_v37  ;;  %v7346_v37 = vld [vmem:[%s9754_s1 + $0x500] ss:$12 sps:$4 sm:$0xff]  }
 0x1e4   :  { %5148 = vmatmul.mubr.bf16.vlgmr.msra.gmra.mxu1 %v7957_v15  ;;  %6364 = vmatprep.subr.bf16.mxu0 %v7341_v14  ;;  %v7349_v15 = vld [vmem:[%s9754_s1 + $0x5a8] ss:$12 sps:$4 sm:$0xff]  }
 0x1e5   :  { %6385 = vmatpush3.bf16.msra.mxu1 %v7340_v20  ;;  %5227 = vmatprep.mubr.bf16.mxu1 %v7989_v24  ;;  %v7348_v24 = vld [vmem:[%s9754_s1 + $0x680] ss:$12 sps:$4 sm:$0xff]  }
 0x1e6   :  { %6386 = vmatprep.subr.bf16.mxu1 %v7343_v17 }
 0x1e7   :  { %6365 = vmatpush3.bf16.msra.mxu0 %v7342_v16  ;;  %v7380_v16 = vld [vmem:[%s9754_s1 + $0x980] ss:$12 sps:$4 sm:$0xff]  }
 0x1e8   :  { %6366 = vmatprep.subr.bf16.mxu0 %v7345_v22  ;;  %v7383_v22 = vld [vmem:[%s9754_s1 + $0xa28] ss:$12 sps:$4 sm:$0xff]  }
 0x1e9   :  { %6387 = vmatpush3.bf16.msra.mxu1 %v7344_v8 }
 0x1ea   :  { %6388 = vmatprep.subr.bf16.mxu1 %v7347_v29  ;;  %v7382_v29 = vld [vmem:[%s9754_s1 + $0x7e8] ss:$12 sps:$4 sm:$0xff]  }
 0x1eb   :  { %6367 = vmatpush3.bf16.msra.mxu0 %v7346_v37  ;;  %v7385_v37 = vld [vmem:[%s9754_s1 + $0x890] ss:$12 sps:$4 sm:$0xff]  }
 0x1ec   :  { %6368 = vmatprep.subr.bf16.mxu0 %v7349_v15  ;;  %v7384_v15 = vld [vmem:[%s9754_s1 + $0x968] ss:$12 sps:$4 sm:$0xff]  }
 0x1ed   :  { %6389 = vmatpush3.bf16.msra.mxu1 %v7348_v24  ;;  %v7387_v24 = vld [vmem:[%s9754_s1 + $0xa10] ss:$12 sps:$4 sm:$0xff]  }
 0x1ee   :  { %6390 = vmatprep.subr.bf16.mxu1 %v7351_v26  ;;  %v7386_v26 = vld [vmem:[%s9754_s1 + $0x7d0] ss:$12 sps:$4 sm:$0xff]  }
 0x1ef   :  { %6369 = vmatpush3.bf16.msra.mxu0 %v7350_v19  ;;  %v7389_v19 = vld [vmem:[%s9754_s1 + $0x878] ss:$12 sps:$4 sm:$0xff]  }
 0x1f0   :  { %6370 = vmatprep.subr.bf16.mxu0 %v7353_v52  ;;  %v7388_v52 = vld [vmem:[%s9754_s1 + $0x950] ss:$12 sps:$4 sm:$0xff]  }
 0x1f1   :  { %6391 = vmatpush3.bf16.msra.mxu1 %v7352_v23  ;;  %v7391_v23 = vld [vmem:[%s9754_s1 + $0x9f8] ss:$12 sps:$4 sm:$0xff]  }
 0x1f2   :  { %6392 = vmatprep.subr.bf16.mxu1 %v7355_v5  ;;  %v7390_v5 = vld [vmem:[%s9754_s1 + $0x7b8] ss:$12 sps:$4 sm:$0xff]  }
 0x1f3   :  { %6371 = vmatpush3.bf16.msra.mxu0 %v7354_v30  ;;  %v7393_v30 = vld [vmem:[%s9754_s1 + $0x860] ss:$12 sps:$4 sm:$0xff]  }
 0x1f4   :  { %6372 = vmatprep.subr.bf16.mxu0 %v7357_v48  ;;  %v7392_v48 = vld [vmem:[%s9754_s1 + $0x938] ss:$12 sps:$4 sm:$0xff]  }
 0x1f5   :  { %6393 = vmatpush3.bf16.msra.mxu1 %v7356_v34  ;;  %v7395_v34 = vld [vmem:[%s9754_s1 + $0x9e0] ss:$12 sps:$4 sm:$0xff]  }
 0x1f6   :  { %6394 = vmatprep.subr.bf16.mxu1 %v7359_v33  ;;  %v7394_v33 = vld [vmem:[%s9754_s1 + $0x7a0] ss:$12 sps:$4 sm:$0xff]  }
 0x1f7   :  { %6373 = vmatpush3.bf16.msra.mxu0 %v7358_v36  ;;  %v7397_v36 = vld [vmem:[%s9754_s1 + $0x848] ss:$12 sps:$4 sm:$0xff]  }
 0x1f8   :  { %6374 = vmatprep.subr.bf16.mxu0 %v7361_v39  ;;  %v7396_v39 = vld [vmem:[%s9754_s1 + $0x920] ss:$12 sps:$4 sm:$0xff]  }
 0x1f9   :  { %6395 = vmatpush3.bf16.msra.mxu1 %v7360_v41  ;;  %v7399_v41 = vld [vmem:[%s9754_s1 + $0x9c8] ss:$12 sps:$4 sm:$0xff]  }
 0x1fa   :  { %6396 = vmatprep.subr.bf16.mxu1 %v7363_v42  ;;  %v7398_v42 = vld [vmem:[%s9754_s1 + $0x788] ss:$12 sps:$4 sm:$0xff]  }
 0x1fb   :  { %6375 = vmatpush3.bf16.msra.mxu0 %v7362_v25  ;;  %v7401_v25 = vld [vmem:[%s9754_s1 + $0xbf0] ss:$12 sps:$4 sm:$0xff]  }
 0x1fc   :  { %6376 = vmatprep.subr.bf16.mxu0 %v7365_v44  ;;  %v7400_v44 = vld [vmem:[%s9754_s1 + $0x908] ss:$12 sps:$4 sm:$0xff]  }
 0x1fd   :  { %6397 = vmatpush3.bf16.msra.mxu1 %v7364_v45  ;;  %v7403_v45 = vld [vmem:[%s9754_s1 + $0xd70] ss:$12 sps:$4 sm:$0xff]  }
 0x1fe   :  { %6398 = vmatprep.subr.bf16.mxu1 %v7367_v46  ;;  %v7402_v46 = vld [vmem:[%s9754_s1 + $0xb30] ss:$12 sps:$4 sm:$0xff]  }
 0x1ff   :  { %6377 = vmatpush3.bf16.msra.mxu0 %v7366_v47  ;;  %v7405_v47 = vld [vmem:[%s9754_s1 + $0xbd8] ss:$12 sps:$4 sm:$0xff]  }
 0x200   :  { %6406 = vmatprep.subr.bf16.mxu0 %v7369_v49  ;;  %v7404_v49 = vld [vmem:[%s9754_s1 + $0xcb0] ss:$12 sps:$4 sm:$0xff]  }
 0x201   :  { %6399 = vmatpush3.bf16.msra.mxu1 %v7368_v50  ;;  %v7407_v50 = vld [vmem:[%s9754_s1 + $0xd58] ss:$12 sps:$4 sm:$0xff]  }
 0x202   :  { %v4823_v2 = vpop.f32.mrf.mxu0  ;;  %5188 = vmatmul.mubr.bf16.vlgmr.msra.gmra.mxu0 %v7967_v18  ;;  %6428 = vmatprep.subr.bf16.mxu1 %v7371_v53  ;;  %v7377_v18 = vld [vmem:[%s9754_s1 + $0x8c0] ss:$12 sps:$4 sm:$0xff]   ;;  %v7406_v53 = vld [vmem:[%s9754_s1 + $0xb18] ss:$12 sps:$4 sm:$0xff]  }
 0x203   :  { %v4824_v56 = vadd.f32 %v4823_v2, %v9112_v28  ;;  %6407 = vmatpush3.bf16.msra.mxu0 %v7370_v54  ;;  %5267 = vmatprep.mubr.bf16.mxu0 %v8002_v27  ;;  %v7376_v28 = vld [vmem:[%s9754_s1 + $0x998] ss:$12 sps:$4 sm:$0xff]   ;;  %v7409_v54 = vld [vmem:[%s9754_s1 + $0xbc0] ss:$12 sps:$4 sm:$0xff]   ;;  %v7414_v2 = vld [vmem:[%s9754_s1 + $0xae8] ss:$12 sps:$4 sm:$0xff]  }
 0x204   :  { %v4825_v38 = vpop.f32.mrf.mxu0  ;;  %v4864_v60 = vpop.f32.mrf.mxu1  ;;  %5228 = vmatmul.mubr.bf16.vlgmr.msra.gmra.mxu1 %v8184_v35  ;;  %6408 = vmatprep.subr.bf16.mxu0 %v7373_v55  ;;  %v7379_v35 = vld [vmem:[%s9754_s1 + $0xa40] ss:$12 sps:$4 sm:$0xff]  }
 0x205   :  { %v4826_v12 = vadd.f32 %v4825_v38, %v9121_v31  ;;  %v9318_v57 = vadd.f32 %v4864_v60, %v4824_v56  ;;  %6429 = vmatpush3.bf16.msra.mxu1 %v7372_v59  ;;  %5307 = vmatprep.mubr.bf16.mxu1 %v8199_v40  ;;  %v7378_v31 = vld [vmem:[%s9754_s1 + $0x800] ss:$12 sps:$4 sm:$0xff]   ;;  %v7381_v40 = vld [vmem:[%s9754_s1 + $0x8a8] ss:$12 sps:$4 sm:$0xff]   ;;  %v7418_v38 = vld [vmem:[%s9754_s1 + $0xad0] ss:$12 sps:$4 sm:$0xff]  }
 0x206   :  { %v4827_v27 = vpop.f32.mrf.mxu0  ;;  %v4866_v13 = vpop.f32.mrf.mxu1  ;;  %6430 = vmatprep.subr.bf16.mxu1 %v7375_v3  ;;  %v7411_v55 = vld [vmem:[%s9754_s1 + $0xd40] ss:$12 sps:$4 sm:$0xff]   ;;  %v7415_v59 = vld [vmem:[%s9754_s1 + $0xd28] ss:$12 sps:$4 sm:$0xff]   ;;  %v7417_v3 = vld [vmem:[%s9754_s1 + $0xb90] ss:$12 sps:$4 sm:$0xff]  }
 0x207   :  { %v9327_v14 = vadd.f32 %v4866_v13, %v4826_v12  ;;  %6409 = vmatpush3.bf16.msra.mxu0 %v7374_v9  ;;  %v7416_v56 = vld [vmem:[%s9754_s1 + $0xc68] ss:$12 sps:$4 sm:$0xff]   ;;  %v7419_v9 = vld [vmem:[%s9754_s1 + $0xd10] ss:$12 sps:$4 sm:$0xff]   ;;  %v7421_v60 = vld [vmem:[%s9754_s1 + $0xb78] ss:$12 sps:$4 sm:$0xff]  }
 0x208   :  { %v4828_v20 = vpop.f32.mrf.mxu0  ;;  %6410 = vmatprep.subr.bf16.mxu0 %v7377_v18  ;;  %v4868_v17 = vpop.f32.mrf.mxu1  ;;  %v7420_v18 = vld [vmem:[%s9754_s1 + $0xc50] ss:$12 sps:$4 sm:$0xff]   ;;  %v7423_v12 = vld [vmem:[%s9754_s1 + $0xcf8] ss:$12 sps:$4 sm:$0xff]   ;;  %v7425_v27 = vld [vmem:[%s9754_s1 + $0xb60] ss:$12 sps:$4 sm:$0xff]  }
 0x209   :  { %6431 = vmatpush3.bf16.msra.mxu1 %v7376_v28  ;;  %v7422_v28 = vld [vmem:[%s9754_s1 + $0xab8] ss:$12 sps:$4 sm:$0xff]   ;;  %v7429_v20 = vld [vmem:[%s9754_s1 + $0xb48] ss:$12 sps:$4 sm:$0xff]  }
 0x20a   :  { %6432 = vmatprep.subr.bf16.mxu1 %v7379_v35  ;;  %v4869_v8 = vpop.f32.mrf.mxu1  ;;  %v7424_v13 = vld [vmem:[%s9754_s1 + $0xc38] ss:$12 sps:$4 sm:$0xff]   ;;  %v7427_v35 = vld [vmem:[%s9754_s1 + $0xce0] ss:$12 sps:$4 sm:$0xff]   ;;  %v7431_v17 = vld [vmem:[%s9754_s1 + $0xcc8] ss:$12 sps:$4 sm:$0xff]  }
 0x20b   :  { %6411 = vmatpush3.bf16.msra.mxu0 %v7378_v31  ;;  %v7426_v31 = vld [vmem:[%s9754_s1 + $0xaa0] ss:$12 sps:$4 sm:$0xff]   ;;  %v7432_v8 = vld [vmem:[%s9754_s1 + $0xc08] ss:$12 sps:$4 sm:$0xff]  }
 0x20c   :  { %6412 = vmatprep.subr.bf16.mxu0 %v7381_v40  ;;  %v7428_v40 = vld [vmem:[%s9754_s1 + $0xc20] ss:$12 sps:$4 sm:$0xff]  }
 0x20d   :  { %6433 = vmatpush3.bf16.msra.mxu1 %v7380_v16  ;;  %v7430_v16 = vld [vmem:[%s9754_s1 + $0xa88] ss:$12 sps:$4 sm:$0xff]  }
 0x20e   :  { %6434 = vmatprep.subr.bf16.mxu1 %v7383_v22  ;;  %v7433_v22 = vld [vmem:[%s9754_s1 + $0xef0] ss:$12 sps:$4 sm:$0xff]  }
 0x20f   :  { %6413 = vmatpush3.bf16.msra.mxu0 %v7382_v29  ;;  %v7435_v29 = vld [vmem:[%s9754_s1 + $0x1070] ss:$12 sps:$4 sm:$0xff]  }
 0x210   :  { %6414 = vmatprep.subr.bf16.mxu0 %v7385_v37  ;;  %v7434_v37 = vld [vmem:[%s9754_s1 + $0xe30] ss:$12 sps:$4 sm:$0xff]  }
 0x211   :  { %6435 = vmatpush3.bf16.msra.mxu1 %v7384_v15  ;;  %v7437_v15 = vld [vmem:[%s9754_s1 + $0xed8] ss:$12 sps:$4 sm:$0xff]  }
 0x212   :  { %6436 = vmatprep.subr.bf16.mxu1 %v7387_v24  ;;  %v7436_v24 = vld [vmem:[%s9754_s1 + $0xfb0] ss:$12 sps:$4 sm:$0xff]  }
 0x213   :  { %6415 = vmatpush3.bf16.msra.mxu0 %v7386_v26 }
 0x214   :  { %6416 = vmatprep.subr.bf16.mxu0 %v7389_v19  ;;  %v7439_v19 = vld [vmem:[%s9754_s1 + $0x1058] ss:$12 sps:$4 sm:$0xff]  }
 0x215   :  { %6437 = vmatpush3.bf16.msra.mxu1 %v7388_v52  ;;  %v7438_v52 = vld [vmem:[%s9754_s1 + $0xe18] ss:$12 sps:$4 sm:$0xff]  }
 0x216   :  { %6438 = vmatprep.subr.bf16.mxu1 %v7391_v23 }
 0x217   :  { %6417 = vmatpush3.bf16.msra.mxu0 %v7390_v5 }
 0x218   :  { %6418 = vmatprep.subr.bf16.mxu0 %v7393_v30  ;;  %v7440_v30 = vld [vmem:[%s9754_s1 + $0xf98] ss:$12 sps:$4 sm:$0xff]  }
 0x219   :  { %6439 = vmatpush3.bf16.msra.mxu1 %v7392_v48 }
 0x21a   :  { %6440 = vmatprep.subr.bf16.mxu1 %v7395_v34  ;;  %v7442_v34 = vld [vmem:[%s9754_s1 + $0xe00] ss:$12 sps:$4 sm:$0xff]  }
 0x21b   :  { %6419 = vmatpush3.bf16.msra.mxu0 %v7394_v33 }
 0x21c   :  { %6420 = vmatprep.subr.bf16.mxu0 %v7397_v36  ;;  %v7445_v36 = vld [vmem:[%s9754_s1 + $0xea8] ss:$12 sps:$4 sm:$0xff]  }
 0x21d   :  { %6441 = vmatpush3.bf16.msra.mxu1 %v7396_v39  ;;  %v7444_v39 = vld [vmem:[%s9754_s1 + $0xf80] ss:$12 sps:$4 sm:$0xff]  }
 0x21e   :  { %6442 = vmatprep.subr.bf16.mxu1 %v7399_v41  ;;  %v7447_v41 = vld [vmem:[%s9754_s1 + $0x1028] ss:$12 sps:$4 sm:$0xff]  }
 0x21f   :  { %6421 = vmatpush3.bf16.msra.mxu0 %v7398_v42 }
 0x220   :  { %6450 = vmatprep.subr.bf16.mxu0 %v7401_v25  ;;  %v7446_v25 = vld [vmem:[%s9754_s1 + $0xde8] ss:$12 sps:$4 sm:$0xff]  }
 0x221   :  { %6443 = vmatpush3.bf16.msra.mxu1 %v7400_v44  ;;  %v7449_v44 = vld [vmem:[%s9754_s1 + $0xe90] ss:$12 sps:$4 sm:$0xff]  }
 0x222   :  { %5268 = vmatmul.mubr.bf16.vlgmr.msra.gmra.mxu0 %v8203_v21  ;;  %6472 = vmatprep.subr.bf16.mxu1 %v7403_v45  ;;  %v7408_v21 = vld [vmem:[%s9754_s1 + $0xc98] ss:$12 sps:$4 sm:$0xff]   ;;  %v7448_v45 = vld [vmem:[%s9754_s1 + $0xf68] ss:$12 sps:$4 sm:$0xff]  }
 0x223   :  { %6451 = vmatpush3.bf16.msra.mxu0 %v7402_v46  ;;  %5347 = vmatprep.mubr.bf16.mxu0 %v8213_v43  ;;  %v7410_v43 = vld [vmem:[%s9754_s1 + $0xb00] ss:$12 sps:$4 sm:$0xff]   ;;  %v7451_v46 = vld [vmem:[%s9754_s1 + $0x1010] ss:$12 sps:$4 sm:$0xff]  }
 0x224   :  { %5308 = vmatmul.mubr.bf16.vlgmr.msra.gmra.mxu1 %v8416_v0  ;;  %6452 = vmatprep.subr.bf16.mxu0 %v7405_v47  ;;  %v7413_v0 = vld [vmem:[%s9754_s1 + $0xba8] ss:$12 sps:$4 sm:$0xff]   ;;  %v7450_v47 = vld [vmem:[%s9754_s1 + $0xdd0] ss:$12 sps:$4 sm:$0xff]  }
 0x225   :  { %6473 = vmatpush3.bf16.msra.mxu1 %v7404_v49  ;;  %5387 = vmatprep.mubr.bf16.mxu1 %v8428_v4  ;;  %v7412_v4 = vld [vmem:[%s9754_s1 + $0xc80] ss:$12 sps:$4 sm:$0xff]   ;;  %v7453_v49 = vld [vmem:[%s9754_s1 + $0xe78] ss:$12 sps:$4 sm:$0xff]  }
 0x226   :  { %6474 = vmatprep.subr.bf16.mxu1 %v7407_v50  ;;  %v7452_v50 = vld [vmem:[%s9754_s1 + $0xf50] ss:$12 sps:$4 sm:$0xff]  }
 0x227   :  { %6453 = vmatpush3.bf16.msra.mxu0 %v7406_v53  ;;  %v7455_v53 = vld [vmem:[%s9754_s1 + $0xff8] ss:$12 sps:$4 sm:$0xff]  }
 0x228   :  { %6454 = vmatprep.subr.bf16.mxu0 %v7409_v54  ;;  %v7454_v54 = vld [vmem:[%s9754_s1 + $0xdb8] ss:$12 sps:$4 sm:$0xff]  }
 0x229   :  { %6475 = vmatpush3.bf16.msra.mxu1 %v7408_v21  ;;  %v7457_v21 = vld [vmem:[%s9754_s1 + $0xe60] ss:$12 sps:$4 sm:$0xff]  }
 0x22a   :  { %6476 = vmatprep.subr.bf16.mxu1 %v7411_v55  ;;  %v7456_v55 = vld [vmem:[%s9754_s1 + $0xf38] ss:$12 sps:$4 sm:$0xff]  }
 0x22b   :  { %6455 = vmatpush3.bf16.msra.mxu0 %v7410_v43  ;;  %v7459_v43 = vld [vmem:[%s9754_s1 + $0xfe0] ss:$12 sps:$4 sm:$0xff]  }
 0x22c   :  { %6456 = vmatprep.subr.bf16.mxu0 %v7413_v0  ;;  %v7458_v0 = vld [vmem:[%s9754_s1 + $0xda0] ss:$12 sps:$4 sm:$0xff]  }
 0x22d   :  { %6477 = vmatpush3.bf16.msra.mxu1 %v7412_v4  ;;  %v7461_v4 = vld [vmem:[%s9754_s1 + $0xe48] ss:$12 sps:$4 sm:$0xff]  }
 0x22e   :  { %6478 = vmatprep.subr.bf16.mxu1 %v7415_v59  ;;  %v7460_v59 = vld [vmem:[%s9754_s1 + $0xf20] ss:$12 sps:$4 sm:$0xff]  }
 0x22f   :  { %6457 = vmatpush3.bf16.msra.mxu0 %v7414_v2  ;;  %v7463_v2 = vld [vmem:[%s9754_s1 + $0xfc8] ss:$12 sps:$4 sm:$0xff]  }
 0x230   :  { %6458 = vmatprep.subr.bf16.mxu0 %v7417_v3  ;;  %v7462_v3 = vld [vmem:[%s9754_s1 + $0xd88] ss:$12 sps:$4 sm:$0xff]  }
 0x231   :  { %6479 = vmatpush3.bf16.msra.mxu1 %v7416_v56  ;;  %v7465_v56 = vld [vmem:[%s9754_s1 + $0x11f0] ss:$12 sps:$4 sm:$0xff]  }
 0x232   :  { %6480 = vmatprep.subr.bf16.mxu1 %v7419_v9  ;;  %v7464_v9 = vld [vmem:[%s9754_s1 + $0xf08] ss:$12 sps:$4 sm:$0xff]  }
 0x233   :  { %6459 = vmatpush3.bf16.msra.mxu0 %v7418_v38  ;;  %v7467_v38 = vld [vmem:[%s9754_s1 + $0x1370] ss:$12 sps:$4 sm:$0xff]  }
 0x234   :  { %6460 = vmatprep.subr.bf16.mxu0 %v7421_v60  ;;  %v7466_v60 = vld [vmem:[%s9754_s1 + $0x1130] ss:$12 sps:$4 sm:$0xff]  }
 0x235   :  { %6481 = vmatpush3.bf16.msra.mxu1 %v7420_v18  ;;  %v7469_v18 = vld [vmem:[%s9754_s1 + $0x11d8] ss:$12 sps:$4 sm:$0xff]  }
 0x236   :  { %6482 = vmatprep.subr.bf16.mxu1 %v7423_v12  ;;  %v7468_v12 = vld [vmem:[%s9754_s1 + $0x12b0] ss:$12 sps:$4 sm:$0xff]  }
 0x237   :  { %6461 = vmatpush3.bf16.msra.mxu0 %v7422_v28  ;;  %v7471_v28 = vld [vmem:[%s9754_s1 + $0x1358] ss:$12 sps:$4 sm:$0xff]  }
 0x238   :  { %6462 = vmatprep.subr.bf16.mxu0 %v7425_v27  ;;  %v7470_v27 = vld [vmem:[%s9754_s1 + $0x1118] ss:$12 sps:$4 sm:$0xff]  }
 0x239   :  { %6483 = vmatpush3.bf16.msra.mxu1 %v7424_v13  ;;  %v7473_v13 = vld [vmem:[%s9754_s1 + $0x11c0] ss:$12 sps:$4 sm:$0xff]  }
 0x23a   :  { %6484 = vmatprep.subr.bf16.mxu1 %v7427_v35  ;;  %v7472_v35 = vld [vmem:[%s9754_s1 + $0x1298] ss:$12 sps:$4 sm:$0xff]  }
 0x23b   :  { %6463 = vmatpush3.bf16.msra.mxu0 %v7426_v31  ;;  %v7474_v31 = vld [vmem:[%s9754_s1 + $0x1100] ss:$12 sps:$4 sm:$0xff]  }
 0x23c   :  { %6464 = vmatprep.subr.bf16.mxu0 %v7429_v20  ;;  %v7477_v20 = vld [vmem:[%s9754_s1 + $0x11a8] ss:$12 sps:$4 sm:$0xff]  }
 0x23d   :  { %6485 = vmatpush3.bf16.msra.mxu1 %v7428_v40 }
 0x23e   :  { %6486 = vmatprep.subr.bf16.mxu1 %v7431_v17  ;;  %v7479_v17 = vld [vmem:[%s9754_s1 + $0x1328] ss:$12 sps:$4 sm:$0xff]  }
 0x23f   :  { %6465 = vmatpush3.bf16.msra.mxu0 %v7430_v16 }
 0x240   :  { %6494 = vmatprep.subr.bf16.mxu0 %v7433_v22  ;;  %v7478_v22 = vld [vmem:[%s9754_s1 + $0x10e8] ss:$12 sps:$4 sm:$0xff]  }
 0x241   :  { %6487 = vmatpush3.bf16.msra.mxu1 %v7432_v8  ;;  %v7481_v8 = vld [vmem:[%s9754_s1 + $0x1190] ss:$12 sps:$4 sm:$0xff]  }
 0x242   :  { %v9510_v26 = vpop.f32.mrf.mxu0  ;;  %5348 = vmatmul.mubr.bf16.vlgmr.msra.gmra.mxu0 %v8432_v32  ;;  %6516 = vmatprep.subr.bf16.mxu1 %v7435_v29  ;;  %v7441_v32 = vld [vmem:[%s9754_s1 + $0xec0] ss:$12 sps:$4 sm:$0xff]   ;;  %v7480_v29 = vld [vmem:[%s9754_s1 + $0x1268] ss:$12 sps:$4 sm:$0xff]  }
 0x243   :  { %6495 = vmatpush3.bf16.msra.mxu0 %v7434_v37  ;;  %5427 = vmatprep.mubr.bf16.mxu0 %v8442_v10  ;;  %v7483_v37 = vld [vmem:[%s9754_s1 + $0x1310] ss:$12 sps:$4 sm:$0xff]  }
 0x244   :  { %v9520_v23 = vpop.f32.mrf.mxu0  ;;  %v9522_v5 = vpop.f32.mrf.mxu1  ;;  %5388 = vmatmul.mubr.bf16.vlgmr.msra.gmra.mxu1 %v8642_v58  ;;  %6496 = vmatprep.subr.bf16.mxu0 %v7437_v15  ;;  %v7443_v58 = vld [vmem:[%s9754_s1 + $0x1040] ss:$12 sps:$4 sm:$0xff]   ;;  %v7482_v15 = vld [vmem:[%s9754_s1 + $0x10d0] ss:$12 sps:$4 sm:$0xff]  }
 0x245   :  { %6517 = vmatpush3.bf16.msra.mxu1 %v7436_v24  ;;  %5467 = vmatprep.mubr.bf16.mxu1 %v8657_v63  ;;  %v7485_v24 = vld [vmem:[%s9754_s1 + $0x1178] ss:$12 sps:$4 sm:$0xff]  }
 0x246   :  { %v4909_v48 = vpop.f32.mrf.mxu0  ;;  %v9532_v10 = vpop.f32.mrf.mxu1  ;;  %6518 = vmatprep.subr.bf16.mxu1 %v7439_v19  ;;  %v7484_v19 = vld [vmem:[%s9754_s1 + $0x1250] ss:$12 sps:$4 sm:$0xff]  }
 0x247   :  { %6497 = vmatpush3.bf16.msra.mxu0 %v7438_v52  ;;  %v7487_v52 = vld [vmem:[%s9754_s1 + $0x12f8] ss:$12 sps:$4 sm:$0xff]  }
 0x248   :  { %v4910_v33 = vpop.f32.mrf.mxu0  ;;  %6498 = vmatprep.subr.bf16.mxu0 %v7441_v32  ;;  %v4950_v63 = vpop.f32.mrf.mxu1  ;;  %v7486_v32 = vld [vmem:[%s9754_s1 + $0x10b8] ss:$12 sps:$4 sm:$0xff]  }
 0x249   :  { %6519 = vmatpush3.bf16.msra.mxu1 %v7440_v30  ;;  %v7489_v30 = vld [vmem:[%s9754_s1 + $0x1160] ss:$12 sps:$4 sm:$0xff]   ;;  %v7488_v48 = vld [vmem:[%s9754_s1 + $0x1238] ss:$12 sps:$4 sm:$0xff]   ;;  %v7493_v33 = vld [vmem:[%s9754_s1 + $0x1148] ss:$12 sps:$4 sm:$0xff]  }
 0x24a   :  { %6520 = vmatprep.subr.bf16.mxu1 %v7443_v58  ;;  %v4951_v42 = vpop.f32.mrf.mxu1  ;;  %v7491_v58 = vld [vmem:[%s9754_s1 + $0x12e0] ss:$12 sps:$4 sm:$0xff]   ;;  %v7495_v63 = vld [vmem:[%s9754_s1 + $0x12c8] ss:$12 sps:$4 sm:$0xff]  }
 0x24b   :  { %6499 = vmatpush3.bf16.msra.mxu0 %v7442_v34  ;;  %v7490_v34 = vld [vmem:[%s9754_s1 + $0x10a0] ss:$12 sps:$4 sm:$0xff]   ;;  %v7496_v42 = vld [vmem:[%s9754_s1 + $0x1208] ss:$12 sps:$4 sm:$0xff]  }
 0x24c   :  { %6500 = vmatprep.subr.bf16.mxu0 %v7445_v36  ;;  %v7492_v36 = vld [vmem:[%s9754_s1 + $0x1220] ss:$12 sps:$4 sm:$0xff]  }
 0x24d   :  { %6521 = vmatpush3.bf16.msra.mxu1 %v7444_v39  ;;  %v7494_v39 = vld [vmem:[%s9754_s1 + $0x1088] ss:$12 sps:$4 sm:$0xff]  }
 0x24e   :  { %6522 = vmatprep.subr.bf16.mxu1 %v7447_v41  ;;  %v4906_v41 = vadd.f32 %v9510_v26, %v9318_v57 }
 0x24f   :  { %6501 = vmatpush3.bf16.msra.mxu0 %v7446_v25  ;;  %v4908_v25 = vadd.f32 %v9520_v23, %v9327_v14  ;;  %v7498_v14 = vld [vmem:[%s9754_s1 + $0x1418] ss:$12 sps:$4 sm:$0xff]  }
 0x250   :  { %6502 = vmatprep.subr.bf16.mxu0 %v7449_v44  ;;  %v7497_v44 = vld [vmem:[%s9754_s1 + $0x1430] ss:$12 sps:$4 sm:$0xff]  }
 0x251   :  { %6523 = vmatpush3.bf16.msra.mxu1 %v7448_v45  ;;  %v7508_v45 = vmov 0.0   ;;  %v4949_v26 = vadd.f32 %v9532_v10, %v4908_v25 }
 0x252   :  { %6524 = vmatprep.subr.bf16.mxu1 %v7451_v46  ;;  %v4947_v46 = vadd.f32 %v9522_v5, %v4906_v41 }
 0x253   :  { %6503 = vmatpush3.bf16.msra.mxu0 %v7450_v47 }
 0x254   :  { %6504 = vmatprep.subr.bf16.mxu0 %v7453_v49 }
 0x255   :  { %6525 = vmatpush3.bf16.msra.mxu1 %v7452_v50 }
 0x256   :  { %6526 = vmatprep.subr.bf16.mxu1 %v7455_v53 }
 0x257   :  { %6505 = vmatpush3.bf16.msra.mxu0 %v7454_v54  ;;  %v7499_v54 = vld [vmem:[%s9754_s1 + $0x1400] ss:$12 sps:$4 sm:$0xff]  }
 0x258   :  { %6506 = vmatprep.subr.bf16.mxu0 %v7457_v21 }
 0x259   :  { %6527 = vmatpush3.bf16.msra.mxu1 %v7456_v55 }
 0x25a   :  { %6528 = vmatprep.subr.bf16.mxu1 %v7459_v43 }
 0x25b   :  { %6507 = vmatpush3.bf16.msra.mxu0 %v7458_v0 }
 0x25c   :  { %6508 = vmatprep.subr.bf16.mxu0 %v7461_v4 }
 0x25d   :  { %6529 = vmatpush3.bf16.msra.mxu1 %v7460_v59 }
 0x25e   :  { %6530 = vmatprep.subr.bf16.mxu1 %v7463_v2  ;;  %v7500_v2 = vld [vmem:[%s9754_s1 + $0x13e8] ss:$12 sps:$4 sm:$0xff]  }
 0x25f   :  { %6509 = vmatpush3.bf16.msra.mxu0 %v7462_v3  ;;  %v7501_v3 = vld [vmem:[%s9754_s1 + $0x13d0] ss:$12 sps:$4 sm:$0xff]  }
 0x260   :  { %6538 = vmatprep.subr.bf16.mxu0 %v7465_v56  ;;  %v7502_v56 = vld [vmem:[%s9754_s1 + $0x13b8] ss:$12 sps:$4 sm:$0xff]  }
 0x261   :  { %6531 = vmatpush3.bf16.msra.mxu1 %v7464_v9  ;;  %v7503_v9 = vld [vmem:[%s9754_s1 + $0x13a0] ss:$12 sps:$4 sm:$0xff]  }
 0x262   :  { %5428 = vmatmul.mubr.bf16.vlgmr.msra.gmra.mxu0 %v8661_v61  ;;  %6560 = vmatprep.subr.bf16.mxu1 %v7467_v38  ;;  %v7504_v38 = vld [vmem:[%s9754_s1 + $0x1388] ss:$12 sps:$4 sm:$0xff]  }
 0x263   :  { %6539 = vmatpush3.bf16.msra.mxu0 %v7466_v60  ;;  %5507 = vmatprep.mubr.bf16.mxu0 %v8671_v6  ;;  %v7475_v6 = vld [vmem:[%s9754_s1 + $0x1340] ss:$12 sps:$4 sm:$0xff]   ;;  %v905_v60 = vsub.s32 2, %v8381_v51 }
 0x264   :  { %5468 = vmatmul.mubr.bf16.vlgmr.msra.gmra.mxu1 %v8870_v62  ;;  %6540 = vmatprep.subr.bf16.mxu0 %v7469_v18  ;;  %v9630_v61 = vpop.f32.mrf.mxu1  ;;  %v7505_v18 = vld [vmem:[%s9756_s2] sm:$0x7] }
 0x265   :  { %6561 = vmatpush3.bf16.msra.mxu1 %v7468_v12  ;;  %5547 = vmatprep.mubr.bf16.mxu1 %v8880_v7  ;;  %v7476_v7 = vld [vmem:[%s9754_s1 + $0x1280] ss:$12 sps:$4 sm:$0xff]   ;;  %v906_v12 = vrot.slane %v7505_v18, %v905_v60 }
 0x266   :  { %6562 = vmatprep.subr.bf16.mxu1 %v7471_v28  ;;  %v9639_v62 = vpop.f32.mrf.mxu1 }
 0x267   :  { %6541 = vmatpush3.bf16.msra.mxu0 %v7470_v27  ;;  %v7506_v27 = vld [vmem:[%s9755_s0 + $0x68] ss:$0 sps:$4 sm:$0xff]  }
 0x268   :  { %6542 = vmatprep.subr.bf16.mxu0 %v7473_v13  ;;  %v5032_v40 = vpop.f32.mrf.mxu1 }
 0x269   :  { %6563 = vmatpush3.bf16.msra.mxu1 %v7472_v35 }
 0x26a   :  { %6564 = vmatprep.subr.bf16.mxu1 %v7475_v6  ;;  %v5033_v16 = vpop.f32.mrf.mxu1 }
 0x26b   :  { %6543 = vmatpush3.bf16.msra.mxu0 %v7474_v31 }
 0x26c   :  { %6544 = vmatprep.subr.bf16.mxu0 %v7477_v20 }
 0x26d   :  { %6565 = vmatpush3.bf16.msra.mxu1 %v7476_v7 }
 0x26e   :  { %6566 = vmatprep.subr.bf16.mxu1 %v7479_v17 }
 0x26f   :  { %6545 = vmatpush3.bf16.msra.mxu0 %v7478_v22 }
 0x270   :  { %6546 = vmatprep.subr.bf16.mxu0 %v7481_v8 }
 0x271   :  { %6567 = vmatpush3.bf16.msra.mxu1 %v7480_v29 }
 0x272   :  { %6568 = vmatprep.subr.bf16.mxu1 %v7483_v37 }
 0x273   :  { %6547 = vmatpush3.bf16.msra.mxu0 %v7482_v15 }
 0x274   :  { %6548 = vmatprep.subr.bf16.mxu0 %v7485_v24 }
 0x275   :  { %6569 = vmatpush3.bf16.msra.mxu1 %v7484_v19 }
 0x276   :  { %6570 = vmatprep.subr.bf16.mxu1 %v7487_v52 }
 0x277   :  { %6549 = vmatpush3.bf16.msra.mxu0 %v7486_v32 }
 0x278   :  { %6550 = vmatprep.subr.bf16.mxu0 %v7489_v30 }
 0x279   :  { %6571 = vmatpush3.bf16.msra.mxu1 %v7488_v48 }
 0x27a   :  { %6572 = vmatprep.subr.bf16.mxu1 %v7491_v58 }
 0x27b   :  { %6551 = vmatpush3.bf16.msra.mxu0 %v7490_v34 }
 0x27c   :  { %6552 = vmatprep.subr.bf16.mxu0 %v7493_v33 }
 0x27d   :  { %6573 = vmatpush3.bf16.msra.mxu1 %v7492_v36 }
 0x27e   :  { %6574 = vmatprep.subr.bf16.mxu1 %v7495_v63 }
 0x27f   :  { %6553 = vmatpush3.bf16.msra.mxu0 %v7494_v39 }
 0x280   :  { %6591 = vmatprep.subr.bf16.mxu0 %v7508_v45 }
 0x281   :  { %6575 = vmatpush3.bf16.msra.mxu1 %v7496_v42 }
 0x282   :  { %v4987_v57 = vpop.f32.mrf.mxu0  ;;  %5508 = vmatmul.mubr.bf16.vlgmr.msra.gmra.mxu0 %v8884_v1 }
 0x283   :  { %v4988_v47 = vadd.f32 %v4987_v57, %v4947_v46  ;;  %6592 = vmatpush3.bf16.msra.mxu0 %v7497_v44  ;;  %6607 = vmatprep.mubr.msk.bf16.mxu0 %vm7509_vm0, %v7508_v45 }
 0x284   :  { %v4989_v23 = vpop.f32.mrf.mxu0  ;;  %5548 = vmatmul.mubr.bf16.vlgmr.msra.gmra.mxu1 %v9084_v11  ;;  %6593 = vmatprep.subr.bf16.mxu0 %v7508_v45  ;;  %v6312_v49 = vpop.f32.mrf.mxu1 }
 0x285   :  { %v5029_v5 = vadd.f32 %v9630_v61, %v4988_v47  ;;  %v4990_v50 = vadd.f32 %v4989_v23, %v4949_v26 }
 0x286   :  { %v4991_v53 = vpop.f32.mrf.mxu0  ;;  %v6313_v1 = vpop.f32.mrf.mxu1 }
 0x287   :  { %v5031_v10 = vadd.f32 %v9639_v62, %v4990_v50  ;;  %6594 = vmatpush3.bf16.msra.mxu0 %v7498_v14  ;;  %v6314_v21 = vadd.f32 %v6313_v1, %v6312_v49  ;;  %v5595_v0 = vmax.f32 %v5029_v5, 0.0 }
 0x288   :  { %v4992_v55 = vpop.f32.mrf.mxu0  ;;  %6595 = vmatprep.subr.bf16.mxu0 %v7508_v45  ;;  %v6315_v43 = vpop.f32.mrf.mxu1 }
 0x289   :  { %v5596_v11 = vmax.f32 %v5031_v10, 0.0  ;;  %v5070_v35 = vadd.f32 %v6314_v21, %v906_v12 }
 0x28a   :  { %v6316_v4 = vpop.f32.mrf.mxu1 }
 0x28b   :  { %v6294_v59 = vpack.c.bf16 %v5596_v11, %v5595_v0  ;;  %6596 = vmatpush3.bf16.msra.mxu0 %v7499_v54 }
 0x28c   :  { %6597 = vmatprep.subr.bf16.mxu0 %v7508_v45 }
 0x28d   :  { %5611 = vst [vmem:[%s9757_s3] sm:$0xff] %v6294_v59 }
 0x28f   :  { %6598 = vmatpush3.bf16.msra.mxu0 %v7500_v2 }
 0x290   :  { %6599 = vmatprep.subr.bf16.mxu0 %v7508_v45 }
 0x293   :  { %6600 = vmatpush3.bf16.msra.mxu0 %v7501_v3 }
 0x294   :  { %6601 = vmatprep.subr.bf16.mxu0 %v7508_v45 }
 0x297   :  { %6602 = vmatpush3.bf16.msra.mxu0 %v7502_v56 }
 0x298   :  { %6603 = vmatprep.subr.bf16.mxu0 %v7508_v45 }
 0x29b   :  { %6604 = vmatpush3.bf16.msra.mxu0 %v7503_v9 }
 0x29c   :  { %6605 = vmatprep.subr.bf16.mxu0 %v7508_v45 }
 0x29f   :  { %6606 = vmatpush3.bf16.msra.mxu0 %v7504_v38 }
 0x2a2   :  { %v6334_v28 = vpop.f32.mrf.mxu0  ;;  %6608 = vmatmul.mubr.bf16.vlgmr.msra.gmra.mxu0 %v7506_v27 }
 0x2a4   :  { %v6335_v13 = vpop.f32.mrf.mxu0  ;;  %v6356_v61 = vpop.f32.mrf.mxu1 }
 0x2a5   :  { %v6336_v6 = vadd.f32 %v6335_v13, %v6334_v28 }
 0x2a6   :  { %v6337_v62 = vpop.f32.mrf.mxu0  ;;  %v6357_v31 = vpop.f32.mrf.mxu1 }
 0x2a7   :  { %v5110_v20 = vadd.f32 %v6336_v6, %v5070_v35  ;;  %v6358_v51 = vadd.f32 %v6357_v31, %v6356_v61 }
 0x2a8   :  { %v6338_v40 = vpop.f32.mrf.mxu0  ;;  %v6359_v7 = vpop.f32.mrf.mxu1 }
 0x2a9   :  { %v5150_v17 = vadd.f32 %v6358_v51, %v5110_v20 }
 0x2aa   :  { %v6360_v16 = vpop.f32.mrf.mxu1 }
 0x2c2   :  { %v6378_v22 = vpop.f32.mrf.mxu0 }
 0x2c4   :  { %v6379_v8 = vpop.f32.mrf.mxu0  ;;  %v6400_v29 = vpop.f32.mrf.mxu1 }
 0x2c5   :  { %v6380_v37 = vadd.f32 %v6379_v8, %v6378_v22 }
 0x2c6   :  { %v6381_v15 = vpop.f32.mrf.mxu0  ;;  %v6401_v24 = vpop.f32.mrf.mxu1 }
 0x2c7   :  { %v5190_v19 = vadd.f32 %v6380_v37, %v5150_v17  ;;  %v6402_v52 = vadd.f32 %v6401_v24, %v6400_v29 }
 0x2c8   :  { %v6382_v32 = vpop.f32.mrf.mxu0  ;;  %v6403_v30 = vpop.f32.mrf.mxu1 }
 0x2c9   :  { %v5230_v48 = vadd.f32 %v6402_v52, %v5190_v19 }
 0x2ca   :  { %v6404_v58 = vpop.f32.mrf.mxu1 }
 0x2e2   :  { %v6422_v34 = vpop.f32.mrf.mxu0 }
 0x2e4   :  { %v6423_v33 = vpop.f32.mrf.mxu0  ;;  %v6444_v36 = vpop.f32.mrf.mxu1 }
 0x2e5   :  { %v6424_v63 = vadd.f32 %v6423_v33, %v6422_v34 }
 0x2e6   :  { %v6425_v39 = vpop.f32.mrf.mxu0  ;;  %v6445_v41 = vpop.f32.mrf.mxu1 }
 0x2e7   :  { %v5270_v42 = vadd.f32 %v6424_v63, %v5230_v48  ;;  %v6446_v25 = vadd.f32 %v6445_v41, %v6444_v36 }
 0x2e8   :  { %v6426_v44 = vpop.f32.mrf.mxu0  ;;  %v6447_v45 = vpop.f32.mrf.mxu1 }
 0x2e9   :  { %v5310_v46 = vadd.f32 %v6446_v25, %v5270_v42 }
 0x2ea   :  { %v6448_v57 = vpop.f32.mrf.mxu1 }
 0x302   :  { %v6466_v26 = vpop.f32.mrf.mxu0 }
 0x304   :  { %v6467_v47 = vpop.f32.mrf.mxu0  ;;  %v6488_v14 = vpop.f32.mrf.mxu1 }
 0x305   :  { %v6468_v23 = vadd.f32 %v6467_v47, %v6466_v26 }
 0x306   :  { %v6469_v49 = vpop.f32.mrf.mxu0  ;;  %v6489_v5 = vpop.f32.mrf.mxu1 }
 0x307   :  { %v5350_v50 = vadd.f32 %v6468_v23, %v5310_v46  ;;  %v6490_v53 = vadd.f32 %v6489_v5, %v6488_v14 }
 0x308   :  { %v6470_v1 = vpop.f32.mrf.mxu0  ;;  %v6491_v10 = vpop.f32.mrf.mxu1 }
 0x309   :  { %v5390_v54 = vadd.f32 %v6490_v53, %v5350_v50 }
 0x30a   :  { %v6492_v21 = vpop.f32.mrf.mxu1 }
 0x322   :  { %v6510_v55 = vpop.f32.mrf.mxu0 }
 0x324   :  { %v6511_v43 = vpop.f32.mrf.mxu0  ;;  %v6532_v0 = vpop.f32.mrf.mxu1 }
 0x325   :  { %v6512_v13 = vadd.f32 %v6511_v43, %v6510_v55 }
 0x326   :  { %v6513_v11 = vpop.f32.mrf.mxu0  ;;  %v6533_v4 = vpop.f32.mrf.mxu1 }
 0x327   :  { %v5430_v61 = vadd.f32 %v6512_v13, %v5390_v54  ;;  %v6534_v35 = vadd.f32 %v6533_v4, %v6532_v0 }
 0x328   :  { %v6514_v59 = vpop.f32.mrf.mxu0  ;;  %v6535_v2 = vpop.f32.mrf.mxu1 }
 0x329   :  { %v5470_v62 = vadd.f32 %v6534_v35, %v5430_v61 }
 0x32a   :  { %v6536_v3 = vpop.f32.mrf.mxu1 }
 0x342   :  { %v6554_v56 = vpop.f32.mrf.mxu0 }
 0x344   :  { %v6555_v9 = vpop.f32.mrf.mxu0  ;;  %v6576_v38 = vpop.f32.mrf.mxu1 }
 0x345   :  { %v6556_v6 = vadd.f32 %v6555_v9, %v6554_v56 }
 0x346   :  { %v6557_v60 = vpop.f32.mrf.mxu0  ;;  %v6577_v18 = vpop.f32.mrf.mxu1 }
 0x347   :  { %v5510_v31 = vadd.f32 %v6556_v6, %v5470_v62  ;;  %v6578_v20 = vadd.f32 %v6577_v18, %v6576_v38 }
 0x348   :  { %v6558_v12 = vpop.f32.mrf.mxu0  ;;  %v6579_v28 = vpop.f32.mrf.mxu1 }
 0x349   :  { %v5550_v51 = vadd.f32 %v6578_v20, %v5510_v31 }
 0x34a   :  { %v6580_v27 = vpop.f32.mrf.mxu1 }
 0x362   :  { %v5589_v40 = vpop.f32.mrf.mxu0 }
 0x363   :  { %v5590_v7 = vadd.f32 %v5589_v40, %v5550_v51 }
 0x364   :  { %v6609_v17 = vpop.f32.mrf.mxu0 }
 0x365   :  { %v5597_v16 = vmax.f32 %v5590_v7, 0.0 }
 0x366   :  { %v5592_v22 = vpop.f32.mrf.mxu0 }
 0x367   :  { %v6295_v8 = vpack.c.bf16 %v5597_v16, %v5597_v16 }
 0x368   :  { %v6610_v29 = vpop.f32.mrf.mxu0 }
 0x369   :  { %5612 = vst [vmem:[%s9757_s3 + $0x8] sm:$0xf] %v6295_v8 }

// kernel: alexnet_forward.17
= control target key start
LH: loop header
LB: loop body
LE: loop exit
PB: predicated region body
PF: predicated region fallthrough
CT: control target
= control target key end

     0   :  { %v95_v38 = vlaneseq  ;;  %v2484_v39 = vmov 1966171168   ;;  %s3244_s0 = inlined_call_operand.vmem [shape: bf16[2,256], index: 0, kind: input, shape index: {}]   ;;  %s3245_s1 = inlined_call_operand.vmem [shape: bf16[256,512], index: 1, kind: input, shape index: {}]   ;;  %s3246_s2 = inlined_call_operand.vmem [shape: f32[1,512], index: 2, kind: input, shape index: {}]   ;;  %s3247_s3 = inlined_call_operand.vmem [shape: bf16[512,512], index: 3, kind: input, shape index: {}]   ;;  %s3248_s4 = inlined_call_operand.vmem [shape: f32[1,512], index: 4, kind: input, shape index: {}]   ;;  %s3249_s5 = inlined_call_operand.vmem [shape: bf16[512,128], index: 5, kind: input, shape index: {}]   ;;  %s3250_s6 = inlined_call_operand.vmem [shape: f32[1,128], index: 6, kind: input, shape index: {}]   ;;  %s3251_s7 = inlined_call_operand.hbm [shape: f32[2,128], index: 7, kind: output, shape index: {}]  }
   0x1   :  { %v2142_v0 = vld [vmem:[%s3245_s1 + $0xe4] ss:$16 sps:$4 sm:$0xff]   ;;  %v2144_v1 = vld [vmem:[%s3245_s1 + $0xec] ss:$16 sps:$4 sm:$0xff]   ;;  %v2146_v2 = vld [vmem:[%s3245_s1 + $0xe0] ss:$16 sps:$4 sm:$0xff]   ;;  %v125_v40 = vunpack.c.l.s4 %v2484_v39 }
   0x2   :  { %460 = vmatprep.subr.bf16.mxu0 %v2142_v0  ;;  %v2147_v3 = vld [vmem:[%s3245_s1 + $0xe8] ss:$16 sps:$4 sm:$0xff]   ;;  %501 = vmatprep.subr.bf16.mxu1 %v2144_v1  ;;  %v2148_v4 = vld [vmem:[%s3245_s1 + $0xc4] ss:$16 sps:$4 sm:$0xff]   ;;  %v2150_v5 = vld [vmem:[%s3245_s1 + $0xcc] ss:$16 sps:$4 sm:$0xff]  }
   0x3   :  { %461 = vmatpush1.bf16.msra.mxu0 %v2146_v2  ;;  %502 = vmatpush1.bf16.msra.mxu1 %v2147_v3  ;;  %v2152_v6 = vld [vmem:[%s3245_s1 + $0xc0] ss:$16 sps:$4 sm:$0xff]   ;;  %v2153_v7 = vld [vmem:[%s3245_s1 + $0xc8] ss:$16 sps:$4 sm:$0xff]   ;;  %v2154_v8 = vld [vmem:[%s3245_s1 + $0xa4] ss:$16 sps:$4 sm:$0xff]   ;;  %v126_v46 = vunpack.c.0.s8 %v125_v40 }
   0x4   :  { %462 = vmatprep.subr.bf16.mxu0 %v2148_v4  ;;  %503 = vmatprep.subr.bf16.mxu1 %v2150_v5  ;;  %v2156_v9 = vld [vmem:[%s3245_s1 + $0xac] ss:$16 sps:$4 sm:$0xff]   ;;  %v2158_v10 = vld [vmem:[%s3245_s1 + $0xa0] ss:$16 sps:$4 sm:$0xff]   ;;  %v2159_v11 = vld [vmem:[%s3245_s1 + $0xa8] ss:$16 sps:$4 sm:$0xff]  }
   0x5   :  { %v2160_v12 = vld [vmem:[%s3245_s1 + $0x84] ss:$16 sps:$4 sm:$0xff]   ;;  %v2162_v13 = vld [vmem:[%s3245_s1 + $0x8c] ss:$16 sps:$4 sm:$0xff]   ;;  %v2164_v14 = vld [vmem:[%s3245_s1 + $0x80] ss:$16 sps:$4 sm:$0xff]  }
   0x6   :  { %v2165_v15 = vld [vmem:[%s3245_s1 + $0x88] ss:$16 sps:$4 sm:$0xff]   ;;  %v2166_v16 = vld [vmem:[%s3245_s1 + $0x64] ss:$16 sps:$4 sm:$0xff]   ;;  %v2168_v17 = vld [vmem:[%s3245_s1 + $0x6c] ss:$16 sps:$4 sm:$0xff]  }
   0x7   :  { %463 = vmatpush1.bf16.msra.mxu0 %v2152_v6  ;;  %504 = vmatpush1.bf16.msra.mxu1 %v2153_v7  ;;  %v2170_v18 = vld [vmem:[%s3245_s1 + $0x60] ss:$16 sps:$4 sm:$0xff]   ;;  %v2171_v19 = vld [vmem:[%s3245_s1 + $0x68] ss:$16 sps:$4 sm:$0xff]   ;;  %v2172_v20 = vld [vmem:[%s3245_s1 + $0x44] ss:$16 sps:$4 sm:$0xff]  }
   0x8   :  { %464 = vmatprep.subr.bf16.mxu0 %v2154_v8  ;;  %505 = vmatprep.subr.bf16.mxu1 %v2156_v9  ;;  %v2174_v21 = vld [vmem:[%s3245_s1 + $0x4c] ss:$16 sps:$4 sm:$0xff]   ;;  %v2176_v22 = vld [vmem:[%s3245_s1 + $0x40] ss:$16 sps:$4 sm:$0xff]   ;;  %v2177_v23 = vld [vmem:[%s3245_s1 + $0x48] ss:$16 sps:$4 sm:$0xff]  }
   0x9   :  { %v2178_v24 = vld [vmem:[%s3245_s1 + $0x24] ss:$16 sps:$4 sm:$0xff]   ;;  %v2180_v25 = vld [vmem:[%s3245_s1 + $0x2c] ss:$16 sps:$4 sm:$0xff]   ;;  %v2182_v26 = vld [vmem:[%s3245_s1 + $0x20] ss:$16 sps:$4 sm:$0xff]  }
   0xa   :  { %v2183_v27 = vld [vmem:[%s3245_s1 + $0x28] ss:$16 sps:$4 sm:$0xff]   ;;  %v2184_v28 = vld [vmem:[%s3245_s1 + $0x4] ss:$16 sps:$4 sm:$0xff]   ;;  %v2186_v29 = vld [vmem:[%s3245_s1 + $0xc] ss:$16 sps:$4 sm:$0xff]  }
   0xb   :  { %465 = vmatpush1.bf16.msra.mxu0 %v2158_v10  ;;  %506 = vmatpush1.bf16.msra.mxu1 %v2159_v11  ;;  %v2188_v30 = vld [vmem:[%s3245_s1] ss:$16 sps:$4 sm:$0xff]   ;;  %v2189_v31 = vld [vmem:[%s3245_s1 + $0x8] ss:$16 sps:$4 sm:$0xff]   ;;  %v2190_v32 = vld [vmem:[%s3245_s1 + $0x1e4] ss:$16 sps:$4 sm:$0xff]  }
   0xc   :  { %466 = vmatprep.subr.bf16.mxu0 %v2160_v12  ;;  %507 = vmatprep.subr.bf16.mxu1 %v2162_v13  ;;  %v2192_v33 = vld [vmem:[%s3245_s1 + $0x1ec] ss:$16 sps:$4 sm:$0xff]   ;;  %v2194_v34 = vld [vmem:[%s3245_s1 + $0x1e0] ss:$16 sps:$4 sm:$0xff]   ;;  %v2195_v35 = vld [vmem:[%s3245_s1 + $0x1e8] ss:$16 sps:$4 sm:$0xff]  }
   0xd   :  { %v2196_v36 = vld [vmem:[%s3245_s1 + $0x1c4] ss:$16 sps:$4 sm:$0xff]   ;;  %v2198_v37 = vld [vmem:[%s3245_s1 + $0x1cc] ss:$16 sps:$4 sm:$0xff]   ;;  %v2200_v41 = vld [vmem:[%s3245_s1 + $0x1c0] ss:$16 sps:$4 sm:$0xff]  }
   0xe   :  { %v2201_v42 = vld [vmem:[%s3245_s1 + $0x1c8] ss:$16 sps:$4 sm:$0xff]   ;;  %v2202_v43 = vld [vmem:[%s3245_s1 + $0x1a4] ss:$16 sps:$4 sm:$0xff]   ;;  %v2204_v44 = vld [vmem:[%s3245_s1 + $0x1ac] ss:$16 sps:$4 sm:$0xff]  }
   0xf   :  { %467 = vmatpush1.bf16.msra.mxu0 %v2164_v14  ;;  %508 = vmatpush1.bf16.msra.mxu1 %v2165_v15  ;;  %v2652_v45 = vshrl.u32 %v95_v38, 7  ;;  %v2206_v47 = vld [vmem:[%s3245_s1 + $0x1a0] ss:$16 sps:$4 sm:$0xff]   ;;  %v2207_v48 = vld [vmem:[%s3245_s1 + $0x1a8] ss:$16 sps:$4 sm:$0xff]  }
  0x10   :  { %468 = vmatprep.subr.bf16.mxu0 %v2166_v16  ;;  %509 = vmatprep.subr.bf16.mxu1 %v2168_v17  ;;  %v2208_v49 = vld [vmem:[%s3245_s1 + $0x184] ss:$16 sps:$4 sm:$0xff]   ;;  %v2210_v50 = vld [vmem:[%s3245_s1 + $0x18c] ss:$16 sps:$4 sm:$0xff]   ;;  %v2212_v53 = vld [vmem:[%s3245_s1 + $0x180] ss:$16 sps:$4 sm:$0xff]  }
  0x11   :  { %v129_v51 = vsub.s32 %v126_v46, %v2652_v45  ;;  %v1870_v52 = vld.sshfl [vmem:[%s3244_s0] sm:$0x11 pattern:$0x75316420]  ;;  %v2213_v54 = vld [vmem:[%s3245_s1 + $0x188] ss:$16 sps:$4 sm:$0xff]  }
  0x12   :  { %v123_v55 = vcombine.high %v1870_v52, %v1870_v52  ;;  %v2214_v56 = vld [vmem:[%s3245_s1 + $0x164] ss:$16 sps:$4 sm:$0xff]   ;;  %v2216_v57 = vld [vmem:[%s3245_s1 + $0x16c] ss:$16 sps:$4 sm:$0xff]   ;;  %v2218_v59 = vld [vmem:[%s3245_s1 + $0x160] ss:$16 sps:$4 sm:$0xff]  }
  0x13   :  { %469 = vmatpush1.bf16.msra.mxu0 %v2170_v18  ;;  %510 = vmatpush1.bf16.msra.mxu1 %v2171_v19  ;;  %v2219_v60 = vld [vmem:[%s3245_s1 + $0x168] ss:$16 sps:$4 sm:$0xff]   ;;  %v2220_v61 = vld [vmem:[%s3245_s1 + $0x144] ss:$16 sps:$4 sm:$0xff]   ;;  %v2222_v62 = vld [vmem:[%s3245_s1 + $0x14c] ss:$16 sps:$4 sm:$0xff]   ;;  %v130_v11 = vrot.slane %v1870_v52, %v129_v51 }
  0x14   :  { %470 = vmatprep.subr.bf16.mxu0 %v2172_v20  ;;  %511 = vmatprep.subr.bf16.mxu1 %v2174_v21  ;;  %v137_v58 = vrot.slane %v123_v55, %v129_v51  ;;  %v2224_v63 = vld [vmem:[%s3245_s1 + $0x140] ss:$16 sps:$4 sm:$0xff]   ;;  %v2225_v0 = vld [vmem:[%s3245_s1 + $0x148] ss:$16 sps:$4 sm:$0xff]   ;;  %v2226_v1 = vld [vmem:[%s3245_s1 + $0x124] ss:$16 sps:$4 sm:$0xff]  }
  0x15   :  { %v2228_v2 = vld [vmem:[%s3245_s1 + $0x12c] ss:$16 sps:$4 sm:$0xff]   ;;  %v2230_v3 = vld [vmem:[%s3245_s1 + $0x120] ss:$16 sps:$4 sm:$0xff]   ;;  %v2231_v4 = vld [vmem:[%s3245_s1 + $0x128] ss:$16 sps:$4 sm:$0xff]  }
  0x16   :  { %492 = vmatprep.mubr.bf16.mxu0 %v137_v58  ;;  %533 = vmatprep.mubr.bf16.mxu1 %v137_v58  ;;  %v2232_v5 = vld [vmem:[%s3245_s1 + $0x104] ss:$16 sps:$4 sm:$0xff]   ;;  %v2234_v6 = vld [vmem:[%s3245_s1 + $0x10c] ss:$16 sps:$4 sm:$0xff]   ;;  %v2236_v7 = vld [vmem:[%s3245_s1 + $0x100] ss:$16 sps:$4 sm:$0xff]  }
  0x17   :  { %471 = vmatpush1.bf16.msra.mxu0 %v2176_v22  ;;  %512 = vmatpush1.bf16.msra.mxu1 %v2177_v23  ;;  %v2237_v8 = vld [vmem:[%s3245_s1 + $0x108] ss:$16 sps:$4 sm:$0xff]   ;;  %v2240_v9 = vld [vmem:[%s3247_s3 + $0xe4] ss:$16 sps:$4 sm:$0xff]   ;;  %v2238_v12 = vld [vmem:[%s3247_s3 + $0xe0] ss:$16 sps:$4 sm:$0xff]  }
  0x18   :  { %472 = vmatprep.subr.bf16.mxu0 %v2178_v24  ;;  %513 = vmatprep.subr.bf16.mxu1 %v2180_v25  ;;  %v2243_v10 = vld [vmem:[%s3247_s3 + $0x2e4] ss:$16 sps:$4 sm:$0xff]   ;;  %v2241_v13 = vld [vmem:[%s3247_s3 + $0x2e0] ss:$16 sps:$4 sm:$0xff]  }
  0x19   :  { %v2246_v14 = vld [vmem:[%s3247_s3 + $0xc4] ss:$16 sps:$4 sm:$0xff]   ;;  %v2244_v16 = vld [vmem:[%s3247_s3 + $0xc0] ss:$16 sps:$4 sm:$0xff]  }
  0x1a   :  { %v2249_v15 = vld [vmem:[%s3247_s3 + $0x2c4] ss:$16 sps:$4 sm:$0xff]   ;;  %v2247_v17 = vld [vmem:[%s3247_s3 + $0x2c0] ss:$16 sps:$4 sm:$0xff]  }
  0x1b   :  { %473 = vmatpush1.bf16.msra.mxu0 %v2182_v26  ;;  %514 = vmatpush1.bf16.msra.mxu1 %v2183_v27  ;;  %v2252_v18 = vld [vmem:[%s3247_s3 + $0xa4] ss:$16 sps:$4 sm:$0xff]   ;;  %v2250_v20 = vld [vmem:[%s3247_s3 + $0xa0] ss:$16 sps:$4 sm:$0xff]  }
  0x1c   :  { %474 = vmatprep.subr.bf16.mxu0 %v2184_v28  ;;  %515 = vmatprep.subr.bf16.mxu1 %v2186_v29  ;;  %v2255_v19 = vld [vmem:[%s3247_s3 + $0x2a4] ss:$16 sps:$4 sm:$0xff]   ;;  %v2253_v21 = vld [vmem:[%s3247_s3 + $0x2a0] ss:$16 sps:$4 sm:$0xff]  }
  0x1d   :  { %v2258_v22 = vld [vmem:[%s3247_s3 + $0x84] ss:$16 sps:$4 sm:$0xff]   ;;  %v2256_v24 = vld [vmem:[%s3247_s3 + $0x80] ss:$16 sps:$4 sm:$0xff]  }
  0x1e   :  { %v2261_v23 = vld [vmem:[%s3247_s3 + $0x284] ss:$16 sps:$4 sm:$0xff]   ;;  %v2259_v25 = vld [vmem:[%s3247_s3 + $0x280] ss:$16 sps:$4 sm:$0xff]  }
  0x1f   :  { %475 = vmatpush1.bf16.msra.mxu0 %v2188_v30  ;;  %516 = vmatpush1.bf16.msra.mxu1 %v2189_v31  ;;  %v2264_v26 = vld [vmem:[%s3247_s3 + $0x64] ss:$16 sps:$4 sm:$0xff]   ;;  %v2262_v28 = vld [vmem:[%s3247_s3 + $0x60] ss:$16 sps:$4 sm:$0xff]  }
  0x20   :  { %476 = vmatprep.subr.bf16.mxu0 %v2190_v32  ;;  %517 = vmatprep.subr.bf16.mxu1 %v2192_v33  ;;  %v2267_v27 = vld [vmem:[%s3247_s3 + $0x264] ss:$16 sps:$4 sm:$0xff]   ;;  %v2265_v29 = vld [vmem:[%s3247_s3 + $0x260] ss:$16 sps:$4 sm:$0xff]  }
  0x21   :  { %v2270_v30 = vld [vmem:[%s3247_s3 + $0x44] ss:$16 sps:$4 sm:$0xff]   ;;  %v2268_v32 = vld [vmem:[%s3247_s3 + $0x40] ss:$16 sps:$4 sm:$0xff]  }
  0x22   :  { %v2273_v31 = vld [vmem:[%s3247_s3 + $0x244] ss:$16 sps:$4 sm:$0xff]   ;;  %v2271_v33 = vld [vmem:[%s3247_s3 + $0x240] ss:$16 sps:$4 sm:$0xff]  }
  0x23   :  { %477 = vmatpush2.bf16.msra.mxu0 %v2194_v34  ;;  %518 = vmatpush2.bf16.msra.mxu1 %v2195_v35  ;;  %v2276_v34 = vld [vmem:[%s3247_s3 + $0x24] ss:$16 sps:$4 sm:$0xff]   ;;  %v2280_v40 = vld [vmem:[%s3247_s3] ss:$16 sps:$4 sm:$0xff]  }
  0x24   :  { %478 = vmatprep.subr.bf16.mxu0 %v2196_v36  ;;  %519 = vmatprep.subr.bf16.mxu1 %v2198_v37  ;;  %v2279_v35 = vld [vmem:[%s3247_s3 + $0x224] ss:$16 sps:$4 sm:$0xff]   ;;  %v2274_v36 = vld [vmem:[%s3247_s3 + $0x20] ss:$16 sps:$4 sm:$0xff]  }
  0x25   :  { %v2277_v37 = vld [vmem:[%s3247_s3 + $0x220] ss:$16 sps:$4 sm:$0xff]   ;;  %v2282_v38 = vld [vmem:[%s3247_s3 + $0x4] ss:$16 sps:$4 sm:$0xff]  }
  0x26   :  { %v2285_v39 = vld [vmem:[%s3247_s3 + $0x204] ss:$16 sps:$4 sm:$0xff]   ;;  %v2289_v46 = vld [vmem:[%s3247_s3 + $0x3e0] ss:$16 sps:$4 sm:$0xff]  }
  0x27   :  { %479 = vmatpush2.bf16.msra.mxu0 %v2200_v41  ;;  %520 = vmatpush2.bf16.msra.mxu1 %v2201_v42  ;;  %v2283_v41 = vld [vmem:[%s3247_s3 + $0x200] ss:$16 sps:$4 sm:$0xff]   ;;  %v2288_v42 = vld [vmem:[%s3247_s3 + $0x1e4] ss:$16 sps:$4 sm:$0xff]  }
  0x28   :  { %480 = vmatprep.subr.bf16.mxu0 %v2202_v43  ;;  %521 = vmatprep.subr.bf16.mxu1 %v2204_v44  ;;  %v2291_v43 = vld [vmem:[%s3247_s3 + $0x3e4] ss:$16 sps:$4 sm:$0xff]   ;;  %v2286_v44 = vld [vmem:[%s3247_s3 + $0x1e0] ss:$16 sps:$4 sm:$0xff]  }
  0x29   :  { %v2300_v51 = vld [vmem:[%s3247_s3 + $0x1a4] ss:$16 sps:$4 sm:$0xff]   ;;  %v2307_v58 = vld [vmem:[%s3247_s3 + $0x380] ss:$16 sps:$4 sm:$0xff]  }
  0x2a   :  { %v2303_v52 = vld [vmem:[%s3247_s3 + $0x3a4] ss:$16 sps:$4 sm:$0xff]  }
  0x2b   :  { %481 = vmatpush2.bf16.msra.mxu0 %v2206_v47  ;;  %522 = vmatpush2.bf16.msra.mxu1 %v2207_v48  ;;  %v2294_v47 = vld [vmem:[%s3247_s3 + $0x1c4] ss:$16 sps:$4 sm:$0xff]  }
  0x2c   :  { %482 = vmatprep.subr.bf16.mxu0 %v2208_v49  ;;  %523 = vmatprep.subr.bf16.mxu1 %v2210_v50  ;;  %v2297_v48 = vld [vmem:[%s3247_s3 + $0x3c4] ss:$16 sps:$4 sm:$0xff]   ;;  %v2292_v49 = vld [vmem:[%s3247_s3 + $0x1c0] ss:$16 sps:$4 sm:$0xff]  }
  0x2d   :  { %v2295_v50 = vld [vmem:[%s3247_s3 + $0x3c0] ss:$16 sps:$4 sm:$0xff]   ;;  %v2306_v55 = vld [vmem:[%s3247_s3 + $0x184] ss:$16 sps:$4 sm:$0xff]  }
  0x2f   :  { %483 = vmatpush2.bf16.msra.mxu0 %v2212_v53  ;;  %524 = vmatpush2.bf16.msra.mxu1 %v2213_v54  ;;  %v2298_v53 = vld [vmem:[%s3247_s3 + $0x1a0] ss:$16 sps:$4 sm:$0xff]  }
  0x30   :  { %484 = vmatprep.subr.bf16.mxu0 %v2214_v56  ;;  %525 = vmatprep.subr.bf16.mxu1 %v2216_v57  ;;  %v2301_v54 = vld [vmem:[%s3247_s3 + $0x3a0] ss:$16 sps:$4 sm:$0xff]   ;;  %v2309_v56 = vld [vmem:[%s3247_s3 + $0x384] ss:$16 sps:$4 sm:$0xff]  }
  0x31   :  { %v2304_v57 = vld [vmem:[%s3247_s3 + $0x180] ss:$16 sps:$4 sm:$0xff]  }
  0x33   :  { %485 = vmatpush2.bf16.msra.mxu0 %v2218_v59  ;;  %526 = vmatpush2.bf16.msra.mxu1 %v2219_v60  ;;  %v2312_v59 = vld [vmem:[%s3247_s3 + $0x164] ss:$16 sps:$4 sm:$0xff]  }
  0x34   :  { %486 = vmatprep.subr.bf16.mxu0 %v2220_v61  ;;  %527 = vmatprep.subr.bf16.mxu1 %v2222_v62  ;;  %v2315_v60 = vld [vmem:[%s3247_s3 + $0x364] ss:$16 sps:$4 sm:$0xff]   ;;  %v2310_v61 = vld [vmem:[%s3247_s3 + $0x160] ss:$16 sps:$4 sm:$0xff]  }
  0x35   :  { %v2313_v62 = vld [vmem:[%s3247_s3 + $0x360] ss:$16 sps:$4 sm:$0xff]  }
  0x37   :  { %487 = vmatpush2.bf16.msra.mxu0 %v2224_v63  ;;  %528 = vmatpush2.bf16.msra.mxu1 %v2225_v0  ;;  %v2318_v63 = vld [vmem:[%s3247_s3 + $0x144] ss:$16 sps:$4 sm:$0xff]  }
  0x38   :  { %488 = vmatprep.subr.bf16.mxu0 %v2226_v1  ;;  %529 = vmatprep.subr.bf16.mxu1 %v2228_v2  ;;  %v2321_v0 = vld [vmem:[%s3247_s3 + $0x344] ss:$16 sps:$4 sm:$0xff]   ;;  %v2316_v1 = vld [vmem:[%s3247_s3 + $0x140] ss:$16 sps:$4 sm:$0xff]  }
  0x39   :  { %v2319_v2 = vld [vmem:[%s3247_s3 + $0x340] ss:$16 sps:$4 sm:$0xff]  }
  0x3b   :  { %489 = vmatpush2.bf16.msra.mxu0 %v2230_v3  ;;  %530 = vmatpush2.bf16.msra.mxu1 %v2231_v4 }
  0x3c   :  { %490 = vmatprep.subr.bf16.mxu0 %v2232_v5  ;;  %531 = vmatprep.subr.bf16.mxu1 %v2234_v6 }
  0x3f   :  { %491 = vmatpush2.bf16.msra.mxu0 %v2236_v7  ;;  %532 = vmatpush2.bf16.msra.mxu1 %v2237_v8 }
  0x40   :  { %1340 = vmatprep.subr.bf16.mxu0 %v2240_v9  ;;  %1381 = vmatprep.subr.bf16.mxu1 %v2243_v10 }
  0x42   :  { %493 = vmatmul.mubr.bf16.vlgmr.msra.gmra.mxu0 %v130_v11  ;;  %534 = vmatmul.mubr.bf16.vlgmr.msra.gmra.mxu1 %v130_v11 }
  0x43   :  { %1341 = vmatpush1.bf16.msra.mxu0 %v2238_v12  ;;  %1382 = vmatpush1.bf16.msra.mxu1 %v2241_v13 }
  0x44   :  { %1342 = vmatprep.subr.bf16.mxu0 %v2246_v14  ;;  %1383 = vmatprep.subr.bf16.mxu1 %v2249_v15 }
  0x47   :  { %1343 = vmatpush1.bf16.msra.mxu0 %v2244_v16  ;;  %1384 = vmatpush1.bf16.msra.mxu1 %v2247_v17 }
  0x48   :  { %1344 = vmatprep.subr.bf16.mxu0 %v2252_v18  ;;  %1385 = vmatprep.subr.bf16.mxu1 %v2255_v19 }
  0x4b   :  { %1345 = vmatpush1.bf16.msra.mxu0 %v2250_v20  ;;  %1386 = vmatpush1.bf16.msra.mxu1 %v2253_v21 }
  0x4c   :  { %1346 = vmatprep.subr.bf16.mxu0 %v2258_v22  ;;  %1387 = vmatprep.subr.bf16.mxu1 %v2261_v23 }
  0x4f   :  { %1347 = vmatpush1.bf16.msra.mxu0 %v2256_v24  ;;  %1388 = vmatpush1.bf16.msra.mxu1 %v2259_v25 }
  0x50   :  { %1348 = vmatprep.subr.bf16.mxu0 %v2264_v26  ;;  %1389 = vmatprep.subr.bf16.mxu1 %v2267_v27 }
  0x53   :  { %1349 = vmatpush1.bf16.msra.mxu0 %v2262_v28  ;;  %1390 = vmatpush1.bf16.msra.mxu1 %v2265_v29 }
  0x54   :  { %1350 = vmatprep.subr.bf16.mxu0 %v2270_v30  ;;  %1391 = vmatprep.subr.bf16.mxu1 %v2273_v31 }
  0x57   :  { %1351 = vmatpush1.bf16.msra.mxu0 %v2268_v32  ;;  %1392 = vmatpush1.bf16.msra.mxu1 %v2271_v33 }
  0x58   :  { %1352 = vmatprep.subr.bf16.mxu0 %v2276_v34  ;;  %1393 = vmatprep.subr.bf16.mxu1 %v2279_v35 }
  0x5b   :  { %1353 = vmatpush1.bf16.msra.mxu0 %v2274_v36  ;;  %1394 = vmatpush1.bf16.msra.mxu1 %v2277_v37 }
  0x5c   :  { %1354 = vmatprep.subr.bf16.mxu0 %v2282_v38  ;;  %1395 = vmatprep.subr.bf16.mxu1 %v2285_v39 }
  0x5f   :  { %1355 = vmatpush1.bf16.msra.mxu0 %v2280_v40  ;;  %1396 = vmatpush1.bf16.msra.mxu1 %v2283_v41 }
  0x60   :  { %1356 = vmatprep.subr.bf16.mxu0 %v2288_v42  ;;  %1397 = vmatprep.subr.bf16.mxu1 %v2291_v43 }
  0x63   :  { %1357 = vmatpush2.bf16.msra.mxu0 %v2286_v44  ;;  %1398 = vmatpush2.bf16.msra.mxu1 %v2289_v46 }
  0x64   :  { %1358 = vmatprep.subr.bf16.mxu0 %v2294_v47  ;;  %1399 = vmatprep.subr.bf16.mxu1 %v2297_v48 }
  0x67   :  { %1359 = vmatpush2.bf16.msra.mxu0 %v2292_v49  ;;  %1400 = vmatpush2.bf16.msra.mxu1 %v2295_v50 }
  0x68   :  { %1360 = vmatprep.subr.bf16.mxu0 %v2300_v51  ;;  %1401 = vmatprep.subr.bf16.mxu1 %v2303_v52 }
  0x6b   :  { %1361 = vmatpush2.bf16.msra.mxu0 %v2298_v53  ;;  %1402 = vmatpush2.bf16.msra.mxu1 %v2301_v54 }
  0x6c   :  { %1362 = vmatprep.subr.bf16.mxu0 %v2306_v55  ;;  %1403 = vmatprep.subr.bf16.mxu1 %v2309_v56 }
  0x6f   :  { %1363 = vmatpush2.bf16.msra.mxu0 %v2304_v57  ;;  %1404 = vmatpush2.bf16.msra.mxu1 %v2307_v58 }
  0x70   :  { %1364 = vmatprep.subr.bf16.mxu0 %v2312_v59  ;;  %1405 = vmatprep.subr.bf16.mxu1 %v2315_v60 }
  0x73   :  { %1365 = vmatpush2.bf16.msra.mxu0 %v2310_v61  ;;  %1406 = vmatpush2.bf16.msra.mxu1 %v2313_v62 }
  0x74   :  { %1366 = vmatprep.subr.bf16.mxu0 %v2318_v63  ;;  %1407 = vmatprep.subr.bf16.mxu1 %v2321_v0 }
  0x77   :  { %1367 = vmatpush2.bf16.msra.mxu0 %v2316_v1  ;;  %1408 = vmatpush2.bf16.msra.mxu1 %v2319_v2 }
  0x78   :  { %12 = vsyncpa [#allocation3], 0  ;;  %v2324_v3 = vld [vmem:[%s3247_s3 + $0x124] ss:$16 sps:$4 sm:$0xff]   ;;  %v2322_v5 = vld [vmem:[%s3247_s3 + $0x120] ss:$16 sps:$4 sm:$0xff]  }
  0x79   :  { %v2327_v4 = vld [vmem:[%s3247_s3 + $0x324] ss:$16 sps:$4 sm:$0xff]   ;;  %v2325_v6 = vld [vmem:[%s3247_s3 + $0x320] ss:$16 sps:$4 sm:$0xff]   ;;  %1368 = vmatprep.subr.bf16.mxu0 %v2324_v3  ;;  %v2336_v11 = vld [vmem:[%s3247_s3 + $0xec] ss:$16 sps:$4 sm:$0xff]  }
  0x7a   :  { %1409 = vmatprep.subr.bf16.mxu1 %v2327_v4  ;;  %v2330_v7 = vld [vmem:[%s3247_s3 + $0x104] ss:$16 sps:$4 sm:$0xff]   ;;  %v2328_v9 = vld [vmem:[%s3247_s3 + $0x100] ss:$16 sps:$4 sm:$0xff]   ;;  %v2339_v12 = vld [vmem:[%s3247_s3 + $0x2ec] ss:$16 sps:$4 sm:$0xff]  }
  0x7b   :  { %1369 = vmatpush2.bf16.msra.mxu0 %v2322_v5  ;;  %1410 = vmatpush2.bf16.msra.mxu1 %v2325_v6  ;;  %v2333_v8 = vld [vmem:[%s3247_s3 + $0x304] ss:$16 sps:$4 sm:$0xff]   ;;  %v2331_v10 = vld [vmem:[%s3247_s3 + $0x300] ss:$16 sps:$4 sm:$0xff]   ;;  %v97_v13 = vsub.s32 0, %v2652_v45  ;;  %v105_v14 = vsub.s32 2, %v2652_v45 }
  0x7c   :  { %1370 = vmatprep.subr.bf16.mxu0 %v2330_v7  ;;  %1411 = vmatprep.subr.bf16.mxu1 %v2333_v8  ;;  %v93_v15 = vld [vmem:[%s3246_s2] sm:$0xf]  ;;  %v101_v16 = vsub.s32 1, %v2652_v45  ;;  %v109_v17 = vsub.s32 3, %v2652_v45  ;;  %v2334_v41 = vld [vmem:[%s3247_s3 + $0xe8] ss:$16 sps:$4 sm:$0xff]  }
  0x7d   :  { %v98_v18 = vrot.slane %v93_v15, %v97_v13  ;;  %v106_v19 = vrot.slane %v93_v15, %v105_v14  ;;  %v2337_v42 = vld [vmem:[%s3247_s3 + $0x2e8] ss:$16 sps:$4 sm:$0xff]   ;;  %v2342_v44 = vld [vmem:[%s3247_s3 + $0xcc] ss:$16 sps:$4 sm:$0xff]   ;;  %s2485_s26 = smov [#allocation2]  }
  0x7e   :  { %v102_v20 = vrot.slane %v93_v15, %v101_v16  ;;  %v110_v21 = vrot.slane %v93_v15, %v109_v17  ;;  %v2345_v46 = vld [vmem:[%s3247_s3 + $0x2cc] ss:$16 sps:$4 sm:$0xff]   ;;  %v2340_v47 = vld [vmem:[%s3247_s3 + $0xc8] ss:$16 sps:$4 sm:$0xff]   ;;  %s1862_s27 = sshll.u32 %s2485_s26, 4  ;;  %s1863_s27 = int_to_ptr.vmem [resolvable:$true] %s1862_s27 }
  0x7f   :  { %1371 = vmatpush2.bf16.msra.mxu0 %v2328_v9  ;;  %1412 = vmatpush2.bf16.msra.mxu1 %v2331_v10  ;;  %v2343_v48 = vld [vmem:[%s3247_s3 + $0x2c8] ss:$16 sps:$4 sm:$0xff]   ;;  %v2348_v49 = vld [vmem:[%s3247_s3 + $0xac] ss:$16 sps:$4 sm:$0xff]   ;;  %s2462_s28 = scalar_lea.vmem %s1863_s27, 32  ;;  %p2467_p1 = scmp.lt.s32.totalorder %s1863_s27, %s1863_s27 }
  0x80   :  { %1422 = vmatprep.subr.bf16.mxu0 %v2336_v11  ;;  %1463 = vmatprep.subr.bf16.mxu1 %v2339_v12  ;;  %v2351_v50 = vld [vmem:[%s3247_s3 + $0x2ac] ss:$16 sps:$4 sm:$0xff]   ;;  %v2346_v51 = vld [vmem:[%s3247_s3 + $0xa8] ss:$16 sps:$4 sm:$0xff]   ;;  %p2463_p0 = scmp.ne.s32.totalorder %s1863_s27, %s2462_s28  ;;  %p2468_p2 = scmp.lt.s32.totalorder %s2462_s28, %s2462_s28 }
  0x81   :  { %v2349_v52 = vld [vmem:[%s3247_s3 + $0x2a8] ss:$16 sps:$4 sm:$0xff]   ;;  %v2354_v53 = vld [vmem:[%s3247_s3 + $0x8c] ss:$16 sps:$4 sm:$0xff]  }
  0x82   :  { %v2357_v54 = vld [vmem:[%s3247_s3 + $0x28c] ss:$16 sps:$4 sm:$0xff]   ;;  %v2352_v55 = vld [vmem:[%s3247_s3 + $0x88] ss:$16 sps:$4 sm:$0xff]   ;;  %p2469_p3 = por %p2468_p2, %p2467_p1 }
  0x83   :  { %v2355_v56 = vld [vmem:[%s3247_s3 + $0x288] ss:$16 sps:$4 sm:$0xff]   ;;  %v2360_v57 = vld [vmem:[%s3247_s3 + $0x6c] ss:$16 sps:$4 sm:$0xff]  }
  0x84   :  { %v2363_v58 = vld [vmem:[%s3247_s3 + $0x26c] ss:$16 sps:$4 sm:$0xff]   ;;  %v2358_v59 = vld [vmem:[%s3247_s3 + $0x68] ss:$16 sps:$4 sm:$0xff]   ;;  %p2470_p4 = pnand %p2469_p3, %p2463_p0 }
  0x85   :  { %v2361_v60 = vld [vmem:[%s3247_s3 + $0x268] ss:$16 sps:$4 sm:$0xff]   ;;  %v2366_v61 = vld [vmem:[%s3247_s3 + $0x4c] ss:$16 sps:$4 sm:$0xff]  }
  0x86   :  { %v2369_v62 = vld [vmem:[%s3247_s3 + $0x24c] ss:$16 sps:$4 sm:$0xff]   ;;  %v2364_v63 = vld [vmem:[%s3247_s3 + $0x48] ss:$16 sps:$4 sm:$0xff]  }
  0x87   :  { %v2367_v0 = vld [vmem:[%s3247_s3 + $0x248] ss:$16 sps:$4 sm:$0xff]   ;;  %v2372_v1 = vld [vmem:[%s3247_s3 + $0x2c] ss:$16 sps:$4 sm:$0xff]  }
  0x88   :  { %v2375_v2 = vld [vmem:[%s3247_s3 + $0x22c] ss:$16 sps:$4 sm:$0xff]   ;;  %v2370_v3 = vld [vmem:[%s3247_s3 + $0x28] ss:$16 sps:$4 sm:$0xff]  }
  0x89   :  { %v2373_v4 = vld [vmem:[%s3247_s3 + $0x228] ss:$16 sps:$4 sm:$0xff]   ;;  %v2378_v5 = vld [vmem:[%s3247_s3 + $0xc] ss:$16 sps:$4 sm:$0xff]  }
  0x8a   :  { %v2381_v6 = vld [vmem:[%s3247_s3 + $0x20c] ss:$16 sps:$4 sm:$0xff]   ;;  %v2376_v7 = vld [vmem:[%s3247_s3 + $0x8] ss:$16 sps:$4 sm:$0xff]  }
  0x8b   :  { %v2379_v8 = vld [vmem:[%s3247_s3 + $0x208] ss:$16 sps:$4 sm:$0xff]   ;;  %v2384_v9 = vld [vmem:[%s3247_s3 + $0x1ec] ss:$16 sps:$4 sm:$0xff]  }
  0x8c   :  { %v2387_v10 = vld [vmem:[%s3247_s3 + $0x3ec] ss:$16 sps:$4 sm:$0xff]   ;;  %v2382_v11 = vld [vmem:[%s3247_s3 + $0x1e8] ss:$16 sps:$4 sm:$0xff]  }
  0x8d   :  { %v2385_v12 = vld [vmem:[%s3247_s3 + $0x3e8] ss:$16 sps:$4 sm:$0xff]   ;;  %v2390_v15 = vld [vmem:[%s3247_s3 + $0x1cc] ss:$16 sps:$4 sm:$0xff]  }
 0x102   :  { %v494_v22 = vpop.f32.mrf.mxu0  ;;  %v535_v23 = vpop.f32.mrf.mxu1 }
 0x103   :  { %v495_v24 = vadd.f32 %v494_v22, %v98_v18  ;;  %v536_v25 = vadd.f32 %v535_v23, %v106_v19  ;;  %v2393_v18 = vld [vmem:[%s3247_s3 + $0x3cc] ss:$16 sps:$4 sm:$0xff]   ;;  %v2388_v19 = vld [vmem:[%s3247_s3 + $0x1c8] ss:$16 sps:$4 sm:$0xff]  }
 0x104   :  { %v496_v26 = vpop.f32.mrf.mxu0  ;;  %v537_v27 = vpop.f32.mrf.mxu1  ;;  %v2399_v22 = vld [vmem:[%s3247_s3 + $0x3ac] ss:$16 sps:$4 sm:$0xff]   ;;  %v2394_v23 = vld [vmem:[%s3247_s3 + $0x1a8] ss:$16 sps:$4 sm:$0xff]  }
 0x105   :  { %v544_v28 = vmax.f32 %v536_v25, 0.0  ;;  %v497_v29 = vadd.f32 %v496_v26, %v102_v20  ;;  %v538_v30 = vadd.f32 %v537_v27, %v110_v21  ;;  %v542_v31 = vmax.f32 %v495_v24, 0.0  ;;  %v2391_v20 = vld [vmem:[%s3247_s3 + $0x3c8] ss:$16 sps:$4 sm:$0xff]   ;;  %v2396_v21 = vld [vmem:[%s3247_s3 + $0x1ac] ss:$16 sps:$4 sm:$0xff]  }
 0x106   :  { %v498_v32 = vpop.f32.mrf.mxu0  ;;  %v539_v33 = vpop.f32.mrf.mxu1  ;;  %v2397_v24 = vld [vmem:[%s3247_s3 + $0x3a8] ss:$16 sps:$4 sm:$0xff]   ;;  %v2402_v25 = vld [vmem:[%s3247_s3 + $0x18c] ss:$16 sps:$4 sm:$0xff]  }
 0x107   :  { %v543_v34 = vmax.f32 %v497_v29, 0.0  ;;  %v545_v35 = vmax.f32 %v538_v30, 0.0  ;;  %v2937_v36 = vpack.c.bf16 %v544_v28, %v544_v28  ;;  %v2945_v43 = vpack.c.bf16 %v542_v31, %v542_v31  ;;  %v2405_v26 = vld [vmem:[%s3247_s3 + $0x38c] ss:$16 sps:$4 sm:$0xff]   ;;  %v2400_v27 = vld [vmem:[%s3247_s3 + $0x188] ss:$16 sps:$4 sm:$0xff]  }
 0x108   :  { %v499_v37 = vpop.f32.mrf.mxu0  ;;  %v540_v38 = vpop.f32.mrf.mxu1  ;;  %v2403_v28 = vld [vmem:[%s3247_s3 + $0x388] ss:$16 sps:$4 sm:$0xff]   ;;  %v2408_v29 = vld [vmem:[%s3247_s3 + $0x16c] ss:$16 sps:$4 sm:$0xff]  }
 0x109   :  { %v547_v39 = vpack.c.bf16 %v543_v34, %v543_v34  ;;  %v549_v40 = vpack.c.bf16 %v545_v35, %v545_v35  ;;  %v2411_v30 = vld [vmem:[%s3247_s3 + $0x36c] ss:$16 sps:$4 sm:$0xff]   ;;  %v2406_v31 = vld [vmem:[%s3247_s3 + $0x168] ss:$16 sps:$4 sm:$0xff]  }
 0x10a   :  { %v2409_v32 = vld [vmem:[%s3247_s3 + $0x368] ss:$16 sps:$4 sm:$0xff]   ;;  %v2414_v33 = vld [vmem:[%s3247_s3 + $0x14c] ss:$16 sps:$4 sm:$0xff]  }
 0x10b   :  { %1372 = vmatprep.mubr.bf16.mxu0 %v547_v39  ;;  %1413 = vmatprep.mubr.bf16.mxu1 %v549_v40  ;;  %v2417_v34 = vld [vmem:[%s3247_s3 + $0x34c] ss:$16 sps:$4 sm:$0xff]   ;;  %v2412_v35 = vld [vmem:[%s3247_s3 + $0x148] ss:$16 sps:$4 sm:$0xff]  }
 0x10c   :  { %1373 = vmatmul.mubr.bf16.vlgmr.msra.gmra.mxu0 %v2945_v43  ;;  %1414 = vmatmul.mubr.bf16.vlgmr.msra.gmra.mxu1 %v2937_v36  ;;  %v2415_v37 = vld [vmem:[%s3247_s3 + $0x348] ss:$16 sps:$4 sm:$0xff]   ;;  %v2420_v38 = vld [vmem:[%s3247_s3 + $0x12c] ss:$16 sps:$4 sm:$0xff]  }
 0x10d   :  { %1423 = vmatpush1.bf16.msra.mxu0 %v2334_v41  ;;  %1464 = vmatpush1.bf16.msra.mxu1 %v2337_v42  ;;  %v2421_v41 = vld [vmem:[%s3247_s3 + $0x328] ss:$16 sps:$4 sm:$0xff]   ;;  %v2426_v42 = vld [vmem:[%s3247_s3 + $0x10c] ss:$16 sps:$4 sm:$0xff]  }
 0x10e   :  { %1454 = vmatprep.mubr.bf16.mxu0 %v547_v39  ;;  %1495 = vmatprep.mubr.bf16.mxu1 %v549_v40  ;;  %v2423_v39 = vld [vmem:[%s3247_s3 + $0x32c] ss:$16 sps:$4 sm:$0xff]   ;;  %v2418_v40 = vld [vmem:[%s3247_s3 + $0x128] ss:$16 sps:$4 sm:$0xff]  }
 0x10f   :  { %1424 = vmatprep.subr.bf16.mxu0 %v2342_v44  ;;  %1465 = vmatprep.subr.bf16.mxu1 %v2345_v46  ;;  %v2429_v44 = vld [vmem:[%s3247_s3 + $0x30c] ss:$16 sps:$4 sm:$0xff]   ;;  %v2424_v46 = vld [vmem:[%s3247_s3 + $0x108] ss:$16 sps:$4 sm:$0xff]  }
 0x111   :  { %1425 = vmatpush1.bf16.msra.mxu0 %v2340_v47  ;;  %1466 = vmatpush1.bf16.msra.mxu1 %v2343_v48  ;;  %v2427_v47 = vld [vmem:[%s3247_s3 + $0x308] ss:$16 sps:$4 sm:$0xff]  }
 0x112   :  { %1426 = vmatprep.subr.bf16.mxu0 %v2348_v49  ;;  %1467 = vmatprep.subr.bf16.mxu1 %v2351_v50  ;;  %v2430_v48 = vld [vmem:[%s3249_s5 + $0x78] sm:$0xff]   ;;  %v2432_v50 = vld [vmem:[%s3249_s5 + $0x70] sm:$0xff]  }
 0x113   :  { %v2431_v49 = vld [vmem:[%s3249_s5 + $0x38] sm:$0xff]  }
 0x115   :  { %1427 = vmatpush1.bf16.msra.mxu0 %v2346_v51  ;;  %1468 = vmatpush1.bf16.msra.mxu1 %v2349_v52  ;;  %v2433_v51 = vld [vmem:[%s3249_s5 + $0x30] sm:$0xff]   ;;  %v2434_v52 = vld [vmem:[%s3249_s5 + $0x68] sm:$0xff]  }
 0x116   :  { %1428 = vmatprep.subr.bf16.mxu0 %v2354_v53  ;;  %1469 = vmatprep.subr.bf16.mxu1 %v2357_v54  ;;  %v2435_v53 = vld [vmem:[%s3249_s5 + $0x28] sm:$0xff]   ;;  %v2438_v54 = vld [vmem:[%s3249_s5 + $0x58] sm:$0xff]  }
 0x119   :  { %1429 = vmatpush1.bf16.msra.mxu0 %v2352_v55  ;;  %1470 = vmatpush1.bf16.msra.mxu1 %v2355_v56  ;;  %v2446_v55 = vld [vmem:[%s3249_s5 + $0xf8] sm:$0xff]  }
 0x11a   :  { %1430 = vmatprep.subr.bf16.mxu0 %v2360_v57  ;;  %1471 = vmatprep.subr.bf16.mxu1 %v2363_v58  ;;  %v2447_v56 = vld [vmem:[%s3249_s5 + $0xb8] sm:$0xff]   ;;  %v2448_v57 = vld [vmem:[%s3249_s5 + $0xf0] sm:$0xff]  }
 0x11b   :  { %v2439_v58 = vld [vmem:[%s3249_s5 + $0x18] sm:$0xff]  }
 0x11d   :  { %1431 = vmatpush1.bf16.msra.mxu0 %v2358_v59  ;;  %1472 = vmatpush1.bf16.msra.mxu1 %v2361_v60  ;;  %v2440_v59 = vld [vmem:[%s3249_s5 + $0x50] sm:$0xff]  }
 0x11e   :  { %1432 = vmatprep.subr.bf16.mxu0 %v2366_v61  ;;  %1473 = vmatprep.subr.bf16.mxu1 %v2369_v62  ;;  %v2449_v60 = vld [vmem:[%s3249_s5 + $0xb0] sm:$0xff]   ;;  %v2450_v61 = vld [vmem:[%s3249_s5 + $0xe8] sm:$0xff]  }
 0x11f   :  { %v2441_v62 = vld [vmem:[%s3249_s5 + $0x10] sm:$0xff]  }
 0x121   :  { %1433 = vmatpush1.bf16.msra.mxu0 %v2364_v63  ;;  %1474 = vmatpush1.bf16.msra.mxu1 %v2367_v0  ;;  %v2442_v63 = vld [vmem:[%s3249_s5 + $0x48] sm:$0xff]  }
 0x122   :  { %1434 = vmatprep.subr.bf16.mxu0 %v2372_v1  ;;  %1475 = vmatprep.subr.bf16.mxu1 %v2375_v2  ;;  %v2451_v0 = vld [vmem:[%s3249_s5 + $0xa8] sm:$0xff]   ;;  %v2452_v1 = vld [vmem:[%s3249_s5 + $0xe0] sm:$0xff]  }
 0x123   :  { %v2443_v2 = vld [vmem:[%s3249_s5 + $0x8] sm:$0xff]  }
 0x125   :  { %1435 = vmatpush1.bf16.msra.mxu0 %v2370_v3  ;;  %1476 = vmatpush1.bf16.msra.mxu1 %v2373_v4  ;;  %v2444_v3 = vld [vmem:[%s3249_s5 + $0x40] sm:$0xff]  }
 0x126   :  { %1436 = vmatprep.subr.bf16.mxu0 %v2378_v5  ;;  %1477 = vmatprep.subr.bf16.mxu1 %v2381_v6  ;;  %v2453_v4 = vld [vmem:[%s3249_s5 + $0xa0] sm:$0xff]   ;;  %v2454_v5 = vld [vmem:[%s3249_s5 + $0xd8] sm:$0xff]  }
 0x127   :  { %v2445_v6 = vld [vmem:[%s3249_s5] sm:$0xff]  }
 0x129   :  { %1437 = vmatpush1.bf16.msra.mxu0 %v2376_v7  ;;  %1478 = vmatpush1.bf16.msra.mxu1 %v2379_v8  ;;  %v2455_v7 = vld [vmem:[%s3249_s5 + $0x98] sm:$0xff]   ;;  %v2456_v8 = vld [vmem:[%s3249_s5 + $0xd0] sm:$0xff]  }
 0x12a   :  { %1438 = vmatprep.subr.bf16.mxu0 %v2384_v9  ;;  %1479 = vmatprep.subr.bf16.mxu1 %v2387_v10  ;;  %v2457_v9 = vld [vmem:[%s3249_s5 + $0x90] sm:$0xff]   ;;  %v2458_v10 = vld [vmem:[%s3249_s5 + $0xc8] sm:$0xff]  }
 0x12d   :  { %1439 = vmatpush2.bf16.msra.mxu0 %v2382_v11  ;;  %1480 = vmatpush2.bf16.msra.mxu1 %v2385_v12  ;;  %v2459_v11 = vld [vmem:[%s3249_s5 + $0x88] sm:$0xff]   ;;  %v2460_v12 = vld [vmem:[%s3249_s5 + $0xc0] sm:$0xff]  }
 0x12e   :  { %1440 = vmatprep.subr.bf16.mxu0 %v2390_v15  ;;  %1481 = vmatprep.subr.bf16.mxu1 %v2393_v18  ;;  %v2461_v15 = vld [vmem:[%s3249_s5 + $0x80] sm:$0xff]  }
 0x12f   :  { %v678_v18 = vld [vmem:[%s3248_s4] sm:$0xf] }
 0x131   :  { %1441 = vmatpush2.bf16.msra.mxu0 %v2388_v19  ;;  %1482 = vmatpush2.bf16.msra.mxu1 %v2391_v20  ;;  %v683_v19 = vrot.slane %v678_v18, %v97_v13  ;;  %v687_v20 = vrot.slane %v678_v18, %v101_v16  ;;  %v691_v13 = vrot.slane %v678_v18, %v105_v14 }
 0x132   :  { %1442 = vmatprep.subr.bf16.mxu0 %v2396_v21  ;;  %1483 = vmatprep.subr.bf16.mxu1 %v2399_v22  ;;  %v695_v16 = vrot.slane %v678_v18, %v109_v17 }
 0x135   :  { %1443 = vmatpush2.bf16.msra.mxu0 %v2394_v23  ;;  %1484 = vmatpush2.bf16.msra.mxu1 %v2397_v24 }
 0x136   :  { %1444 = vmatprep.subr.bf16.mxu0 %v2402_v25  ;;  %1485 = vmatprep.subr.bf16.mxu1 %v2405_v26 }
 0x139   :  { %1445 = vmatpush2.bf16.msra.mxu0 %v2400_v27  ;;  %1486 = vmatpush2.bf16.msra.mxu1 %v2403_v28 }
 0x13a   :  { %1446 = vmatprep.subr.bf16.mxu0 %v2408_v29  ;;  %1487 = vmatprep.subr.bf16.mxu1 %v2411_v30 }
 0x13d   :  { %1447 = vmatpush2.bf16.msra.mxu0 %v2406_v31  ;;  %1488 = vmatpush2.bf16.msra.mxu1 %v2409_v32 }
 0x13e   :  { %1448 = vmatprep.subr.bf16.mxu0 %v2414_v33  ;;  %1489 = vmatprep.subr.bf16.mxu1 %v2417_v34 }
 0x141   :  { %1449 = vmatpush2.bf16.msra.mxu0 %v2412_v35  ;;  %1490 = vmatpush2.bf16.msra.mxu1 %v2415_v37 }
 0x142   :  { %1450 = vmatprep.subr.bf16.mxu0 %v2420_v38  ;;  %1491 = vmatprep.subr.bf16.mxu1 %v2423_v39 }
 0x145   :  { %1451 = vmatpush2.bf16.msra.mxu0 %v2418_v40  ;;  %1492 = vmatpush2.bf16.msra.mxu1 %v2421_v41 }
 0x146   :  { %1452 = vmatprep.subr.bf16.mxu0 %v2426_v42  ;;  %1493 = vmatprep.subr.bf16.mxu1 %v2429_v44 }
 0x149   :  { %1453 = vmatpush2.bf16.msra.mxu0 %v2424_v46  ;;  %1494 = vmatpush2.bf16.msra.mxu1 %v2427_v47 }
 0x14a   :  { %2096 = vmatprep.subr.bf16.mxu0 %v2430_v48  ;;  %2118 = vmatprep.subr.bf16.mxu1 %v2446_v55 }
 0x14c   :  { %1455 = vmatmul.mubr.bf16.vlgmr.msra.gmra.mxu0 %v2945_v43  ;;  %1496 = vmatmul.mubr.bf16.vlgmr.msra.gmra.mxu1 %v2937_v36  ;;  %v2436_v36 = vld [vmem:[%s3249_s5 + $0x60] sm:$0xff]  }
 0x14d   :  { %2097 = vmatpush3.bf16.msra.mxu0 %v2431_v49  ;;  %v2437_v43 = vld [vmem:[%s3249_s5 + $0x20] sm:$0xff]   ;;  %2119 = vmatpush3.bf16.msra.mxu1 %v2447_v56 }
 0x14e   :  { %2098 = vmatprep.subr.bf16.mxu0 %v2432_v50  ;;  %2120 = vmatprep.subr.bf16.mxu1 %v2448_v57  ;;  %v2063_v56 = vld [vmem:[%s3250_s6] ss:$0 sm:$0xff] }
 0x151   :  { %2099 = vmatpush3.bf16.msra.mxu0 %v2433_v51  ;;  %2121 = vmatpush3.bf16.msra.mxu1 %v2449_v60 }
 0x152   :  { %2100 = vmatprep.subr.bf16.mxu0 %v2434_v52  ;;  %2122 = vmatprep.subr.bf16.mxu1 %v2450_v61 }
 0x155   :  { %2101 = vmatpush3.bf16.msra.mxu0 %v2435_v53  ;;  %2123 = vmatpush3.bf16.msra.mxu1 %v2451_v0 }
 0x156   :  { %2102 = vmatprep.subr.bf16.mxu0 %v2436_v36  ;;  %2124 = vmatprep.subr.bf16.mxu1 %v2452_v1 }
 0x159   :  { %2103 = vmatpush3.bf16.msra.mxu0 %v2437_v43  ;;  %2125 = vmatpush3.bf16.msra.mxu1 %v2453_v4 }
 0x15a   :  { %2104 = vmatprep.subr.bf16.mxu0 %v2438_v54  ;;  %2126 = vmatprep.subr.bf16.mxu1 %v2454_v5 }
 0x15d   :  { %2105 = vmatpush3.bf16.msra.mxu0 %v2439_v58  ;;  %2127 = vmatpush3.bf16.msra.mxu1 %v2455_v7 }
 0x15e   :  { %2106 = vmatprep.subr.bf16.mxu0 %v2440_v59  ;;  %2128 = vmatprep.subr.bf16.mxu1 %v2456_v8 }
 0x161   :  { %2107 = vmatpush3.bf16.msra.mxu0 %v2441_v62  ;;  %2129 = vmatpush3.bf16.msra.mxu1 %v2457_v9 }
 0x162   :  { %2108 = vmatprep.subr.bf16.mxu0 %v2442_v63  ;;  %2130 = vmatprep.subr.bf16.mxu1 %v2458_v10 }
 0x165   :  { %2109 = vmatpush3.bf16.msra.mxu0 %v2443_v2  ;;  %2131 = vmatpush3.bf16.msra.mxu1 %v2459_v11 }
 0x166   :  { %2110 = vmatprep.subr.bf16.mxu0 %v2444_v3  ;;  %2132 = vmatprep.subr.bf16.mxu1 %v2460_v12 }
 0x169   :  { %2111 = vmatpush3.bf16.msra.mxu0 %v2445_v6  ;;  %2133 = vmatpush3.bf16.msra.mxu1 %v2461_v15 }
 0x1cc   :  { %v1374_v21 = vpop.f32.mrf.mxu0  ;;  %v1415_v22 = vpop.f32.mrf.mxu1 }
 0x1cd   :  { %v1375_v23 = vadd.f32 %v1374_v21, %v683_v19 }
 0x1ce   :  { %v1376_v24 = vpop.f32.mrf.mxu0  ;;  %v1417_v25 = vpop.f32.mrf.mxu1 }
 0x1cf   :  { %v1416_v26 = vadd.f32 %v1415_v22, %v1375_v23  ;;  %v1377_v27 = vadd.f32 %v1376_v24, %v687_v20 }
 0x1d0   :  { %v1378_v28 = vpop.f32.mrf.mxu0  ;;  %v1419_v29 = vpop.f32.mrf.mxu1 }
 0x1d1   :  { %v1418_v30 = vadd.f32 %v1417_v25, %v1377_v27  ;;  %v1504_v31 = vmax.f32 %v1416_v26, 0.0 }
 0x1d2   :  { %v1379_v32 = vpop.f32.mrf.mxu0  ;;  %v1420_v33 = vpop.f32.mrf.mxu1 }
 0x1d3   :  { %v1505_v34 = vmax.f32 %v1418_v30, 0.0  ;;  %v1508_v37 = vpack.c.bf16 %v1504_v31, %v1504_v31 }
 0x1d5   :  { %v1509_v35 = vpack.c.bf16 %v1505_v34, %v1505_v34 }
 0x1d7   :  { %1807 = vmatprep.mubr.bf16.mxu0 %v1509_v35 }
 0x1d8   :  { %1808 = vmatmul.mubr.bf16.vlgmr.msra.gmra.mxu0 %v1508_v37 }
 0x20c   :  { %v1456_v38 = vpop.f32.mrf.mxu0  ;;  %v1497_v39 = vpop.f32.mrf.mxu1 }
 0x20d   :  { %v1457_v40 = vadd.f32 %v1456_v38, %v691_v13 }
 0x20e   :  { %v1458_v41 = vpop.f32.mrf.mxu0  ;;  %v1499_v42 = vpop.f32.mrf.mxu1 }
 0x20f   :  { %v1498_v44 = vadd.f32 %v1497_v39, %v1457_v40  ;;  %v1459_v46 = vadd.f32 %v1458_v41, %v695_v16 }
 0x210   :  { %v1460_v47 = vpop.f32.mrf.mxu0  ;;  %v1501_v48 = vpop.f32.mrf.mxu1 }
 0x211   :  { %v1500_v49 = vadd.f32 %v1499_v42, %v1459_v46  ;;  %v1506_v50 = vmax.f32 %v1498_v44, 0.0 }
 0x212   :  { %v1461_v51 = vpop.f32.mrf.mxu0  ;;  %v1502_v52 = vpop.f32.mrf.mxu1 }
 0x213   :  { %v1507_v53 = vmax.f32 %v1500_v49, 0.0  ;;  %v1510_v43 = vpack.c.bf16 %v1506_v50, %v1506_v50 }
 0x215   :  { %v1511_v36 = vpack.c.bf16 %v1507_v53, %v1507_v53 }
 0x217   :  { %1847 = vmatprep.mubr.bf16.mxu1 %v1511_v36 }
 0x218   :  { %1848 = vmatmul.mubr.bf16.vlgmr.msra.gmra.mxu1 %v1510_v43 }
 0x298   :  { %v2112_v45 = vpop.f32.mrf.mxu0 }
 0x29a   :  { %v2113_v14 = vpop.f32.mrf.mxu0 }
 0x29b   :  { %v2114_v55 = vadd.f32 %v2113_v14, %v2112_v45 }
 0x29c   :  { %v2115_v17 = vpop.f32.mrf.mxu0 }
 0x29d   :  { %v1810_v59 = vadd.f32 %v2114_v55, %v2063_v56 }
 0x29e   :  { %v2116_v54 = vpop.f32.mrf.mxu0 }
 0x2d8   :  { %v2134_v57 = vpop.f32.mrf.mxu1 }
 0x2da   :  { %v2135_v58 = vpop.f32.mrf.mxu1 }
 0x2db   :  { %v2136_v60 = vadd.f32 %v2135_v58, %v2134_v57 }
 0x2dc   :  { %v2137_v61 = vpop.f32.mrf.mxu1 }
 0x2dd   :  { %v1850_v62 = vadd.f32 %v2136_v60, %v1810_v59 }
 0x2de   :  { %v2138_v63 = vpop.f32.mrf.mxu1 }
 0x2df   :  { %1855 = vst [vmem:[#allocation2] sm:$0x3] %v1850_v62 }
 0x2e0   :  { %2473 = shalt.err (!%p2470_p4)
}
 0x2e1   :  { %1865 = dma.vmem_to_hbm [thread:$0]  %s1863_s27, 32, %s3251_s7, [#allocation3]  }
 0x2e2   :  { %2482 = dma.done.wait [#allocation3], 32  }
 0x2e3   :  { %2483 = vsyncadd [#allocation3], 4294967264 }
 0x2e4   :  { %1869 = vsyncpa [#allocation3], 1 }

</bundles_post_ra>
